<compile_context>
chip_gen: v6e
topology: v6e:2x2x1
jax: 0.10.0
libtpu: 0.0.40
codegen_flags: <defaults>
</compile_context>

<pallas_src>
import functools

import jax
import jax.numpy as jnp
from jax.experimental import pallas as pl
from jax.experimental.pallas import tpu as pltpu

# ---- constants from TDFbanks.__init__ --------------------------------------
WLEN = 25
WSTRIDE_MS = 10
SAMPLERATE = 8000
NFILTERS = 40
WINDOW_SIZE = SAMPLERATE * WLEN // 1000 + 1        # 201 (K)
WINDOW_STRIDE = SAMPLERATE * WSTRIDE_MS // 1000    # 80
PADDING = (WINDOW_SIZE - 1) // 2                   # 100
EPS = 1e-5                                         # InstanceNorm1d default eps

K = WINDOW_SIZE
STR = WINDOW_STRIDE
F2 = 2 * NFILTERS          # 80 fused conv channels (real || imag)
KPAD = 3 * STR             # 240: lowpass kernel zero-padded to 3 stride chunks
W4 = 4 * STR               # 320: samples spanned by one tile row-group window
NLANES = STR * F2          # 6400: conv-output lanes, f2-major (col = f2*80 + d)
NLH = STR * NFILTERS       # 3200: lanes per real|imag half (3200 = 25*128, aligned)
NLP = 3 * NFILTERS         # 120: fused lowpass output lanes (col = c*40 + f)


def _round_up(x, m):
    return (x + m - 1) // m * m


# ---- Pallas kernel ----------------------------------------------------------
def _tdfbanks_kernel(sig_ref, wt_ref, rlp_ref, out_ref, y_sc, *, TL, NLT, L):
    # sig_ref: (NR, 80)    f32  padded preemphasized signal, reshaped by stride 80
    # wt_ref : (320, 6400) bf16 Toeplitz complex-conv weights, f2-major columns
    # rlp_ref: (3200, 120) bf16 fused depthwise-lowpass-as-matmul weights
    # out_ref: (40, L)     f32  lane-dense (filters, time) output
    # y_sc   : (LP, 40)    f32  un-normalized log energies (time-major staging)
    NJ = TL + 2                              # conv row-groups per tile (+2 halo)

    def tile(t, carry):
        l0 = pl.multiple_of(t * TL, 8)       # TL % 8 == 0 -> sublane-aligned start
        # Contiguous signal rows; row j holds samples [j*80, (j+1)*80).
        blk = sig_ref[pl.ds(l0, NJ + 3), :].astype(jnp.bfloat16)    # (NJ+3, 80)
        # s4[j, s] = signal[(l0+j)*80 + s], s in [0, 320): on-chip framing.
        s4 = jnp.concatenate([blk[c:c + NJ, :] for c in range(4)], axis=1)
        # One MXU matmul == stride-1 complex_conv for all 80 in-row offsets d:
        #   cc[j, f2*80 + d] = conv output at time (l0+j)*80 + d, fused channel f2
        cc = jnp.dot(s4, wt_ref[...], preferred_element_type=jnp.float32)
        # Squared modulus on the VPU (128-aligned lane split; no shuffle):
        #   modsq[j, f*80 + d] = cc_real^2 + cc_imag^2  (== avg_pool1d(x^2,2,2)*2)
        modsq = cc[:, :NLH] * cc[:, :NLH] + cc[:, NLH:] * cc[:, NLH:]
        # Depthwise lowpass (K=201 zero-padded to 240 = 3 stride chunks) as a
        # single bf16 matmul; chunk c lands in output lanes [c*40, (c+1)*40).
        lp = jnp.dot(modsq.astype(jnp.bfloat16), rlp_ref[...],
                     preferred_element_type=jnp.float32)            # (NJ, 120)
        z = (lp[0:TL, 0:NFILTERS]
             + lp[1:TL + 1, NFILTERS:2 * NFILTERS]
             + lp[2:TL + 2, 2 * NFILTERS:3 * NFILTERS])              # (TL, 40)
        y_sc[pl.ds(l0, TL), :] = jnp.log(jnp.abs(z) + 1.0)
        return carry

    jax.lax.fori_loop(0, NLT, tile, 0)

    # InstanceNorm1d (affine=False, biased variance) over the L *valid* frames only
    # (slack frames in [L, LP) were computed on zero-padding and must be excluded
    # from the statistics), then one lane-dense (NFILTERS, L) store.
    y = y_sc[pl.ds(0, L), :]                                         # (L, 40)
    mean = jnp.mean(y, axis=0, keepdims=True)
    var = jnp.mean((y - mean) * (y - mean), axis=0, keepdims=True)
    yn = (y - mean) * jax.lax.rsqrt(var + EPS)
    out_ref[...] = jnp.transpose(yn, (1, 0))                         # (40, L)


# ---- wrapper ----------------------------------------------------------------
def tdfbanks_forward(x, w_pre, w_cc, w_lp, *, max_frame_tile=256):
    """x: (B, 1, T) float32.  Returns (B, NFILTERS, L), matching the nn.Module."""
    B, _, T = x.shape
    xs = x[:, 0, :].astype(jnp.float32)

    # preemp: Conv1d(1, 1, 2, stride=1, padding=1, bias=False) -> length T + 1
    xp = jnp.pad(xs, ((0, 0), (1, 1)))
    wp = w_pre.reshape(-1).astype(jnp.float32)
    y = wp[0] * xp[:, :-1] + wp[1] * xp[:, 1:]                       # (B, T_out)
    T_out = T + 1

    L = (T_out - WINDOW_SIZE) // WINDOW_STRIDE + 1                   # output frames
    max_frame_tile = max(8, _round_up(max_frame_tile, 8))            # keep TL % 8 == 0
    TL = min(max_frame_tile, _round_up(L, 8))                        # frames per tile
    NLT = (L + TL - 1) // TL
    LP = NLT * TL
    NR = LP + 5                                                      # stride-80 rows

    # Zero-pad (complex_conv padding=100 + tile slack) and reshape by the lowpass
    # stride: HBM holds exactly one copy of the signal (no im2col inflation).
    right = NR * STR - (T_out + PADDING)
    sig = jnp.pad(y, ((0, 0), (PADDING, right))).reshape(B, NR, STR)

    # Fused complex-conv filterbank, (K, 80): cols [0,40) = even (real) channels,
    # cols [40,80) = odd (imag) channels of the PyTorch complex_conv weight.
    wcc = jnp.concatenate([jnp.transpose(w_cc[0::2, 0, :].astype(jnp.float32)),
                           jnp.transpose(w_cc[1::2, 0, :].astype(jnp.float32))],
                          axis=1)                                    # (K, 80)

    # Toeplitz conv weights, f2-major columns:
    #   WT[s, f2*80 + d] = wcc[s - d, f2]  for 0 <= s - d < K, else 0.
    s_idx = jnp.arange(W4)[:, None]
    d_idx = jnp.arange(STR)[None, :]
    k_rel = s_idx - d_idx                                            # (320, 80)
    valid = (k_rel >= 0) & (k_rel < K)
    wt_sdf = jnp.where(valid[:, :, None],
                       wcc[jnp.clip(k_rel, 0, K - 1)], 0.0)          # (s, d, f2)
    wt = jnp.transpose(wt_sdf, (0, 2, 1)).reshape(W4, NLANES)        # (s, f2*80+d)
    wt = wt.astype(jnp.bfloat16)

    # Fused lowpass-as-matmul weights (bf16, lane-dense):
    #   RLP[f*80 + d, c*40 + f'] = wlp_pad[f, c*80 + d] if f == f' else 0.
    wlp_pad = jnp.pad(w_lp[:, 0, :].astype(jnp.float32),
                      ((0, 0), (0, KPAD - K)))                       # (40, 240)
    wlp_fcd = wlp_pad.reshape(NFILTERS, 3, STR)                      # (f, c, d)
    eye = jnp.eye(NFILTERS, dtype=jnp.float32)
    rlp = wlp_fcd[:, :, :, None] * eye[:, None, None, :]             # (f, c, d, f')
    rlp = jnp.transpose(rlp, (0, 2, 1, 3)).reshape(NLH, NLP)         # (3200, 120)
    rlp = rlp.astype(jnp.bfloat16)

    kernel = functools.partial(_tdfbanks_kernel, TL=TL, NLT=NLT, L=L)
    out = pl.pallas_call(
        kernel,
        out_shape=jax.ShapeDtypeStruct((B, NFILTERS, L), jnp.float32),
        grid_spec=pltpu.PrefetchScalarGridSpec(
            num_scalar_prefetch=0,
            grid=(B,),
            in_specs=[
                pl.BlockSpec((None, NR, STR), lambda b: (b, 0, 0)),
                # constant index maps -> weights DMA'd once, stay VMEM-resident
                pl.BlockSpec((W4, NLANES), lambda b: (0, 0)),
                pl.BlockSpec((NLH, NLP), lambda b: (0, 0)),
            ],
            out_specs=pl.BlockSpec((None, NFILTERS, L), lambda b: (b, 0, 0)),
            scratch_shapes=[pltpu.VMEM((LP, NFILTERS), jnp.float32)],
        ),
        compiler_params=pltpu.CompilerParams(
            dimension_semantics=("parallel",),
            vmem_limit_bytes=48 * 1024 * 1024),
    )(sig, wt, rlp)
    return out


# ---- pure-JAX reference (test-only; builds im2col in HBM, full f32) ---------
def tdfbanks_ref(x, w_pre, w_cc, w_lp):
    hi = jax.lax.Precision.HIGHEST
    B, _, T = x.shape
    xs = x[:, 0, :].astype(jnp.float32)
    xp = jnp.pad(xs, ((0, 0), (1, 1)))
    wp = w_pre.reshape(-1)
    y = wp[0] * xp[:, :-1] + wp[1] * xp[:, 1:]
    T_out = T + 1
    y_pad = jnp.pad(y, ((0, 0), (PADDING, PADDING)))
    idx = jnp.arange(T_out)[:, None] + jnp.arange(WINDOW_SIZE)[None, :]
    frames = y_pad[:, idx]                                           # (B, T_out, K)
    cc = jnp.einsum("btk,fk->bft", frames, w_cc[:, 0, :], precision=hi)
    m = cc[:, 0::2, :] ** 2 + cc[:, 1::2, :] ** 2                    # (B, F, T_out)
    L = (T_out - WINDOW_SIZE) // WINDOW_STRIDE + 1
    z = jnp.stack(
        [jnp.einsum("bfk,fk->bf",
                    m[:, :, l * WINDOW_STRIDE: l * WINDOW_STRIDE + WINDOW_SIZE],
                    w_lp[:, 0, :], precision=hi)
         for l in range(L)],
        axis=-1)                                                     # (B, F, L)
    yv = jnp.log(jnp.abs(z) + 1.0)
    mean = jnp.mean(yv, axis=-1, keepdims=True)
    var = jnp.mean((yv - mean) ** 2, axis=-1, keepdims=True)
    return (yv - mean) / jnp.sqrt(var + EPS)


if __name__ == "__main__":
    key = jax.random.PRNGKey(0)
    k_x, k_pre, k_cc, k_lp = jax.random.split(key, 4)

    B, T = 2, 2000                       # 0.25 s @ 8 kHz per item -> L = 23 frames
    x = jax.random.normal(k_x, (B, 1, T), dtype=jnp.float32)

    # deterministic synthetic parameters (same shapes as the nn.Module weights)
    w_pre = jax.random.normal(k_pre, (1, 1, 2), dtype=jnp.float32) * 0.5
    w_cc = jax.random.normal(k_cc, (2 * NFILTERS, 1, WINDOW_SIZE),
                             dtype=jnp.float32) * (1.0 / jnp.sqrt(WINDOW_SIZE))
    w_lp = jax.random.normal(k_lp, (NFILTERS, 1, WINDOW_SIZE),
                             dtype=jnp.float32) * (1.0 / jnp.sqrt(WINDOW_SIZE))

    out = jax.block_until_ready(tdfbanks_forward(x, w_pre, w_cc, w_lp))
    ref = jax.block_until_ready(tdfbanks_ref(x, w_pre, w_cc, w_lp))

    assert out.shape == ref.shape, (out.shape, ref.shape)
    err = float(jnp.max(jnp.abs(out - ref)))
    # Tolerance accounts for the two review-endorsed bf16 MXU stages (Toeplitz conv
    # and lowpass, both with f32 accumulation) amplified by InstanceNorm's 1/sigma
    # over only L=23 frames.
    assert bool(jnp.allclose(out, ref, atol=7.5e-2, rtol=7.5e-2)), err
    print("KERNEL_OK")
</pallas_src>

<mosaic_0001>
module attributes {stable_mosaic.version = 11 : i64} {
  func.func @_tdfbanks_kernel(%arg0: i32, %arg1: memref<1x29x80xf32, #tpu.memory_space<vmem>>, %arg2: memref<320x6400xbf16, #tpu.memory_space<vmem>>, %arg3: memref<3200x120xbf16, #tpu.memory_space<vmem>>, %arg4: memref<1x40x23xf32, #tpu.memory_space<vmem>>, %arg5: memref<24x40xf32, #tpu.memory_space<vmem>>) attributes {dimension_semantics = [#tpu.dimension_semantics<parallel>], iteration_bounds = array<i64: 2>, scalar_prefetch = 0 : i64, scratch_operands = 1 : i64, tpu.core_type = #tpu.core_type<tc>, window_params = [{transform_indices = @transform_0, window_bounds = array<i64: 1, 29, 80>}, {pipeline_mode = #tpu.pipeline_mode<synchronous>, transform_indices = @transform_1, window_bounds = array<i64: 320, 6400>}, {pipeline_mode = #tpu.pipeline_mode<synchronous>, transform_indices = @transform_2, window_bounds = array<i64: 3200, 120>}, {transform_indices = @transform_3, window_bounds = array<i64: 1, 40, 23>}]} {
    %c0_i32 = arith.constant 0 : i32
    %c24_i32 = arith.constant 24 : i32
    %0 = arith.muli %c0_i32, %c24_i32 : i32
    %1 = tpu.assume_multiple %0, 8 : i32
    %c0 = arith.constant 0 : index
    %2 = arith.index_cast %1 : i32 to index
    %c0_0 = arith.constant 0 : index
    %3 = vector.load %arg1[%c0, %2, %c0_0] : memref<1x29x80xf32, #tpu.memory_space<vmem>>, vector<1x29x80xf32>
    %4 = vector.shape_cast %3 : vector<1x29x80xf32> to vector<29x80xf32>
    %5 = arith.truncf %4 : vector<29x80xf32> to vector<29x80xbf16>
    %6 = vector.extract_strided_slice %5 {offsets = [0, 0], sizes = [26, 80], strides = [1, 1]} : vector<29x80xbf16> to vector<26x80xbf16>
    %7 = vector.extract_strided_slice %5 {offsets = [1, 0], sizes = [26, 80], strides = [1, 1]} : vector<29x80xbf16> to vector<26x80xbf16>
    %8 = vector.extract_strided_slice %5 {offsets = [2, 0], sizes = [26, 80], strides = [1, 1]} : vector<29x80xbf16> to vector<26x80xbf16>
    %9 = vector.extract_strided_slice %5 {offsets = [3, 0], sizes = [26, 80], strides = [1, 1]} : vector<29x80xbf16> to vector<26x80xbf16>
    %10 = tpu.concatenate %6, %7, %8, %9 in 1 : vector<26x80xbf16>, vector<26x80xbf16>, vector<26x80xbf16>, vector<26x80xbf16> -> vector<26x320xbf16>
    %c0_1 = arith.constant 0 : index
    %c0_2 = arith.constant 0 : index
    %11 = vector.load %arg2[%c0_1, %c0_2] : memref<320x6400xbf16, #tpu.memory_space<vmem>>, vector<320x6400xbf16>
    %cst = arith.constant dense<0.000000e+00> : vector<26x6400xf32>
    %12 = tpu.matmul %10, %11, %cst {dimension_numbers = #tpu.dot_dimension_numbers<[1], [0], [0], [1], [0, 0, 1, 1], [], []>} : vector<26x320xbf16>, vector<320x6400xbf16>, vector<26x6400xf32> -> vector<26x6400xf32>
    %13 = vector.extract_strided_slice %12 {offsets = [0, 0], sizes = [26, 3200], strides = [1, 1]} : vector<26x6400xf32> to vector<26x3200xf32>
    %14 = vector.extract_strided_slice %12 {offsets = [0, 0], sizes = [26, 3200], strides = [1, 1]} : vector<26x6400xf32> to vector<26x3200xf32>
    %15 = arith.mulf %13, %14 : vector<26x3200xf32>
    %16 = vector.extract_strided_slice %12 {offsets = [0, 3200], sizes = [26, 3200], strides = [1, 1]} : vector<26x6400xf32> to vector<26x3200xf32>
    %17 = vector.extract_strided_slice %12 {offsets = [0, 3200], sizes = [26, 3200], strides = [1, 1]} : vector<26x6400xf32> to vector<26x3200xf32>
    %18 = arith.mulf %16, %17 : vector<26x3200xf32>
    %19 = arith.addf %15, %18 : vector<26x3200xf32>
    %20 = arith.truncf %19 : vector<26x3200xf32> to vector<26x3200xbf16>
    %c0_3 = arith.constant 0 : index
    %c0_4 = arith.constant 0 : index
    %21 = vector.load %arg3[%c0_3, %c0_4] : memref<3200x120xbf16, #tpu.memory_space<vmem>>, vector<3200x120xbf16>
    %cst_5 = arith.constant dense<0.000000e+00> : vector<26x120xf32>
    %22 = tpu.matmul %20, %21, %cst_5 {dimension_numbers = #tpu.dot_dimension_numbers<[1], [0], [0], [1], [0, 0, 1, 1], [], []>} : vector<26x3200xbf16>, vector<3200x120xbf16>, vector<26x120xf32> -> vector<26x120xf32>
    %23 = vector.extract_strided_slice %22 {offsets = [0, 0], sizes = [24, 40], strides = [1, 1]} : vector<26x120xf32> to vector<24x40xf32>
    %24 = vector.extract_strided_slice %22 {offsets = [1, 40], sizes = [24, 40], strides = [1, 1]} : vector<26x120xf32> to vector<24x40xf32>
    %25 = arith.addf %23, %24 : vector<24x40xf32>
    %26 = vector.extract_strided_slice %22 {offsets = [2, 80], sizes = [24, 40], strides = [1, 1]} : vector<26x120xf32> to vector<24x40xf32>
    %27 = arith.addf %25, %26 : vector<24x40xf32>
    %28 = math.absf %27 : vector<24x40xf32>
    %cst_6 = arith.constant 1.000000e+00 : f32
    %29 = vector.broadcast %cst_6 : f32 to vector<24x40xf32>
    %30 = arith.addf %28, %29 : vector<24x40xf32>
    %31 = math.log %30 : vector<24x40xf32>
    %32 = arith.index_cast %1 : i32 to index
    %c0_7 = arith.constant 0 : index
    %33 = vector.load %arg5[%32, %c0_7] : memref<24x40xf32, #tpu.memory_space<vmem>>, vector<24x40xf32>
    tpu.vector_store %arg5[%32, %c0_7], %31 {strides = array<i32>} : memref<24x40xf32, #tpu.memory_space<vmem>>, vector<24x40xf32>,
    %c1_i32 = arith.constant 1 : i32
    %c0_8 = arith.constant 0 : index
    %c0_9 = arith.constant 0 : index
    %34 = vector.load %arg5[%c0_8, %c0_9] : memref<24x40xf32, #tpu.memory_space<vmem>>, vector<23x40xf32>
    %cst_10 = arith.constant dense<0.000000e+00> : vector<40xf32>
    %35 = vector.multi_reduction <add>, %34, %cst_10 [0] : vector<23x40xf32> to vector<40xf32>
    %36 = vector.shape_cast %35 : vector<40xf32> to vector<1x40xf32>
    %cst_11 = arith.constant 2.300000e+01 : f32
    %37 = vector.broadcast %cst_11 : f32 to vector<1x40xf32>
    %38 = arith.divf %36, %37 : vector<1x40xf32>
    %39 = vector.broadcast %38 : vector<1x40xf32> to vector<23x40xf32>
    %40 = arith.subf %34, %39 : vector<23x40xf32>
    %41 = vector.broadcast %38 : vector<1x40xf32> to vector<23x40xf32>
    %42 = arith.subf %34, %41 : vector<23x40xf32>
    %43 = arith.mulf %40, %42 : vector<23x40xf32>
    %cst_12 = arith.constant dense<0.000000e+00> : vector<40xf32>
    %44 = vector.multi_reduction <add>, %43, %cst_12 [0] : vector<23x40xf32> to vector<40xf32>
    %45 = vector.shape_cast %44 : vector<40xf32> to vector<1x40xf32>
    %cst_13 = arith.constant 2.300000e+01 : f32
    %46 = vector.broadcast %cst_13 : f32 to vector<1x40xf32>
    %47 = arith.divf %45, %46 : vector<1x40xf32>
    %48 = vector.broadcast %38 : vector<1x40xf32> to vector<23x40xf32>
    %49 = arith.subf %34, %48 : vector<23x40xf32>
    %cst_14 = arith.constant 9.99999974E-6 : f32
    %50 = vector.broadcast %cst_14 : f32 to vector<1x40xf32>
    %51 = arith.addf %47, %50 : vector<1x40xf32>
    %52 = math.rsqrt %51 : vector<1x40xf32>
    %53 = vector.broadcast %52 : vector<1x40xf32> to vector<23x40xf32>
    %54 = arith.mulf %49, %53 : vector<23x40xf32>
    %55 = tpu.transpose %54, [1, 0] : vector<23x40xf32> -> vector<40x23xf32>
    %c0_15 = arith.constant 0 : index
    %c0_16 = arith.constant 0 : index
    %c0_17 = arith.constant 0 : index
    %56 = vector.load %arg4[%c0_15, %c0_16, %c0_17] : memref<1x40x23xf32, #tpu.memory_space<vmem>>, vector<1x40x23xf32>
    %57 = vector.shape_cast %56 : vector<1x40x23xf32> to vector<40x23xf32>
    %58 = vector.shape_cast %55 : vector<40x23xf32> to vector<1x40x23xf32>
    tpu.vector_store %arg4[%c0_15, %c0_16, %c0_17], %58 {strides = array<i32>} : memref<1x40x23xf32, #tpu.memory_space<vmem>>, vector<1x40x23xf32>,
    return
  }
  func.func @transform_0(%arg0: i32) -> (i32, i32, i32) {
    %c0_i32 = arith.constant 0 : i32
    %c0_i32_0 = arith.constant 0 : i32
    %c0_i32_1 = arith.constant 0 : i32
    return %arg0, %c0_i32, %c0_i32_0 : i32, i32, i32
  }
  func.func @transform_1(%arg0: i32) -> (i32, i32) {
    %c0_i32 = arith.constant 0 : i32
    %c0_i32_0 = arith.constant 0 : i32
    %c0_i32_1 = arith.constant 0 : i32
    return %c0_i32, %c0_i32_0 : i32, i32
  }
  func.func @transform_2(%arg0: i32) -> (i32, i32) {
    %c0_i32 = arith.constant 0 : i32
    %c0_i32_0 = arith.constant 0 : i32
    %c0_i32_1 = arith.constant 0 : i32
    return %c0_i32, %c0_i32_0 : i32, i32
  }
  func.func @transform_3(%arg0: i32) -> (i32, i32, i32) {
    %c0_i32 = arith.constant 0 : i32
    %c0_i32_0 = arith.constant 0 : i32
    %c0_i32_1 = arith.constant 0 : i32
    return %arg0, %c0_i32, %c0_i32_0 : i32, i32, i32
  }
}

</mosaic_0001>

<bundles_post_ra>
// kernel: tpu_custom_call.1
= control target key start
LH: loop header
LB: loop body
LE: loop exit
PB: predicated region body
PF: predicated region fallthrough
CT: control target
= control target key end

     0   :  { %8 = vsyncpa [#allocation4], 0  ;;  %s15134_s12 = smov 0   ;;  %s17122_s0 = inlined_call_operand.vmem [shape: f32[2,29,80], index: 0, kind: input, shape index: {}]   ;;  %s17123_s1 = inlined_call_operand.hbm [shape: bf16[320,6400], index: 1, kind: input, shape index: {}]   ;;  %s17124_s2 = inlined_call_operand.vmem [shape: bf16[3200,120], index: 2, kind: input, shape index: {}]   ;;  %s17125_s3 = inlined_call_operand.vmem [shape: f32[2,40,23], index: 3, kind: output, shape index: {}]  }
   0x1 LB: > { %s11701_s13 = sadd.s32 4294967295, %s15103_s12   ;;  %p11703_p0 = scmp.ge.s32.totalorder %s15103_s12, 1  ;;  %s15103_s12 = sphi %s15134_s12, %s14_s12  }
   0x2   : > { %p113_p1 = scmp.lt.s32.totalorder %s15103_s12, 3  ;;  %s15105_s14 = smov [#allocation3]  }
   0x3   : > { %s125_s15 = sshll.u32 %s15105_s14, 4  ;;  %p13339_p3 = scmp.eq.s32.totalorder %s11701_s13, 0  ;;  %s126_s15 = int_to_ptr.vmem [resolvable:$true] %s125_s15 }
   0x4   : > { %p15142_p2 = pnand %p11703_p0, %p113_p1  ;;  %s15078_s17 = scalar_lea.vmem %s126_s15, 128000 }
   0x5   : > { %p15079_p7 = scmp.ne.s32.totalorder %s126_s15, %s15078_s17  ;;  %p15086_p10 = scmp.lt.s32.totalorder %s126_s15, %s126_s15 }
   0x6   : > { %p13335_p4 = pneg %p15142_p2  ;;  %p15087_p11 = scmp.lt.s32.totalorder %s15078_s17, %s15078_s17 }
   0x8   : > { %p13336_p5 = pnand %p13339_p3, %p13335_p4  ;;  %p15088_p12 = por %p15087_p11, %p15086_p10 }
   0xa   : > { %p15069_p6 = pneg %p13336_p5 }
   0xc   : > { %p15081_p8 = pnand %p15079_p7, %p15069_p6 }
   0xe   : > { %p15082_p9 = pneg %p15081_p8 }
  0x10   : > { %p15089_p13 = pnand %p15088_p12, %p15082_p9 }
  0x12   : > { %15092 = shalt.err (!%p15089_p13)
}
  0x13   : > { %s15106_s18 = smov 3200   ;;  %s15107_s19 = smov 200  }
  0x14   : > { %13338 = dma.hbm_to_vmem [thread:$0]  (!%p13336_p5), %s17123_s1, 128000, %s126_s15, [#allocation4], %s15106_s18, %s15106_s18, %s15107_s19  }
  0x15   : > { %152 = sbr.rel (%p15142_p2) target bundleno = 1922 (0x782), region = 32 }
  0x1a   : > { %15098 = dma.done.wait (%p13339_p3), [#allocation4], 128000  }
  0x1b   : > { %15100 = vsyncadd (%p13339_p3), [#allocation4], 4294839296  ;;  %p176_p0 = scmp.lt.s32.totalorder %s11701_s13, 1  ;;  %v17126_v0 = vmov 0   ;;  %vm215_vm0 = vcmask 1046528   ;;  %s15109_s26 = smov 32  }
  0x1c   : > { %6344 = vmatprep.mubr.bf16.mxu1 %v17126_v0  ;;  %v13359_v7 = vld [vmem:[#allocation3 + $0xaf4] ss:$200 sps:$4 sm:$0xff]   ;;  %v13361_v8 = vld [vmem:[#allocation3 + $0xaf0] ss:$200 sps:$4 sm:$0xff]   ;;  %v13362_v12 = vld [vmem:[#allocation3 + $0x964] ss:$200 sps:$4 sm:$0xff]  }
  0x1d   : > { %s17464_s13 = smov (!%p176_p0, %s11701_s13), 1  ;;  %6259 = vmatprep.subr.bf16.mxu0 %v13359_v7  ;;  %v13364_v19 = vld [vmem:[#allocation3 + $0x960] ss:$200 sps:$4 sm:$0xff]   ;;  %v13365_v24 = vld [vmem:[#allocation3 + $0x7d4] ss:$200 sps:$4 sm:$0xff]   ;;  %s15110_s27 = smov 112  }
  0x1e   : > { %s12963_s22 = sshll.u32 %s17464_s13, 5  ;;  %6260 = vmatpush1.bf16.msra.mxu0 %v13361_v8  ;;  %vm223_vm1 = vsmask.f32 6400  ;;  %vm193_vm2 = vsmask.f32 7424  ;;  %s15111_s28 = smov 80  }
  0x1f   : > { %s180_s25 = scalar_lea.vmem %s17122_s0, %s12963_s22  ;;  %6261 = vmatprep.subr.bf16.mxu0 %v13362_v12  ;;  %v13367_v29 = vld [vmem:[#allocation3 + $0x7d0] ss:$200 sps:$4 sm:$0xff]   ;;  %v13368_v31 = vld [vmem:[#allocation3 + $0x644] ss:$200 sps:$4 sm:$0xff]   ;;  %v13370_v33 = vld [vmem:[#allocation3 + $0x640] ss:$200 sps:$4 sm:$0xff]  }
  0x20   : > { %v187_v1 = vld [vmem:[%s180_s25] sm:$0xff]  ;;  %v188_v2 = vld [vmem:[%s180_s25 + $0x8] sm:$0xff]  ;;  %v189_v3 = vld [vmem:[%s180_s25 + $0x10] sm:$0xff]  ;;  %vm6254_vm3 = vcmask 523264   ;;  %vm235_vm4 = vcmask 654336   ;;  %vm242_vm5 = vcmask 261120  }
  0x21   : > { %v190_v4 = vld [vmem:[%s180_s25 + $0x18] sm:$0x1f]  ;;  %v15163_v5 = vpack.c.bf16 %v188_v2, %v187_v1  ;;  %v13371_v34 = vld [vmem:[#allocation3 + $0x4b4] ss:$200 sps:$4 sm:$0xff]   ;;  %v13373_v35 = vld [vmem:[#allocation3 + $0x4b0] ss:$200 sps:$4 sm:$0xff]  }
  0x22   : > { %v15165_v6 = vpack.c.bf16 %v190_v4, %v189_v3  ;;  %6262 = vmatpush1.bf16.msra.mxu0 %v13364_v19  ;;  %v13374_v36 = vld [vmem:[#allocation3 + $0x324] ss:$200 sps:$4 sm:$0xff]   ;;  %v13392_v37 = vld [vmem:[#allocation3 + $0x1db4] ss:$200 sps:$4 sm:$0xff]   ;;  %v13394_v38 = vld [vmem:[#allocation3 + $0x1db0] ss:$200 sps:$4 sm:$0xff]  }
  0x23   : > { %v216_v9 = vrot.slane %v15163_v5, 1  ;;  %v195_v10 = vshrl.u32 %v15163_v5, 16  ;;  %v197_v11 = vshll.u32 %v15163_v5, 16  ;;  %6263 = vmatprep.subr.bf16.mxu0 %v13365_v24  ;;  %v13376_v39 = vld [vmem:[#allocation3 + $0x320] ss:$200 sps:$4 sm:$0xff]   ;;  %6320 = vmatprep.subr.bf16.mxu1 %v13392_v37  ;;  %vm247_vm6 = vcmask 916480  }
  0x24   : > { %v217_v13 = vrot.slane %v15165_v6, 1  ;;  %v202_v14 = vshll.u32 %v15165_v6, 16  ;;  %v206_v15 = vshrl.u32 %v15165_v6, 16  ;;  %v13398_v40 = vld [vmem:[#allocation3 + $0x1c24] ss:$200 sps:$4 sm:$0xff]   ;;  %6321 = vmatpush1.bf16.msra.mxu1 %v13394_v38  ;;  %vm11520_vm7 = vcmask 1045504  }
  0x25   : > { %v224_v16 = vrot.slane %v195_v10, 1  ;;  %v225_v17 = vrot.slane %v197_v11, 2  ;;  %v199_v18 = vrot.slane %v197_v11, 1  ;;  %v13400_v41 = vld [vmem:[#allocation3 + $0x1c20] ss:$200 sps:$4 sm:$0xff]   ;;  %6322 = vmatprep.subr.bf16.mxu1 %v13398_v40  ;;  %s15112_s29 = smov 48  }
  0x26   : > { %v218_v20 = vsel %vm215_vm0, %v216_v9, %v217_v13  ;;  %v227_v21 = vrot.slane %v206_v15, 1  ;;  %v228_v22 = vrot.slane %v202_v14, 2  ;;  %v204_v23 = vrot.slane %v202_v14, 1  ;;  %6264 = vmatpush1.bf16.msra.mxu0 %v13367_v29  ;;  %v13377_v42 = vld [vmem:[#allocation3 + $0x194] ss:$200 sps:$4 sm:$0xff]   ;;  %s15113_s30 = smov 88  }
  0x27   : > { %219 = vrot.lane.b32.xlu1 %v218_v20, %s15109_s26  ;;  %v226_v25 = vor.u32 %v225_v17, %v224_v16  ;;  %v200_v28 = vor.u32 %v199_v18, %v195_v10  ;;  %6265 = vmatprep.subr.bf16.mxu0 %v13368_v31  ;;  %v13404_v43 = vld [vmem:[#allocation3 + $0x1a94] ss:$200 sps:$4 sm:$0xff]   ;;  %v13379_v44 = vld [vmem:[#allocation3 + $0x190] ss:$200 sps:$4 sm:$0xff]   ;;  %v13380_v46 = vld [vmem:[#allocation3 + $0x4] ss:$200 sps:$4 sm:$0xff]  }
  0x28   : > { %v229_v26 = vor.u32 %v228_v22, %v227_v21  ;;  %v208_v27 = vor.u32 %v206_v15, %v204_v23  ;;  %6323 = vmatpush1.bf16.msra.mxu1 %v13400_v41  ;;  %v13406_v45 = vld [vmem:[#allocation3 + $0x1a90] ss:$200 sps:$4 sm:$0xff]   ;;  %v13410_v47 = vld [vmem:[#allocation3 + $0x1904] ss:$200 sps:$4 sm:$0xff]   ;;  %v13382_v48 = vld [vmem:[#allocation3] ss:$200 sps:$4 sm:$0xff]  }
  0x29   : > { %v205_v32 = vsel %vm193_vm2, %v200_v28, %v204_v23  ;;  %6324 = vmatprep.subr.bf16.mxu1 %v13404_v43  ;;  %v13412_v49 = vld [vmem:[#allocation3 + $0x1900] ss:$200 sps:$4 sm:$0xff]   ;;  %v13383_v50 = vld [vmem:[#allocation3 + $0x1774] ss:$200 sps:$4 sm:$0xff]   ;;  %v13385_v52 = vld [vmem:[#allocation3 + $0x1770] ss:$200 sps:$4 sm:$0xff]  }
  0x2a   : > { %v230_v30 = vsel %vm223_vm1, %v226_v25, %v229_v26  ;;  %6266 = vmatpush1.bf16.msra.mxu0 %v13370_v33  ;;  %v13418_v51 = vld [vmem:[#allocation3 + $0xafc] ss:$200 sps:$4 sm:$0xff]   ;;  %v13388_v54 = vld [vmem:[#allocation3 + $0x15e0] ss:$200 sps:$4 sm:$0xff]   ;;  %v13391_v56 = vld [vmem:[#allocation3 + $0x1450] ss:$200 sps:$4 sm:$0xff]  }
  0x2b   : > { %231 = vrot.lane.b32.xlu0 %v230_v30, %s15110_s27  ;;  %211 = vrot.lane.b32.xlu1 %v208_v27, %s15111_s28  ;;  %v13386_v53 = vld [vmem:[#allocation3 + $0x15e4] ss:$200 sps:$4 sm:$0xff]   ;;  %v13389_v55 = vld [vmem:[#allocation3 + $0x1454] ss:$200 sps:$4 sm:$0xff]   ;;  %v13397_v58 = vld [vmem:[#allocation3 + $0x12c0] ss:$200 sps:$4 sm:$0xff]  }
  0x2c   : > { %6267 = vmatprep.subr.bf16.mxu0 %v13371_v34  ;;  %6325 = vmatpush1.bf16.msra.mxu1 %v13406_v45  ;;  %v13395_v57 = vld [vmem:[#allocation3 + $0x12c4] ss:$200 sps:$4 sm:$0xff]   ;;  %v13401_v59 = vld [vmem:[#allocation3 + $0x1134] ss:$200 sps:$4 sm:$0xff]   ;;  %v13403_v60 = vld [vmem:[#allocation3 + $0x1130] ss:$200 sps:$4 sm:$0xff]  }
  0x2d   : > { %6326 = vmatprep.subr.bf16.mxu1 %v13410_v47  ;;  %v13407_v61 = vld [vmem:[#allocation3 + $0xfa4] ss:$200 sps:$4 sm:$0xff]   ;;  %v13409_v62 = vld [vmem:[#allocation3 + $0xfa0] ss:$200 sps:$4 sm:$0xff]   ;;  %v13413_v63 = vld [vmem:[#allocation3 + $0xe14] ss:$200 sps:$4 sm:$0xff]  }
  0x2e   : > { %6268 = vmatpush1.bf16.msra.mxu0 %v13373_v35  ;;  %v13415_v1 = vld [vmem:[#allocation3 + $0xe10] ss:$200 sps:$4 sm:$0xff]   ;;  %v13419_v2 = vld [vmem:[#allocation3 + $0xc84] ss:$200 sps:$4 sm:$0xff]   ;;  %v13421_v3 = vld [vmem:[#allocation3 + $0xc80] ss:$200 sps:$4 sm:$0xff]  }
  0x2f   : > { %209 = vrot.lane.b32.xlu0 %v205_v32, %s15111_s28  ;;  %233 = vrot.lane.b32.xlu1 %v229_v26, %s15110_s27  ;;  %v13427_v4 = vld [vmem:[#allocation3 + $0x1dbc] ss:$200 sps:$4 sm:$0xff]   ;;  %v13416_v7 = vld [vmem:[#allocation3 + $0xaf8] ss:$200 sps:$4 sm:$0xff]   ;;  %v13424_v9 = vld [vmem:[#allocation3 + $0x96c] ss:$200 sps:$4 sm:$0xff]  }
  0x30   : > { %6269 = vmatprep.subr.bf16.mxu0 %v13374_v36  ;;  %6327 = vmatpush1.bf16.msra.mxu1 %v13412_v49  ;;  %v13422_v12 = vld [vmem:[#allocation3 + $0x968] ss:$200 sps:$4 sm:$0xff]   ;;  %v13430_v14 = vld [vmem:[#allocation3 + $0x7dc] ss:$200 sps:$4 sm:$0xff]   ;;  %v13428_v16 = vld [vmem:[#allocation3 + $0x7d8] ss:$200 sps:$4 sm:$0xff]  }
  0x31   : > { %6365 = vmatprep.subr.bf16.mxu1 %v13418_v51  ;;  %v13431_v21 = vld [vmem:[#allocation3 + $0x1c28] ss:$200 sps:$4 sm:$0xff]   ;;  %v13433_v22 = vld [vmem:[#allocation3 + $0x1c2c] ss:$200 sps:$4 sm:$0xff]   ;;  %v13439_v25 = vld [vmem:[#allocation3 + $0x1a9c] ss:$200 sps:$4 sm:$0xff]  }
  0x32   : > { %6270 = vmatpush1.bf16.msra.mxu0 %v13376_v39  ;;  %v13436_v23 = vld [vmem:[#allocation3 + $0x64c] ss:$200 sps:$4 sm:$0xff]   ;;  %v13434_v24 = vld [vmem:[#allocation3 + $0x648] ss:$200 sps:$4 sm:$0xff]   ;;  %v13437_v28 = vld [vmem:[#allocation3 + $0x1a98] ss:$200 sps:$4 sm:$0xff]  }
  0x33   : > { %221 = vrot.lane.b32.xlu0 %v217_v13, %s15109_s26  ;;  %6271 = vmatprep.subr.bf16.mxu0 %v13377_v42  ;;  %v13425_v13 = vld [vmem:[#allocation3 + $0x1db8] ss:$200 sps:$4 sm:$0xff]   ;;  %v13442_v29 = vld [vmem:[#allocation3 + $0x4bc] ss:$200 sps:$4 sm:$0xff]   ;;  %v13445_v31 = vld [vmem:[#allocation3 + $0x190c] ss:$200 sps:$4 sm:$0xff]  }
  0x34   : > { %v13440_v30 = vld [vmem:[#allocation3 + $0x4b8] ss:$200 sps:$4 sm:$0xff]   ;;  %v13443_v33 = vld [vmem:[#allocation3 + $0x1908] ss:$200 sps:$4 sm:$0xff]   ;;  %v13448_v34 = vld [vmem:[#allocation3 + $0x32c] ss:$200 sps:$4 sm:$0xff]  }
  0x35   : > { %v13446_v35 = vld [vmem:[#allocation3 + $0x328] ss:$200 sps:$4 sm:$0xff]   ;;  %v13451_v36 = vld [vmem:[#allocation3 + $0xb04] ss:$200 sps:$4 sm:$0xff]   ;;  %v13457_v39 = vld [vmem:[#allocation3 + $0x974] ss:$200 sps:$4 sm:$0xff]  }
  0x36   : > { %6272 = vmatpush1.bf16.msra.mxu0 %v13379_v44  ;;  %v13449_v37 = vld [vmem:[#allocation3 + $0xb00] ss:$200 sps:$4 sm:$0xff]   ;;  %v13454_v38 = vld [vmem:[#allocation3 + $0x19c] ss:$200 sps:$4 sm:$0xff]   ;;  %v13455_v40 = vld [vmem:[#allocation3 + $0x970] ss:$200 sps:$4 sm:$0xff]  }
  0x37   : > { %6273 = vmatprep.subr.bf16.mxu0 %v13380_v46  ;;  %v13460_v41 = vld [vmem:[#allocation3 + $0xc] ss:$200 sps:$4 sm:$0xff]   ;;  %v13458_v42 = vld [vmem:[#allocation3 + $0x8] ss:$200 sps:$4 sm:$0xff]   ;;  %v13466_v45 = vld [vmem:[#allocation3 + $0x177c] ss:$200 sps:$4 sm:$0xff]  }
  0x38   : > { %v13463_v43 = vld [vmem:[#allocation3 + $0x7e4] ss:$200 sps:$4 sm:$0xff]   ;;  %v13461_v44 = vld [vmem:[#allocation3 + $0x7e0] ss:$200 sps:$4 sm:$0xff]   ;;  %v13469_v47 = vld [vmem:[#allocation3 + $0x654] ss:$200 sps:$4 sm:$0xff]  }
  0x39   : > { %v13464_v46 = vld [vmem:[#allocation3 + $0x1778] ss:$200 sps:$4 sm:$0xff]   ;;  %v13472_v49 = vld [vmem:[#allocation3 + $0x15ec] ss:$200 sps:$4 sm:$0xff]   ;;  %vm11552_vm8 = vcmask 326656   ;;  %vm11562_vm9 = vcmask 325632  }
  0x3a   : > { %6274 = vmatpush1.bf16.msra.mxu0 %v13382_v48  ;;  %v13467_v48 = vld [vmem:[#allocation3 + $0x650] ss:$200 sps:$4 sm:$0xff]   ;;  %v13475_v51 = vld [vmem:[#allocation3 + $0x4c4] ss:$200 sps:$4 sm:$0xff]   ;;  %s13330_s4 = smul.u32 40, %s17464_s13  ;;  %vm11628_vm10 = vcmask 187392  }
  0x3b   : > { %6275 = vmatprep.subr.bf16.mxu0 %v13383_v50  ;;  %v13470_v50 = vld [vmem:[#allocation3 + $0x15e8] ss:$200 sps:$4 sm:$0xff]  }
  0x3c   : > { %s185_s7 = scalar_lea.vmem %s17125_s3, %s13330_s4 }
  0x3e   : > { %6276 = vmatpush2.bf16.msra.mxu0 %v13385_v52  ;;  %v13473_v52 = vld [vmem:[#allocation3 + $0x4c0] ss:$200 sps:$4 sm:$0xff]  }
  0x3f   : > { %6277 = vmatprep.subr.bf16.mxu0 %v13386_v53  ;;  %v13478_v53 = vld [vmem:[#allocation3 + $0x145c] ss:$200 sps:$4 sm:$0xff]  }
  0x42   : > { %6278 = vmatpush2.bf16.msra.mxu0 %v13388_v54  ;;  %v13476_v54 = vld [vmem:[#allocation3 + $0x1458] ss:$200 sps:$4 sm:$0xff]  }
  0x43   : > { %6279 = vmatprep.subr.bf16.mxu0 %v13389_v55  ;;  %v13481_v55 = vld [vmem:[#allocation3 + $0x334] ss:$200 sps:$4 sm:$0xff]  }
  0x46   : > { %6280 = vmatpush2.bf16.msra.mxu0 %v13391_v56  ;;  %v13479_v56 = vld [vmem:[#allocation3 + $0x330] ss:$200 sps:$4 sm:$0xff]  }
  0x47   : > { %6281 = vmatprep.subr.bf16.mxu0 %v13395_v57  ;;  %v13484_v57 = vld [vmem:[#allocation3 + $0x12cc] ss:$200 sps:$4 sm:$0xff]  }
  0x4a   : > { %6282 = vmatpush2.bf16.msra.mxu0 %v13397_v58  ;;  %v13482_v58 = vld [vmem:[#allocation3 + $0x12c8] ss:$200 sps:$4 sm:$0xff]  }
  0x4b   : > { %6283 = vmatprep.subr.bf16.mxu0 %v13401_v59  ;;  %v13487_v59 = vld [vmem:[#allocation3 + $0x1a4] ss:$200 sps:$4 sm:$0xff]  }
  0x4e   : > { %6284 = vmatpush2.bf16.msra.mxu0 %v13403_v60  ;;  %v13490_v60 = vld [vmem:[#allocation3 + $0x113c] ss:$200 sps:$4 sm:$0xff]  }
  0x4f   : > { %6285 = vmatprep.subr.bf16.mxu0 %v13407_v61  ;;  %v13485_v61 = vld [vmem:[#allocation3 + $0x1a0] ss:$200 sps:$4 sm:$0xff]  }
  0x52   : > { %6286 = vmatpush2.bf16.msra.mxu0 %v13409_v62  ;;  %v13488_v62 = vld [vmem:[#allocation3 + $0x1138] ss:$200 sps:$4 sm:$0xff]  }
  0x53   : > { %6287 = vmatprep.subr.bf16.mxu0 %v13413_v63  ;;  %v13493_v63 = vld [vmem:[#allocation3 + $0x14] ss:$200 sps:$4 sm:$0xff]  }
  0x56   : > { %6288 = vmatpush2.bf16.msra.mxu0 %v13415_v1  ;;  %v13496_v1 = vld [vmem:[#allocation3 + $0xfac] ss:$200 sps:$4 sm:$0xff]  }
  0x57   : > { %6289 = vmatprep.subr.bf16.mxu0 %v13419_v2  ;;  %v13491_v2 = vld [vmem:[#allocation3 + $0x10] ss:$200 sps:$4 sm:$0xff]  }
  0x5a   : > { %6290 = vmatpush2.bf16.msra.mxu0 %v13421_v3  ;;  %v13494_v3 = vld [vmem:[#allocation3 + $0xfa8] ss:$200 sps:$4 sm:$0xff]  }
  0x5b   : > { %6426 = vmatprep.subr.bf16.mxu0 %v13427_v4  ;;  %v13499_v4 = vld [vmem:[#allocation3 + $0x1784] ss:$200 sps:$4 sm:$0xff]  }
  0x99   : > { %v220_v8 = vpop.permute.xlu1 %219 }
  0x9d   : > { %v15174_v10 = vpop.permute.xlu0 %231  ;;  %v212_v11 = vpop.permute.xlu1 %211 }
  0x9e   : > { %12711 = vmatmul.mubr.msk.bf16.vlgmr.msra.gmra.mxu1 %vm6254_vm3, %v15174_v10  ;;  %v15203_v32 = vsel %vm235_vm4, %v15165_v6, %v212_v11  ;;  %v13452_v6 = vld [vmem:[#allocation3 + $0x198] ss:$200 sps:$4 sm:$0xff]  }
  0x9f   : > { %6366 = vmatpush1.bf16.msra.mxu1 %v13416_v7  ;;  %6354 = vmatprep.mubr.bf16.mxu1 %v17126_v0  ;;  %v13497_v7 = vld [vmem:[#allocation3 + $0x1780] ss:$200 sps:$4 sm:$0xff]  }
  0xa0   : > { %6367 = vmatprep.subr.bf16.mxu1 %v13424_v9  ;;  %v13500_v9 = vld [vmem:[#allocation3 + $0xe18] ss:$200 sps:$4 sm:$0xff]  }
  0xa1   : > { %v210_v15 = vpop.permute.xlu0 %209  ;;  %v15188_v20 = vpop.permute.xlu1 %233 }
  0xa2   : > { %v15181_v17 = vsel %vm235_vm4, %v15163_v5, %v210_v15  ;;  %v244_v18 = vsel %vm242_vm5, %v210_v15, %v220_v8  ;;  %v13502_v8 = vld [vmem:[#allocation3 + $0xe1c] ss:$200 sps:$4 sm:$0xff]  }
  0xa3   : > { %v15186_v19 = vsel %vm247_vm6, %v244_v18, %v15174_v10  ;;  %6368 = vmatpush1.bf16.msra.mxu1 %v13422_v12  ;;  %v13508_v12 = vld [vmem:[#allocation3 + $0xc8c] ss:$200 sps:$4 sm:$0xff]   ;;  %v13509_v18 = vld [vmem:[#allocation3 + $0x1460] ss:$200 sps:$4 sm:$0xff]  }
  0xa4   : > { %6291 = vmatprep.mubr.bf16.mxu0 %v15186_v19  ;;  %6369 = vmatprep.subr.bf16.mxu1 %v13430_v14  ;;  %v13506_v14 = vld [vmem:[#allocation3 + $0xc88] ss:$200 sps:$4 sm:$0xff]   ;;  %v13511_v15 = vld [vmem:[#allocation3 + $0x1464] ss:$200 sps:$4 sm:$0xff]  }
  0xa5   : > { %6292 = vmatmul.mubr.bf16.vlgmr.msra.gmra.mxu0 %v15181_v17  ;;  %v222_v5 = vpop.permute.xlu0 %221 }
  0xa6   : > { %6427 = vmatpush1.bf16.msra.mxu0 %v13425_v13  ;;  %12712 = vmatmul.mubr.msk.bf16.gmra.mxu1 %vm6254_vm3, %v15188_v20  ;;  %v246_v26 = vsel %vm242_vm5, %v212_v11, %v222_v5  ;;  %v13505_v11 = vld [vmem:[#allocation3 + $0x15f4] ss:$200 sps:$4 sm:$0xff]   ;;  %v13503_v13 = vld [vmem:[#allocation3 + $0x15f0] ss:$200 sps:$4 sm:$0xff]  }
  0xa7   : > { %6370 = vmatpush1.bf16.msra.mxu1 %v13428_v16  ;;  %6397 = vmatprep.mubr.bf16.mxu1 %v15186_v19  ;;  %v15198_v27 = vsel %vm247_vm6, %v246_v26, %v15188_v20  ;;  %v13514_v16 = vld [vmem:[#allocation3 + $0x1dc4] ss:$200 sps:$4 sm:$0xff]   ;;  %v13518_v5 = vld [vmem:[#allocation3 + $0x1c30] ss:$200 sps:$4 sm:$0xff]  }
  0xa8   : > { %6428 = vmatprep.subr.bf16.mxu0 %v13433_v22  ;;  %6371 = vmatprep.subr.bf16.mxu1 %v13436_v23  ;;  %v13517_v22 = vld [vmem:[#allocation3 + $0x12d4] ss:$200 sps:$4 sm:$0xff]   ;;  %v13526_v26 = vld [vmem:[#allocation3 + $0x1aa4] ss:$200 sps:$4 sm:$0xff]  }
  0xa9   : > { %6301 = vmatprep.mubr.bf16.mxu0 %v15198_v27  ;;  %v13520_v23 = vld [vmem:[#allocation3 + $0x1c34] ss:$200 sps:$4 sm:$0xff]  }
  0xaa   : > { %6429 = vmatpush1.bf16.msra.mxu0 %v13431_v21  ;;  %v13512_v21 = vld [vmem:[#allocation3 + $0x1dc0] ss:$200 sps:$4 sm:$0xff]  }
  0xab   : > { %6372 = vmatpush1.bf16.msra.mxu1 %v13434_v24  ;;  %6430 = vmatprep.subr.bf16.mxu0 %v13439_v25  ;;  %v13515_v24 = vld [vmem:[#allocation3 + $0x12d0] ss:$200 sps:$4 sm:$0xff]   ;;  %v13523_v25 = vld [vmem:[#allocation3 + $0x1144] ss:$200 sps:$4 sm:$0xff]  }
  0xac   : > { %6373 = vmatprep.subr.bf16.mxu1 %v13442_v29  ;;  %v13524_v29 = vld [vmem:[#allocation3 + $0x1aa0] ss:$200 sps:$4 sm:$0xff]  }
  0xad   : > { %6302 = vmatmul.mubr.bf16.gmra.mxu0 %v15203_v32 }
  0xae   : > { %6431 = vmatpush1.bf16.msra.mxu0 %v13437_v28  ;;  %6450 = vmatprep.mubr.bf16.mxu0 %v17126_v0  ;;  %v13521_v28 = vld [vmem:[#allocation3 + $0x1140] ss:$200 sps:$4 sm:$0xff]  }
  0xaf   : > { %6374 = vmatpush1.bf16.msra.mxu1 %v13440_v30  ;;  %6432 = vmatprep.subr.bf16.mxu0 %v13445_v31  ;;  %v13529_v30 = vld [vmem:[#allocation3 + $0xfb4] ss:$200 sps:$4 sm:$0xff]  }
  0xb0   : > { %6375 = vmatprep.subr.bf16.mxu1 %v13448_v34  ;;  %v13532_v31 = vld [vmem:[#allocation3 + $0x1914] ss:$200 sps:$4 sm:$0xff]   ;;  %v13530_v34 = vld [vmem:[#allocation3 + $0x1910] ss:$200 sps:$4 sm:$0xff]  }
  0xb2   : > { %6433 = vmatpush1.bf16.msra.mxu0 %v13443_v33  ;;  %v13527_v33 = vld [vmem:[#allocation3 + $0xfb0] ss:$200 sps:$4 sm:$0xff]  }
  0xb3   : > { %6376 = vmatpush1.bf16.msra.mxu1 %v13446_v35  ;;  %6471 = vmatprep.subr.bf16.mxu0 %v13451_v36  ;;  %v13535_v35 = vld [vmem:[#allocation3 + $0xe24] ss:$200 sps:$4 sm:$0xff]  }
  0xb4   : > { %6377 = vmatprep.subr.bf16.mxu1 %v13454_v38  ;;  %v13538_v36 = vld [vmem:[#allocation3 + $0xb0c] ss:$200 sps:$4 sm:$0xff]   ;;  %v13536_v38 = vld [vmem:[#allocation3 + $0xb08] ss:$200 sps:$4 sm:$0xff]  }
  0xb5   : > { %12713 = vmatmul.mubr.msk.bf16.vlgmr.msra.gmra.mxu0 %vm6254_vm3, %v15174_v10 }
  0xb6   : > { %6472 = vmatpush1.bf16.msra.mxu0 %v13449_v37  ;;  %6460 = vmatprep.mubr.bf16.mxu0 %v17126_v0  ;;  %v13533_v37 = vld [vmem:[#allocation3 + $0xe20] ss:$200 sps:$4 sm:$0xff]  }
  0xb7   : > { %6378 = vmatpush1.bf16.msra.mxu1 %v13452_v6  ;;  %6473 = vmatprep.subr.bf16.mxu0 %v13457_v39  ;;  %v13541_v6 = vld [vmem:[#allocation3 + $0xc94] ss:$200 sps:$4 sm:$0xff]  }
  0xb8   : > { %6379 = vmatprep.subr.bf16.mxu1 %v13460_v41  ;;  %v13544_v39 = vld [vmem:[#allocation3 + $0x97c] ss:$200 sps:$4 sm:$0xff]   ;;  %v13542_v41 = vld [vmem:[#allocation3 + $0x978] ss:$200 sps:$4 sm:$0xff]  }
  0xba   : > { %6474 = vmatpush1.bf16.msra.mxu0 %v13455_v40  ;;  %v13539_v40 = vld [vmem:[#allocation3 + $0xc90] ss:$200 sps:$4 sm:$0xff]  }
  0xbb   : > { %6380 = vmatpush1.bf16.msra.mxu1 %v13458_v42  ;;  %6475 = vmatprep.subr.bf16.mxu0 %v13463_v43  ;;  %v13547_v42 = vld [vmem:[#allocation3 + $0x1dcc] ss:$200 sps:$4 sm:$0xff]  }
  0xbc   : > { %6381 = vmatprep.subr.bf16.mxu1 %v13466_v45  ;;  %v13550_v43 = vld [vmem:[#allocation3 + $0x7ec] ss:$200 sps:$4 sm:$0xff]   ;;  %v13548_v45 = vld [vmem:[#allocation3 + $0x7e8] ss:$200 sps:$4 sm:$0xff]  }
  0xbd   : > { %12714 = vmatmul.mubr.msk.bf16.gmra.mxu0 %vm6254_vm3, %v15188_v20 }
  0xbe   : > { %6476 = vmatpush1.bf16.msra.mxu0 %v13461_v44  ;;  %6503 = vmatprep.mubr.bf16.mxu0 %v15186_v19  ;;  %v13545_v44 = vld [vmem:[#allocation3 + $0x1dc8] ss:$200 sps:$4 sm:$0xff]  }
  0xbf   : > { %6382 = vmatpush2.bf16.msra.mxu1 %v13464_v46  ;;  %6477 = vmatprep.subr.bf16.mxu0 %v13469_v47  ;;  %v13553_v46 = vld [vmem:[#allocation3 + $0x1c3c] ss:$200 sps:$4 sm:$0xff]   ;;  %v13551_v47 = vld [vmem:[#allocation3 + $0x1c38] ss:$200 sps:$4 sm:$0xff]  }
  0xc0   : > { %6383 = vmatprep.subr.bf16.mxu1 %v13472_v49  ;;  %v13554_v49 = vld [vmem:[#allocation3 + $0x658] ss:$200 sps:$4 sm:$0xff]  }
  0xc2   : > { %6478 = vmatpush1.bf16.msra.mxu0 %v13467_v48  ;;  %v13556_v48 = vld [vmem:[#allocation3 + $0x65c] ss:$200 sps:$4 sm:$0xff]  }
  0xc3   : > { %6384 = vmatpush2.bf16.msra.mxu1 %v13470_v50  ;;  %6479 = vmatprep.subr.bf16.mxu0 %v13475_v51  ;;  %v13559_v50 = vld [vmem:[#allocation3 + $0x1aac] ss:$200 sps:$4 sm:$0xff]  }
  0xc4   : > { %6385 = vmatprep.subr.bf16.mxu1 %v13478_v53  ;;  %v13562_v51 = vld [vmem:[#allocation3 + $0x4cc] ss:$200 sps:$4 sm:$0xff]   ;;  %v13560_v53 = vld [vmem:[#allocation3 + $0x4c8] ss:$200 sps:$4 sm:$0xff]  }
  0xc6   : > { %6480 = vmatpush1.bf16.msra.mxu0 %v13473_v52  ;;  %v13557_v52 = vld [vmem:[#allocation3 + $0x1aa8] ss:$200 sps:$4 sm:$0xff]  }
  0xc7   : > { %6386 = vmatpush2.bf16.msra.mxu1 %v13476_v54  ;;  %6481 = vmatprep.subr.bf16.mxu0 %v13481_v55  ;;  %v13565_v54 = vld [vmem:[#allocation3 + $0x191c] ss:$200 sps:$4 sm:$0xff]  }
  0xc8   : > { %6387 = vmatprep.subr.bf16.mxu1 %v13484_v57  ;;  %v13568_v55 = vld [vmem:[#allocation3 + $0x33c] ss:$200 sps:$4 sm:$0xff]   ;;  %v13566_v57 = vld [vmem:[#allocation3 + $0x338] ss:$200 sps:$4 sm:$0xff]  }
  0xca   : > { %6482 = vmatpush1.bf16.msra.mxu0 %v13479_v56  ;;  %v13563_v56 = vld [vmem:[#allocation3 + $0x1918] ss:$200 sps:$4 sm:$0xff]  }
  0xcb   : > { %6388 = vmatpush2.bf16.msra.mxu1 %v13482_v58  ;;  %6483 = vmatprep.subr.bf16.mxu0 %v13487_v59  ;;  %v13571_v58 = vld [vmem:[#allocation3 + $0xb14] ss:$200 sps:$4 sm:$0xff]  }
  0xcc   : > { %6389 = vmatprep.subr.bf16.mxu1 %v13490_v60  ;;  %v13574_v59 = vld [vmem:[#allocation3 + $0x1ac] ss:$200 sps:$4 sm:$0xff]   ;;  %v13569_v60 = vld [vmem:[#allocation3 + $0xb10] ss:$200 sps:$4 sm:$0xff]  }
  0xce   : > { %6484 = vmatpush1.bf16.msra.mxu0 %v13485_v61  ;;  %v13572_v61 = vld [vmem:[#allocation3 + $0x1a8] ss:$200 sps:$4 sm:$0xff]  }
  0xcf   : > { %6390 = vmatpush2.bf16.msra.mxu1 %v13488_v62  ;;  %6485 = vmatprep.subr.bf16.mxu0 %v13493_v63  ;;  %v13577_v62 = vld [vmem:[#allocation3 + $0x984] ss:$200 sps:$4 sm:$0xff]  }
  0xd0   : > { %6391 = vmatprep.subr.bf16.mxu1 %v13496_v1  ;;  %v13580_v63 = vld [vmem:[#allocation3 + $0x1c] ss:$200 sps:$4 sm:$0xff]   ;;  %v13575_v1 = vld [vmem:[#allocation3 + $0x980] ss:$200 sps:$4 sm:$0xff]  }
  0xd2   : > { %6486 = vmatpush1.bf16.msra.mxu0 %v13491_v2  ;;  %v13578_v2 = vld [vmem:[#allocation3 + $0x18] ss:$200 sps:$4 sm:$0xff]  }
  0xd3   : > { %6392 = vmatpush2.bf16.msra.mxu1 %v13494_v3  ;;  %6487 = vmatprep.subr.bf16.mxu0 %v13499_v4  ;;  %v13583_v3 = vld [vmem:[#allocation3 + $0x7f4] ss:$200 sps:$4 sm:$0xff]  }
  0xd4   : > { %6393 = vmatprep.subr.bf16.mxu1 %v13502_v8  ;;  %v13586_v4 = vld [vmem:[#allocation3 + $0x178c] ss:$200 sps:$4 sm:$0xff]   ;;  %v13584_v8 = vld [vmem:[#allocation3 + $0x1788] ss:$200 sps:$4 sm:$0xff]  }
  0xd6   : > { %6488 = vmatpush2.bf16.msra.mxu0 %v13497_v7  ;;  %v13581_v7 = vld [vmem:[#allocation3 + $0x7f0] ss:$200 sps:$4 sm:$0xff]  }
  0xd7   : > { %6394 = vmatpush2.bf16.msra.mxu1 %v13500_v9  ;;  %6489 = vmatprep.subr.bf16.mxu0 %v13505_v11  ;;  %v13589_v9 = vld [vmem:[#allocation3 + $0x664] ss:$200 sps:$4 sm:$0xff]   ;;  %v13587_v11 = vld [vmem:[#allocation3 + $0x660] ss:$200 sps:$4 sm:$0xff]  }
  0xd8   : > { %6395 = vmatprep.subr.bf16.mxu1 %v13508_v12  ;;  %v13592_v12 = vld [vmem:[#allocation3 + $0x15fc] ss:$200 sps:$4 sm:$0xff]  }
  0xda   : > { %6490 = vmatpush2.bf16.msra.mxu0 %v13503_v13  ;;  %v13590_v13 = vld [vmem:[#allocation3 + $0x15f8] ss:$200 sps:$4 sm:$0xff]  }
  0xdb   : > { %6396 = vmatpush2.bf16.msra.mxu1 %v13506_v14  ;;  %6491 = vmatprep.subr.bf16.mxu0 %v13511_v15  ;;  %v13595_v14 = vld [vmem:[#allocation3 + $0x4d4] ss:$200 sps:$4 sm:$0xff]   ;;  %v13593_v15 = vld [vmem:[#allocation3 + $0x4d0] ss:$200 sps:$4 sm:$0xff]  }
  0xdc   : > { %6532 = vmatprep.subr.bf16.mxu1 %v13514_v16  ;;  %v13598_v16 = vld [vmem:[#allocation3 + $0x146c] ss:$200 sps:$4 sm:$0xff]  }
  0xde   : > { %6398 = vmatmul.mubr.bf16.vlgmr.msra.gmra.mxu1 %v15181_v17  ;;  %6492 = vmatpush2.bf16.msra.mxu0 %v13509_v18  ;;  %v13596_v18 = vld [vmem:[#allocation3 + $0x1468] ss:$200 sps:$4 sm:$0xff]  }
  0xdf   : > { %6407 = vmatprep.mubr.bf16.mxu1 %v15198_v27  ;;  %6533 = vmatpush1.bf16.msra.mxu1 %v13512_v21  ;;  %v13601_v21 = vld [vmem:[#allocation3 + $0x344] ss:$200 sps:$4 sm:$0xff]  }
  0xe0   : > { %6493 = vmatprep.subr.bf16.mxu0 %v13517_v22  ;;  %6534 = vmatprep.subr.bf16.mxu1 %v13520_v23  ;;  %v13599_v22 = vld [vmem:[#allocation3 + $0x340] ss:$200 sps:$4 sm:$0xff]   ;;  %v13604_v23 = vld [vmem:[#allocation3 + $0x12dc] ss:$200 sps:$4 sm:$0xff]  }
  0xe2   : > { %6494 = vmatpush2.bf16.msra.mxu0 %v13515_v24  ;;  %v13602_v24 = vld [vmem:[#allocation3 + $0x12d8] ss:$200 sps:$4 sm:$0xff]  }
  0xe3   : > { %6535 = vmatpush1.bf16.msra.mxu1 %v13518_v5  ;;  %6495 = vmatprep.subr.bf16.mxu0 %v13523_v25  ;;  %v13607_v5 = vld [vmem:[#allocation3 + $0x1b4] ss:$200 sps:$4 sm:$0xff]  }
  0xe4   : > { %6536 = vmatprep.subr.bf16.mxu1 %v13526_v26  ;;  %v13610_v25 = vld [vmem:[#allocation3 + $0x114c] ss:$200 sps:$4 sm:$0xff]   ;;  %v13605_v26 = vld [vmem:[#allocation3 + $0x1b0] ss:$200 sps:$4 sm:$0xff]  }
  0xe6   : > { %6408 = vmatmul.mubr.bf16.gmra.mxu1 %v15203_v32  ;;  %6496 = vmatpush2.bf16.msra.mxu0 %v13521_v28  ;;  %v13608_v28 = vld [vmem:[#allocation3 + $0x1148] ss:$200 sps:$4 sm:$0xff]  }
  0xe7   : > { %6537 = vmatpush1.bf16.msra.mxu1 %v13524_v29  ;;  %6497 = vmatprep.subr.bf16.mxu0 %v13529_v30  ;;  %v13613_v29 = vld [vmem:[#allocation3 + $0x24] ss:$200 sps:$4 sm:$0xff]  }
  0xe8   : > { %6538 = vmatprep.subr.bf16.mxu1 %v13532_v31  ;;  %6556 = vmatprep.mubr.bf16.mxu1 %v17126_v0  ;;  %v13616_v30 = vld [vmem:[#allocation3 + $0xfbc] ss:$200 sps:$4 sm:$0xff]   ;;  %v13611_v31 = vld [vmem:[#allocation3 + $0x20] ss:$200 sps:$4 sm:$0xff]  }
  0xea   : > { %6498 = vmatpush2.bf16.msra.mxu0 %v13527_v33  ;;  %v13614_v33 = vld [vmem:[#allocation3 + $0xfb8] ss:$200 sps:$4 sm:$0xff]  }
  0xeb   : > { %6539 = vmatpush1.bf16.msra.mxu1 %v13530_v34  ;;  %6499 = vmatprep.subr.bf16.mxu0 %v13535_v35  ;;  %v13619_v34 = vld [vmem:[#allocation3 + $0x1794] ss:$200 sps:$4 sm:$0xff]  }
  0xec   : > { %6577 = vmatprep.subr.bf16.mxu1 %v13538_v36  ;;  %v13622_v35 = vld [vmem:[#allocation3 + $0xe2c] ss:$200 sps:$4 sm:$0xff]   ;;  %v13617_v36 = vld [vmem:[#allocation3 + $0x1790] ss:$200 sps:$4 sm:$0xff]  }
  0xee   : > { %6500 = vmatpush2.bf16.msra.mxu0 %v13533_v37  ;;  %12715 = vmatmul.mubr.msk.bf16.vlgmr.msra.gmra.mxu1 %vm6254_vm3, %v15174_v10  ;;  %v13620_v37 = vld [vmem:[#allocation3 + $0xe28] ss:$200 sps:$4 sm:$0xff]  }
  0xef   : > { %6578 = vmatpush1.bf16.msra.mxu1 %v13536_v38  ;;  %6501 = vmatprep.subr.bf16.mxu0 %v13541_v6  ;;  %v13625_v38 = vld [vmem:[#allocation3 + $0x1604] ss:$200 sps:$4 sm:$0xff]  }
  0xf0   : > { %6579 = vmatprep.subr.bf16.mxu1 %v13544_v39  ;;  %6566 = vmatprep.mubr.bf16.mxu1 %v17126_v0  ;;  %v13628_v6 = vld [vmem:[#allocation3 + $0xc9c] ss:$200 sps:$4 sm:$0xff]   ;;  %v13623_v39 = vld [vmem:[#allocation3 + $0x1600] ss:$200 sps:$4 sm:$0xff]  }
  0xf2   : > { %6502 = vmatpush2.bf16.msra.mxu0 %v13539_v40  ;;  %v13626_v40 = vld [vmem:[#allocation3 + $0xc98] ss:$200 sps:$4 sm:$0xff]  }
  0xf3   : > { %6580 = vmatpush1.bf16.msra.mxu1 %v13542_v41  ;;  %6638 = vmatprep.subr.bf16.mxu0 %v13547_v42  ;;  %v13631_v41 = vld [vmem:[#allocation3 + $0x1474] ss:$200 sps:$4 sm:$0xff]  }
  0xf4   : > { %6581 = vmatprep.subr.bf16.mxu1 %v13550_v43  ;;  %v13634_v42 = vld [vmem:[#allocation3 + $0x1dd4] ss:$200 sps:$4 sm:$0xff]   ;;  %v13629_v43 = vld [vmem:[#allocation3 + $0x1470] ss:$200 sps:$4 sm:$0xff]  }
  0xf5   : > { %6504 = vmatmul.mubr.bf16.vlgmr.msra.gmra.mxu0 %v15181_v17 }
  0xf6   : > { %6513 = vmatprep.mubr.bf16.mxu0 %v15198_v27  ;;  %12716 = vmatmul.mubr.msk.bf16.gmra.mxu1 %vm6254_vm3, %v15188_v20 }
  0xf7   : > { %6639 = vmatpush1.bf16.msra.mxu0 %v13545_v44  ;;  %6582 = vmatpush1.bf16.msra.mxu1 %v13548_v45  ;;  %v13632_v44 = vld [vmem:[#allocation3 + $0x1dd0] ss:$200 sps:$4 sm:$0xff]   ;;  %v13637_v45 = vld [vmem:[#allocation3 + $0x12e4] ss:$200 sps:$4 sm:$0xff]  }
  0xf8   : > { %6609 = vmatprep.mubr.bf16.mxu1 %v15186_v19  ;;  %6640 = vmatprep.subr.bf16.mxu0 %v13553_v46  ;;  %v13640_v46 = vld [vmem:[#allocation3 + $0x1c44] ss:$200 sps:$4 sm:$0xff]  }
  0xf9   : > { %6583 = vmatprep.subr.bf16.mxu1 %v13556_v48  ;;  %v13638_v48 = vld [vmem:[#allocation3 + $0x1c40] ss:$200 sps:$4 sm:$0xff]  }
  0xfb   : > { %6641 = vmatpush1.bf16.msra.mxu0 %v13551_v47  ;;  %6584 = vmatpush1.bf16.msra.mxu1 %v13554_v49  ;;  %v13635_v47 = vld [vmem:[#allocation3 + $0x12e0] ss:$200 sps:$4 sm:$0xff]   ;;  %v13643_v49 = vld [vmem:[#allocation3 + $0x1154] ss:$200 sps:$4 sm:$0xff]  }
  0xfc   : > { %6642 = vmatprep.subr.bf16.mxu0 %v13559_v50  ;;  %6585 = vmatprep.subr.bf16.mxu1 %v13562_v51  ;;  %v13646_v50 = vld [vmem:[#allocation3 + $0x1ab4] ss:$200 sps:$4 sm:$0xff]   ;;  %v13641_v51 = vld [vmem:[#allocation3 + $0x1150] ss:$200 sps:$4 sm:$0xff]  }
  0xfd   : > { %6514 = vmatmul.mubr.bf16.gmra.mxu0 %v15203_v32 }
  0xfe   : > { %6662 = vmatprep.mubr.bf16.mxu0 %v17126_v0 }
  0xff   : > { %6643 = vmatpush1.bf16.msra.mxu0 %v13557_v52  ;;  %6586 = vmatpush1.bf16.msra.mxu1 %v13560_v53  ;;  %v13644_v52 = vld [vmem:[#allocation3 + $0x1ab0] ss:$200 sps:$4 sm:$0xff]   ;;  %v13649_v53 = vld [vmem:[#allocation3 + $0xfc4] ss:$200 sps:$4 sm:$0xff]  }
 0x100   : > { %6644 = vmatprep.subr.bf16.mxu0 %v13565_v54  ;;  %6587 = vmatprep.subr.bf16.mxu1 %v13568_v55  ;;  %v13652_v54 = vld [vmem:[#allocation3 + $0x1924] ss:$200 sps:$4 sm:$0xff]   ;;  %v13647_v55 = vld [vmem:[#allocation3 + $0xfc0] ss:$200 sps:$4 sm:$0xff]  }
 0x103   : > { %6645 = vmatpush1.bf16.msra.mxu0 %v13563_v56  ;;  %6588 = vmatpush1.bf16.msra.mxu1 %v13566_v57  ;;  %v13650_v56 = vld [vmem:[#allocation3 + $0x1920] ss:$200 sps:$4 sm:$0xff]   ;;  %v13655_v57 = vld [vmem:[#allocation3 + $0xe34] ss:$200 sps:$4 sm:$0xff]  }
 0x104   : > { %6683 = vmatprep.subr.bf16.mxu0 %v13571_v58  ;;  %6589 = vmatprep.subr.bf16.mxu1 %v13574_v59  ;;  %v13658_v58 = vld [vmem:[#allocation3 + $0xb1c] ss:$200 sps:$4 sm:$0xff]   ;;  %v13653_v59 = vld [vmem:[#allocation3 + $0xe30] ss:$200 sps:$4 sm:$0xff]  }
 0x106   : > { %12717 = vmatmul.mubr.msk.bf16.vlgmr.msra.gmra.mxu0 %vm6254_vm3, %v15174_v10 }
 0x107   : > { %6684 = vmatpush1.bf16.msra.mxu0 %v13569_v60  ;;  %6590 = vmatpush1.bf16.msra.mxu1 %v13572_v61  ;;  %v13656_v60 = vld [vmem:[#allocation3 + $0xb18] ss:$200 sps:$4 sm:$0xff]   ;;  %v13661_v61 = vld [vmem:[#allocation3 + $0xca4] ss:$200 sps:$4 sm:$0xff]  }
 0x108   : > { %6685 = vmatprep.subr.bf16.mxu0 %v13577_v62  ;;  %6591 = vmatprep.subr.bf16.mxu1 %v13580_v63  ;;  %v13664_v62 = vld [vmem:[#allocation3 + $0x98c] ss:$200 sps:$4 sm:$0xff]   ;;  %v13659_v63 = vld [vmem:[#allocation3 + $0xca0] ss:$200 sps:$4 sm:$0xff]  }
 0x109   : > { %6672 = vmatprep.mubr.bf16.mxu0 %v17126_v0 }
 0x10b   : > { %6686 = vmatpush1.bf16.msra.mxu0 %v13575_v1  ;;  %6592 = vmatpush1.bf16.msra.mxu1 %v13578_v2  ;;  %v13662_v1 = vld [vmem:[#allocation3 + $0x988] ss:$200 sps:$4 sm:$0xff]   ;;  %v13667_v2 = vld [vmem:[#allocation3 + $0x1ddc] ss:$200 sps:$4 sm:$0xff]  }
 0x10c   : > { %6687 = vmatprep.subr.bf16.mxu0 %v13583_v3  ;;  %6593 = vmatprep.subr.bf16.mxu1 %v13586_v4  ;;  %v13670_v3 = vld [vmem:[#allocation3 + $0x7fc] ss:$200 sps:$4 sm:$0xff]   ;;  %v13665_v4 = vld [vmem:[#allocation3 + $0x1dd8] ss:$200 sps:$4 sm:$0xff]  }
 0x10e   : > { %12718 = vmatmul.mubr.msk.bf16.gmra.mxu0 %vm6254_vm3, %v15188_v20 }
 0x10f   : > { %6688 = vmatpush1.bf16.msra.mxu0 %v13581_v7  ;;  %6715 = vmatprep.mubr.bf16.mxu0 %v15186_v19  ;;  %v13668_v7 = vld [vmem:[#allocation3 + $0x7f8] ss:$200 sps:$4 sm:$0xff]  }
 0x110   : > { %6594 = vmatpush2.bf16.msra.mxu1 %v13584_v8  ;;  %6689 = vmatprep.subr.bf16.mxu0 %v13589_v9  ;;  %v13673_v8 = vld [vmem:[#allocation3 + $0x1c4c] ss:$200 sps:$4 sm:$0xff]   ;;  %v13671_v9 = vld [vmem:[#allocation3 + $0x1c48] ss:$200 sps:$4 sm:$0xff]  }
 0x111   : > { %6595 = vmatprep.subr.bf16.mxu1 %v13592_v12  ;;  %v13676_v12 = vld [vmem:[#allocation3 + $0x66c] ss:$200 sps:$4 sm:$0xff]  }
 0x113   : > { %6690 = vmatpush1.bf16.msra.mxu0 %v13587_v11  ;;  %v13674_v11 = vld [vmem:[#allocation3 + $0x668] ss:$200 sps:$4 sm:$0xff]  }
 0x114   : > { %6596 = vmatpush2.bf16.msra.mxu1 %v13590_v13  ;;  %6691 = vmatprep.subr.bf16.mxu0 %v13595_v14  ;;  %v13679_v13 = vld [vmem:[#allocation3 + $0x1abc] ss:$200 sps:$4 sm:$0xff]  }
 0x115   : > { %6597 = vmatprep.subr.bf16.mxu1 %v13598_v16  ;;  %v13682_v14 = vld [vmem:[#allocation3 + $0x4dc] ss:$200 sps:$4 sm:$0xff]   ;;  %v13680_v16 = vld [vmem:[#allocation3 + $0x4d8] ss:$200 sps:$4 sm:$0xff]  }
 0x117   : > { %6692 = vmatpush1.bf16.msra.mxu0 %v13593_v15  ;;  %v13677_v15 = vld [vmem:[#allocation3 + $0x1ab8] ss:$200 sps:$4 sm:$0xff]  }
 0x118   : > { %6598 = vmatpush2.bf16.msra.mxu1 %v13596_v18  ;;  %6693 = vmatprep.subr.bf16.mxu0 %v13601_v21  ;;  %v13685_v18 = vld [vmem:[#allocation3 + $0x192c] ss:$200 sps:$4 sm:$0xff]  }
 0x119   : > { %6599 = vmatprep.subr.bf16.mxu1 %v13604_v23  ;;  %v13688_v21 = vld [vmem:[#allocation3 + $0x34c] ss:$200 sps:$4 sm:$0xff]   ;;  %v13686_v23 = vld [vmem:[#allocation3 + $0x348] ss:$200 sps:$4 sm:$0xff]  }
 0x11b   : > { %6694 = vmatpush1.bf16.msra.mxu0 %v13599_v22  ;;  %v13683_v22 = vld [vmem:[#allocation3 + $0x1928] ss:$200 sps:$4 sm:$0xff]  }
 0x11c   : > { %6600 = vmatpush2.bf16.msra.mxu1 %v13602_v24  ;;  %6695 = vmatprep.subr.bf16.mxu0 %v13607_v5  ;;  %v13691_v24 = vld [vmem:[#allocation3 + $0xb24] ss:$200 sps:$4 sm:$0xff]  }
 0x11d   : > { %6601 = vmatprep.subr.bf16.mxu1 %v13610_v25  ;;  %v13694_v5 = vld [vmem:[#allocation3 + $0x1bc] ss:$200 sps:$4 sm:$0xff]   ;;  %v13689_v25 = vld [vmem:[#allocation3 + $0xb20] ss:$200 sps:$4 sm:$0xff]  }
 0x11f   : > { %6696 = vmatpush1.bf16.msra.mxu0 %v13605_v26  ;;  %v13692_v26 = vld [vmem:[#allocation3 + $0x1b8] ss:$200 sps:$4 sm:$0xff]  }
 0x120   : > { %6602 = vmatpush2.bf16.msra.mxu1 %v13608_v28  ;;  %6697 = vmatprep.subr.bf16.mxu0 %v13613_v29  ;;  %v13697_v28 = vld [vmem:[#allocation3 + $0x994] ss:$200 sps:$4 sm:$0xff]  }
 0x121   : > { %6603 = vmatprep.subr.bf16.mxu1 %v13616_v30  ;;  %v13700_v29 = vld [vmem:[#allocation3 + $0x2c] ss:$200 sps:$4 sm:$0xff]   ;;  %v13695_v30 = vld [vmem:[#allocation3 + $0x990] ss:$200 sps:$4 sm:$0xff]  }
 0x123   : > { %6698 = vmatpush1.bf16.msra.mxu0 %v13611_v31  ;;  %v13698_v31 = vld [vmem:[#allocation3 + $0x28] ss:$200 sps:$4 sm:$0xff]  }
 0x124   : > { %6604 = vmatpush2.bf16.msra.mxu1 %v13614_v33  ;;  %6699 = vmatprep.subr.bf16.mxu0 %v13619_v34  ;;  %v13703_v33 = vld [vmem:[#allocation3 + $0x804] ss:$200 sps:$4 sm:$0xff]  }
 0x125   : > { %6605 = vmatprep.subr.bf16.mxu1 %v13622_v35  ;;  %v13706_v34 = vld [vmem:[#allocation3 + $0x179c] ss:$200 sps:$4 sm:$0xff]   ;;  %v13701_v35 = vld [vmem:[#allocation3 + $0x800] ss:$200 sps:$4 sm:$0xff]  }
 0x127   : > { %6700 = vmatpush2.bf16.msra.mxu0 %v13617_v36  ;;  %v13704_v36 = vld [vmem:[#allocation3 + $0x1798] ss:$200 sps:$4 sm:$0xff]  }
 0x128   : > { %6606 = vmatpush2.bf16.msra.mxu1 %v13620_v37  ;;  %6701 = vmatprep.subr.bf16.mxu0 %v13625_v38  ;;  %v13709_v37 = vld [vmem:[#allocation3 + $0x674] ss:$200 sps:$4 sm:$0xff]  }
 0x129   : > { %6607 = vmatprep.subr.bf16.mxu1 %v13628_v6  ;;  %v13707_v6 = vld [vmem:[#allocation3 + $0x670] ss:$200 sps:$4 sm:$0xff]  }
 0x12b   : > { %6702 = vmatpush2.bf16.msra.mxu0 %v13623_v39  ;;  %v13712_v39 = vld [vmem:[#allocation3 + $0x160c] ss:$200 sps:$4 sm:$0xff]  }
 0x12c   : > { %6608 = vmatpush2.bf16.msra.mxu1 %v13626_v40  ;;  %6703 = vmatprep.subr.bf16.mxu0 %v13631_v41  ;;  %v13710_v40 = vld [vmem:[#allocation3 + $0x1608] ss:$200 sps:$4 sm:$0xff]  }
 0x12d   : > { %6744 = vmatprep.subr.bf16.mxu1 %v13634_v42  ;;  %v13715_v42 = vld [vmem:[#allocation3 + $0x4e4] ss:$200 sps:$4 sm:$0xff]  }
 0x12f   : > { %6610 = vmatmul.mubr.bf16.vlgmr.msra.gmra.mxu1 %v15181_v17  ;;  %6704 = vmatpush2.bf16.msra.mxu0 %v13629_v43 }
 0x130   : > { %6619 = vmatprep.mubr.bf16.mxu1 %v15198_v27  ;;  %6745 = vmatpush1.bf16.msra.mxu1 %v13632_v44  ;;  %v13713_v44 = vld [vmem:[#allocation3 + $0x4e0] ss:$200 sps:$4 sm:$0xff]  }
 0x131   : > { %6705 = vmatprep.subr.bf16.mxu0 %v13637_v45  ;;  %6746 = vmatprep.subr.bf16.mxu1 %v13640_v46  ;;  %v13718_v45 = vld [vmem:[#allocation3 + $0x147c] ss:$200 sps:$4 sm:$0xff]   ;;  %v13716_v46 = vld [vmem:[#allocation3 + $0x1478] ss:$200 sps:$4 sm:$0xff]  }
 0x133   : > { %6706 = vmatpush2.bf16.msra.mxu0 %v13635_v47  ;;  %v13721_v47 = vld [vmem:[#allocation3 + $0x354] ss:$200 sps:$4 sm:$0xff]  }
 0x134   : > { %6747 = vmatpush1.bf16.msra.mxu1 %v13638_v48  ;;  %6707 = vmatprep.subr.bf16.mxu0 %v13643_v49 }
 0x135   : > { %6748 = vmatprep.subr.bf16.mxu1 %v13646_v50 }
 0x137   : > { %6620 = vmatmul.mubr.bf16.gmra.mxu1 %v15203_v32  ;;  %6708 = vmatpush2.bf16.msra.mxu0 %v13641_v51  ;;  %v13719_v51 = vld [vmem:[#allocation3 + $0x350] ss:$200 sps:$4 sm:$0xff]  }
 0x138   : > { %6749 = vmatpush1.bf16.msra.mxu1 %v13644_v52  ;;  %6709 = vmatprep.subr.bf16.mxu0 %v13649_v53  ;;  %v13724_v52 = vld [vmem:[#allocation3 + $0x12ec] ss:$200 sps:$4 sm:$0xff]  }
 0x139   : > { %6750 = vmatprep.subr.bf16.mxu1 %v13652_v54  ;;  %6768 = vmatprep.mubr.bf16.mxu1 %v17126_v0  ;;  %v13722_v54 = vld [vmem:[#allocation3 + $0x12e8] ss:$200 sps:$4 sm:$0xff]  }
 0x13b   : > { %6710 = vmatpush2.bf16.msra.mxu0 %v13647_v55  ;;  %v13727_v55 = vld [vmem:[#allocation3 + $0x1c4] ss:$200 sps:$4 sm:$0xff]  }
 0x13c   : > { %6751 = vmatpush1.bf16.msra.mxu1 %v13650_v56  ;;  %6711 = vmatprep.subr.bf16.mxu0 %v13655_v57 }
 0x13d   : > { %6789 = vmatprep.subr.bf16.mxu1 %v13658_v58  ;;  %v13730_v58 = vld [vmem:[#allocation3 + $0x115c] ss:$200 sps:$4 sm:$0xff]  }
 0x13f   : > { %6712 = vmatpush2.bf16.msra.mxu0 %v13653_v59  ;;  %12719 = vmatmul.mubr.msk.bf16.vlgmr.msra.gmra.mxu1 %vm6254_vm3, %v15174_v10 }
 0x140   : > { %6790 = vmatpush1.bf16.msra.mxu1 %v13656_v60  ;;  %6713 = vmatprep.subr.bf16.mxu0 %v13661_v61 }
 0x141   : > { %6791 = vmatprep.subr.bf16.mxu1 %v13664_v62  ;;  %6778 = vmatprep.mubr.bf16.mxu1 %v17126_v0  ;;  %v13725_v62 = vld [vmem:[#allocation3 + $0x1c0] ss:$200 sps:$4 sm:$0xff]  }
 0x143   : > { %6714 = vmatpush2.bf16.msra.mxu0 %v13659_v63  ;;  %v13728_v63 = vld [vmem:[#allocation3 + $0x1158] ss:$200 sps:$4 sm:$0xff]  }
 0x144   : > { %6792 = vmatpush1.bf16.msra.mxu1 %v13662_v1  ;;  %6850 = vmatprep.subr.bf16.mxu0 %v13667_v2  ;;  %v13733_v2 = vld [vmem:[#allocation3 + $0x34] ss:$200 sps:$4 sm:$0xff]  }
 0x145   : > { %6793 = vmatprep.subr.bf16.mxu1 %v13670_v3  ;;  %v13736_v3 = vld [vmem:[#allocation3 + $0xfcc] ss:$200 sps:$4 sm:$0xff]  }
 0x146   : > { %6716 = vmatmul.mubr.bf16.vlgmr.msra.gmra.mxu0 %v15181_v17 }
 0x147   : > { %6725 = vmatprep.mubr.bf16.mxu0 %v15198_v27  ;;  %12720 = vmatmul.mubr.msk.bf16.gmra.mxu1 %vm6254_vm3, %v15188_v20 }
 0x148   : > { %6851 = vmatpush1.bf16.msra.mxu0 %v13665_v4  ;;  %6794 = vmatpush1.bf16.msra.mxu1 %v13668_v7 }
 0x149   : > { %6821 = vmatprep.mubr.bf16.mxu1 %v15186_v19  ;;  %6852 = vmatprep.subr.bf16.mxu0 %v13673_v8 }
 0x14a   : > { %6795 = vmatprep.subr.bf16.mxu1 %v13676_v12 }
 0x14c   : > { %6853 = vmatpush1.bf16.msra.mxu0 %v13671_v9  ;;  %6796 = vmatpush1.bf16.msra.mxu1 %v13674_v11  ;;  %v13731_v9 = vld [vmem:[#allocation3 + $0x30] ss:$200 sps:$4 sm:$0xff]  }
 0x14d   : > { %6854 = vmatprep.subr.bf16.mxu0 %v13679_v13  ;;  %6797 = vmatprep.subr.bf16.mxu1 %v13682_v14  ;;  %v13734_v13 = vld [vmem:[#allocation3 + $0xfc8] ss:$200 sps:$4 sm:$0xff]   ;;  %v13739_v14 = vld [vmem:[#allocation3 + $0x17a4] ss:$200 sps:$4 sm:$0xff]  }
 0x14e   : > { %6726 = vmatmul.mubr.bf16.gmra.mxu0 %v15203_v32 }
 0x14f   : > { %6874 = vmatprep.mubr.bf16.mxu0 %v17126_v0 }
 0x150   : > { %6855 = vmatpush1.bf16.msra.mxu0 %v13677_v15  ;;  %6798 = vmatpush1.bf16.msra.mxu1 %v13680_v16  ;;  %v13742_v16 = vld [vmem:[#allocation3 + $0xe3c] ss:$200 sps:$4 sm:$0xff]  }
 0x151   : > { %6856 = vmatprep.subr.bf16.mxu0 %v13685_v18  ;;  %6799 = vmatprep.subr.bf16.mxu1 %v13688_v21  ;;  %v13737_v21 = vld [vmem:[#allocation3 + $0x17a0] ss:$200 sps:$4 sm:$0xff]  }
 0x154   : > { %6857 = vmatpush1.bf16.msra.mxu0 %v13683_v22  ;;  %6800 = vmatpush1.bf16.msra.mxu1 %v13686_v23  ;;  %v13740_v22 = vld [vmem:[#allocation3 + $0xe38] ss:$200 sps:$4 sm:$0xff]   ;;  %v13745_v23 = vld [vmem:[#allocation3 + $0x1614] ss:$200 sps:$4 sm:$0xff]  }
 0x155   : > { %6895 = vmatprep.subr.bf16.mxu0 %v13691_v24  ;;  %6801 = vmatprep.subr.bf16.mxu1 %v13694_v5  ;;  %v13748_v24 = vld [vmem:[#allocation3 + $0xcac] ss:$200 sps:$4 sm:$0xff]   ;;  %v13743_v5 = vld [vmem:[#allocation3 + $0x1610] ss:$200 sps:$4 sm:$0xff]  }
 0x157   : > { %12721 = vmatmul.mubr.msk.bf16.vlgmr.msra.gmra.mxu0 %vm6254_vm3, %v15174_v10 }
 0x158   : > { %6896 = vmatpush1.bf16.msra.mxu0 %v13689_v25  ;;  %6802 = vmatpush1.bf16.msra.mxu1 %v13692_v26  ;;  %v13746_v25 = vld [vmem:[#allocation3 + $0xca8] ss:$200 sps:$4 sm:$0xff]   ;;  %v13751_v26 = vld [vmem:[#allocation3 + $0x1484] ss:$200 sps:$4 sm:$0xff]  }
 0x159   : > { %6897 = vmatprep.subr.bf16.mxu0 %v13697_v28  ;;  %6803 = vmatprep.subr.bf16.mxu1 %v13700_v29  ;;  %v13754_v28 = vld [vmem:[#allocation3 + $0x1de4] ss:$200 sps:$4 sm:$0xff]   ;;  %v13749_v29 = vld [vmem:[#allocation3 + $0x1480] ss:$200 sps:$4 sm:$0xff]  }
 0x15a   : > { %6884 = vmatprep.mubr.bf16.mxu0 %v17126_v0 }
 0x15c   : > { %6898 = vmatpush1.bf16.msra.mxu0 %v13695_v30  ;;  %6804 = vmatpush1.bf16.msra.mxu1 %v13698_v31  ;;  %v13752_v30 = vld [vmem:[#allocation3 + $0x1de0] ss:$200 sps:$4 sm:$0xff]   ;;  %v13757_v31 = vld [vmem:[#allocation3 + $0x12f4] ss:$200 sps:$4 sm:$0xff]  }
 0x15d   : > { %6899 = vmatprep.subr.bf16.mxu0 %v13703_v33  ;;  %6805 = vmatprep.subr.bf16.mxu1 %v13706_v34  ;;  %v13760_v33 = vld [vmem:[#allocation3 + $0x1c54] ss:$200 sps:$4 sm:$0xff]   ;;  %v13755_v34 = vld [vmem:[#allocation3 + $0x12f0] ss:$200 sps:$4 sm:$0xff]  }
 0x15e   : > { %v6346_v38 = vpop.f32.mrf.mxu1 }
 0x15f   : > { %12722 = vmatmul.mubr.msk.bf16.gmra.mxu0 %vm6254_vm3, %v15188_v20 }
 0x160   : > { %6900 = vmatpush1.bf16.msra.mxu0 %v13701_v35  ;;  %6927 = vmatprep.mubr.bf16.mxu0 %v15186_v19  ;;  %v6348_v41 = vpop.f32.mrf.mxu1  ;;  %v13758_v35 = vld [vmem:[#allocation3 + $0x1c50] ss:$200 sps:$4 sm:$0xff]  }
 0x161   : > { %6806 = vmatpush2.bf16.msra.mxu1 %v13704_v36  ;;  %6901 = vmatprep.subr.bf16.mxu0 %v13709_v37  ;;  %v13763_v36 = vld [vmem:[#allocation3 + $0x1164] ss:$200 sps:$4 sm:$0xff]  }
 0x162   : > { %6807 = vmatprep.subr.bf16.mxu1 %v13712_v39  ;;  %v6350_v43 = vpop.f32.mrf.mxu1  ;;  %v13766_v37 = vld [vmem:[#allocation3 + $0x1ac4] ss:$200 sps:$4 sm:$0xff]   ;;  %v13769_v39 = vld [vmem:[#allocation3 + $0xfd4] ss:$200 sps:$4 sm:$0xff]  }
 0x164   : > { %6902 = vmatpush1.bf16.msra.mxu0 %v13707_v6  ;;  %v15253_v48 = vpop.f32.mrf.mxu1  ;;  %v13764_v6 = vld [vmem:[#allocation3 + $0x1ac0] ss:$200 sps:$4 sm:$0xff]  }
 0x165   : > { %6808 = vmatpush2.bf16.msra.mxu1 %v13710_v40  ;;  %6903 = vmatprep.subr.bf16.mxu0 %v13715_v42  ;;  %v6293_v49 = vpop.f32.mrf.mxu0  ;;  %v13772_v40 = vld [vmem:[#allocation3 + $0x1934] ss:$200 sps:$4 sm:$0xff]   ;;  %v13770_v42 = vld [vmem:[#allocation3 + $0x1930] ss:$200 sps:$4 sm:$0xff]  }
 0x166   : > { %v15255_v50 = vadd.f32 %v6346_v38, %v6293_v49  ;;  %6809 = vmatprep.subr.bf16.mxu1 %v13718_v45  ;;  %v6356_v56 = vpop.f32.mrf.mxu1  ;;  %v13761_v38 = vld [vmem:[#allocation3 + $0x1160] ss:$200 sps:$4 sm:$0xff]   ;;  %v13784_v49 = vld [vmem:[#allocation3 + $0x99c] ss:$200 sps:$4 sm:$0xff]  }
 0x167   : > { %v6295_v53 = vpop.f32.mrf.mxu0  ;;  %v13773_v45 = vld [vmem:[#allocation3 + $0xe40] ss:$200 sps:$4 sm:$0xff]  }
 0x168   : > { %6904 = vmatpush1.bf16.msra.mxu0 %v13713_v44  ;;  %v15257_v57 = vadd.f32 %v6348_v41, %v6295_v53  ;;  %v6358_v1 = vpop.f32.mrf.mxu1  ;;  %v13767_v41 = vld [vmem:[#allocation3 + $0xfd0] ss:$200 sps:$4 sm:$0xff]   ;;  %v13778_v44 = vld [vmem:[#allocation3 + $0xb2c] ss:$200 sps:$4 sm:$0xff]  }
 0x169   : > { %6810 = vmatpush2.bf16.msra.mxu1 %v13716_v46  ;;  %6905 = vmatprep.subr.bf16.mxu0 %v13721_v47  ;;  %v6297_v59 = vpop.f32.mrf.mxu0  ;;  %v13776_v46 = vld [vmem:[#allocation3 + $0xb28] ss:$200 sps:$4 sm:$0xff]   ;;  %v13781_v47 = vld [vmem:[#allocation3 + $0xcb4] ss:$200 sps:$4 sm:$0xff]   ;;  %v13782_v53 = vld [vmem:[#allocation3 + $0x998] ss:$200 sps:$4 sm:$0xff]  }
 0x16a   : > { %v15259_v60 = vadd.f32 %v6350_v43, %v6297_v59  ;;  %6811 = vmatprep.subr.bf16.mxu1 %v13724_v52  ;;  %v6360_v11 = vpop.f32.mrf.mxu1  ;;  %v13775_v43 = vld [vmem:[#allocation3 + $0xe44] ss:$200 sps:$4 sm:$0xff]   ;;  %v13779_v52 = vld [vmem:[#allocation3 + $0xcb0] ss:$200 sps:$4 sm:$0xff]  }
 0x16b   : > { %v15261_v61 = vpop.f32.mrf.mxu0  ;;  %v13788_v59 = vld [vmem:[#allocation3 + $0x808] ss:$200 sps:$4 sm:$0xff]  }
 0x16c   : > { %6906 = vmatpush1.bf16.msra.mxu0 %v13719_v51 }
 0x16d   : > { %6812 = vmatpush2.bf16.msra.mxu1 %v13722_v54  ;;  %6907 = vmatprep.subr.bf16.mxu0 %v13727_v55  ;;  %v6303_v4 = vpop.f32.mrf.mxu0  ;;  %v13787_v54 = vld [vmem:[#allocation3 + $0x1dec] ss:$200 sps:$4 sm:$0xff]  }
 0x16e   : > { %v15263_v7 = vadd.f32 %v6356_v56, %v6303_v4  ;;  %6813 = vmatprep.subr.bf16.mxu1 %v13730_v58  ;;  %v13790_v55 = vld [vmem:[#allocation3 + $0x80c] ss:$200 sps:$4 sm:$0xff]   ;;  %v13785_v58 = vld [vmem:[#allocation3 + $0x1de8] ss:$200 sps:$4 sm:$0xff]  }
 0x16f   : > { %v6305_v8 = vpop.f32.mrf.mxu0  ;;  %v13799_v4 = vld [vmem:[#allocation3 + $0x1acc] ss:$200 sps:$4 sm:$0xff]  }
 0x170   : > { %6908 = vmatpush1.bf16.msra.mxu0 %v13725_v62  ;;  %v15265_v12 = vadd.f32 %v6358_v1, %v6305_v8  ;;  %v13793_v62 = vld [vmem:[#allocation3 + $0x1c5c] ss:$200 sps:$4 sm:$0xff]   ;;  %v13791_v1 = vld [vmem:[#allocation3 + $0x1c58] ss:$200 sps:$4 sm:$0xff]   ;;  %v13802_v8 = vld [vmem:[#allocation3 + $0x4ec] ss:$200 sps:$4 sm:$0xff]  }
 0x171   : > { %6814 = vmatpush2.bf16.msra.mxu1 %v13728_v63  ;;  %6909 = vmatprep.subr.bf16.mxu0 %v13733_v2  ;;  %v6307_v15 = vpop.f32.mrf.mxu0  ;;  %v13794_v2 = vld [vmem:[#allocation3 + $0x678] ss:$200 sps:$4 sm:$0xff]  }
 0x172   : > { %17153 = vst [vmem:[#allocation6_spill] sm:$0xff] %v15265_v12  ;;  %v15267_v18 = vadd.f32 %v6360_v11, %v6307_v15  ;;  %6815 = vmatprep.subr.bf16.mxu1 %v13736_v3  ;;  %v13796_v3 = vld [vmem:[#allocation3 + $0x67c] ss:$200 sps:$4 sm:$0xff]   ;;  %v13797_v11 = vld [vmem:[#allocation3 + $0x1ac8] ss:$200 sps:$4 sm:$0xff]  }
 0x173   : > { %v15273_v51 = vpop.f32.mrf.mxu0  ;;  %v13805_v15 = vld [vmem:[#allocation3 + $0x193c] ss:$200 sps:$4 sm:$0xff]   ;;  %v14180_v12 = vld [vmem:[#allocation3 + $0x6c] ss:$200 sps:$4 sm:$0xff]  }
 0x174   : > { %6910 = vmatpush1.bf16.msra.mxu0 %v13731_v9 }
 0x175   : > { %6816 = vmatpush2.bf16.msra.mxu1 %v13734_v13  ;;  %6911 = vmatprep.subr.bf16.mxu0 %v13739_v14  ;;  %v6452_v56 = vpop.f32.mrf.mxu0  ;;  %v13800_v13 = vld [vmem:[#allocation3 + $0x4e8] ss:$200 sps:$4 sm:$0xff]   ;;  %v15283_v14 = vpop.f32.mrf.mxu1 }
 0x176   : > { %6817 = vmatprep.subr.bf16.mxu1 %v13742_v16  ;;  %17154 = vst [vmem:[#allocation7_spill] sm:$0xff] %v15283_v14  ;;  %v13808_v16 = vld [vmem:[#allocation3 + $0x35c] ss:$200 sps:$4 sm:$0xff]  }
 0x177   : > { %v6454_v63 = vpop.f32.mrf.mxu0 }
 0x178   : > { %6912 = vmatpush2.bf16.msra.mxu0 %v13737_v21 }
 0x179   : > { %6818 = vmatpush2.bf16.msra.mxu1 %v13740_v22  ;;  %6913 = vmatprep.subr.bf16.mxu0 %v13745_v23  ;;  %v6456_v9 = vpop.f32.mrf.mxu0 }
 0x17a   : > { %6819 = vmatprep.subr.bf16.mxu1 %v13748_v24  ;;  %v13803_v24 = vld [vmem:[#allocation3 + $0x1938] ss:$200 sps:$4 sm:$0xff]  }
 0x17b   : > { %v15285_v21 = vpop.f32.mrf.mxu0 }
 0x17c   : > { %6914 = vmatpush2.bf16.msra.mxu0 %v13743_v5  ;;  %17155 = vst [vmem:[#allocation8_spill] sm:$0xff] %v15285_v21  ;;  %v13806_v5 = vld [vmem:[#allocation3 + $0x358] ss:$200 sps:$4 sm:$0xff]  }
 0x17d   : > { %6820 = vmatpush2.bf16.msra.mxu1 %v13746_v25  ;;  %6915 = vmatprep.subr.bf16.mxu0 %v13751_v26  ;;  %v13811_v26 = vld [vmem:[#allocation3 + $0xb34] ss:$200 sps:$4 sm:$0xff]  }
 0x17e   : > { %6956 = vmatprep.subr.bf16.mxu1 %v13754_v28 }
 0x180   : > { %6822 = vmatmul.mubr.bf16.vlgmr.msra.gmra.mxu1 %v15181_v17  ;;  %6916 = vmatpush2.bf16.msra.mxu0 %v13749_v29  ;;  %v13814_v29 = vld [vmem:[#allocation3 + $0x1cc] ss:$200 sps:$4 sm:$0xff]  }
 0x181   : > { %6831 = vmatprep.mubr.bf16.mxu1 %v15198_v27  ;;  %6957 = vmatpush1.bf16.msra.mxu1 %v13752_v30  ;;  %v6462_v30 = vpop.f32.mrf.mxu0 }
 0x182   : > { %6917 = vmatprep.subr.bf16.mxu0 %v13757_v31  ;;  %6958 = vmatprep.subr.bf16.mxu1 %v13760_v33 }
 0x184   : > { %6918 = vmatpush2.bf16.msra.mxu0 %v13755_v34  ;;  %v13809_v34 = vld [vmem:[#allocation3 + $0xb30] ss:$200 sps:$4 sm:$0xff]  }
 0x185   : > { %6959 = vmatpush1.bf16.msra.mxu1 %v13758_v35  ;;  %6919 = vmatprep.subr.bf16.mxu0 %v13763_v36  ;;  %v13812_v35 = vld [vmem:[#allocation3 + $0x1c8] ss:$200 sps:$4 sm:$0xff]  }
 0x186   : > { %6960 = vmatprep.subr.bf16.mxu1 %v13766_v37  ;;  %v13817_v37 = vld [vmem:[#allocation3 + $0x9a4] ss:$200 sps:$4 sm:$0xff]  }
 0x188   : > { %6832 = vmatmul.mubr.bf16.gmra.mxu1 %v15203_v32  ;;  %6920 = vmatpush2.bf16.msra.mxu0 %v13761_v38  ;;  %v13820_v38 = vld [vmem:[#allocation3 + $0x3c] ss:$200 sps:$4 sm:$0xff]  }
 0x189   : > { %6961 = vmatpush1.bf16.msra.mxu1 %v13764_v6  ;;  %6921 = vmatprep.subr.bf16.mxu0 %v13769_v39  ;;  %v6464_v6 = vpop.f32.mrf.mxu0 }
 0x18a   : > { %6962 = vmatprep.subr.bf16.mxu1 %v13772_v40  ;;  %6980 = vmatprep.mubr.bf16.mxu1 %v17126_v0 }
 0x18c   : > { %6922 = vmatpush2.bf16.msra.mxu0 %v13767_v41  ;;  %v13815_v41 = vld [vmem:[#allocation3 + $0x9a0] ss:$200 sps:$4 sm:$0xff]  }
 0x18d   : > { %6963 = vmatpush1.bf16.msra.mxu1 %v13770_v42  ;;  %6923 = vmatprep.subr.bf16.mxu0 %v13775_v43  ;;  %v13818_v42 = vld [vmem:[#allocation3 + $0x38] ss:$200 sps:$4 sm:$0xff]  }
 0x18e   : > { %7001 = vmatprep.subr.bf16.mxu1 %v13778_v44  ;;  %v13823_v44 = vld [vmem:[#allocation3 + $0x814] ss:$200 sps:$4 sm:$0xff]  }
 0x190   : > { %6924 = vmatpush2.bf16.msra.mxu0 %v13773_v45  ;;  %12723 = vmatmul.mubr.msk.bf16.vlgmr.msra.gmra.mxu1 %vm6254_vm3, %v15174_v10 }
 0x191   : > { %7002 = vmatpush1.bf16.msra.mxu1 %v13776_v46  ;;  %6925 = vmatprep.subr.bf16.mxu0 %v13781_v47  ;;  %v13826_v46 = vld [vmem:[#allocation3 + $0x17ac] ss:$200 sps:$4 sm:$0xff]   ;;  %v6466_v47 = vpop.f32.mrf.mxu0 }
 0x192   : > { %7003 = vmatprep.subr.bf16.mxu1 %v13784_v49  ;;  %6990 = vmatprep.mubr.bf16.mxu1 %v17126_v0 }
 0x194   : > { %6926 = vmatpush2.bf16.msra.mxu0 %v13779_v52 }
 0x195   : > { %7004 = vmatpush1.bf16.msra.mxu1 %v13782_v53  ;;  %7062 = vmatprep.subr.bf16.mxu0 %v13787_v54  ;;  %v13821_v53 = vld [vmem:[#allocation3 + $0x810] ss:$200 sps:$4 sm:$0xff]  }
 0x196   : > { %7005 = vmatprep.subr.bf16.mxu1 %v13790_v55  ;;  %v13824_v55 = vld [vmem:[#allocation3 + $0x17a8] ss:$200 sps:$4 sm:$0xff]  }
 0x197   : > { %6928 = vmatmul.mubr.bf16.vlgmr.msra.gmra.mxu0 %v15181_v17 }
 0x198   : > { %6937 = vmatprep.mubr.bf16.mxu0 %v15198_v27  ;;  %12724 = vmatmul.mubr.msk.bf16.gmra.mxu1 %vm6254_vm3, %v15188_v20 }
 0x199   : > { %7063 = vmatpush1.bf16.msra.mxu0 %v13785_v58  ;;  %7006 = vmatpush1.bf16.msra.mxu1 %v13788_v59  ;;  %v13827_v59 = vld [vmem:[#allocation3 + $0x680] ss:$200 sps:$4 sm:$0xff]  }
 0x19a   : > { %7033 = vmatprep.mubr.bf16.mxu1 %v15186_v19  ;;  %7064 = vmatprep.subr.bf16.mxu0 %v13793_v62  ;;  %v13832_v62 = vld [vmem:[#allocation3 + $0x161c] ss:$200 sps:$4 sm:$0xff]  }
 0x19b   : > { %7007 = vmatprep.subr.bf16.mxu1 %v13796_v3 }
 0x19d   : > { %7065 = vmatpush1.bf16.msra.mxu0 %v13791_v1  ;;  %7008 = vmatpush1.bf16.msra.mxu1 %v13794_v2  ;;  %v13830_v1 = vld [vmem:[#allocation3 + $0x1618] ss:$200 sps:$4 sm:$0xff]   ;;  %v13835_v2 = vld [vmem:[#allocation3 + $0x4f4] ss:$200 sps:$4 sm:$0xff]  }
 0x19e   : > { %7066 = vmatprep.subr.bf16.mxu0 %v13799_v4  ;;  %v6399_v22 = vpop.f32.mrf.mxu1  ;;  %7009 = vmatprep.subr.bf16.mxu1 %v13802_v8  ;;  %v15311_v4 = vpop.f32.mrf.mxu0  ;;  %v13833_v8 = vld [vmem:[#allocation3 + $0x4f0] ss:$200 sps:$4 sm:$0xff]  }
 0x19f   : > { %6938 = vmatmul.mubr.bf16.gmra.mxu0 %v15203_v32  ;;  %v15288_v23 = vadd.f32 %v6452_v56, %v6399_v22  ;;  %v13829_v56 = vld [vmem:[#allocation3 + $0x684] ss:$200 sps:$4 sm:$0xff]   ;;  %17160 = vst [vmem:[#allocation13_spill] sm:$0xff] %v15311_v4 }
 0x1a0   : > { %v6401_v25 = vpop.f32.mrf.mxu1  ;;  %7086 = vmatprep.mubr.bf16.mxu0 %v17126_v0 }
 0x1a1   : > { %7067 = vmatpush1.bf16.msra.mxu0 %v13797_v11  ;;  %7010 = vmatpush1.bf16.msra.mxu1 %v13800_v13  ;;  %v15291_v28 = vadd.f32 %v6454_v63, %v6401_v25  ;;  %v13836_v11 = vld [vmem:[#allocation3 + $0x1488] ss:$200 sps:$4 sm:$0xff]   ;;  %v13844_v25 = vld [vmem:[#allocation3 + $0x12fc] ss:$200 sps:$4 sm:$0xff]  }
 0x1a2   : > { %7068 = vmatprep.subr.bf16.mxu0 %v13805_v15  ;;  %v6403_v31 = vpop.f32.mrf.mxu1  ;;  %7011 = vmatprep.subr.bf16.mxu1 %v13808_v16  ;;  %v13841_v16 = vld [vmem:[#allocation3 + $0x364] ss:$200 sps:$4 sm:$0xff]  }
 0x1a3   : > { %17156 = vst [vmem:[#allocation9_spill] sm:$0xff] %v15291_v28  ;;  %v15293_v33 = vadd.f32 %v6456_v9, %v6403_v31  ;;  %v13838_v9 = vld [vmem:[#allocation3 + $0x148c] ss:$200 sps:$4 sm:$0xff]  }
 0x1a4   : > { %v15295_v36 = vpop.f32.mrf.mxu1 }
 0x1a5   : > { %17157 = vst [vmem:[#allocation10_spill] sm:$0xff] %v15295_v36  ;;  %7069 = vmatpush1.bf16.msra.mxu0 %v13803_v24  ;;  %7012 = vmatpush1.bf16.msra.mxu1 %v13806_v5  ;;  %v13839_v5 = vld [vmem:[#allocation3 + $0x360] ss:$200 sps:$4 sm:$0xff]  }
 0x1a6   : > { %7107 = vmatprep.subr.bf16.mxu0 %v13811_v26  ;;  %v6409_v39 = vpop.f32.mrf.mxu1  ;;  %7013 = vmatprep.subr.bf16.mxu1 %v13814_v29  ;;  %v13842_v29 = vld [vmem:[#allocation3 + $0x12f8] ss:$200 sps:$4 sm:$0xff]  }
 0x1a7   : > { %v15297_v40 = vadd.f32 %v6462_v30, %v6409_v39  ;;  %v13847_v30 = vld [vmem:[#allocation3 + $0x1d4] ss:$200 sps:$4 sm:$0xff]   ;;  %v13848_v39 = vld [vmem:[#allocation3 + $0x1168] ss:$200 sps:$4 sm:$0xff]  }
 0x1a8   : > { %12725 = vmatmul.mubr.msk.bf16.vlgmr.msra.gmra.mxu0 %vm6254_vm3, %v15174_v10  ;;  %v6411_v43 = vpop.f32.mrf.mxu1 }
 0x1a9   : > { %7108 = vmatpush1.bf16.msra.mxu0 %v13809_v34  ;;  %7014 = vmatpush1.bf16.msra.mxu1 %v13812_v35  ;;  %v15301_v45 = vadd.f32 %v6464_v6, %v6411_v43  ;;  %v13850_v35 = vld [vmem:[#allocation3 + $0x116c] ss:$200 sps:$4 sm:$0xff]   ;;  %v13845_v6 = vld [vmem:[#allocation3 + $0x1d0] ss:$200 sps:$4 sm:$0xff]  }
 0x1aa   : > { %7109 = vmatprep.subr.bf16.mxu0 %v13817_v37  ;;  %v6413_v49 = vpop.f32.mrf.mxu1  ;;  %7015 = vmatprep.subr.bf16.mxu1 %v13820_v38 }
 0x1ab   : > { %17158 = vst [vmem:[#allocation11_spill] sm:$0xff] %v15301_v45  ;;  %v15303_v52 = vadd.f32 %v6466_v47, %v6413_v49  ;;  %7096 = vmatprep.mubr.bf16.mxu0 %v17126_v0 }
 0x1ac   : > { %v15306_v54 = vpop.f32.mrf.mxu1 }
 0x1ad   : > { %17159 = vst [vmem:[#allocation12_spill] sm:$0xff] %v15306_v54  ;;  %7110 = vmatpush1.bf16.msra.mxu0 %v13815_v41  ;;  %7016 = vmatpush1.bf16.msra.mxu1 %v13818_v42  ;;  %v13853_v41 = vld [vmem:[#allocation3 + $0x44] ss:$200 sps:$4 sm:$0xff]   ;;  %v14051_v54 = vld [vmem:[#allocation3 + $0xb54] ss:$200 sps:$4 sm:$0xff]  }
 0x1ae   : > { %7111 = vmatprep.subr.bf16.mxu0 %v13823_v44  ;;  %v6558_v58 = vpop.f32.mrf.mxu1  ;;  %7017 = vmatprep.subr.bf16.mxu1 %v13826_v46  ;;  %v13856_v44 = vld [vmem:[#allocation3 + $0xfdc] ss:$200 sps:$4 sm:$0xff]  }
 0x1b0   : > { %12726 = vmatmul.mubr.msk.bf16.gmra.mxu0 %vm6254_vm3, %v15188_v20  ;;  %v6560_v63 = vpop.f32.mrf.mxu1 }
 0x1b1   : > { %7112 = vmatpush1.bf16.msra.mxu0 %v13821_v53  ;;  %7139 = vmatprep.mubr.bf16.mxu0 %v15186_v19  ;;  %v13851_v53 = vld [vmem:[#allocation3 + $0x40] ss:$200 sps:$4 sm:$0xff]  }
 0x1b2   : > { %7018 = vmatpush2.bf16.msra.mxu1 %v13824_v55  ;;  %7113 = vmatprep.subr.bf16.mxu0 %v13829_v56  ;;  %v6562_v3 = vpop.f32.mrf.mxu1 }
 0x1b3   : > { %7019 = vmatprep.subr.bf16.mxu1 %v13832_v62 }
 0x1b4   : > { %v15313_v13 = vpop.f32.mrf.mxu1 }
 0x1b5   : > { %7114 = vmatpush1.bf16.msra.mxu0 %v13827_v59  ;;  %v6505_v15 = vpop.f32.mrf.mxu0  ;;  %v13859_v59 = vld [vmem:[#allocation3 + $0x17b4] ss:$200 sps:$4 sm:$0xff]  }
 0x1b6   : > { %7020 = vmatpush2.bf16.msra.mxu1 %v13830_v1  ;;  %v15315_v22 = vadd.f32 %v6558_v58, %v6505_v15  ;;  %7115 = vmatprep.subr.bf16.mxu0 %v13835_v2  ;;  %v6568_v31 = vpop.f32.mrf.mxu1  ;;  %v13854_v58 = vld [vmem:[#allocation3 + $0xfd8] ss:$200 sps:$4 sm:$0xff]   ;;  %v13860_v2 = vld [vmem:[#allocation3 + $0xe48] ss:$200 sps:$4 sm:$0xff]   ;;  %v13871_v15 = vld [vmem:[#allocation3 + $0x1494] ss:$200 sps:$4 sm:$0xff]  }
 0x1b7   : > { %7021 = vmatprep.subr.bf16.mxu1 %v13838_v9  ;;  %v6507_v24 = vpop.f32.mrf.mxu0  ;;  %v13857_v1 = vld [vmem:[#allocation3 + $0x17b0] ss:$200 sps:$4 sm:$0xff]   ;;  %v13863_v9 = vld [vmem:[#allocation3 + $0x1620] ss:$200 sps:$4 sm:$0xff]  }
 0x1b8   : > { %v15317_v26 = vadd.f32 %v6560_v63, %v6507_v24  ;;  %v6570_v42 = vpop.f32.mrf.mxu1  ;;  %v13862_v63 = vld [vmem:[#allocation3 + $0xe4c] ss:$200 sps:$4 sm:$0xff]   ;;  %v13869_v24 = vld [vmem:[#allocation3 + $0x1490] ss:$200 sps:$4 sm:$0xff]  }
 0x1b9   : > { %7116 = vmatpush1.bf16.msra.mxu0 %v13833_v8  ;;  %v6509_v34 = vpop.f32.mrf.mxu0  ;;  %v13868_v8 = vld [vmem:[#allocation3 + $0xcbc] ss:$200 sps:$4 sm:$0xff]  }
 0x1ba   : > { %7022 = vmatpush2.bf16.msra.mxu1 %v13836_v11  ;;  %v15319_v37 = vadd.f32 %v6562_v3, %v6509_v34  ;;  %7117 = vmatprep.subr.bf16.mxu0 %v13841_v16  ;;  %v6572_v55 = vpop.f32.mrf.mxu1  ;;  %v13865_v3 = vld [vmem:[#allocation3 + $0x1624] ss:$200 sps:$4 sm:$0xff]   ;;  %v13866_v11 = vld [vmem:[#allocation3 + $0xcb8] ss:$200 sps:$4 sm:$0xff]   ;;  %v13874_v16 = vld [vmem:[#allocation3 + $0x1df4] ss:$200 sps:$4 sm:$0xff]  }
 0x1bb   : > { %7023 = vmatprep.subr.bf16.mxu1 %v13844_v25  ;;  %v15321_v38 = vpop.f32.mrf.mxu0  ;;  %v13877_v25 = vld [vmem:[#allocation3 + $0x1304] ss:$200 sps:$4 sm:$0xff]   ;;  %v13883_v34 = vld [vmem:[#allocation3 + $0x1174] ss:$200 sps:$4 sm:$0xff]  }
 0x1bd   : > { %7118 = vmatpush1.bf16.msra.mxu0 %v13839_v5  ;;  %v6515_v43 = vpop.f32.mrf.mxu0  ;;  %v13872_v5 = vld [vmem:[#allocation3 + $0x1df0] ss:$200 sps:$4 sm:$0xff]  }
 0x1be   : > { %7024 = vmatpush2.bf16.msra.mxu1 %v13842_v29  ;;  %v15323_v46 = vadd.f32 %v6568_v31, %v6515_v43  ;;  %7119 = vmatprep.subr.bf16.mxu0 %v13847_v30  ;;  %v13880_v29 = vld [vmem:[#allocation3 + $0x1c64] ss:$200 sps:$4 sm:$0xff]   ;;  %v13875_v30 = vld [vmem:[#allocation3 + $0x1300] ss:$200 sps:$4 sm:$0xff]  }
 0x1bf   : > { %7025 = vmatprep.subr.bf16.mxu1 %v13850_v35  ;;  %v6517_v47 = vpop.f32.mrf.mxu0  ;;  %v13878_v31 = vld [vmem:[#allocation3 + $0x1c60] ss:$200 sps:$4 sm:$0xff]   ;;  %v13886_v35 = vld [vmem:[#allocation3 + $0x1ad4] ss:$200 sps:$4 sm:$0xff]  }
 0x1c0   : > { %v15325_v49 = vadd.f32 %v6570_v42, %v6517_v47  ;;  %v13892_v42 = vld [vmem:[#allocation3 + $0x1944] ss:$200 sps:$4 sm:$0xff]   ;;  %v13887_v43 = vld [vmem:[#allocation3 + $0xfe0] ss:$200 sps:$4 sm:$0xff]   ;;  %v13895_v47 = vld [vmem:[#allocation3 + $0xe54] ss:$200 sps:$4 sm:$0xff]  }
 0x1c1   : > { %7120 = vmatpush1.bf16.msra.mxu0 %v13845_v6  ;;  %v6519_v56 = vpop.f32.mrf.mxu0  ;;  %v13881_v6 = vld [vmem:[#allocation3 + $0x1170] ss:$200 sps:$4 sm:$0xff]  }
 0x1c2   : > { %17161 = vst [vmem:[#allocation14_spill] sm:$0xff] %v15325_v49  ;;  %7026 = vmatpush2.bf16.msra.mxu1 %v13848_v39  ;;  %v15327_v62 = vadd.f32 %v6572_v55, %v6519_v56  ;;  %7121 = vmatprep.subr.bf16.mxu0 %v13853_v41  ;;  %v13884_v39 = vld [vmem:[#allocation3 + $0x1ad0] ss:$200 sps:$4 sm:$0xff]   ;;  %v13889_v41 = vld [vmem:[#allocation3 + $0xfe4] ss:$200 sps:$4 sm:$0xff]  }
 0x1c3   : > { %7027 = vmatprep.subr.bf16.mxu1 %v13856_v44  ;;  %v13890_v44 = vld [vmem:[#allocation3 + $0x1940] ss:$200 sps:$4 sm:$0xff]   ;;  %v13893_v55 = vld [vmem:[#allocation3 + $0xe50] ss:$200 sps:$4 sm:$0xff]  }
 0x1c4   : > { %v13896_v56 = vld [vmem:[#allocation3 + $0xb38] ss:$200 sps:$4 sm:$0xff]  }
 0x1c5   : > { %7122 = vmatpush1.bf16.msra.mxu0 %v13851_v53  ;;  %v13898_v53 = vld [vmem:[#allocation3 + $0xb3c] ss:$200 sps:$4 sm:$0xff]  }
 0x1c6   : > { %7028 = vmatpush2.bf16.msra.mxu1 %v13854_v58  ;;  %7123 = vmatprep.subr.bf16.mxu0 %v13859_v59  ;;  %v13901_v58 = vld [vmem:[#allocation3 + $0xcc4] ss:$200 sps:$4 sm:$0xff]  }
 0x1c7   : > { %7029 = vmatprep.subr.bf16.mxu1 %v13862_v63  ;;  %v13904_v59 = vld [vmem:[#allocation3 + $0x9ac] ss:$200 sps:$4 sm:$0xff]   ;;  %v15333_v63 = vpop.f32.mrf.mxu0 }
 0x1c8   : > { %17162 = vst [vmem:[#allocation15_spill] sm:$0xff] %v15333_v63  ;;  %v14177_v63 = vld [vmem:[#allocation3 + $0x9d4] ss:$200 sps:$4 sm:$0xff]  }
 0x1c9   : > { %7124 = vmatpush2.bf16.msra.mxu0 %v13857_v1  ;;  %v13899_v1 = vld [vmem:[#allocation3 + $0xcc0] ss:$200 sps:$4 sm:$0xff]  }
 0x1ca   : > { %7030 = vmatpush2.bf16.msra.mxu1 %v13860_v2  ;;  %7125 = vmatprep.subr.bf16.mxu0 %v13865_v3  ;;  %v13902_v2 = vld [vmem:[#allocation3 + $0x9a8] ss:$200 sps:$4 sm:$0xff]   ;;  %v13907_v3 = vld [vmem:[#allocation3 + $0x1dfc] ss:$200 sps:$4 sm:$0xff]  }
 0x1cb   : > { %7031 = vmatprep.subr.bf16.mxu1 %v13868_v8  ;;  %v13910_v8 = vld [vmem:[#allocation3 + $0x81c] ss:$200 sps:$4 sm:$0xff]  }
 0x1cd   : > { %7126 = vmatpush2.bf16.msra.mxu0 %v13863_v9  ;;  %v6664_v9 = vpop.f32.mrf.mxu0 }
 0x1ce   : > { %7032 = vmatpush2.bf16.msra.mxu1 %v13866_v11  ;;  %7127 = vmatprep.subr.bf16.mxu0 %v13871_v15  ;;  %v13905_v11 = vld [vmem:[#allocation3 + $0x1df8] ss:$200 sps:$4 sm:$0xff]  }
 0x1cf   : > { %7168 = vmatprep.subr.bf16.mxu1 %v13874_v16  ;;  %v13908_v15 = vld [vmem:[#allocation3 + $0x818] ss:$200 sps:$4 sm:$0xff]   ;;  %v13913_v16 = vld [vmem:[#allocation3 + $0x1c6c] ss:$200 sps:$4 sm:$0xff]  }
 0x1d1   : > { %7034 = vmatmul.mubr.bf16.vlgmr.msra.gmra.mxu1 %v15181_v17  ;;  %7128 = vmatpush2.bf16.msra.mxu0 %v13869_v24  ;;  %v6666_v24 = vpop.f32.mrf.mxu0 }
 0x1d2   : > { %7043 = vmatprep.mubr.bf16.mxu1 %v15198_v27  ;;  %7169 = vmatpush1.bf16.msra.mxu1 %v13872_v5  ;;  %v13911_v5 = vld [vmem:[#allocation3 + $0x1c68] ss:$200 sps:$4 sm:$0xff]  }
 0x1d3   : > { %7129 = vmatprep.subr.bf16.mxu0 %v13877_v25  ;;  %7170 = vmatprep.subr.bf16.mxu1 %v13880_v29  ;;  %v13914_v25 = vld [vmem:[#allocation3 + $0x688] ss:$200 sps:$4 sm:$0xff]   ;;  %v13916_v29 = vld [vmem:[#allocation3 + $0x68c] ss:$200 sps:$4 sm:$0xff]  }
 0x1d5   : > { %7130 = vmatpush2.bf16.msra.mxu0 %v13875_v30  ;;  %v13919_v30 = vld [vmem:[#allocation3 + $0x1adc] ss:$200 sps:$4 sm:$0xff]  }
 0x1d6   : > { %7171 = vmatpush1.bf16.msra.mxu1 %v13878_v31  ;;  %7131 = vmatprep.subr.bf16.mxu0 %v13883_v34  ;;  %v13922_v31 = vld [vmem:[#allocation3 + $0x4fc] ss:$200 sps:$4 sm:$0xff]   ;;  %v6668_v34 = vpop.f32.mrf.mxu0 }
 0x1d7   : > { %7172 = vmatprep.subr.bf16.mxu1 %v13886_v35  ;;  %v13917_v35 = vld [vmem:[#allocation3 + $0x1ad8] ss:$200 sps:$4 sm:$0xff]  }
 0x1d9   : > { %7044 = vmatmul.mubr.bf16.gmra.mxu1 %v15203_v32  ;;  %7132 = vmatpush2.bf16.msra.mxu0 %v13881_v6  ;;  %v13920_v6 = vld [vmem:[#allocation3 + $0x4f8] ss:$200 sps:$4 sm:$0xff]  }
 0x1da   : > { %7173 = vmatpush1.bf16.msra.mxu1 %v13884_v39  ;;  %7133 = vmatprep.subr.bf16.mxu0 %v13889_v41  ;;  %v15343_v39 = vpop.f32.mrf.mxu1  ;;  %v13925_v41 = vld [vmem:[#allocation3 + $0x194c] ss:$200 sps:$4 sm:$0xff]  }
 0x1db   : > { %7174 = vmatprep.subr.bf16.mxu1 %v13892_v42  ;;  %7192 = vmatprep.mubr.bf16.mxu1 %v17126_v0  ;;  %17163 = vst [vmem:[#allocation16_spill] sm:$0xff] %v15343_v39  ;;  %v13928_v42 = vld [vmem:[#allocation3 + $0x36c] ss:$200 sps:$4 sm:$0xff]  }
 0x1dc   : > { %v14171_v39 = vld [vmem:[#allocation3 + $0xb64] ss:$200 sps:$4 sm:$0xff]  }
 0x1dd   : > { %7134 = vmatpush2.bf16.msra.mxu0 %v13887_v43  ;;  %v15345_v43 = vpop.f32.mrf.mxu0 }
 0x1de   : > { %7175 = vmatpush1.bf16.msra.mxu1 %v13890_v44  ;;  %7135 = vmatprep.subr.bf16.mxu0 %v13895_v47  ;;  %17164 = vst [vmem:[#allocation17_spill] sm:$0xff] %v15345_v43 }
 0x1df   : > { %7213 = vmatprep.subr.bf16.mxu1 %v13898_v53  ;;  %v13923_v53 = vld [vmem:[#allocation3 + $0x1948] ss:$200 sps:$4 sm:$0xff]  }
 0x1e1   : > { %7136 = vmatpush2.bf16.msra.mxu0 %v13893_v55  ;;  %12727 = vmatmul.mubr.msk.bf16.vlgmr.msra.gmra.mxu1 %vm6254_vm3, %v15174_v10  ;;  %v13926_v55 = vld [vmem:[#allocation3 + $0x368] ss:$200 sps:$4 sm:$0xff]  }
 0x1e2   : > { %7214 = vmatpush1.bf16.msra.mxu1 %v13896_v56  ;;  %7137 = vmatprep.subr.bf16.mxu0 %v13901_v58  ;;  %v13931_v58 = vld [vmem:[#allocation3 + $0xb44] ss:$200 sps:$4 sm:$0xff]  }
 0x1e3   : > { %7215 = vmatprep.subr.bf16.mxu1 %v13904_v59  ;;  %7202 = vmatprep.mubr.bf16.mxu1 %v17126_v0 }
 0x1e5   : > { %7138 = vmatpush2.bf16.msra.mxu0 %v13899_v1  ;;  %v13934_v1 = vld [vmem:[#allocation3 + $0x1dc] ss:$200 sps:$4 sm:$0xff]  }
 0x1e6   : > { %7216 = vmatpush1.bf16.msra.mxu1 %v13902_v2  ;;  %7274 = vmatprep.subr.bf16.mxu0 %v13907_v3  ;;  %v6674_v2 = vpop.f32.mrf.mxu0 }
 0x1e7   : > { %7217 = vmatprep.subr.bf16.mxu1 %v13910_v8 }
 0x1e8   : > { %7140 = vmatmul.mubr.bf16.vlgmr.msra.gmra.mxu0 %v15181_v17 }
 0x1e9   : > { %7149 = vmatprep.mubr.bf16.mxu0 %v15198_v27  ;;  %12728 = vmatmul.mubr.msk.bf16.gmra.mxu1 %vm6254_vm3, %v15188_v20 }
 0x1ea   : > { %7275 = vmatpush1.bf16.msra.mxu0 %v13905_v11  ;;  %7218 = vmatpush1.bf16.msra.mxu1 %v13908_v15  ;;  %v13929_v11 = vld [vmem:[#allocation3 + $0xb40] ss:$200 sps:$4 sm:$0xff]  }
 0x1eb   : > { %7245 = vmatprep.mubr.bf16.mxu1 %v15186_v19  ;;  %7276 = vmatprep.subr.bf16.mxu0 %v13913_v16  ;;  %v13937_v16 = vld [vmem:[#allocation3 + $0x9b4] ss:$200 sps:$4 sm:$0xff]  }
 0x1ec   : > { %7219 = vmatprep.subr.bf16.mxu1 %v13916_v29 }
 0x1ee   : > { %7277 = vmatpush1.bf16.msra.mxu0 %v13911_v5  ;;  %7220 = vmatpush1.bf16.msra.mxu1 %v13914_v25  ;;  %v13940_v5 = vld [vmem:[#allocation3 + $0x4c] ss:$200 sps:$4 sm:$0xff]   ;;  %v6676_v25 = vpop.f32.mrf.mxu0 }
 0x1ef   : > { %7278 = vmatprep.subr.bf16.mxu0 %v13919_v30  ;;  %v6611_v44 = vpop.f32.mrf.mxu1  ;;  %7221 = vmatprep.subr.bf16.mxu1 %v13922_v31  ;;  %v13935_v30 = vld [vmem:[#allocation3 + $0x9b0] ss:$200 sps:$4 sm:$0xff]  }
 0x1f0   : > { %7150 = vmatmul.mubr.bf16.gmra.mxu0 %v15203_v32  ;;  %v15348_v47 = vadd.f32 %v6664_v9, %v6611_v44  ;;  %v13932_v9 = vld [vmem:[#allocation3 + $0x1d8] ss:$200 sps:$4 sm:$0xff]   ;;  %v13938_v31 = vld [vmem:[#allocation3 + $0x48] ss:$200 sps:$4 sm:$0xff]  }
 0x1f1   : > { %v6613_v56 = vpop.f32.mrf.mxu1  ;;  %7298 = vmatprep.mubr.bf16.mxu0 %v17126_v0 }
 0x1f2   : > { %7279 = vmatpush1.bf16.msra.mxu0 %v13917_v35  ;;  %7222 = vmatpush1.bf16.msra.mxu1 %v13920_v6  ;;  %v15351_v59 = vadd.f32 %v6666_v24, %v6613_v56  ;;  %v13943_v35 = vld [vmem:[#allocation3 + $0x824] ss:$200 sps:$4 sm:$0xff]  }
 0x1f3   : > { %7280 = vmatprep.subr.bf16.mxu0 %v13925_v41  ;;  %v6615_v3 = vpop.f32.mrf.mxu1  ;;  %7223 = vmatprep.subr.bf16.mxu1 %v13928_v42  ;;  %v13946_v41 = vld [vmem:[#allocation3 + $0x17bc] ss:$200 sps:$4 sm:$0xff]   ;;  %v6678_v42 = vpop.f32.mrf.mxu0 }
 0x1f4   : > { %17165 = vst [vmem:[#allocation18_spill] sm:$0xff] %v15351_v59  ;;  %v15353_v8 = vadd.f32 %v6668_v34, %v6615_v3  ;;  %v13947_v3 = vld [vmem:[#allocation3 + $0x690] ss:$200 sps:$4 sm:$0xff]  }
 0x1f5   : > { %v15355_v15 = vpop.f32.mrf.mxu1 }
 0x1f6   : > { %17166 = vst [vmem:[#allocation19_spill] sm:$0xff] %v15355_v15  ;;  %7281 = vmatpush1.bf16.msra.mxu0 %v13923_v53  ;;  %7224 = vmatpush1.bf16.msra.mxu1 %v13926_v55  ;;  %v13941_v55 = vld [vmem:[#allocation3 + $0x820] ss:$200 sps:$4 sm:$0xff]   ;;  %v13979_v15 = vld [vmem:[#allocation3 + $0x17c4] ss:$200 sps:$4 sm:$0xff]  }
 0x1f7   : > { %7319 = vmatprep.subr.bf16.mxu0 %v13931_v58  ;;  %v6621_v29 = vpop.f32.mrf.mxu1  ;;  %7225 = vmatprep.subr.bf16.mxu1 %v13934_v1  ;;  %v13944_v58 = vld [vmem:[#allocation3 + $0x17b8] ss:$200 sps:$4 sm:$0xff]   ;;  %v13949_v1 = vld [vmem:[#allocation3 + $0x694] ss:$200 sps:$4 sm:$0xff]  }
 0x1f8   : > { %v15357_v24 = vadd.f32 %v6674_v2, %v6621_v29  ;;  %v15371_v29 = vpop.f32.mrf.mxu0 }
 0x1f9   : > { %12729 = vmatmul.mubr.msk.bf16.vlgmr.msra.gmra.mxu0 %vm6254_vm3, %v15174_v10  ;;  %v6623_v34 = vpop.f32.mrf.mxu1  ;;  %17169 = vst [vmem:[#allocation22_spill] sm:$0xff] %v15371_v29 }
 0x1fa   : > { %7320 = vmatpush1.bf16.msra.mxu0 %v13929_v11  ;;  %7226 = vmatpush1.bf16.msra.mxu1 %v13932_v9  ;;  %v15361_v6 = vadd.f32 %v6676_v25, %v6623_v34  ;;  %v13952_v11 = vld [vmem:[#allocation3 + $0x162c] ss:$200 sps:$4 sm:$0xff]   ;;  %v13956_v34 = vld [vmem:[#allocation3 + $0x1498] ss:$200 sps:$4 sm:$0xff]  }
 0x1fb   : > { %7321 = vmatprep.subr.bf16.mxu0 %v13937_v16  ;;  %v6625_v44 = vpop.f32.mrf.mxu1  ;;  %7227 = vmatprep.subr.bf16.mxu1 %v13940_v5  ;;  %v13950_v16 = vld [vmem:[#allocation3 + $0x1628] ss:$200 sps:$4 sm:$0xff]   ;;  %v13955_v5 = vld [vmem:[#allocation3 + $0x504] ss:$200 sps:$4 sm:$0xff]  }
 0x1fc   : > { %17167 = vst [vmem:[#allocation20_spill] sm:$0xff] %v15361_v6  ;;  %v15363_v53 = vadd.f32 %v6678_v42, %v6625_v44  ;;  %7308 = vmatprep.mubr.bf16.mxu0 %v17126_v0  ;;  %v13961_v42 = vld [vmem:[#allocation3 + $0x374] ss:$200 sps:$4 sm:$0xff]   ;;  %v13962_v6 = vld [vmem:[#allocation3 + $0x1308] ss:$200 sps:$4 sm:$0xff]  }
 0x1fd   : > { %v15366_v56 = vpop.f32.mrf.mxu1 }
 0x1fe   : > { %17168 = vst [vmem:[#allocation21_spill] sm:$0xff] %v15366_v56  ;;  %7322 = vmatpush1.bf16.msra.mxu0 %v13935_v30  ;;  %7228 = vmatpush1.bf16.msra.mxu1 %v13938_v31  ;;  %v13953_v30 = vld [vmem:[#allocation3 + $0x500] ss:$200 sps:$4 sm:$0xff]   ;;  %v13958_v31 = vld [vmem:[#allocation3 + $0x149c] ss:$200 sps:$4 sm:$0xff]  }
 0x1ff   : > { %7323 = vmatprep.subr.bf16.mxu0 %v13943_v35  ;;  %v6770_v2 = vpop.f32.mrf.mxu1  ;;  %7229 = vmatprep.subr.bf16.mxu1 %v13946_v41 }
 0x201   : > { %12730 = vmatmul.mubr.msk.bf16.gmra.mxu0 %vm6254_vm3, %v15188_v20  ;;  %v6772_v9 = vpop.f32.mrf.mxu1 }
 0x202   : > { %7324 = vmatpush1.bf16.msra.mxu0 %v13941_v55  ;;  %7351 = vmatprep.mubr.bf16.mxu0 %v15186_v19 }
 0x203   : > { %7230 = vmatpush2.bf16.msra.mxu1 %v13944_v58  ;;  %7325 = vmatprep.subr.bf16.mxu0 %v13949_v1  ;;  %v6774_v25 = vpop.f32.mrf.mxu1  ;;  %v13959_v58 = vld [vmem:[#allocation3 + $0x370] ss:$200 sps:$4 sm:$0xff]   ;;  %v13964_v1 = vld [vmem:[#allocation3 + $0x130c] ss:$200 sps:$4 sm:$0xff]  }
 0x204   : > { %7231 = vmatprep.subr.bf16.mxu1 %v13952_v11  ;;  %v13967_v11 = vld [vmem:[#allocation3 + $0x1e4] ss:$200 sps:$4 sm:$0xff]  }
 0x205   : > { %v15373_v35 = vpop.f32.mrf.mxu1 }
 0x206   : > { %7326 = vmatpush1.bf16.msra.mxu0 %v13947_v3  ;;  %17170 = vst [vmem:[#allocation23_spill] sm:$0xff] %v15373_v35  ;;  %v6717_v41 = vpop.f32.mrf.mxu0  ;;  %v13970_v3 = vld [vmem:[#allocation3 + $0x117c] ss:$200 sps:$4 sm:$0xff]  }
 0x207   : > { %7232 = vmatpush2.bf16.msra.mxu1 %v13950_v16  ;;  %v15375_v44 = vadd.f32 %v6770_v2, %v6717_v41  ;;  %7327 = vmatprep.subr.bf16.mxu0 %v13955_v5  ;;  %v6780_v29 = vpop.f32.mrf.mxu1  ;;  %v13965_v16 = vld [vmem:[#allocation3 + $0x1e0] ss:$200 sps:$4 sm:$0xff]   ;;  %v14060_v35 = vld [vmem:[#allocation3 + $0x5c] ss:$200 sps:$4 sm:$0xff]  }
 0x208   : > { %7233 = vmatprep.subr.bf16.mxu1 %v13958_v31  ;;  %v6719_v55 = vpop.f32.mrf.mxu0  ;;  %v13968_v5 = vld [vmem:[#allocation3 + $0x1178] ss:$200 sps:$4 sm:$0xff]   ;;  %v13973_v31 = vld [vmem:[#allocation3 + $0x54] ss:$200 sps:$4 sm:$0xff]  }
 0x209   : > { %v15377_v0 = vadd.f32 %v6772_v9, %v6719_v55  ;;  %v6782_v41 = vpop.f32.mrf.mxu1  ;;  %v13976_v55 = vld [vmem:[#allocation3 + $0xfec] ss:$200 sps:$4 sm:$0xff]  }
 0x20a   : > { %7328 = vmatpush1.bf16.msra.mxu0 %v13953_v30  ;;  %v6721_v56 = vpop.f32.mrf.mxu0 }
 0x20b   : > { %17171 = vst [vmem:[#allocation24_spill] sm:$0xff] %v15377_v0  ;;  %7234 = vmatpush2.bf16.msra.mxu1 %v13956_v34  ;;  %v15379_v59 = vadd.f32 %v6774_v25, %v6721_v56  ;;  %7329 = vmatprep.subr.bf16.mxu0 %v13961_v42  ;;  %v13971_v56 = vld [vmem:[#allocation3 + $0x50] ss:$200 sps:$4 sm:$0xff]   ;;  %v6784_v25 = vpop.f32.mrf.mxu1  ;;  %v14057_v0 = vld [vmem:[#allocation3 + $0x9c4] ss:$200 sps:$4 sm:$0xff]  }
 0x20c   : > { %7235 = vmatprep.subr.bf16.mxu1 %v13964_v1  ;;  %v15381_v2 = vpop.f32.mrf.mxu0  ;;  %v13974_v1 = vld [vmem:[#allocation3 + $0xfe8] ss:$200 sps:$4 sm:$0xff]  }
 0x20d   : > { %17172 = vst [vmem:[#allocation25_spill] sm:$0xff] %v15381_v2 }
 0x20e   : > { %7330 = vmatpush1.bf16.msra.mxu0 %v13959_v58  ;;  %v6727_v9 = vpop.f32.mrf.mxu0  ;;  %v13982_v58 = vld [vmem:[#allocation3 + $0xe5c] ss:$200 sps:$4 sm:$0xff]  }
 0x20f   : > { %7236 = vmatpush2.bf16.msra.mxu1 %v13962_v6  ;;  %v15383_v43 = vadd.f32 %v6780_v29, %v6727_v9  ;;  %7331 = vmatprep.subr.bf16.mxu0 %v13967_v11  ;;  %v13977_v6 = vld [vmem:[#allocation3 + $0x17c0] ss:$200 sps:$4 sm:$0xff]   ;;  %v13985_v11 = vld [vmem:[#allocation3 + $0x1634] ss:$200 sps:$4 sm:$0xff]   ;;  %v13991_v9 = vld [vmem:[#allocation3 + $0x14a4] ss:$200 sps:$4 sm:$0xff]  }
 0x210   : > { %7237 = vmatprep.subr.bf16.mxu1 %v13970_v3  ;;  %v6729_v30 = vpop.f32.mrf.mxu0  ;;  %v13980_v29 = vld [vmem:[#allocation3 + $0xe58] ss:$200 sps:$4 sm:$0xff]   ;;  %v13988_v3 = vld [vmem:[#allocation3 + $0xccc] ss:$200 sps:$4 sm:$0xff]  }
 0x211   : > { %v15385_v34 = vadd.f32 %v6782_v41, %v6729_v30  ;;  %v13983_v41 = vld [vmem:[#allocation3 + $0x1630] ss:$200 sps:$4 sm:$0xff]   ;;  %v13989_v30 = vld [vmem:[#allocation3 + $0x14a0] ss:$200 sps:$4 sm:$0xff]  }
 0x212   : > { %7332 = vmatpush1.bf16.msra.mxu0 %v13965_v16  ;;  %v6731_v42 = vpop.f32.mrf.mxu0  ;;  %v13986_v16 = vld [vmem:[#allocation3 + $0xcc8] ss:$200 sps:$4 sm:$0xff]  }
 0x213   : > { %17173 = vst [vmem:[#allocation26_spill] sm:$0xff] %v15385_v34  ;;  %7238 = vmatpush2.bf16.msra.mxu1 %v13968_v5  ;;  %v15387_v45 = vadd.f32 %v6784_v25, %v6731_v42  ;;  %7333 = vmatprep.subr.bf16.mxu0 %v13973_v31  ;;  %v13994_v5 = vld [vmem:[#allocation3 + $0x1e04] ss:$200 sps:$4 sm:$0xff]   ;;  %v13992_v31 = vld [vmem:[#allocation3 + $0x1e00] ss:$200 sps:$4 sm:$0xff]  }
 0x214   : > { %7239 = vmatprep.subr.bf16.mxu1 %v13976_v55  ;;  %v13997_v55 = vld [vmem:[#allocation3 + $0x1314] ss:$200 sps:$4 sm:$0xff]   ;;  %v13995_v25 = vld [vmem:[#allocation3 + $0x1310] ss:$200 sps:$4 sm:$0xff]   ;;  %v14003_v42 = vld [vmem:[#allocation3 + $0x1184] ss:$200 sps:$4 sm:$0xff]  }
 0x215   : > { %v14048_v34 = vld [vmem:[#allocation3 + $0x37c] ss:$200 sps:$4 sm:$0xff]  }
 0x216   : > { %7334 = vmatpush1.bf16.msra.mxu0 %v13971_v56  ;;  %v14000_v56 = vld [vmem:[#allocation3 + $0x1c74] ss:$200 sps:$4 sm:$0xff]  }
 0x217   : > { %7240 = vmatpush2.bf16.msra.mxu1 %v13974_v1  ;;  %7335 = vmatprep.subr.bf16.mxu0 %v13979_v15  ;;  %v13998_v15 = vld [vmem:[#allocation3 + $0x1c70] ss:$200 sps:$4 sm:$0xff]   ;;  %v14006_v1 = vld [vmem:[#allocation3 + $0x1ae4] ss:$200 sps:$4 sm:$0xff]  }
 0x218   : > { %7241 = vmatprep.subr.bf16.mxu1 %v13982_v58  ;;  %v14001_v58 = vld [vmem:[#allocation3 + $0x1180] ss:$200 sps:$4 sm:$0xff]  }
 0x21a   : > { %7336 = vmatpush2.bf16.msra.mxu0 %v13977_v6  ;;  %v14004_v6 = vld [vmem:[#allocation3 + $0x1ae0] ss:$200 sps:$4 sm:$0xff]  }
 0x21b   : > { %7242 = vmatpush2.bf16.msra.mxu1 %v13980_v29  ;;  %7337 = vmatprep.subr.bf16.mxu0 %v13985_v11  ;;  %v14009_v29 = vld [vmem:[#allocation3 + $0xff4] ss:$200 sps:$4 sm:$0xff]  }
 0x21c   : > { %7243 = vmatprep.subr.bf16.mxu1 %v13988_v3  ;;  %v14012_v11 = vld [vmem:[#allocation3 + $0x1954] ss:$200 sps:$4 sm:$0xff]   ;;  %v14007_v3 = vld [vmem:[#allocation3 + $0xff0] ss:$200 sps:$4 sm:$0xff]  }
 0x21e   : > { %7338 = vmatpush2.bf16.msra.mxu0 %v13983_v41  ;;  %v14010_v41 = vld [vmem:[#allocation3 + $0x1950] ss:$200 sps:$4 sm:$0xff]  }
 0x21f   : > { %7244 = vmatpush2.bf16.msra.mxu1 %v13986_v16  ;;  %7339 = vmatprep.subr.bf16.mxu0 %v13991_v9  ;;  %v14015_v16 = vld [vmem:[#allocation3 + $0xe64] ss:$200 sps:$4 sm:$0xff]  }
 0x220   : > { %7380 = vmatprep.subr.bf16.mxu1 %v13994_v5  ;;  %v14018_v9 = vld [vmem:[#allocation3 + $0xb4c] ss:$200 sps:$4 sm:$0xff]   ;;  %v17174_v5 = vmov 0  }
 0x222   : > { %7246 = vmatmul.mubr.bf16.vlgmr.msra.gmra.mxu1 %v15181_v17  ;;  %7340 = vmatpush2.bf16.msra.mxu0 %v13989_v30  ;;  %v14013_v30 = vld [vmem:[#allocation3 + $0xe60] ss:$200 sps:$4 sm:$0xff]  }
 0x223   : > { %7255 = vmatprep.mubr.bf16.mxu1 %v15198_v27  ;;  %7381 = vmatpush1.bf16.msra.mxu1 %v13992_v31  ;;  %v14016_v31 = vld [vmem:[#allocation3 + $0xb48] ss:$200 sps:$4 sm:$0xff]  }
 0x224   : > { %7341 = vmatprep.subr.bf16.mxu0 %v13997_v55  ;;  %7382 = vmatprep.subr.bf16.mxu1 %v14000_v56  ;;  %v14021_v55 = vld [vmem:[#allocation3 + $0xcd4] ss:$200 sps:$4 sm:$0xff]  }
 0x225   : > { %v14024_v56 = vld [vmem:[#allocation3 + $0x9bc] ss:$200 sps:$4 sm:$0xff]  }
 0x226   : > { %7342 = vmatpush2.bf16.msra.mxu0 %v13995_v25  ;;  %v15393_v25 = vpop.f32.mrf.mxu0 }
 0x227   : > { %7383 = vmatpush1.bf16.msra.mxu1 %v13998_v15  ;;  %7343 = vmatprep.subr.bf16.mxu0 %v14003_v42  ;;  %17175 = vst [vmem:[#allocation27_spill] sm:$0xff] %v15393_v25  ;;  %v14019_v15 = vld [vmem:[#allocation3 + $0xcd0] ss:$200 sps:$4 sm:$0xff]  }
 0x228   : > { %7384 = vmatprep.subr.bf16.mxu1 %v14006_v1  ;;  %v14022_v42 = vld [vmem:[#allocation3 + $0x9b8] ss:$200 sps:$4 sm:$0xff]   ;;  %v14027_v1 = vld [vmem:[#allocation3 + $0x1e0c] ss:$200 sps:$4 sm:$0xff]  }
 0x22a   : > { %7256 = vmatmul.mubr.bf16.gmra.mxu1 %v15203_v32  ;;  %7344 = vmatpush2.bf16.msra.mxu0 %v14001_v58  ;;  %v14030_v58 = vld [vmem:[#allocation3 + $0x82c] ss:$200 sps:$4 sm:$0xff]  }
 0x22b   : > { %7385 = vmatpush1.bf16.msra.mxu1 %v14004_v6  ;;  %7345 = vmatprep.subr.bf16.mxu0 %v14009_v29  ;;  %v6876_v6 = vpop.f32.mrf.mxu0  ;;  %v14025_v29 = vld [vmem:[#allocation3 + $0x1e08] ss:$200 sps:$4 sm:$0xff]  }
 0x22c   : > { %7386 = vmatprep.subr.bf16.mxu1 %v14012_v11  ;;  %7404 = vmatprep.mubr.bf16.mxu1 %v17174_v5  ;;  %v14028_v11 = vld [vmem:[#allocation3 + $0x828] ss:$200 sps:$4 sm:$0xff]  }
 0x22e   : > { %7346 = vmatpush2.bf16.msra.mxu0 %v14007_v3  ;;  %v14033_v3 = vld [vmem:[#allocation3 + $0x1c7c] ss:$200 sps:$4 sm:$0xff]  }
 0x22f   : > { %7387 = vmatpush1.bf16.msra.mxu1 %v14010_v41  ;;  %7347 = vmatprep.subr.bf16.mxu0 %v14015_v16  ;;  %v6878_v41 = vpop.f32.mrf.mxu0  ;;  %v14031_v16 = vld [vmem:[#allocation3 + $0x1c78] ss:$200 sps:$4 sm:$0xff]  }
 0x230   : > { %7425 = vmatprep.subr.bf16.mxu1 %v14018_v9  ;;  %v14034_v9 = vld [vmem:[#allocation3 + $0x698] ss:$200 sps:$4 sm:$0xff]  }
 0x232   : > { %7348 = vmatpush2.bf16.msra.mxu0 %v14013_v30  ;;  %12731 = vmatmul.mubr.msk.bf16.vlgmr.msra.gmra.mxu1 %vm6254_vm3, %v15174_v10  ;;  %v14036_v30 = vld [vmem:[#allocation3 + $0x69c] ss:$200 sps:$4 sm:$0xff]  }
 0x233   : > { %7426 = vmatpush1.bf16.msra.mxu1 %v14016_v31  ;;  %7349 = vmatprep.subr.bf16.mxu0 %v14021_v55  ;;  %v14039_v31 = vld [vmem:[#allocation3 + $0x1aec] ss:$200 sps:$4 sm:$0xff]  }
 0x234   : > { %7427 = vmatprep.subr.bf16.mxu1 %v14024_v56  ;;  %7414 = vmatprep.mubr.bf16.mxu1 %v17174_v5  ;;  %v14042_v55 = vld [vmem:[#allocation3 + $0x50c] ss:$200 sps:$4 sm:$0xff]   ;;  %v6880_v56 = vpop.f32.mrf.mxu0 }
 0x236   : > { %7350 = vmatpush2.bf16.msra.mxu0 %v14019_v15  ;;  %v14037_v15 = vld [vmem:[#allocation3 + $0x1ae8] ss:$200 sps:$4 sm:$0xff]   ;;  %v15405_v25 = vpop.f32.mrf.mxu0 }
 0x237   : > { %7428 = vmatpush1.bf16.msra.mxu1 %v14022_v42  ;;  %7486 = vmatprep.subr.bf16.mxu0 %v14027_v1  ;;  %v14040_v42 = vld [vmem:[#allocation3 + $0x508] ss:$200 sps:$4 sm:$0xff]   ;;  %v15403_v1 = vpop.f32.mrf.mxu1  ;;  %17177 = vst [vmem:[#allocation29_spill] sm:$0xff] %v15405_v25 }
 0x238   : > { %7429 = vmatprep.subr.bf16.mxu1 %v14030_v58  ;;  %17176 = vst [vmem:[#allocation28_spill] sm:$0xff] %v15403_v1  ;;  %v14045_v58 = vld [vmem:[#allocation3 + $0x195c] ss:$200 sps:$4 sm:$0xff]   ;;  %v14049_v25 = vld [vmem:[#allocation3 + $0xb50] ss:$200 sps:$4 sm:$0xff]  }
 0x239   : > { %7352 = vmatmul.mubr.bf16.vlgmr.msra.gmra.mxu0 %v15181_v17 }
 0x23a   : > { %7361 = vmatprep.mubr.bf16.mxu0 %v15198_v27  ;;  %12732 = vmatmul.mubr.msk.bf16.gmra.mxu1 %vm6254_vm3, %v15188_v20 }
 0x23b   : > { %7487 = vmatpush1.bf16.msra.mxu0 %v14025_v29  ;;  %7430 = vmatpush1.bf16.msra.mxu1 %v14028_v11  ;;  %v14043_v11 = vld [vmem:[#allocation3 + $0x1958] ss:$200 sps:$4 sm:$0xff]  }
 0x23c   : > { %7457 = vmatprep.mubr.bf16.mxu1 %v15186_v19  ;;  %7488 = vmatprep.subr.bf16.mxu0 %v14033_v3  ;;  %v14046_v3 = vld [vmem:[#allocation3 + $0x378] ss:$200 sps:$4 sm:$0xff]  }
 0x23d   : > { %7431 = vmatprep.subr.bf16.mxu1 %v14036_v30 }
 0x23f   : > { %7489 = vmatpush1.bf16.msra.mxu0 %v14031_v16  ;;  %7432 = vmatpush1.bf16.msra.mxu1 %v14034_v9  ;;  %v14054_v16 = vld [vmem:[#allocation3 + $0x1ec] ss:$200 sps:$4 sm:$0xff]   ;;  %v6886_v9 = vpop.f32.mrf.mxu0 }
 0x240   : > { %7490 = vmatprep.subr.bf16.mxu0 %v14039_v31  ;;  %v6823_v4 = vpop.f32.mrf.mxu1  ;;  %7433 = vmatprep.subr.bf16.mxu1 %v14042_v55 }
 0x241   : > { %7362 = vmatmul.mubr.bf16.gmra.mxu0 %v15203_v32  ;;  %v15408_v29 = vadd.f32 %v6876_v6, %v6823_v4  ;;  %v14052_v4 = vld [vmem:[#allocation3 + $0x1e8] ss:$200 sps:$4 sm:$0xff]   ;;  %v6888_v2 = vpop.f32.mrf.mxu0 }
 0x242   : > { %v6825_v30 = vpop.f32.mrf.mxu1  ;;  %7510 = vmatprep.mubr.bf16.mxu0 %v17174_v5 }
 0x243   : > { %7491 = vmatpush1.bf16.msra.mxu0 %v14037_v15  ;;  %7434 = vmatpush1.bf16.msra.mxu1 %v14040_v42  ;;  %v15411_v1 = vadd.f32 %v6878_v41, %v6825_v30  ;;  %v14055_v42 = vld [vmem:[#allocation3 + $0x9c0] ss:$200 sps:$4 sm:$0xff]  }
 0x244   : > { %7492 = vmatprep.subr.bf16.mxu0 %v14045_v58  ;;  %v6827_v31 = vpop.f32.mrf.mxu1  ;;  %7435 = vmatprep.subr.bf16.mxu1 %v14048_v34  ;;  %v14058_v58 = vld [vmem:[#allocation3 + $0x58] ss:$200 sps:$4 sm:$0xff]  }
 0x245   : > { %17178 = vst [vmem:[#allocation30_spill] sm:$0xff] %v15411_v1  ;;  %v15413_v55 = vadd.f32 %v6880_v56, %v6827_v31  ;;  %v14063_v56 = vld [vmem:[#allocation3 + $0x834] ss:$200 sps:$4 sm:$0xff]   ;;  %v14069_v1 = vld [vmem:[#allocation3 + $0x6a4] ss:$200 sps:$4 sm:$0xff]  }
 0x246   : > { %v15415_v6 = vpop.f32.mrf.mxu1 }
 0x247   : > { %17179 = vst [vmem:[#allocation31_spill] sm:$0xff] %v15415_v6  ;;  %7493 = vmatpush1.bf16.msra.mxu0 %v14043_v11  ;;  %7436 = vmatpush1.bf16.msra.mxu1 %v14046_v3  ;;  %v14066_v11 = vld [vmem:[#allocation3 + $0x17cc] ss:$200 sps:$4 sm:$0xff]   ;;  %v6890_v3 = vpop.f32.mrf.mxu0 }
 0x248   : > { %7531 = vmatprep.subr.bf16.mxu0 %v14051_v54  ;;  %v6833_v15 = vpop.f32.mrf.mxu1  ;;  %7437 = vmatprep.subr.bf16.mxu1 %v14054_v16  ;;  %v14061_v16 = vld [vmem:[#allocation3 + $0x830] ss:$200 sps:$4 sm:$0xff]  }
 0x249   : > { %v15417_v41 = vadd.f32 %v6886_v9, %v6833_v15  ;;  %v14064_v15 = vld [vmem:[#allocation3 + $0x17c8] ss:$200 sps:$4 sm:$0xff]  }
 0x24a   : > { %12733 = vmatmul.mubr.msk.bf16.vlgmr.msra.gmra.mxu0 %vm6254_vm3, %v15174_v10  ;;  %v6835_v34 = vpop.f32.mrf.mxu1 }
 0x24b   : > { %7532 = vmatpush1.bf16.msra.mxu0 %v14049_v25  ;;  %7438 = vmatpush1.bf16.msra.mxu1 %v14052_v4  ;;  %v15421_v30 = vadd.f32 %v6888_v2, %v6835_v34  ;;  %v14067_v2 = vld [vmem:[#allocation3 + $0x6a0] ss:$200 sps:$4 sm:$0xff]   ;;  %v14072_v4 = vld [vmem:[#allocation3 + $0x163c] ss:$200 sps:$4 sm:$0xff]  }
 0x24c   : > { %7533 = vmatprep.subr.bf16.mxu0 %v14057_v0  ;;  %v6837_v31 = vpop.f32.mrf.mxu1  ;;  %7439 = vmatprep.subr.bf16.mxu1 %v14060_v35  ;;  %v14070_v35 = vld [vmem:[#allocation3 + $0x1638] ss:$200 sps:$4 sm:$0xff]   ;;  %v14075_v34 = vld [vmem:[#allocation3 + $0x514] ss:$200 sps:$4 sm:$0xff]  }
 0x24d   : > { %17180 = vst [vmem:[#allocation32_spill] sm:$0xff] %v15421_v30  ;;  %v15423_v54 = vadd.f32 %v6890_v3, %v6837_v31  ;;  %7520 = vmatprep.mubr.bf16.mxu0 %v17174_v5 }
 0x24e   : > { %v15426_v9 = vpop.f32.mrf.mxu1 }
 0x24f   : > { %17181 = vst [vmem:[#allocation33_spill] sm:$0xff] %v15426_v9  ;;  %7534 = vmatpush1.bf16.msra.mxu0 %v14055_v42  ;;  %7440 = vmatpush1.bf16.msra.mxu1 %v14058_v58  ;;  %v15431_v42 = vpop.f32.mrf.mxu0  ;;  %v14073_v58 = vld [vmem:[#allocation3 + $0x510] ss:$200 sps:$4 sm:$0xff]   ;;  %v14081_v9 = vld [vmem:[#allocation3 + $0x384] ss:$200 sps:$4 sm:$0xff]  }
 0x250   : > { %7535 = vmatprep.subr.bf16.mxu0 %v14063_v56  ;;  %v6982_v25 = vpop.f32.mrf.mxu1  ;;  %7441 = vmatprep.subr.bf16.mxu1 %v14066_v11  ;;  %17182 = vst [vmem:[#allocation34_spill] sm:$0xff] %v15431_v42  ;;  %v14078_v56 = vld [vmem:[#allocation3 + $0x14ac] ss:$200 sps:$4 sm:$0xff]   ;;  %v14076_v11 = vld [vmem:[#allocation3 + $0x14a8] ss:$200 sps:$4 sm:$0xff]  }
 0x251   : > { %v14082_v42 = vld [vmem:[#allocation3 + $0x1318] ss:$200 sps:$4 sm:$0xff]  }
 0x252   : > { %12734 = vmatmul.mubr.msk.bf16.gmra.mxu0 %vm6254_vm3, %v15188_v20  ;;  %v6984_v0 = vpop.f32.mrf.mxu1 }
 0x253   : > { %7536 = vmatpush1.bf16.msra.mxu0 %v14061_v16  ;;  %7563 = vmatprep.mubr.bf16.mxu0 %v15186_v19 }
 0x254   : > { %7442 = vmatpush2.bf16.msra.mxu1 %v14064_v15  ;;  %7537 = vmatprep.subr.bf16.mxu0 %v14069_v1  ;;  %v6986_v3 = vpop.f32.mrf.mxu1  ;;  %v14079_v15 = vld [vmem:[#allocation3 + $0x380] ss:$200 sps:$4 sm:$0xff]   ;;  %v14084_v1 = vld [vmem:[#allocation3 + $0x131c] ss:$200 sps:$4 sm:$0xff]  }
 0x255   : > { %7443 = vmatprep.subr.bf16.mxu1 %v14072_v4  ;;  %v14087_v4 = vld [vmem:[#allocation3 + $0x1f4] ss:$200 sps:$4 sm:$0xff]  }
 0x256   : > { %v15433_v31 = vpop.f32.mrf.mxu1 }
 0x257   : > { %7538 = vmatpush1.bf16.msra.mxu0 %v14067_v2  ;;  %17183 = vst [vmem:[#allocation35_spill] sm:$0xff] %v15433_v31  ;;  %v6929_v30 = vpop.f32.mrf.mxu0  ;;  %v14090_v2 = vld [vmem:[#allocation3 + $0x118c] ss:$200 sps:$4 sm:$0xff]  }
 0x258   : > { %7444 = vmatpush2.bf16.msra.mxu1 %v14070_v35  ;;  %v15435_v6 = vadd.f32 %v6982_v25, %v6929_v30  ;;  %7539 = vmatprep.subr.bf16.mxu0 %v14075_v34  ;;  %v6992_v49 = vpop.f32.mrf.mxu1  ;;  %v14085_v25 = vld [vmem:[#allocation3 + $0x1f0] ss:$200 sps:$4 sm:$0xff]   ;;  %v14093_v34 = vld [vmem:[#allocation3 + $0x64] ss:$200 sps:$4 sm:$0xff]  }
 0x259   : > { %7445 = vmatprep.subr.bf16.mxu1 %v14078_v56  ;;  %v6931_v16 = vpop.f32.mrf.mxu0  ;;  %v14088_v35 = vld [vmem:[#allocation3 + $0x1188] ss:$200 sps:$4 sm:$0xff]  }
 0x25a   : > { %v15437_v28 = vadd.f32 %v6984_v0, %v6931_v16  ;;  %v6994_v56 = vpop.f32.mrf.mxu1  ;;  %v14096_v16 = vld [vmem:[#allocation3 + $0xffc] ss:$200 sps:$4 sm:$0xff]  }
 0x25b   : > { %7540 = vmatpush1.bf16.msra.mxu0 %v14073_v58  ;;  %v6933_v21 = vpop.f32.mrf.mxu0 }
 0x25c   : > { %17184 = vst [vmem:[#allocation36_spill] sm:$0xff] %v15437_v28  ;;  %7446 = vmatpush2.bf16.msra.mxu1 %v14076_v11  ;;  %v15439_v31 = vadd.f32 %v6986_v3, %v6933_v21  ;;  %7541 = vmatprep.subr.bf16.mxu0 %v14081_v9  ;;  %v14091_v21 = vld [vmem:[#allocation3 + $0x60] ss:$200 sps:$4 sm:$0xff]   ;;  %v6996_v9 = vpop.f32.mrf.mxu1 }
 0x25d   : > { %7447 = vmatprep.subr.bf16.mxu1 %v14084_v1  ;;  %v15441_v30 = vpop.f32.mrf.mxu0  ;;  %v14094_v1 = vld [vmem:[#allocation3 + $0xff8] ss:$200 sps:$4 sm:$0xff]  }
 0x25e   : > { %17185 = vst [vmem:[#allocation37_spill] sm:$0xff] %v15441_v30  ;;  %v14099_v30 = vld [vmem:[#allocation3 + $0x17d4] ss:$200 sps:$4 sm:$0xff]  }
 0x25f   : > { %7542 = vmatpush1.bf16.msra.mxu0 %v14079_v15  ;;  %v6939_v0 = vpop.f32.mrf.mxu0  ;;  %v14102_v15 = vld [vmem:[#allocation3 + $0xe6c] ss:$200 sps:$4 sm:$0xff]  }
 0x260   : > { %7448 = vmatpush2.bf16.msra.mxu1 %v14082_v42  ;;  %v15443_v28 = vadd.f32 %v6992_v49, %v6939_v0  ;;  %7543 = vmatprep.subr.bf16.mxu0 %v14087_v4  ;;  %v14097_v42 = vld [vmem:[#allocation3 + $0x17d0] ss:$200 sps:$4 sm:$0xff]   ;;  %v14105_v4 = vld [vmem:[#allocation3 + $0x1644] ss:$200 sps:$4 sm:$0xff]   ;;  %v14111_v0 = vld [vmem:[#allocation3 + $0x14b4] ss:$200 sps:$4 sm:$0xff]  }
 0x261   : > { %7449 = vmatprep.subr.bf16.mxu1 %v14090_v2  ;;  %v6941_v58 = vpop.f32.mrf.mxu0  ;;  %v14100_v49 = vld [vmem:[#allocation3 + $0xe68] ss:$200 sps:$4 sm:$0xff]   ;;  %v14108_v2 = vld [vmem:[#allocation3 + $0xcdc] ss:$200 sps:$4 sm:$0xff]  }
 0x262   : > { %v15445_v11 = vadd.f32 %v6994_v56, %v6941_v58  ;;  %v14103_v56 = vld [vmem:[#allocation3 + $0x1640] ss:$200 sps:$4 sm:$0xff]   ;;  %v14109_v58 = vld [vmem:[#allocation3 + $0x14b0] ss:$200 sps:$4 sm:$0xff]  }
 0x263   : > { %7544 = vmatpush1.bf16.msra.mxu0 %v14085_v25  ;;  %v6943_v3 = vpop.f32.mrf.mxu0  ;;  %v14106_v25 = vld [vmem:[#allocation3 + $0xcd8] ss:$200 sps:$4 sm:$0xff]  }
 0x264   : > { %17186 = vst [vmem:[#allocation38_spill] sm:$0xff] %v15445_v11  ;;  %7450 = vmatpush2.bf16.msra.mxu1 %v14088_v35  ;;  %v15447_v36 = vadd.f32 %v6996_v9, %v6943_v3  ;;  %7545 = vmatprep.subr.bf16.mxu0 %v14093_v34  ;;  %v14114_v35 = vld [vmem:[#allocation3 + $0x1e14] ss:$200 sps:$4 sm:$0xff]   ;;  %v14112_v34 = vld [vmem:[#allocation3 + $0x1e10] ss:$200 sps:$4 sm:$0xff]  }
 0x265   : > { %7451 = vmatprep.subr.bf16.mxu1 %v14096_v16  ;;  %v14117_v16 = vld [vmem:[#allocation3 + $0x1324] ss:$200 sps:$4 sm:$0xff]   ;;  %v14115_v9 = vld [vmem:[#allocation3 + $0x1320] ss:$200 sps:$4 sm:$0xff]   ;;  %v14123_v3 = vld [vmem:[#allocation3 + $0x1194] ss:$200 sps:$4 sm:$0xff]  }
 0x267   : > { %7546 = vmatpush1.bf16.msra.mxu0 %v14091_v21  ;;  %v14120_v21 = vld [vmem:[#allocation3 + $0x1c84] ss:$200 sps:$4 sm:$0xff]  }
 0x268   : > { %7452 = vmatpush2.bf16.msra.mxu1 %v14094_v1  ;;  %7547 = vmatprep.subr.bf16.mxu0 %v14099_v30  ;;  %v14118_v30 = vld [vmem:[#allocation3 + $0x1c80] ss:$200 sps:$4 sm:$0xff]   ;;  %v14126_v1 = vld [vmem:[#allocation3 + $0x1af4] ss:$200 sps:$4 sm:$0xff]  }
 0x269   : > { %7453 = vmatprep.subr.bf16.mxu1 %v14102_v15  ;;  %v14121_v15 = vld [vmem:[#allocation3 + $0x1190] ss:$200 sps:$4 sm:$0xff]  }
 0x26b   : > { %7548 = vmatpush2.bf16.msra.mxu0 %v14097_v42  ;;  %v14124_v42 = vld [vmem:[#allocation3 + $0x1af0] ss:$200 sps:$4 sm:$0xff]  }
 0x26c   : > { %7454 = vmatpush2.bf16.msra.mxu1 %v14100_v49  ;;  %7549 = vmatprep.subr.bf16.mxu0 %v14105_v4  ;;  %v14129_v49 = vld [vmem:[#allocation3 + $0x1004] ss:$200 sps:$4 sm:$0xff]  }
 0x26d   : > { %7455 = vmatprep.subr.bf16.mxu1 %v14108_v2  ;;  %v14132_v4 = vld [vmem:[#allocation3 + $0x1964] ss:$200 sps:$4 sm:$0xff]   ;;  %v14127_v2 = vld [vmem:[#allocation3 + $0x1000] ss:$200 sps:$4 sm:$0xff]  }
 0x26f   : > { %7550 = vmatpush2.bf16.msra.mxu0 %v14103_v56  ;;  %v14130_v56 = vld [vmem:[#allocation3 + $0x1960] ss:$200 sps:$4 sm:$0xff]  }
 0x270   : > { %7456 = vmatpush2.bf16.msra.mxu1 %v14106_v25  ;;  %7551 = vmatprep.subr.bf16.mxu0 %v14111_v0  ;;  %v14135_v25 = vld [vmem:[#allocation3 + $0xe74] ss:$200 sps:$4 sm:$0xff]  }
 0x271   : > { %7592 = vmatprep.subr.bf16.mxu1 %v14114_v35  ;;  %v14138_v0 = vld [vmem:[#allocation3 + $0xb5c] ss:$200 sps:$4 sm:$0xff]   ;;  %v14133_v35 = vld [vmem:[#allocation3 + $0xe70] ss:$200 sps:$4 sm:$0xff]  }
 0x273   : > { %7458 = vmatmul.mubr.bf16.vlgmr.msra.gmra.mxu1 %v15181_v17  ;;  %7552 = vmatpush2.bf16.msra.mxu0 %v14109_v58  ;;  %v14136_v58 = vld [vmem:[#allocation3 + $0xb58] ss:$200 sps:$4 sm:$0xff]  }
 0x274   : > { %7467 = vmatprep.mubr.bf16.mxu1 %v15198_v27  ;;  %7593 = vmatpush1.bf16.msra.mxu1 %v14112_v34  ;;  %v14141_v34 = vld [vmem:[#allocation3 + $0xce4] ss:$200 sps:$4 sm:$0xff]  }
 0x275   : > { %7553 = vmatprep.subr.bf16.mxu0 %v14117_v16  ;;  %7594 = vmatprep.subr.bf16.mxu1 %v14120_v21  ;;  %v14144_v16 = vld [vmem:[#allocation3 + $0x9cc] ss:$200 sps:$4 sm:$0xff]   ;;  %v15453_v21 = vpop.f32.mrf.mxu0 }
 0x276   : > { %17187 = vst [vmem:[#allocation39_spill] sm:$0xff] %v15453_v21 }
 0x277   : > { %7554 = vmatpush2.bf16.msra.mxu0 %v14115_v9  ;;  %v14139_v9 = vld [vmem:[#allocation3 + $0xce0] ss:$200 sps:$4 sm:$0xff]  }
 0x278   : > { %7595 = vmatpush1.bf16.msra.mxu1 %v14118_v30  ;;  %7555 = vmatprep.subr.bf16.mxu0 %v14123_v3  ;;  %v14142_v30 = vld [vmem:[#allocation3 + $0x9c8] ss:$200 sps:$4 sm:$0xff]   ;;  %v14147_v3 = vld [vmem:[#allocation3 + $0x1e1c] ss:$200 sps:$4 sm:$0xff]  }
 0x279   : > { %7596 = vmatprep.subr.bf16.mxu1 %v14126_v1  ;;  %v14150_v1 = vld [vmem:[#allocation3 + $0x83c] ss:$200 sps:$4 sm:$0xff]  }
 0x27b   : > { %7468 = vmatmul.mubr.bf16.gmra.mxu1 %v15203_v32  ;;  %7556 = vmatpush2.bf16.msra.mxu0 %v14121_v15  ;;  %v7088_v15 = vpop.f32.mrf.mxu0 }
 0x27c   : > { %7597 = vmatpush1.bf16.msra.mxu1 %v14124_v42  ;;  %7557 = vmatprep.subr.bf16.mxu0 %v14129_v49  ;;  %v14145_v42 = vld [vmem:[#allocation3 + $0x1e18] ss:$200 sps:$4 sm:$0xff]  }
 0x27d   : > { %7598 = vmatprep.subr.bf16.mxu1 %v14132_v4  ;;  %7616 = vmatprep.mubr.bf16.mxu1 %v17174_v5  ;;  %v14148_v49 = vld [vmem:[#allocation3 + $0x838] ss:$200 sps:$4 sm:$0xff]   ;;  %v14153_v4 = vld [vmem:[#allocation3 + $0x1c8c] ss:$200 sps:$4 sm:$0xff]  }
 0x27f   : > { %7558 = vmatpush2.bf16.msra.mxu0 %v14127_v2  ;;  %v7090_v2 = vpop.f32.mrf.mxu0 }
 0x280   : > { %7599 = vmatpush1.bf16.msra.mxu1 %v14130_v56  ;;  %7559 = vmatprep.subr.bf16.mxu0 %v14135_v25  ;;  %v14151_v56 = vld [vmem:[#allocation3 + $0x1c88] ss:$200 sps:$4 sm:$0xff]  }
 0x281   : > { %7637 = vmatprep.subr.bf16.mxu1 %v14138_v0  ;;  %v14154_v25 = vld [vmem:[#allocation3 + $0x6a8] ss:$200 sps:$4 sm:$0xff]   ;;  %v14156_v0 = vld [vmem:[#allocation3 + $0x6ac] ss:$200 sps:$4 sm:$0xff]  }
 0x283   : > { %7560 = vmatpush2.bf16.msra.mxu0 %v14133_v35  ;;  %12735 = vmatmul.mubr.msk.bf16.vlgmr.msra.gmra.mxu1 %vm6254_vm3, %v15174_v10  ;;  %v14159_v35 = vld [vmem:[#allocation3 + $0x1afc] ss:$200 sps:$4 sm:$0xff]  }
 0x284   : > { %7638 = vmatpush1.bf16.msra.mxu1 %v14136_v58  ;;  %7561 = vmatprep.subr.bf16.mxu0 %v14141_v34  ;;  %v14162_v58 = vld [vmem:[#allocation3 + $0x51c] ss:$200 sps:$4 sm:$0xff]   ;;  %v7092_v34 = vpop.f32.mrf.mxu0 }
 0x285   : > { %7639 = vmatprep.subr.bf16.mxu1 %v14144_v16  ;;  %7626 = vmatprep.mubr.bf16.mxu1 %v17174_v5  ;;  %v14157_v16 = vld [vmem:[#allocation3 + $0x1af8] ss:$200 sps:$4 sm:$0xff]  }
 0x286   : > { %v15465_v11 = vpop.f32.mrf.mxu0 }
 0x287   : > { %7562 = vmatpush2.bf16.msra.mxu0 %v14139_v9  ;;  %v14160_v9 = vld [vmem:[#allocation3 + $0x518] ss:$200 sps:$4 sm:$0xff]   ;;  %17189 = vst [vmem:[#allocation41_spill] sm:$0xff] %v15465_v11 }
 0x288   : > { %7640 = vmatpush1.bf16.msra.mxu1 %v14142_v30  ;;  %7698 = vmatprep.subr.bf16.mxu0 %v14147_v3  ;;  %v15463_v30 = vpop.f32.mrf.mxu1  ;;  %v14165_v3 = vld [vmem:[#allocation3 + $0x196c] ss:$200 sps:$4 sm:$0xff]   ;;  %v14169_v11 = vld [vmem:[#allocation3 + $0xb60] ss:$200 sps:$4 sm:$0xff]  }
 0x289   : > { %7641 = vmatprep.subr.bf16.mxu1 %v14150_v1  ;;  %17188 = vst [vmem:[#allocation40_spill] sm:$0xff] %v15463_v30  ;;  %v14168_v1 = vld [vmem:[#allocation3 + $0x38c] ss:$200 sps:$4 sm:$0xff]  }
 0x28a   : > { %7564 = vmatmul.mubr.bf16.vlgmr.msra.gmra.mxu0 %v15181_v17 }
 0x28b   : > { %7573 = vmatprep.mubr.bf16.mxu0 %v15198_v27  ;;  %12736 = vmatmul.mubr.msk.bf16.gmra.mxu1 %vm6254_vm3, %v15188_v20 }
 0x28c   : > { %7699 = vmatpush1.bf16.msra.mxu0 %v14145_v42  ;;  %7642 = vmatpush1.bf16.msra.mxu1 %v14148_v49  ;;  %v14163_v49 = vld [vmem:[#allocation3 + $0x1968] ss:$200 sps:$4 sm:$0xff]  }
 0x28d   : > { %7669 = vmatprep.mubr.bf16.mxu1 %v15186_v19  ;;  %7700 = vmatprep.subr.bf16.mxu0 %v14153_v4  ;;  %v14166_v4 = vld [vmem:[#allocation3 + $0x388] ss:$200 sps:$4 sm:$0xff]  }
 0x28e   : > { %7643 = vmatprep.subr.bf16.mxu1 %v14156_v0 }
 0x290   : > { %7701 = vmatpush1.bf16.msra.mxu0 %v14151_v56  ;;  %7644 = vmatpush1.bf16.msra.mxu1 %v14154_v25  ;;  %v14174_v56 = vld [vmem:[#allocation3 + $0x1fc] ss:$200 sps:$4 sm:$0xff]   ;;  %v7098_v25 = vpop.f32.mrf.mxu0 }
 0x291   : > { %7702 = vmatprep.subr.bf16.mxu0 %v14159_v35  ;;  %v7035_v21 = vpop.f32.mrf.mxu1  ;;  %7645 = vmatprep.subr.bf16.mxu1 %v14162_v58 }
 0x292   : > { %7574 = vmatmul.mubr.bf16.gmra.mxu0 %v15203_v32  ;;  %v15468_v42 = vadd.f32 %v7088_v15, %v7035_v21  ;;  %v14172_v21 = vld [vmem:[#allocation3 + $0x1f8] ss:$200 sps:$4 sm:$0xff]   ;;  %v7100_v14 = vpop.f32.mrf.mxu0 }
 0x293   : > { %v7037_v0 = vpop.f32.mrf.mxu1  ;;  %7722 = vmatprep.mubr.bf16.mxu0 %v17174_v5 }
 0x294   : > { %7703 = vmatpush1.bf16.msra.mxu0 %v14157_v16  ;;  %7646 = vmatpush1.bf16.msra.mxu1 %v14160_v9  ;;  %v15471_v30 = vadd.f32 %v7090_v2, %v7037_v0  ;;  %v14175_v9 = vld [vmem:[#allocation3 + $0x9d0] ss:$200 sps:$4 sm:$0xff]  }
 0x295   : > { %7704 = vmatprep.subr.bf16.mxu0 %v14165_v3  ;;  %v7039_v35 = vpop.f32.mrf.mxu1  ;;  %7647 = vmatprep.subr.bf16.mxu1 %v14168_v1  ;;  %v14178_v3 = vld [vmem:[#allocation3 + $0x68] ss:$200 sps:$4 sm:$0xff]   ;;  %v14183_v1 = vld [vmem:[#allocation3 + $0x844] ss:$200 sps:$4 sm:$0xff]  }
 0x296   : > { %17190 = vst [vmem:[#allocation42_spill] sm:$0xff] %v15471_v30  ;;  %v15473_v58 = vadd.f32 %v7092_v34, %v7039_v35  ;;  %v14189_v30 = vld [vmem:[#allocation3 + $0x6b4] ss:$200 sps:$4 sm:$0xff]  }
 0x297   : > { %v15475_v15 = vpop.f32.mrf.mxu1 }
 0x298   : > { %17191 = vst [vmem:[#allocation43_spill] sm:$0xff] %v15473_v58  ;;  %17192 = vst [vmem:[#allocation44_spill] sm:$0xff] %v15475_v15  ;;  %7705 = vmatpush1.bf16.msra.mxu0 %v14163_v49  ;;  %7648 = vmatpush1.bf16.msra.mxu1 %v14166_v4  ;;  %v14186_v49 = vld [vmem:[#allocation3 + $0x17dc] ss:$200 sps:$4 sm:$0xff]   ;;  %v7102_v4 = vpop.f32.mrf.mxu0 }
 0x299   : > { %7743 = vmatprep.subr.bf16.mxu0 %v14171_v39  ;;  %v7045_v16 = vpop.f32.mrf.mxu1  ;;  %7649 = vmatprep.subr.bf16.mxu1 %v14174_v56  ;;  %v14181_v56 = vld [vmem:[#allocation3 + $0x840] ss:$200 sps:$4 sm:$0xff]  }
 0x29a   : > { %v15477_v2 = vadd.f32 %v7098_v25, %v7045_v16  ;;  %v14184_v16 = vld [vmem:[#allocation3 + $0x17d8] ss:$200 sps:$4 sm:$0xff]  }
 0x29b   : > { %12737 = vmatmul.mubr.msk.bf16.vlgmr.msra.gmra.mxu0 %vm6254_vm3, %v15174_v10  ;;  %v7047_v34 = vpop.f32.mrf.mxu1 }
 0x29c   : > { %17193 = vst [vmem:[#allocation45_spill] sm:$0xff] %v15477_v2  ;;  %7744 = vmatpush1.bf16.msra.mxu0 %v14169_v11  ;;  %7650 = vmatpush1.bf16.msra.mxu1 %v14172_v21  ;;  %v15481_v0 = vadd.f32 %v7100_v14, %v7047_v34  ;;  %v14187_v14 = vld [vmem:[#allocation3 + $0x6b0] ss:$200 sps:$4 sm:$0xff]   ;;  %v14192_v21 = vld [vmem:[#allocation3 + $0x164c] ss:$200 sps:$4 sm:$0xff]  }
 0x29d   : > { %7745 = vmatprep.subr.bf16.mxu0 %v14177_v63  ;;  %v7049_v35 = vpop.f32.mrf.mxu1  ;;  %7651 = vmatprep.subr.bf16.mxu1 %v14180_v12  ;;  %v14190_v63 = vld [vmem:[#allocation3 + $0x1648] ss:$200 sps:$4 sm:$0xff]   ;;  %v14195_v34 = vld [vmem:[#allocation3 + $0x524] ss:$200 sps:$4 sm:$0xff]  }
 0x29e   : > { %17194 = vst [vmem:[#allocation46_spill] sm:$0xff] %v15481_v0  ;;  %v15483_v39 = vadd.f32 %v7102_v4, %v7049_v35  ;;  %7732 = vmatprep.mubr.bf16.mxu0 %v17174_v5 }
 0x29f   : > { %v15486_v25 = vpop.f32.mrf.mxu1 }
 0x2a0   : > { %17195 = vst [vmem:[#allocation47_spill] sm:$0xff] %v15483_v39  ;;  %17196 = vst [vmem:[#allocation48_spill] sm:$0xff] %v15486_v25  ;;  %7746 = vmatpush1.bf16.msra.mxu0 %v14175_v9  ;;  %7652 = vmatpush1.bf16.msra.mxu1 %v14178_v3  ;;  %v15491_v9 = vpop.f32.mrf.mxu0  ;;  %v14193_v3 = vld [vmem:[#allocation3 + $0x520] ss:$200 sps:$4 sm:$0xff]   ;;  %v14201_v25 = vld [vmem:[#allocation3 + $0x394] ss:$200 sps:$4 sm:$0xff]  }
 0x2a1   : > { %7747 = vmatprep.subr.bf16.mxu0 %v14183_v1  ;;  %v7194_v11 = vpop.f32.mrf.mxu1  ;;  %7653 = vmatprep.subr.bf16.mxu1 %v14186_v49  ;;  %17197 = vst [vmem:[#allocation49_spill] sm:$0xff] %v15491_v9  ;;  %v14198_v1 = vld [vmem:[#allocation3 + $0x14bc] ss:$200 sps:$4 sm:$0xff]   ;;  %v14196_v49 = vld [vmem:[#allocation3 + $0x14b8] ss:$200 sps:$4 sm:$0xff]  }
 0x2a2   : > { %v14202_v9 = vld [vmem:[#allocation3 + $0x1328] ss:$200 sps:$4 sm:$0xff]  }
 0x2a3   : > { %12738 = vmatmul.mubr.msk.bf16.gmra.mxu0 %vm6254_vm3, %v15188_v20  ;;  %v7196_v12 = vpop.f32.mrf.mxu1 }
 0x2a4   : > { %7748 = vmatpush1.bf16.msra.mxu0 %v14181_v56  ;;  %7775 = vmatprep.mubr.bf16.mxu0 %v15186_v19 }
 0x2a5   : > { %7654 = vmatpush2.bf16.msra.mxu1 %v14184_v16  ;;  %7749 = vmatprep.subr.bf16.mxu0 %v14189_v30  ;;  %v7198_v4 = vpop.f32.mrf.mxu1  ;;  %v14199_v16 = vld [vmem:[#allocation3 + $0x390] ss:$200 sps:$4 sm:$0xff]   ;;  %v14204_v30 = vld [vmem:[#allocation3 + $0x132c] ss:$200 sps:$4 sm:$0xff]  }
 0x2a6   : > { %7655 = vmatprep.subr.bf16.mxu1 %v14192_v21  ;;  %v14207_v21 = vld [vmem:[#allocation3 + $0x204] ss:$200 sps:$4 sm:$0xff]  }
 0x2a7   : > { %v15493_v35 = vpop.f32.mrf.mxu1 }
 0x2a8   : > { %7750 = vmatpush1.bf16.msra.mxu0 %v14187_v14  ;;  %17198 = vst [vmem:[#allocation50_spill] sm:$0xff] %v15493_v35  ;;  %v7141_v0 = vpop.f32.mrf.mxu0  ;;  %v14210_v14 = vld [vmem:[#allocation3 + $0x119c] ss:$200 sps:$4 sm:$0xff]  }
 0x2a9   : > { %7656 = vmatpush2.bf16.msra.mxu1 %v14190_v63  ;;  %v15495_v15 = vadd.f32 %v7194_v11, %v7141_v0  ;;  %7751 = vmatprep.subr.bf16.mxu0 %v14195_v34  ;;  %v7204_v2 = vpop.f32.mrf.mxu1  ;;  %v14205_v11 = vld [vmem:[#allocation3 + $0x200] ss:$200 sps:$4 sm:$0xff]   ;;  %v14213_v34 = vld [vmem:[#allocation3 + $0x74] ss:$200 sps:$4 sm:$0xff]  }
 0x2aa   : > { %7657 = vmatprep.subr.bf16.mxu1 %v14198_v1  ;;  %v7143_v56 = vpop.f32.mrf.mxu0  ;;  %v14208_v63 = vld [vmem:[#allocation3 + $0x1198] ss:$200 sps:$4 sm:$0xff]  }
 0x2ab   : > { %17199 = vst [vmem:[#allocation51_spill] sm:$0xff] %v15495_v15  ;;  %v15497_v39 = vadd.f32 %v7196_v12, %v7143_v56  ;;  %v7206_v1 = vpop.f32.mrf.mxu1  ;;  %v14216_v56 = vld [vmem:[#allocation3 + $0x100c] ss:$200 sps:$4 sm:$0xff]  }
 0x2ac   : > { %7752 = vmatpush1.bf16.msra.mxu0 %v14193_v3  ;;  %v7145_v58 = vpop.f32.mrf.mxu0 }
 0x2ad   : > { %17200 = vst [vmem:[#allocation52_spill] sm:$0xff] %v15497_v39  ;;  %7658 = vmatpush2.bf16.msra.mxu1 %v14196_v49  ;;  %v15499_v35 = vadd.f32 %v7198_v4, %v7145_v58  ;;  %7753 = vmatprep.subr.bf16.mxu0 %v14201_v25  ;;  %v14211_v58 = vld [vmem:[#allocation3 + $0x70] ss:$200 sps:$4 sm:$0xff]   ;;  %v7208_v25 = vpop.f32.mrf.mxu1 }
 0x2ae   : > { %7659 = vmatprep.subr.bf16.mxu1 %v14204_v30  ;;  %v15501_v0 = vpop.f32.mrf.mxu0  ;;  %v14214_v30 = vld [vmem:[#allocation3 + $0x1008] ss:$200 sps:$4 sm:$0xff]  }
 0x2af   : > { %17201 = vst [vmem:[#allocation53_spill] sm:$0xff] %v15499_v35  ;;  %17202 = vst [vmem:[#allocation54_spill] sm:$0xff] %v15501_v0  ;;  %v14219_v0 = vld [vmem:[#allocation3 + $0x17e4] ss:$200 sps:$4 sm:$0xff]  }
 0x2b0   : > { %7754 = vmatpush1.bf16.msra.mxu0 %v14199_v16  ;;  %v7151_v12 = vpop.f32.mrf.mxu0  ;;  %v14222_v16 = vld [vmem:[#allocation3 + $0xe7c] ss:$200 sps:$4 sm:$0xff]  }
 0x2b1   : > { %7660 = vmatpush2.bf16.msra.mxu1 %v14202_v9  ;;  %v15503_v39 = vadd.f32 %v7204_v2, %v7151_v12  ;;  %7755 = vmatprep.subr.bf16.mxu0 %v14207_v21  ;;  %v14217_v9 = vld [vmem:[#allocation3 + $0x17e0] ss:$200 sps:$4 sm:$0xff]   ;;  %v14225_v21 = vld [vmem:[#allocation3 + $0x1654] ss:$200 sps:$4 sm:$0xff]   ;;  %v14231_v12 = vld [vmem:[#allocation3 + $0x14c4] ss:$200 sps:$4 sm:$0xff]  }
 0x2b2   : > { %7661 = vmatprep.subr.bf16.mxu1 %v14210_v14  ;;  %v7153_v3 = vpop.f32.mrf.mxu0  ;;  %v14220_v2 = vld [vmem:[#allocation3 + $0xe78] ss:$200 sps:$4 sm:$0xff]   ;;  %v14228_v14 = vld [vmem:[#allocation3 + $0xcec] ss:$200 sps:$4 sm:$0xff]  }
 0x2b3   : > { %17203 = vst [vmem:[#allocation55_spill] sm:$0xff] %v15503_v39  ;;  %v15505_v49 = vadd.f32 %v7206_v1, %v7153_v3  ;;  %v14223_v1 = vld [vmem:[#allocation3 + $0x1650] ss:$200 sps:$4 sm:$0xff]   ;;  %v14229_v3 = vld [vmem:[#allocation3 + $0x14c0] ss:$200 sps:$4 sm:$0xff]  }
 0x2b4   : > { %7756 = vmatpush1.bf16.msra.mxu0 %v14205_v11  ;;  %v7155_v4 = vpop.f32.mrf.mxu0  ;;  %v14226_v11 = vld [vmem:[#allocation3 + $0xce8] ss:$200 sps:$4 sm:$0xff]   ;;  %v14300_v39 = vld [vmem:[#allocation3 + $0x7c] ss:$200 sps:$4 sm:$0xff]  }
 0x2b5   : > { %17204 = vst [vmem:[#allocation56_spill] sm:$0xff] %v15505_v49  ;;  %7662 = vmatpush2.bf16.msra.mxu1 %v14208_v63  ;;  %v15507_v35 = vadd.f32 %v7208_v25, %v7155_v4  ;;  %7757 = vmatprep.subr.bf16.mxu0 %v14213_v34  ;;  %v14234_v63 = vld [vmem:[#allocation3 + $0x1e24] ss:$200 sps:$4 sm:$0xff]   ;;  %v14232_v34 = vld [vmem:[#allocation3 + $0x1e20] ss:$200 sps:$4 sm:$0xff]  }
 0x2b6   : > { %7663 = vmatprep.subr.bf16.mxu1 %v14216_v56  ;;  %v14237_v56 = vld [vmem:[#allocation3 + $0x1334] ss:$200 sps:$4 sm:$0xff]   ;;  %v14235_v25 = vld [vmem:[#allocation3 + $0x1330] ss:$200 sps:$4 sm:$0xff]   ;;  %v14243_v4 = vld [vmem:[#allocation3 + $0x11a4] ss:$200 sps:$4 sm:$0xff]  }
 0x2b7   : > { %17205 = vst [vmem:[#allocation57_spill] sm:$0xff] %v15507_v35  ;;  %v14291_v35 = vld [vmem:[#allocation3 + $0xb74] ss:$200 sps:$4 sm:$0xff]  }
 0x2b8   : > { %7758 = vmatpush1.bf16.msra.mxu0 %v14211_v58  ;;  %v14240_v58 = vld [vmem:[#allocation3 + $0x1c94] ss:$200 sps:$4 sm:$0xff]  }
 0x2b9   : > { %7664 = vmatpush2.bf16.msra.mxu1 %v14214_v30  ;;  %7759 = vmatprep.subr.bf16.mxu0 %v14219_v0  ;;  %v14238_v0 = vld [vmem:[#allocation3 + $0x1c90] ss:$200 sps:$4 sm:$0xff]   ;;  %v14246_v30 = vld [vmem:[#allocation3 + $0x1b04] ss:$200 sps:$4 sm:$0xff]  }
 0x2ba   : > { %7665 = vmatprep.subr.bf16.mxu1 %v14222_v16  ;;  %v14241_v16 = vld [vmem:[#allocation3 + $0x11a0] ss:$200 sps:$4 sm:$0xff]  }
 0x2bc   : > { %7760 = vmatpush2.bf16.msra.mxu0 %v14217_v9  ;;  %v14244_v9 = vld [vmem:[#allocation3 + $0x1b00] ss:$200 sps:$4 sm:$0xff]  }
 0x2bd   : > { %7666 = vmatpush2.bf16.msra.mxu1 %v14220_v2  ;;  %7761 = vmatprep.subr.bf16.mxu0 %v14225_v21  ;;  %v14249_v2 = vld [vmem:[#allocation3 + $0x1014] ss:$200 sps:$4 sm:$0xff]  }
 0x2be   : > { %7667 = vmatprep.subr.bf16.mxu1 %v14228_v14  ;;  %v14252_v21 = vld [vmem:[#allocation3 + $0x1974] ss:$200 sps:$4 sm:$0xff]   ;;  %v14247_v14 = vld [vmem:[#allocation3 + $0x1010] ss:$200 sps:$4 sm:$0xff]  }
 0x2c0   : > { %7762 = vmatpush2.bf16.msra.mxu0 %v14223_v1  ;;  %v14250_v1 = vld [vmem:[#allocation3 + $0x1970] ss:$200 sps:$4 sm:$0xff]  }
 0x2c1   : > { %7668 = vmatpush2.bf16.msra.mxu1 %v14226_v11  ;;  %7763 = vmatprep.subr.bf16.mxu0 %v14231_v12  ;;  %v14255_v11 = vld [vmem:[#allocation3 + $0xe84] ss:$200 sps:$4 sm:$0xff]  }
 0x2c2   : > { %7804 = vmatprep.subr.bf16.mxu1 %v14234_v63  ;;  %v14258_v12 = vld [vmem:[#allocation3 + $0xb6c] ss:$200 sps:$4 sm:$0xff]   ;;  %v14253_v63 = vld [vmem:[#allocation3 + $0xe80] ss:$200 sps:$4 sm:$0xff]  }
 0x2c4   : > { %7670 = vmatmul.mubr.bf16.vlgmr.msra.gmra.mxu1 %v15181_v17  ;;  %7764 = vmatpush2.bf16.msra.mxu0 %v14229_v3  ;;  %v14256_v3 = vld [vmem:[#allocation3 + $0xb68] ss:$200 sps:$4 sm:$0xff]  }
 0x2c5   : > { %7679 = vmatprep.mubr.bf16.mxu1 %v15198_v27  ;;  %7805 = vmatpush1.bf16.msra.mxu1 %v14232_v34  ;;  %v14261_v34 = vld [vmem:[#allocation3 + $0xcf4] ss:$200 sps:$4 sm:$0xff]  }
 0x2c6   : > { %7765 = vmatprep.subr.bf16.mxu0 %v14237_v56  ;;  %7806 = vmatprep.subr.bf16.mxu1 %v14240_v58  ;;  %v14264_v56 = vld [vmem:[#allocation3 + $0x9dc] ss:$200 sps:$4 sm:$0xff]   ;;  %v15513_v58 = vpop.f32.mrf.mxu0 }
 0x2c7   : > { %17206 = vst [vmem:[#allocation58_spill] sm:$0xff] %v15513_v58 }
 0x2c8   : > { %7766 = vmatpush2.bf16.msra.mxu0 %v14235_v25  ;;  %v14259_v25 = vld [vmem:[#allocation3 + $0xcf0] ss:$200 sps:$4 sm:$0xff]  }
 0x2c9   : > { %7807 = vmatpush1.bf16.msra.mxu1 %v14238_v0  ;;  %7767 = vmatprep.subr.bf16.mxu0 %v14243_v4  ;;  %v14262_v0 = vld [vmem:[#allocation3 + $0x9d8] ss:$200 sps:$4 sm:$0xff]   ;;  %v14267_v4 = vld [vmem:[#allocation3 + $0x1e2c] ss:$200 sps:$4 sm:$0xff]  }
 0x2ca   : > { %7808 = vmatprep.subr.bf16.mxu1 %v14246_v30  ;;  %v14270_v30 = vld [vmem:[#allocation3 + $0x84c] ss:$200 sps:$4 sm:$0xff]  }
 0x2cc   : > { %7680 = vmatmul.mubr.bf16.gmra.mxu1 %v15203_v32  ;;  %7768 = vmatpush2.bf16.msra.mxu0 %v14241_v16  ;;  %v7300_v16 = vpop.f32.mrf.mxu0 }
 0x2cd   : > { %7809 = vmatpush1.bf16.msra.mxu1 %v14244_v9  ;;  %7769 = vmatprep.subr.bf16.mxu0 %v14249_v2  ;;  %v14265_v9 = vld [vmem:[#allocation3 + $0x1e28] ss:$200 sps:$4 sm:$0xff]  }
 0x2ce   : > { %7810 = vmatprep.subr.bf16.mxu1 %v14252_v21  ;;  %7828 = vmatprep.mubr.bf16.mxu1 %v17174_v5  ;;  %v14268_v2 = vld [vmem:[#allocation3 + $0x848] ss:$200 sps:$4 sm:$0xff]   ;;  %v14273_v21 = vld [vmem:[#allocation3 + $0x1c9c] ss:$200 sps:$4 sm:$0xff]  }
 0x2d0   : > { %7770 = vmatpush2.bf16.msra.mxu0 %v14247_v14  ;;  %v7302_v14 = vpop.f32.mrf.mxu0 }
 0x2d1   : > { %7811 = vmatpush1.bf16.msra.mxu1 %v14250_v1  ;;  %7771 = vmatprep.subr.bf16.mxu0 %v14255_v11  ;;  %v14271_v1 = vld [vmem:[#allocation3 + $0x1c98] ss:$200 sps:$4 sm:$0xff]   ;;  %v14276_v11 = vld [vmem:[#allocation3 + $0x6bc] ss:$200 sps:$4 sm:$0xff]  }
 0x2d2   : > { %7849 = vmatprep.subr.bf16.mxu1 %v14258_v12  ;;  %v14274_v12 = vld [vmem:[#allocation3 + $0x6b8] ss:$200 sps:$4 sm:$0xff]  }
 0x2d4   : > { %7772 = vmatpush2.bf16.msra.mxu0 %v14253_v63  ;;  %12739 = vmatmul.mubr.msk.bf16.vlgmr.msra.gmra.mxu1 %vm6254_vm3, %v15174_v10  ;;  %v14279_v63 = vld [vmem:[#allocation3 + $0x1b0c] ss:$200 sps:$4 sm:$0xff]  }
 0x2d5   : > { %7850 = vmatpush1.bf16.msra.mxu1 %v14256_v3  ;;  %7773 = vmatprep.subr.bf16.mxu0 %v14261_v34  ;;  %v14282_v3 = vld [vmem:[#allocation3 + $0x52c] ss:$200 sps:$4 sm:$0xff]   ;;  %v7304_v34 = vpop.f32.mrf.mxu0 }
 0x2d6   : > { %7851 = vmatprep.subr.bf16.mxu1 %v14264_v56  ;;  %7838 = vmatprep.mubr.bf16.mxu1 %v17174_v5  ;;  %v14277_v56 = vld [vmem:[#allocation3 + $0x1b08] ss:$200 sps:$4 sm:$0xff]  }
 0x2d7   : > { %v15525_v49 = vpop.f32.mrf.mxu0 }
 0x2d8   : > { %7774 = vmatpush2.bf16.msra.mxu0 %v14259_v25  ;;  %v14280_v25 = vld [vmem:[#allocation3 + $0x528] ss:$200 sps:$4 sm:$0xff]   ;;  %17208 = vst [vmem:[#allocation60_spill] sm:$0xff] %v15525_v49 }
 0x2d9   : > { %7852 = vmatpush1.bf16.msra.mxu1 %v14262_v0  ;;  %7910 = vmatprep.subr.bf16.mxu0 %v14267_v4  ;;  %v15523_v0 = vpop.f32.mrf.mxu1  ;;  %v14285_v4 = vld [vmem:[#allocation3 + $0x197c] ss:$200 sps:$4 sm:$0xff]   ;;  %v14289_v49 = vld [vmem:[#allocation3 + $0xb70] ss:$200 sps:$4 sm:$0xff]  }
 0x2da   : > { %7853 = vmatprep.subr.bf16.mxu1 %v14270_v30  ;;  %17207 = vst [vmem:[#allocation59_spill] sm:$0xff] %v15523_v0  ;;  %v14288_v30 = vld [vmem:[#allocation3 + $0x39c] ss:$200 sps:$4 sm:$0xff]  }
 0x2db   : > { %7776 = vmatmul.mubr.bf16.vlgmr.msra.gmra.mxu0 %v15181_v17 }
 0x2dc   : > { %7785 = vmatprep.mubr.bf16.mxu0 %v15198_v27  ;;  %12740 = vmatmul.mubr.msk.bf16.gmra.mxu1 %vm6254_vm3, %v15188_v20 }
 0x2dd   : > { %7911 = vmatpush1.bf16.msra.mxu0 %v14265_v9  ;;  %7854 = vmatpush1.bf16.msra.mxu1 %v14268_v2  ;;  %v14283_v2 = vld [vmem:[#allocation3 + $0x1978] ss:$200 sps:$4 sm:$0xff]  }
 0x2de   : > { %7881 = vmatprep.mubr.bf16.mxu1 %v15186_v19  ;;  %7912 = vmatprep.subr.bf16.mxu0 %v14273_v21  ;;  %v14286_v21 = vld [vmem:[#allocation3 + $0x398] ss:$200 sps:$4 sm:$0xff]  }
 0x2df   : > { %7855 = vmatprep.subr.bf16.mxu1 %v14276_v11 }
 0x2e1   : > { %7913 = vmatpush1.bf16.msra.mxu0 %v14271_v1  ;;  %7856 = vmatpush1.bf16.msra.mxu1 %v14274_v12  ;;  %v14294_v1 = vld [vmem:[#allocation3 + $0x20c] ss:$200 sps:$4 sm:$0xff]   ;;  %v7310_v12 = vpop.f32.mrf.mxu0 }
 0x2e2   : > { %7914 = vmatprep.subr.bf16.mxu0 %v14279_v63  ;;  %v7247_v58 = vpop.f32.mrf.mxu1  ;;  %7857 = vmatprep.subr.bf16.mxu1 %v14282_v3 }
 0x2e3   : > { %7786 = vmatmul.mubr.bf16.gmra.mxu0 %v15203_v32  ;;  %v15528_v9 = vadd.f32 %v7300_v16, %v7247_v58  ;;  %v14292_v58 = vld [vmem:[#allocation3 + $0x208] ss:$200 sps:$4 sm:$0xff]   ;;  %v7312_v15 = vpop.f32.mrf.mxu0 }
 0x2e4   : > { %v7249_v11 = vpop.f32.mrf.mxu1  ;;  %7934 = vmatprep.mubr.bf16.mxu0 %v17174_v5 }
 0x2e5   : > { %17209 = vst [vmem:[#allocation61_spill] sm:$0xff] %v15528_v9  ;;  %7915 = vmatpush1.bf16.msra.mxu0 %v14277_v56  ;;  %7858 = vmatpush1.bf16.msra.mxu1 %v14280_v25  ;;  %v15531_v0 = vadd.f32 %v7302_v14, %v7249_v11  ;;  %v14297_v9 = vld [vmem:[#allocation3 + $0x9e4] ss:$200 sps:$4 sm:$0xff]   ;;  %v14295_v25 = vld [vmem:[#allocation3 + $0x9e0] ss:$200 sps:$4 sm:$0xff]  }
 0x2e6   : > { %7916 = vmatprep.subr.bf16.mxu0 %v14285_v4  ;;  %v7251_v63 = vpop.f32.mrf.mxu1  ;;  %7859 = vmatprep.subr.bf16.mxu1 %v14288_v30  ;;  %v14298_v4 = vld [vmem:[#allocation3 + $0x78] ss:$200 sps:$4 sm:$0xff]   ;;  %v14303_v30 = vld [vmem:[#allocation3 + $0x854] ss:$200 sps:$4 sm:$0xff]  }
 0x2e7   : > { %17210 = vst [vmem:[#allocation62_spill] sm:$0xff] %v15531_v0  ;;  %v15533_v3 = vadd.f32 %v7304_v34, %v7251_v63  ;;  %v14321_v0 = vld [vmem:[#allocation3 + $0x3a4] ss:$200 sps:$4 sm:$0xff]  }
 0x2e8   : > { %v15535_v16 = vpop.f32.mrf.mxu1 }
 0x2e9   : > { %17211 = vst [vmem:[#allocation63_spill] sm:$0xff] %v15533_v3  ;;  %17212 = vst [vmem:[#allocation64_spill] sm:$0xff] %v15535_v16  ;;  %7917 = vmatpush1.bf16.msra.mxu0 %v14283_v2  ;;  %7860 = vmatpush1.bf16.msra.mxu1 %v14286_v21  ;;  %v14306_v2 = vld [vmem:[#allocation3 + $0x17ec] ss:$200 sps:$4 sm:$0xff]   ;;  %v7314_v21 = vpop.f32.mrf.mxu0 }
 0x2ea   : > { %7955 = vmatprep.subr.bf16.mxu0 %v14291_v35  ;;  %v7257_v56 = vpop.f32.mrf.mxu1  ;;  %7861 = vmatprep.subr.bf16.mxu1 %v14294_v1 }
 0x2eb   : > { %v15537_v14 = vadd.f32 %v7310_v12, %v7257_v56  ;;  %v14301_v12 = vld [vmem:[#allocation3 + $0x850] ss:$200 sps:$4 sm:$0xff]  }
 0x2ec   : > { %12741 = vmatmul.mubr.msk.bf16.vlgmr.msra.gmra.mxu0 %vm6254_vm3, %v15174_v10  ;;  %v7259_v34 = vpop.f32.mrf.mxu1 }
 0x2ed   : > { %17213 = vst [vmem:[#allocation65_spill] sm:$0xff] %v15537_v14  ;;  %7956 = vmatpush1.bf16.msra.mxu0 %v14289_v49  ;;  %7862 = vmatpush1.bf16.msra.mxu1 %v14292_v58  ;;  %v15541_v11 = vadd.f32 %v7312_v15, %v7259_v34  ;;  %v14304_v49 = vld [vmem:[#allocation3 + $0x17e8] ss:$200 sps:$4 sm:$0xff]   ;;  %v14309_v15 = vld [vmem:[#allocation3 + $0x6c4] ss:$200 sps:$4 sm:$0xff]  }
 0x2ee   : > { %7957 = vmatprep.subr.bf16.mxu0 %v14297_v9  ;;  %v7261_v63 = vpop.f32.mrf.mxu1  ;;  %7863 = vmatprep.subr.bf16.mxu1 %v14300_v39  ;;  %v14312_v58 = vld [vmem:[#allocation3 + $0x165c] ss:$200 sps:$4 sm:$0xff]   ;;  %v14307_v39 = vld [vmem:[#allocation3 + $0x6c0] ss:$200 sps:$4 sm:$0xff]  }
 0x2ef   : > { %17214 = vst [vmem:[#allocation66_spill] sm:$0xff] %v15541_v11  ;;  %v15543_v35 = vadd.f32 %v7314_v21, %v7261_v63  ;;  %7944 = vmatprep.mubr.bf16.mxu0 %v17174_v5  ;;  %v15551_v21 = vpop.f32.mrf.mxu0  ;;  %v14313_v11 = vld [vmem:[#allocation3 + $0x530] ss:$200 sps:$4 sm:$0xff]  }
 0x2f0   : > { %v15546_v1 = vpop.f32.mrf.mxu1  ;;  %17217 = vst [vmem:[#allocation69_spill] sm:$0xff] %v15551_v21  ;;  %v14319_v21 = vld [vmem:[#allocation3 + $0x3a0] ss:$200 sps:$4 sm:$0xff]  }
 0x2f1   : > { %17215 = vst [vmem:[#allocation67_spill] sm:$0xff] %v15543_v35  ;;  %17216 = vst [vmem:[#allocation68_spill] sm:$0xff] %v15546_v1  ;;  %7958 = vmatpush1.bf16.msra.mxu0 %v14295_v25  ;;  %7864 = vmatpush1.bf16.msra.mxu1 %v14298_v4  ;;  %v14310_v25 = vld [vmem:[#allocation3 + $0x1658] ss:$200 sps:$4 sm:$0xff]   ;;  %v14315_v4 = vld [vmem:[#allocation3 + $0x534] ss:$200 sps:$4 sm:$0xff]  }
 0x2f2   : > { %7959 = vmatprep.subr.bf16.mxu0 %v14303_v30  ;;  %v7406_v56 = vpop.f32.mrf.mxu1  ;;  %7865 = vmatprep.subr.bf16.mxu1 %v14306_v2  ;;  %v14318_v30 = vld [vmem:[#allocation3 + $0x14cc] ss:$200 sps:$4 sm:$0xff]  }
 0x2f4   : > { %12742 = vmatmul.mubr.msk.bf16.gmra.mxu0 %vm6254_vm3, %v15188_v20  ;;  %v7408_v9 = vpop.f32.mrf.mxu1 }
 0x2f5   : > { %7960 = vmatpush1.bf16.msra.mxu0 %v14301_v12  ;;  %7987 = vmatprep.mubr.bf16.mxu0 %v15186_v19  ;;  %v14316_v12 = vld [vmem:[#allocation3 + $0x14c8] ss:$200 sps:$4 sm:$0xff]  }
 0x2f6   : > { %7866 = vmatpush2.bf16.msra.mxu1 %v14304_v49  ;;  %7961 = vmatprep.subr.bf16.mxu0 %v14309_v15  ;;  %v7410_v34 = vpop.f32.mrf.mxu1  ;;  %v14324_v15 = vld [vmem:[#allocation3 + $0x133c] ss:$200 sps:$4 sm:$0xff]  }
 0x2f7   : > { %7867 = vmatprep.subr.bf16.mxu1 %v14312_v58 }
 0x2f8   : > { %v15553_v2 = vpop.f32.mrf.mxu1 }
 0x2f9   : > { %7962 = vmatpush1.bf16.msra.mxu0 %v14307_v39  ;;  %17218 = vst [vmem:[#allocation70_spill] sm:$0xff] %v15553_v2  ;;  %v7353_v63 = vpop.f32.mrf.mxu0  ;;  %v14322_v2 = vld [vmem:[#allocation3 + $0x1338] ss:$200 sps:$4 sm:$0xff]  }
 0x2fa   : > { %7868 = vmatpush2.bf16.msra.mxu1 %v14310_v25  ;;  %v15555_v1 = vadd.f32 %v7406_v56, %v7353_v63  ;;  %7963 = vmatprep.subr.bf16.mxu0 %v14315_v4  ;;  %v7416_v35 = vpop.f32.mrf.mxu1  ;;  %v14327_v25 = vld [vmem:[#allocation3 + $0x214] ss:$200 sps:$4 sm:$0xff]  }
 0x2fb   : > { %7869 = vmatprep.subr.bf16.mxu1 %v14318_v30  ;;  %v7355_v49 = vpop.f32.mrf.mxu0  ;;  %v14330_v4 = vld [vmem:[#allocation3 + $0x11ac] ss:$200 sps:$4 sm:$0xff]  }
 0x2fc   : > { %17219 = vst [vmem:[#allocation71_spill] sm:$0xff] %v15555_v1  ;;  %v15557_v16 = vadd.f32 %v7408_v9, %v7355_v49  ;;  %v7418_v63 = vpop.f32.mrf.mxu1  ;;  %v14325_v1 = vld [vmem:[#allocation3 + $0x210] ss:$200 sps:$4 sm:$0xff]   ;;  %v14333_v49 = vld [vmem:[#allocation3 + $0x84] ss:$200 sps:$4 sm:$0xff]  }
 0x2fd   : > { %7964 = vmatpush1.bf16.msra.mxu0 %v14313_v11  ;;  %v7357_v58 = vpop.f32.mrf.mxu0  ;;  %v14328_v11 = vld [vmem:[#allocation3 + $0x11a8] ss:$200 sps:$4 sm:$0xff]  }
 0x2fe   : > { %17220 = vst [vmem:[#allocation72_spill] sm:$0xff] %v15557_v16  ;;  %7870 = vmatpush2.bf16.msra.mxu1 %v14316_v12  ;;  %v15559_v39 = vadd.f32 %v7410_v34, %v7357_v58  ;;  %7965 = vmatprep.subr.bf16.mxu0 %v14321_v0  ;;  %v14336_v12 = vld [vmem:[#allocation3 + $0x101c] ss:$200 sps:$4 sm:$0xff]   ;;  %v7420_v58 = vpop.f32.mrf.mxu1  ;;  %v14331_v16 = vld [vmem:[#allocation3 + $0x80] ss:$200 sps:$4 sm:$0xff]  }
 0x2ff   : > { %7871 = vmatprep.subr.bf16.mxu1 %v14324_v15  ;;  %v15561_v56 = vpop.f32.mrf.mxu0 }
 0x300   : > { %17221 = vst [vmem:[#allocation73_spill] sm:$0xff] %v15559_v39  ;;  %17222 = vst [vmem:[#allocation74_spill] sm:$0xff] %v15561_v56 }
 0x301   : > { %7966 = vmatpush1.bf16.msra.mxu0 %v14319_v21  ;;  %v7363_v30 = vpop.f32.mrf.mxu0  ;;  %v14334_v21 = vld [vmem:[#allocation3 + $0x1018] ss:$200 sps:$4 sm:$0xff]  }
 0x302   : > { %7872 = vmatpush2.bf16.msra.mxu1 %v14322_v2  ;;  %v15563_v9 = vadd.f32 %v7416_v35, %v7363_v30  ;;  %7967 = vmatprep.subr.bf16.mxu0 %v14327_v25  ;;  %v14339_v2 = vld [vmem:[#allocation3 + $0x17f4] ss:$200 sps:$4 sm:$0xff]   ;;  %v14337_v25 = vld [vmem:[#allocation3 + $0x17f0] ss:$200 sps:$4 sm:$0xff]   ;;  %v14345_v30 = vld [vmem:[#allocation3 + $0x1664] ss:$200 sps:$4 sm:$0xff]  }
 0x303   : > { %7873 = vmatprep.subr.bf16.mxu1 %v14330_v4  ;;  %v7365_v34 = vpop.f32.mrf.mxu0  ;;  %v14342_v35 = vld [vmem:[#allocation3 + $0xe8c] ss:$200 sps:$4 sm:$0xff]   ;;  %v14340_v4 = vld [vmem:[#allocation3 + $0xe88] ss:$200 sps:$4 sm:$0xff]  }
 0x304   : > { %17223 = vst [vmem:[#allocation75_spill] sm:$0xff] %v15563_v9  ;;  %v15565_v0 = vadd.f32 %v7418_v63, %v7365_v34  ;;  %v14348_v63 = vld [vmem:[#allocation3 + $0xcfc] ss:$200 sps:$4 sm:$0xff]  }
 0x305   : > { %7968 = vmatpush1.bf16.msra.mxu0 %v14325_v1  ;;  %v7367_v15 = vpop.f32.mrf.mxu0  ;;  %v14343_v1 = vld [vmem:[#allocation3 + $0x1660] ss:$200 sps:$4 sm:$0xff]   ;;  %v14351_v34 = vld [vmem:[#allocation3 + $0x14d4] ss:$200 sps:$4 sm:$0xff]  }
 0x306   : > { %17224 = vst [vmem:[#allocation76_spill] sm:$0xff] %v15565_v0  ;;  %7874 = vmatpush2.bf16.msra.mxu1 %v14328_v11  ;;  %v15567_v56 = vadd.f32 %v7420_v58, %v7367_v15  ;;  %7969 = vmatprep.subr.bf16.mxu0 %v14333_v49  ;;  %v14346_v11 = vld [vmem:[#allocation3 + $0xcf8] ss:$200 sps:$4 sm:$0xff]   ;;  %v14354_v49 = vld [vmem:[#allocation3 + $0x1e34] ss:$200 sps:$4 sm:$0xff]  }
 0x307   : > { %7875 = vmatprep.subr.bf16.mxu1 %v14336_v12  ;;  %v14349_v58 = vld [vmem:[#allocation3 + $0x14d0] ss:$200 sps:$4 sm:$0xff]   ;;  %v14357_v12 = vld [vmem:[#allocation3 + $0x1344] ss:$200 sps:$4 sm:$0xff]  }
 0x308   : > { %17225 = vst [vmem:[#allocation77_spill] sm:$0xff] %v15567_v56  ;;  %v14360_v15 = vld [vmem:[#allocation3 + $0x1ca4] ss:$200 sps:$4 sm:$0xff]  }
 0x309   : > { %7970 = vmatpush1.bf16.msra.mxu0 %v14331_v16  ;;  %v14352_v16 = vld [vmem:[#allocation3 + $0x1e30] ss:$200 sps:$4 sm:$0xff]  }
 0x30a   : > { %7876 = vmatpush2.bf16.msra.mxu1 %v14334_v21  ;;  %7971 = vmatprep.subr.bf16.mxu0 %v14339_v2  ;;  %v14355_v21 = vld [vmem:[#allocation3 + $0x1340] ss:$200 sps:$4 sm:$0xff]  }
 0x30b   : > { %7877 = vmatprep.subr.bf16.mxu1 %v14342_v35  ;;  %v14358_v2 = vld [vmem:[#allocation3 + $0x1ca0] ss:$200 sps:$4 sm:$0xff]   ;;  %v14363_v35 = vld [vmem:[#allocation3 + $0x11b4] ss:$200 sps:$4 sm:$0xff]  }
 0x30d   : > { %7972 = vmatpush2.bf16.msra.mxu0 %v14337_v25  ;;  %v14366_v25 = vld [vmem:[#allocation3 + $0x1b14] ss:$200 sps:$4 sm:$0xff]  }
 0x30e   : > { %7878 = vmatpush2.bf16.msra.mxu1 %v14340_v4  ;;  %7973 = vmatprep.subr.bf16.mxu0 %v14345_v30  ;;  %v14361_v4 = vld [vmem:[#allocation3 + $0x11b0] ss:$200 sps:$4 sm:$0xff]  }
 0x30f   : > { %7879 = vmatprep.subr.bf16.mxu1 %v14348_v63  ;;  %v14364_v30 = vld [vmem:[#allocation3 + $0x1b10] ss:$200 sps:$4 sm:$0xff]   ;;  %v14369_v63 = vld [vmem:[#allocation3 + $0x1024] ss:$200 sps:$4 sm:$0xff]  }
 0x311   : > { %7974 = vmatpush2.bf16.msra.mxu0 %v14343_v1  ;;  %v14372_v1 = vld [vmem:[#allocation3 + $0x1984] ss:$200 sps:$4 sm:$0xff]  }
 0x312   : > { %7880 = vmatpush2.bf16.msra.mxu1 %v14346_v11  ;;  %7975 = vmatprep.subr.bf16.mxu0 %v14351_v34  ;;  %v14367_v11 = vld [vmem:[#allocation3 + $0x1020] ss:$200 sps:$4 sm:$0xff]  }
 0x313   : > { %8016 = vmatprep.subr.bf16.mxu1 %v14354_v49  ;;  %v14370_v34 = vld [vmem:[#allocation3 + $0x1980] ss:$200 sps:$4 sm:$0xff]   ;;  %v14375_v49 = vld [vmem:[#allocation3 + $0xe94] ss:$200 sps:$4 sm:$0xff]  }
 0x315   : > { %7882 = vmatmul.mubr.bf16.vlgmr.msra.gmra.mxu1 %v15181_v17  ;;  %7976 = vmatpush2.bf16.msra.mxu0 %v14349_v58  ;;  %v14378_v58 = vld [vmem:[#allocation3 + $0xb7c] ss:$200 sps:$4 sm:$0xff]  }
 0x316   : > { %7891 = vmatprep.mubr.bf16.mxu1 %v15198_v27  ;;  %8017 = vmatpush1.bf16.msra.mxu1 %v14352_v16  ;;  %v14373_v16 = vld [vmem:[#allocation3 + $0xe90] ss:$200 sps:$4 sm:$0xff]  }
 0x317   : > { %7977 = vmatprep.subr.bf16.mxu0 %v14357_v12  ;;  %8018 = vmatprep.subr.bf16.mxu1 %v14360_v15  ;;  %v14376_v12 = vld [vmem:[#allocation3 + $0xb78] ss:$200 sps:$4 sm:$0xff]   ;;  %v14381_v15 = vld [vmem:[#allocation3 + $0xd04] ss:$200 sps:$4 sm:$0xff]  }
 0x319   : > { %7978 = vmatpush2.bf16.msra.mxu0 %v14355_v21  ;;  %v15573_v21 = vpop.f32.mrf.mxu0 }
 0x31a   : > { %8019 = vmatpush1.bf16.msra.mxu1 %v14358_v2  ;;  %7979 = vmatprep.subr.bf16.mxu0 %v14363_v35  ;;  %17226 = vst [vmem:[#allocation78_spill] sm:$0xff] %v15573_v21  ;;  %v14384_v2 = vld [vmem:[#allocation3 + $0x9ec] ss:$200 sps:$4 sm:$0xff]   ;;  %v14379_v35 = vld [vmem:[#allocation3 + $0xd00] ss:$200 sps:$4 sm:$0xff]  }
 0x31b   : > { %8020 = vmatprep.subr.bf16.mxu1 %v14366_v25  ;;  %v14382_v25 = vld [vmem:[#allocation3 + $0x9e8] ss:$200 sps:$4 sm:$0xff]   ;;  %v14408_v21 = vld [vmem:[#allocation3 + $0x3ac] ss:$200 sps:$4 sm:$0xff]  }
 0x31d   : > { %7892 = vmatmul.mubr.bf16.gmra.mxu1 %v15203_v32  ;;  %7980 = vmatpush2.bf16.msra.mxu0 %v14361_v4  ;;  %v14387_v4 = vld [vmem:[#allocation3 + $0x1e3c] ss:$200 sps:$4 sm:$0xff]  }
 0x31e   : > { %8021 = vmatpush1.bf16.msra.mxu1 %v14364_v30  ;;  %7981 = vmatprep.subr.bf16.mxu0 %v14369_v63  ;;  %v7512_v30 = vpop.f32.mrf.mxu0  ;;  %v14390_v63 = vld [vmem:[#allocation3 + $0x85c] ss:$200 sps:$4 sm:$0xff]  }
 0x31f   : > { %8022 = vmatprep.subr.bf16.mxu1 %v14372_v1  ;;  %8040 = vmatprep.mubr.bf16.mxu1 %v17174_v5  ;;  %v14385_v1 = vld [vmem:[#allocation3 + $0x1e38] ss:$200 sps:$4 sm:$0xff]  }
 0x321   : > { %7982 = vmatpush2.bf16.msra.mxu0 %v14367_v11  ;;  %v14388_v11 = vld [vmem:[#allocation3 + $0x858] ss:$200 sps:$4 sm:$0xff]  }
 0x322   : > { %8023 = vmatpush1.bf16.msra.mxu1 %v14370_v34  ;;  %7983 = vmatprep.subr.bf16.mxu0 %v14375_v49  ;;  %v7514_v34 = vpop.f32.mrf.mxu0  ;;  %v14393_v49 = vld [vmem:[#allocation3 + $0x1cac] ss:$200 sps:$4 sm:$0xff]  }
 0x323   : > { %8061 = vmatprep.subr.bf16.mxu1 %v14378_v58  ;;  %v14396_v58 = vld [vmem:[#allocation3 + $0x6cc] ss:$200 sps:$4 sm:$0xff]  }
 0x325   : > { %7984 = vmatpush2.bf16.msra.mxu0 %v14373_v16  ;;  %12743 = vmatmul.mubr.msk.bf16.vlgmr.msra.gmra.mxu1 %vm6254_vm3, %v15174_v10  ;;  %v14391_v16 = vld [vmem:[#allocation3 + $0x1ca8] ss:$200 sps:$4 sm:$0xff]  }
 0x326   : > { %8062 = vmatpush1.bf16.msra.mxu1 %v14376_v12  ;;  %7985 = vmatprep.subr.bf16.mxu0 %v14381_v15  ;;  %v14394_v12 = vld [vmem:[#allocation3 + $0x6c8] ss:$200 sps:$4 sm:$0xff]   ;;  %v7516_v15 = vpop.f32.mrf.mxu0 }
 0x327   : > { %8063 = vmatprep.subr.bf16.mxu1 %v14384_v2  ;;  %8050 = vmatprep.mubr.bf16.mxu1 %v17174_v5  ;;  %v14399_v2 = vld [vmem:[#allocation3 + $0x1b1c] ss:$200 sps:$4 sm:$0xff]  }
 0x328   : > { %v15585_v0 = vpop.f32.mrf.mxu0 }
 0x329   : > { %7986 = vmatpush2.bf16.msra.mxu0 %v14379_v35  ;;  %v14402_v35 = vld [vmem:[#allocation3 + $0x53c] ss:$200 sps:$4 sm:$0xff]   ;;  %17228 = vst [vmem:[#allocation80_spill] sm:$0xff] %v15585_v0 }
 0x32a   : > { %8064 = vmatpush1.bf16.msra.mxu1 %v14382_v25  ;;  %8122 = vmatprep.subr.bf16.mxu0 %v14387_v4  ;;  %v15583_v25 = vpop.f32.mrf.mxu1  ;;  %v14397_v4 = vld [vmem:[#allocation3 + $0x1b18] ss:$200 sps:$4 sm:$0xff]   ;;  %v14414_v0 = vld [vmem:[#allocation3 + $0x21c] ss:$200 sps:$4 sm:$0xff]  }
 0x32b   : > { %8065 = vmatprep.subr.bf16.mxu1 %v14390_v63  ;;  %17227 = vst [vmem:[#allocation79_spill] sm:$0xff] %v15583_v25  ;;  %v14400_v63 = vld [vmem:[#allocation3 + $0x538] ss:$200 sps:$4 sm:$0xff]   ;;  %v7522_v25 = vpop.f32.mrf.mxu0 }
 0x32c   : > { %7988 = vmatmul.mubr.bf16.vlgmr.msra.gmra.mxu0 %v15181_v17 }
 0x32d   : > { %7997 = vmatprep.mubr.bf16.mxu0 %v15198_v27  ;;  %12744 = vmatmul.mubr.msk.bf16.gmra.mxu1 %vm6254_vm3, %v15188_v20 }
 0x32e   : > { %8123 = vmatpush1.bf16.msra.mxu0 %v14385_v1  ;;  %8066 = vmatpush1.bf16.msra.mxu1 %v14388_v11  ;;  %v14405_v11 = vld [vmem:[#allocation3 + $0x198c] ss:$200 sps:$4 sm:$0xff]  }
 0x32f   : > { %8093 = vmatprep.mubr.bf16.mxu1 %v15186_v19  ;;  %8124 = vmatprep.subr.bf16.mxu0 %v14393_v49 }
 0x330   : > { %8067 = vmatprep.subr.bf16.mxu1 %v14396_v58 }
 0x332   : > { %8125 = vmatpush1.bf16.msra.mxu0 %v14391_v16  ;;  %8068 = vmatpush1.bf16.msra.mxu1 %v14394_v12  ;;  %v14403_v16 = vld [vmem:[#allocation3 + $0x1988] ss:$200 sps:$4 sm:$0xff]  }
 0x333   : > { %8126 = vmatprep.subr.bf16.mxu0 %v14399_v2  ;;  %v7459_v1 = vpop.f32.mrf.mxu1  ;;  %8069 = vmatprep.subr.bf16.mxu1 %v14402_v35  ;;  %v14406_v12 = vld [vmem:[#allocation3 + $0x3a8] ss:$200 sps:$4 sm:$0xff]   ;;  %v14411_v35 = vld [vmem:[#allocation3 + $0xb84] ss:$200 sps:$4 sm:$0xff]  }
 0x334   : > { %7998 = vmatmul.mubr.bf16.gmra.mxu0 %v15203_v32  ;;  %v15588_v56 = vadd.f32 %v7512_v30, %v7459_v1  ;;  %v14409_v30 = vld [vmem:[#allocation3 + $0xb80] ss:$200 sps:$4 sm:$0xff]  }
 0x335   : > { %v7461_v49 = vpop.f32.mrf.mxu1  ;;  %8146 = vmatprep.mubr.bf16.mxu0 %v17174_v5  ;;  %v14412_v1 = vld [vmem:[#allocation3 + $0x218] ss:$200 sps:$4 sm:$0xff]  }
 0x336   : > { %17229 = vst [vmem:[#allocation81_spill] sm:$0xff] %v15588_v56  ;;  %8127 = vmatpush1.bf16.msra.mxu0 %v14397_v4  ;;  %8070 = vmatpush1.bf16.msra.mxu1 %v14400_v63  ;;  %v15591_v58 = vadd.f32 %v7514_v34, %v7461_v49  ;;  %v7524_v4 = vpop.f32.mrf.mxu0  ;;  %v14417_v63 = vld [vmem:[#allocation3 + $0x9f4] ss:$200 sps:$4 sm:$0xff]  }
 0x337   : > { %8128 = vmatprep.subr.bf16.mxu0 %v14405_v11  ;;  %v7463_v2 = vpop.f32.mrf.mxu1  ;;  %8071 = vmatprep.subr.bf16.mxu1 %v14408_v21  ;;  %v14420_v49 = vld [vmem:[#allocation3 + $0x8c] ss:$200 sps:$4 sm:$0xff]   ;;  %v14415_v11 = vld [vmem:[#allocation3 + $0x9f0] ss:$200 sps:$4 sm:$0xff]  }
 0x338   : > { %17230 = vst [vmem:[#allocation82_spill] sm:$0xff] %v15591_v58  ;;  %v15593_v9 = vadd.f32 %v7516_v15, %v7463_v2 }
 0x339   : > { %v15595_v39 = vpop.f32.mrf.mxu1 }
 0x33a   : > { %17231 = vst [vmem:[#allocation83_spill] sm:$0xff] %v15593_v9  ;;  %17232 = vst [vmem:[#allocation84_spill] sm:$0xff] %v15595_v39  ;;  %8129 = vmatpush1.bf16.msra.mxu0 %v14403_v16  ;;  %8072 = vmatpush1.bf16.msra.mxu1 %v14406_v12  ;;  %v14418_v16 = vld [vmem:[#allocation3 + $0x88] ss:$200 sps:$4 sm:$0xff]   ;;  %v7526_v12 = vpop.f32.mrf.mxu0 }
 0x33b   : > { %8167 = vmatprep.subr.bf16.mxu0 %v14411_v35  ;;  %v7469_v34 = vpop.f32.mrf.mxu1  ;;  %8073 = vmatprep.subr.bf16.mxu1 %v14414_v0  ;;  %v14423_v35 = vld [vmem:[#allocation3 + $0x864] ss:$200 sps:$4 sm:$0xff]  }
 0x33c   : > { %v15597_v58 = vadd.f32 %v7522_v25, %v7469_v34  ;;  %v14426_v0 = vld [vmem:[#allocation3 + $0x17fc] ss:$200 sps:$4 sm:$0xff]  }
 0x33d   : > { %12745 = vmatmul.mubr.msk.bf16.vlgmr.msra.gmra.mxu0 %vm6254_vm3, %v15174_v10  ;;  %v7471_v21 = vpop.f32.mrf.mxu1  ;;  %v14429_v34 = vld [vmem:[#allocation3 + $0x6d4] ss:$200 sps:$4 sm:$0xff]  }
 0x33e   : > { %17233 = vst [vmem:[#allocation85_spill] sm:$0xff] %v15597_v58  ;;  %8168 = vmatpush1.bf16.msra.mxu0 %v14409_v30  ;;  %8074 = vmatpush1.bf16.msra.mxu1 %v14412_v1  ;;  %v15601_v15 = vadd.f32 %v7524_v4, %v7471_v21  ;;  %v14421_v30 = vld [vmem:[#allocation3 + $0x860] ss:$200 sps:$4 sm:$0xff]   ;;  %v14432_v21 = vld [vmem:[#allocation3 + $0x166c] ss:$200 sps:$4 sm:$0xff]  }
 0x33f   : > { %8169 = vmatprep.subr.bf16.mxu0 %v14417_v63  ;;  %v7473_v2 = vpop.f32.mrf.mxu1  ;;  %8075 = vmatprep.subr.bf16.mxu1 %v14420_v49  ;;  %v14424_v4 = vld [vmem:[#allocation3 + $0x17f8] ss:$200 sps:$4 sm:$0xff]   ;;  %v14441_v58 = vld [vmem:[#allocation3 + $0x3b4] ss:$200 sps:$4 sm:$0xff]  }
 0x340   : > { %17234 = vst [vmem:[#allocation86_spill] sm:$0xff] %v15601_v15  ;;  %v15603_v39 = vadd.f32 %v7526_v12, %v7473_v2  ;;  %8156 = vmatprep.mubr.bf16.mxu0 %v17174_v5  ;;  %v14427_v49 = vld [vmem:[#allocation3 + $0x6d0] ss:$200 sps:$4 sm:$0xff]   ;;  %v15611_v2 = vpop.f32.mrf.mxu0 }
 0x341   : > { %v15606_v25 = vpop.f32.mrf.mxu1  ;;  %17237 = vst [vmem:[#allocation89_spill] sm:$0xff] %v15611_v2  ;;  %v14439_v2 = vld [vmem:[#allocation3 + $0x3b0] ss:$200 sps:$4 sm:$0xff]  }
 0x342   : > { %17235 = vst [vmem:[#allocation87_spill] sm:$0xff] %v15603_v39  ;;  %17236 = vst [vmem:[#allocation88_spill] sm:$0xff] %v15606_v25  ;;  %8170 = vmatpush1.bf16.msra.mxu0 %v14415_v11  ;;  %8076 = vmatpush1.bf16.msra.mxu1 %v14418_v16  ;;  %v14430_v11 = vld [vmem:[#allocation3 + $0x1668] ss:$200 sps:$4 sm:$0xff]   ;;  %v14435_v16 = vld [vmem:[#allocation3 + $0x544] ss:$200 sps:$4 sm:$0xff]  }
 0x343   : > { %8171 = vmatprep.subr.bf16.mxu0 %v14423_v35  ;;  %v7618_v1 = vpop.f32.mrf.mxu1  ;;  %8077 = vmatprep.subr.bf16.mxu1 %v14426_v0  ;;  %v14438_v35 = vld [vmem:[#allocation3 + $0x14dc] ss:$200 sps:$4 sm:$0xff]   ;;  %v14433_v25 = vld [vmem:[#allocation3 + $0x540] ss:$200 sps:$4 sm:$0xff]  }
 0x345   : > { %12746 = vmatmul.mubr.msk.bf16.gmra.mxu0 %vm6254_vm3, %v15188_v20  ;;  %v7620_v63 = vpop.f32.mrf.mxu1 }
 0x346   : > { %8172 = vmatpush1.bf16.msra.mxu0 %v14421_v30  ;;  %8199 = vmatprep.mubr.bf16.mxu0 %v15186_v19  ;;  %v14436_v30 = vld [vmem:[#allocation3 + $0x14d8] ss:$200 sps:$4 sm:$0xff]  }
 0x347   : > { %8078 = vmatpush2.bf16.msra.mxu1 %v14424_v4  ;;  %8173 = vmatprep.subr.bf16.mxu0 %v14429_v34  ;;  %v7622_v12 = vpop.f32.mrf.mxu1  ;;  %v14444_v34 = vld [vmem:[#allocation3 + $0x134c] ss:$200 sps:$4 sm:$0xff]  }
 0x348   : > { %8079 = vmatprep.subr.bf16.mxu1 %v14432_v21  ;;  %v8909_v21 = vmul.f32 %v15255_v50, %v15255_v50  ;;  %v8934_v50 = vmul.f32 %v15259_v60, %v15259_v60  ;;  %v14451_v60 = vld [vmem:[#allocation3 + $0x90] ss:$200 sps:$4 sm:$0xff]  }
 0x349   : > { %v7624_v0 = vpop.f32.mrf.mxu1 }
 0x34a   : > { %8174 = vmatpush1.bf16.msra.mxu0 %v14427_v49  ;;  %v7565_v15 = vpop.f32.mrf.mxu0 }
 0x34b   : > { %8080 = vmatpush2.bf16.msra.mxu1 %v14430_v11  ;;  %v15613_v39 = vadd.f32 %v7618_v1, %v7565_v15  ;;  %8175 = vmatprep.subr.bf16.mxu0 %v14435_v16  ;;  %v7628_v9 = vpop.f32.mrf.mxu1  ;;  %v14442_v15 = vld [vmem:[#allocation3 + $0x1348] ss:$200 sps:$4 sm:$0xff]   ;;  %v14447_v1 = vld [vmem:[#allocation3 + $0x224] ss:$200 sps:$4 sm:$0xff]  }
 0x34c   : > { %8081 = vmatprep.subr.bf16.mxu1 %v14438_v35  ;;  %v7567_v4 = vpop.f32.mrf.mxu0  ;;  %v14450_v35 = vld [vmem:[#allocation3 + $0x11bc] ss:$200 sps:$4 sm:$0xff]  }
 0x34d   : > { %17238 = vst [vmem:[#allocation90_spill] sm:$0xff] %v15613_v39  ;;  %v7621_v56 = vadd.f32 %v7620_v63, %v7567_v4  ;;  %v7630_v11 = vpop.f32.mrf.mxu1  ;;  %v14445_v4 = vld [vmem:[#allocation3 + $0x220] ss:$200 sps:$4 sm:$0xff]  }
 0x34e   : > { %8176 = vmatpush1.bf16.msra.mxu0 %v14433_v25  ;;  %v7569_v14 = vpop.f32.mrf.mxu0 }
 0x34f   : > { %v9009_v49 = vmul.f32 %v7621_v56, %v7621_v56  ;;  %8082 = vmatpush2.bf16.msra.mxu1 %v14436_v30  ;;  %v15617_v3 = vadd.f32 %v7622_v12, %v7569_v14  ;;  %8177 = vmatprep.subr.bf16.mxu0 %v14441_v58  ;;  %v14448_v58 = vld [vmem:[#allocation3 + $0x11b8] ss:$200 sps:$4 sm:$0xff]   ;;  %v14453_v12 = vld [vmem:[#allocation3 + $0x94] ss:$200 sps:$4 sm:$0xff]   ;;  %v7632_v30 = vpop.f32.mrf.mxu1 }
 0x350   : > { %8083 = vmatprep.subr.bf16.mxu1 %v14444_v34  ;;  %v7571_v16 = vpop.f32.mrf.mxu0 }
 0x351   : > { %17239 = vst [vmem:[#allocation91_spill] sm:$0xff] %v15617_v3  ;;  %v15619_v39 = vadd.f32 %v9009_v49, %v8909_v21  ;;  %v7625_v63 = vadd.f32 %v7624_v0, %v7571_v16  ;;  %v14456_v3 = vld [vmem:[#allocation3 + $0x102c] ss:$200 sps:$4 sm:$0xff]   ;;  %v14454_v16 = vld [vmem:[#allocation3 + $0x1028] ss:$200 sps:$4 sm:$0xff]  }
 0x352   : > { %8178 = vmatpush1.bf16.msra.mxu0 %v14439_v2  ;;  %v7575_v25 = vpop.f32.mrf.mxu0  ;;  %v8959_v2 = vmul.f32 %v15263_v7, %v15263_v7 }
 0x353   : > { %17240 = vst [vmem:[#allocation92_spill] sm:$0xff] %v15619_v39  ;;  %v9034_v56 = vmul.f32 %v7625_v63, %v7625_v63  ;;  %8084 = vmatpush2.bf16.msra.mxu1 %v14442_v15  ;;  %v15623_v14 = vadd.f32 %v7628_v9, %v7575_v25  ;;  %8179 = vmatprep.subr.bf16.mxu0 %v14447_v1  ;;  %v7634_v63 = vpop.f32.mrf.mxu1 }
 0x354   : > { %8085 = vmatprep.subr.bf16.mxu1 %v14450_v35  ;;  %v7577_v34 = vpop.f32.mrf.mxu0  ;;  %v14459_v35 = vld [vmem:[#allocation3 + $0x1804] ss:$200 sps:$4 sm:$0xff]  }
 0x355   : > { %17241 = vst [vmem:[#allocation93_spill] sm:$0xff] %v15623_v14  ;;  %v15625_v21 = vadd.f32 %v9034_v56, %v8934_v50  ;;  %v7631_v0 = vadd.f32 %v7630_v11, %v7577_v34  ;;  %v14462_v11 = vld [vmem:[#allocation3 + $0xe9c] ss:$200 sps:$4 sm:$0xff]   ;;  %v8984_v56 = vmul.f32 %v15267_v18, %v15267_v18 }
 0x356   : > { %8180 = vmatpush1.bf16.msra.mxu0 %v14445_v4  ;;  %v7579_v49 = vpop.f32.mrf.mxu0  ;;  %v14457_v4 = vld [vmem:[#allocation3 + $0x1800] ss:$200 sps:$4 sm:$0xff]   ;;  %v14474_v18 = vld [vmem:[#allocation3 + $0x1e44] ss:$200 sps:$4 sm:$0xff]  }
 0x357   : > { %17242 = vst [vmem:[#allocation94_spill] sm:$0xff] %v15625_v21  ;;  %v9059_v15 = vmul.f32 %v7631_v0, %v7631_v0  ;;  %8086 = vmatpush2.bf16.msra.mxu1 %v14448_v58  ;;  %v15631_v1 = vadd.f32 %v7632_v30, %v7579_v49  ;;  %8181 = vmatprep.subr.bf16.mxu0 %v14453_v12  ;;  %v14460_v58 = vld [vmem:[#allocation3 + $0xe98] ss:$200 sps:$4 sm:$0xff]   ;;  %v14465_v30 = vld [vmem:[#allocation3 + $0x1674] ss:$200 sps:$4 sm:$0xff]  }
 0x358   : > { %8087 = vmatprep.subr.bf16.mxu1 %v14456_v3  ;;  %v7581_v25 = vpop.f32.mrf.mxu0  ;;  %v14468_v12 = vld [vmem:[#allocation3 + $0xd0c] ss:$200 sps:$4 sm:$0xff]   ;;  %v14463_v3 = vld [vmem:[#allocation3 + $0x1670] ss:$200 sps:$4 sm:$0xff]  }
 0x359   : > { %17243 = vst [vmem:[#allocation95_spill] sm:$0xff] %v15631_v1  ;;  %v15633_v50 = vadd.f32 %v9059_v15, %v8959_v2  ;;  %v7635_v7 = vadd.f32 %v7634_v63, %v7581_v25  ;;  %v14466_v49 = vld [vmem:[#allocation3 + $0xd08] ss:$200 sps:$4 sm:$0xff]   ;;  %v14480_v63 = vld [vmem:[#allocation3 + $0x1cb4] ss:$200 sps:$4 sm:$0xff]   ;;  %v8911_v2 = vmul.f32 %v15288_v23, %v15288_v23 }
 0x35a   : > { %8182 = vmatpush1.bf16.msra.mxu0 %v14451_v60  ;;  %v14471_v60 = vld [vmem:[#allocation3 + $0x14e4] ss:$200 sps:$4 sm:$0xff]   ;;  %v14469_v15 = vld [vmem:[#allocation3 + $0x14e0] ss:$200 sps:$4 sm:$0xff]   ;;  %v14475_v25 = vld [vmem:[#allocation3 + $0x1350] ss:$200 sps:$4 sm:$0xff]  }
 0x35b   : > { %17244 = vst [vmem:[#allocation96_spill] sm:$0xff] %v15633_v50  ;;  %v9084_v34 = vmul.f32 %v7635_v7, %v7635_v7  ;;  %8088 = vmatpush2.bf16.msra.mxu1 %v14454_v16  ;;  %8183 = vmatprep.subr.bf16.mxu0 %v14459_v35  ;;  %v14472_v16 = vld [vmem:[#allocation3 + $0x1e40] ss:$200 sps:$4 sm:$0xff]   ;;  %v14477_v35 = vld [vmem:[#allocation3 + $0x1354] ss:$200 sps:$4 sm:$0xff]  }
 0x35c   : > { %8089 = vmatprep.subr.bf16.mxu1 %v14462_v11  ;;  %v14478_v11 = vld [vmem:[#allocation3 + $0x1cb0] ss:$200 sps:$4 sm:$0xff]   ;;  %v14483_v7 = vld [vmem:[#allocation3 + $0x11c4] ss:$200 sps:$4 sm:$0xff]  }
 0x35d   : > { %v15637_v0 = vadd.f32 %v9084_v34, %v8984_v56  ;;  %v14481_v56 = vld [vmem:[#allocation3 + $0x11c0] ss:$200 sps:$4 sm:$0xff]  }
 0x35e   : > { %8184 = vmatpush2.bf16.msra.mxu0 %v14457_v4  ;;  %v14486_v4 = vld [vmem:[#allocation3 + $0x1b24] ss:$200 sps:$4 sm:$0xff]   ;;  %v14484_v34 = vld [vmem:[#allocation3 + $0x1b20] ss:$200 sps:$4 sm:$0xff]  }
 0x35f   : > { %17245 = vst [vmem:[#allocation97_spill] sm:$0xff] %v15637_v0  ;;  %8090 = vmatpush2.bf16.msra.mxu1 %v14460_v58  ;;  %8185 = vmatprep.subr.bf16.mxu0 %v14465_v30  ;;  %v14489_v58 = vld [vmem:[#allocation3 + $0x1034] ss:$200 sps:$4 sm:$0xff]   ;;  %v8936_v0 = vmul.f32 %v15293_v33, %v15293_v33 }
 0x360   : > { %8091 = vmatprep.subr.bf16.mxu1 %v14468_v12  ;;  %v14492_v30 = vld [vmem:[#allocation3 + $0x1994] ss:$200 sps:$4 sm:$0xff]   ;;  %v14487_v12 = vld [vmem:[#allocation3 + $0x1030] ss:$200 sps:$4 sm:$0xff]  }
 0x361   : > { %v14546_v33 = vld [vmem:[#allocation3 + $0x180c] ss:$200 sps:$4 sm:$0xff]  }
 0x362   : > { %8186 = vmatpush2.bf16.msra.mxu0 %v14463_v3  ;;  %v14490_v3 = vld [vmem:[#allocation3 + $0x1990] ss:$200 sps:$4 sm:$0xff]  }
 0x363   : > { %8092 = vmatpush2.bf16.msra.mxu1 %v14466_v49  ;;  %8187 = vmatprep.subr.bf16.mxu0 %v14471_v60  ;;  %v14495_v49 = vld [vmem:[#allocation3 + $0xea4] ss:$200 sps:$4 sm:$0xff]  }
 0x364   : > { %8228 = vmatprep.subr.bf16.mxu1 %v14474_v18  ;;  %v14498_v60 = vld [vmem:[#allocation3 + $0xb8c] ss:$200 sps:$4 sm:$0xff]   ;;  %v14493_v18 = vld [vmem:[#allocation3 + $0xea0] ss:$200 sps:$4 sm:$0xff]  }
 0x366   : > { %8094 = vmatmul.mubr.bf16.vlgmr.msra.gmra.mxu1 %v15181_v17  ;;  %8188 = vmatpush2.bf16.msra.mxu0 %v14469_v15  ;;  %v14496_v15 = vld [vmem:[#allocation3 + $0xb88] ss:$200 sps:$4 sm:$0xff]  }
 0x367   : > { %8103 = vmatprep.mubr.bf16.mxu1 %v15198_v27  ;;  %8229 = vmatpush1.bf16.msra.mxu1 %v14472_v16  ;;  %v14501_v16 = vld [vmem:[#allocation3 + $0xd14] ss:$200 sps:$4 sm:$0xff]  }
 0x368   : > { %8189 = vmatprep.subr.bf16.mxu0 %v14477_v35  ;;  %8230 = vmatprep.subr.bf16.mxu1 %v14480_v63  ;;  %v14504_v35 = vld [vmem:[#allocation3 + $0x9fc] ss:$200 sps:$4 sm:$0xff]   ;;  %v15645_v63 = vpop.f32.mrf.mxu0 }
 0x36a   : > { %8190 = vmatpush2.bf16.msra.mxu0 %v14475_v25  ;;  %v14499_v25 = vld [vmem:[#allocation3 + $0xd10] ss:$200 sps:$4 sm:$0xff]  }
 0x36b   : > { %8231 = vmatpush1.bf16.msra.mxu1 %v14478_v11  ;;  %8191 = vmatprep.subr.bf16.mxu0 %v14483_v7  ;;  %v14502_v11 = vld [vmem:[#allocation3 + $0x9f8] ss:$200 sps:$4 sm:$0xff]   ;;  %v14507_v7 = vld [vmem:[#allocation3 + $0x1e4c] ss:$200 sps:$4 sm:$0xff]  }
 0x36c   : > { %8232 = vmatprep.subr.bf16.mxu1 %v14486_v4  ;;  %v14510_v4 = vld [vmem:[#allocation3 + $0x86c] ss:$200 sps:$4 sm:$0xff]  }
 0x36e   : > { %8104 = vmatmul.mubr.bf16.gmra.mxu1 %v15203_v32  ;;  %8192 = vmatpush2.bf16.msra.mxu0 %v14481_v56  ;;  %v7726_v56 = vpop.f32.mrf.mxu0 }
 0x36f   : > { %8233 = vmatpush1.bf16.msra.mxu1 %v14484_v34  ;;  %8193 = vmatprep.subr.bf16.mxu0 %v14489_v58  ;;  %v14505_v34 = vld [vmem:[#allocation3 + $0x1e48] ss:$200 sps:$4 sm:$0xff]  }
 0x370   : > { %8234 = vmatprep.subr.bf16.mxu1 %v14492_v30  ;;  %8252 = vmatprep.mubr.bf16.mxu1 %v17174_v5  ;;  %v14508_v58 = vld [vmem:[#allocation3 + $0x868] ss:$200 sps:$4 sm:$0xff]   ;;  %v14513_v30 = vld [vmem:[#allocation3 + $0x1cbc] ss:$200 sps:$4 sm:$0xff]  }
 0x372   : > { %8194 = vmatpush2.bf16.msra.mxu0 %v14487_v12  ;;  %v14516_v12 = vld [vmem:[#allocation3 + $0x6dc] ss:$200 sps:$4 sm:$0xff]  }
 0x373   : > { %8235 = vmatpush1.bf16.msra.mxu1 %v14490_v3  ;;  %8195 = vmatprep.subr.bf16.mxu0 %v14495_v49  ;;  %v15651_v3 = vpop.f32.mrf.mxu0  ;;  %v14511_v49 = vld [vmem:[#allocation3 + $0x1cb8] ss:$200 sps:$4 sm:$0xff]  }
 0x374   : > { %8273 = vmatprep.subr.bf16.mxu1 %v14498_v60  ;;  %v14514_v60 = vld [vmem:[#allocation3 + $0x6d8] ss:$200 sps:$4 sm:$0xff]  }
 0x376   : > { %8196 = vmatpush2.bf16.msra.mxu0 %v14493_v18  ;;  %12747 = vmatmul.mubr.msk.bf16.vlgmr.msra.gmra.mxu1 %vm6254_vm3, %v15174_v10  ;;  %v14519_v18 = vld [vmem:[#allocation3 + $0x1b2c] ss:$200 sps:$4 sm:$0xff]  }
 0x377   : > { %8274 = vmatpush1.bf16.msra.mxu1 %v14496_v15  ;;  %8197 = vmatprep.subr.bf16.mxu0 %v14501_v16  ;;  %v14522_v15 = vld [vmem:[#allocation3 + $0x54c] ss:$200 sps:$4 sm:$0xff]   ;;  %v7730_v16 = vpop.f32.mrf.mxu0 }
 0x378   : > { %8275 = vmatprep.subr.bf16.mxu1 %v14504_v35  ;;  %8262 = vmatprep.mubr.bf16.mxu1 %v17174_v5  ;;  %v14517_v35 = vld [vmem:[#allocation3 + $0x1b28] ss:$200 sps:$4 sm:$0xff]  }
 0x37a   : > { %8198 = vmatpush2.bf16.msra.mxu0 %v14499_v25  ;;  %v14520_v25 = vld [vmem:[#allocation3 + $0x548] ss:$200 sps:$4 sm:$0xff]  }
 0x37b   : > { %8276 = vmatpush1.bf16.msra.mxu1 %v14502_v11  ;;  %8334 = vmatprep.subr.bf16.mxu0 %v14507_v7  ;;  %v14525_v7 = vld [vmem:[#allocation3 + $0x199c] ss:$200 sps:$4 sm:$0xff]  }
 0x37c   : > { %8277 = vmatprep.subr.bf16.mxu1 %v14510_v4  ;;  %v14528_v4 = vld [vmem:[#allocation3 + $0x3bc] ss:$200 sps:$4 sm:$0xff]  }
 0x37d   : > { %8200 = vmatmul.mubr.bf16.vlgmr.msra.gmra.mxu0 %v15181_v17 }
 0x37e   : > { %8209 = vmatprep.mubr.bf16.mxu0 %v15198_v27  ;;  %12748 = vmatmul.mubr.msk.bf16.gmra.mxu1 %vm6254_vm3, %v15188_v20 }
 0x37f   : > { %8335 = vmatpush1.bf16.msra.mxu0 %v14505_v34  ;;  %8278 = vmatpush1.bf16.msra.mxu1 %v14508_v58  ;;  %v15660_v34 = vpop.f32.mrf.mxu0 }
 0x380   : > { %8305 = vmatprep.mubr.bf16.mxu1 %v15186_v19  ;;  %8336 = vmatprep.subr.bf16.mxu0 %v14513_v30 }
 0x381   : > { %8279 = vmatprep.subr.bf16.mxu1 %v14516_v12  ;;  %v14523_v12 = vld [vmem:[#allocation3 + $0x1998] ss:$200 sps:$4 sm:$0xff]   ;;  %v7736_v1 = vpop.f32.mrf.mxu0 }
 0x383   : > { %8337 = vmatpush1.bf16.msra.mxu0 %v14511_v49  ;;  %8280 = vmatpush1.bf16.msra.mxu1 %v14514_v60  ;;  %v14526_v49 = vld [vmem:[#allocation3 + $0x3b8] ss:$200 sps:$4 sm:$0xff]  }
 0x384   : > { %8338 = vmatprep.subr.bf16.mxu0 %v14519_v18  ;;  %v15657_v11 = vpop.f32.mrf.mxu1  ;;  %8281 = vmatprep.subr.bf16.mxu1 %v14522_v15  ;;  %v14531_v18 = vld [vmem:[#allocation3 + $0xb94] ss:$200 sps:$4 sm:$0xff]  }
 0x385   : > { %8210 = vmatmul.mubr.bf16.gmra.mxu0 %v15203_v32  ;;  %v14534_v15 = vld [vmem:[#allocation3 + $0x22c] ss:$200 sps:$4 sm:$0xff]  }
 0x386   : > { %v7673_v58 = vpop.f32.mrf.mxu1  ;;  %8358 = vmatprep.mubr.bf16.mxu0 %v17174_v5 }
 0x387   : > { %8339 = vmatpush1.bf16.msra.mxu0 %v14517_v35  ;;  %8282 = vmatpush1.bf16.msra.mxu1 %v14520_v25  ;;  %v7727_v30 = vadd.f32 %v7726_v56, %v7673_v58  ;;  %v14529_v56 = vld [vmem:[#allocation3 + $0xb90] ss:$200 sps:$4 sm:$0xff]   ;;  %v14540_v58 = vld [vmem:[#allocation3 + $0x9c] ss:$200 sps:$4 sm:$0xff]  }
 0x388   : > { %8340 = vmatprep.subr.bf16.mxu0 %v14525_v7  ;;  %v15663_v60 = vpop.f32.mrf.mxu1  ;;  %8283 = vmatprep.subr.bf16.mxu1 %v14528_v4  ;;  %v14532_v25 = vld [vmem:[#allocation3 + $0x228] ss:$200 sps:$4 sm:$0xff]   ;;  %v14537_v4 = vld [vmem:[#allocation3 + $0xa04] ss:$200 sps:$4 sm:$0xff]  }
 0x389   : > { %v9011_v9 = vmul.f32 %v7727_v30, %v7727_v30  ;;  %v15673_v30 = vpop.f32.mrf.mxu0 }
 0x38a   : > { %v7677_v14 = vpop.f32.mrf.mxu1 }
 0x38b   : > { %v15667_v50 = vadd.f32 %v9011_v9, %v8911_v2  ;;  %8341 = vmatpush1.bf16.msra.mxu0 %v14523_v12  ;;  %8284 = vmatpush1.bf16.msra.mxu1 %v14526_v49  ;;  %v7731_v35 = vadd.f32 %v7730_v16, %v7677_v14  ;;  %v14535_v16 = vld [vmem:[#allocation3 + $0xa00] ss:$200 sps:$4 sm:$0xff]  }
 0x38c   : > { %8379 = vmatprep.subr.bf16.mxu0 %v14531_v18  ;;  %v15669_v7 = vpop.f32.mrf.mxu1  ;;  %8285 = vmatprep.subr.bf16.mxu1 %v14534_v15  ;;  %v14538_v12 = vld [vmem:[#allocation3 + $0x98] ss:$200 sps:$4 sm:$0xff]   ;;  %v14543_v18 = vld [vmem:[#allocation3 + $0x874] ss:$200 sps:$4 sm:$0xff]   ;;  %v8961_v15 = vmul.f32 %v15297_v40, %v15297_v40  ;;  %v14549_v40 = vld [vmem:[#allocation3 + $0x6e4] ss:$200 sps:$4 sm:$0xff]  }
 0x38d   : > { %17246 = vst [vmem:[#allocation98_spill] sm:$0xff] %v15667_v50  ;;  %v9036_v23 = vmul.f32 %v7731_v35, %v7731_v35  ;;  %v14552_v35 = vld [vmem:[#allocation3 + $0x167c] ss:$200 sps:$4 sm:$0xff]  }
 0x38e   : > { %12749 = vmatmul.mubr.msk.bf16.vlgmr.msra.gmra.mxu0 %vm6254_vm3, %v15174_v10  ;;  %v7683_v9 = vpop.f32.mrf.mxu1  ;;  %v14564_v50 = vld [vmem:[#allocation3 + $0x135c] ss:$200 sps:$4 sm:$0xff]  }
 0x38f   : > { %v15677_v2 = vadd.f32 %v9036_v23, %v8936_v0  ;;  %8380 = vmatpush1.bf16.msra.mxu0 %v14529_v56  ;;  %8286 = vmatpush1.bf16.msra.mxu1 %v14532_v25  ;;  %v7737_v14 = vadd.f32 %v7736_v1, %v7683_v9  ;;  %v7740_v0 = vpop.f32.mrf.mxu0  ;;  %v14544_v23 = vld [vmem:[#allocation3 + $0x1808] ss:$200 sps:$4 sm:$0xff]   ;;  %v8986_v9 = vmul.f32 %v15303_v52, %v15303_v52  ;;  %v14567_v52 = vld [vmem:[#allocation3 + $0x234] ss:$200 sps:$4 sm:$0xff]  }
 0x390   : > { %8381 = vmatprep.subr.bf16.mxu0 %v14537_v4  ;;  %v15679_v49 = vpop.f32.mrf.mxu1  ;;  %8287 = vmatprep.subr.bf16.mxu1 %v14540_v58  ;;  %v14541_v4 = vld [vmem:[#allocation3 + $0x870] ss:$200 sps:$4 sm:$0xff]  }
 0x391   : > { %17247 = vst [vmem:[#allocation99_spill] sm:$0xff] %v15677_v2  ;;  %v9061_v39 = vmul.f32 %v7737_v14, %v7737_v14  ;;  %8368 = vmatprep.mubr.bf16.mxu0 %v17174_v5 }
 0x392   : > { %v7687_v56 = vpop.f32.mrf.mxu1 }
 0x393   : > { %v15686_v1 = vadd.f32 %v9061_v39, %v8961_v15  ;;  %8382 = vmatpush1.bf16.msra.mxu0 %v14535_v16  ;;  %8288 = vmatpush1.bf16.msra.mxu1 %v14538_v12  ;;  %v7741_v25 = vadd.f32 %v7740_v0, %v7687_v56  ;;  %v14547_v16 = vld [vmem:[#allocation3 + $0x6e0] ss:$200 sps:$4 sm:$0xff]   ;;  %v14558_v0 = vld [vmem:[#allocation3 + $0x14ec] ss:$200 sps:$4 sm:$0xff]  }
 0x394   : > { %8383 = vmatprep.subr.bf16.mxu0 %v14543_v18  ;;  %v15688_v58 = vpop.f32.mrf.mxu1  ;;  %8289 = vmatprep.subr.bf16.mxu1 %v14546_v33  ;;  %v14550_v18 = vld [vmem:[#allocation3 + $0x1678] ss:$200 sps:$4 sm:$0xff]   ;;  %v14555_v33 = vld [vmem:[#allocation3 + $0x554] ss:$200 sps:$4 sm:$0xff]  }
 0x395   : > { %17248 = vst [vmem:[#allocation100_spill] sm:$0xff] %v15686_v1  ;;  %17249 = vst [vmem:[#allocation101_spill] sm:$0xff] %v15688_v58  ;;  %v9086_v14 = vmul.f32 %v7741_v25, %v7741_v25 }
 0x396   : > { %12750 = vmatmul.mubr.msk.bf16.gmra.mxu0 %vm6254_vm3, %v15188_v20  ;;  %v7832_v39 = vpop.f32.mrf.mxu1 }
 0x397   : > { %v15694_v15 = vadd.f32 %v9086_v14, %v8986_v9  ;;  %8384 = vmatpush1.bf16.msra.mxu0 %v14541_v4  ;;  %8411 = vmatprep.mubr.bf16.mxu0 %v15186_v19  ;;  %v14553_v9 = vld [vmem:[#allocation3 + $0x550] ss:$200 sps:$4 sm:$0xff]   ;;  %v14561_v14 = vld [vmem:[#allocation3 + $0x3c4] ss:$200 sps:$4 sm:$0xff]  }
 0x398   : > { %8290 = vmatpush2.bf16.msra.mxu1 %v14544_v23  ;;  %8385 = vmatprep.subr.bf16.mxu0 %v14549_v40  ;;  %v15697_v12 = vpop.f32.mrf.mxu1  ;;  %v14556_v4 = vld [vmem:[#allocation3 + $0x14e8] ss:$200 sps:$4 sm:$0xff]  }
 0x399   : > { %17250 = vst [vmem:[#allocation102_spill] sm:$0xff] %v15694_v15  ;;  %8291 = vmatprep.subr.bf16.mxu1 %v14552_v35  ;;  %v14559_v35 = vld [vmem:[#allocation3 + $0x3c0] ss:$200 sps:$4 sm:$0xff]  }
 0x39a   : > { %v7836_v56 = vpop.f32.mrf.mxu1 }
 0x39b   : > { %8386 = vmatpush1.bf16.msra.mxu0 %v14547_v16  ;;  %v15701_v25 = vpop.f32.mrf.mxu0  ;;  %v14562_v16 = vld [vmem:[#allocation3 + $0x1358] ss:$200 sps:$4 sm:$0xff]  }
 0x39c   : > { %17251 = vst [vmem:[#allocation103_spill] sm:$0xff] %v15701_v25  ;;  %8292 = vmatpush2.bf16.msra.mxu1 %v14550_v18  ;;  %8387 = vmatprep.subr.bf16.mxu0 %v14555_v33  ;;  %v15703_v23 = vpop.f32.mrf.mxu1  ;;  %v14570_v33 = vld [vmem:[#allocation3 + $0x11cc] ss:$200 sps:$4 sm:$0xff]   ;;  %v14571_v25 = vld [vmem:[#allocation3 + $0xa0] ss:$200 sps:$4 sm:$0xff]  }
 0x39d   : > { %17252 = vst [vmem:[#allocation104_spill] sm:$0xff] %v15703_v23  ;;  %8293 = vmatprep.subr.bf16.mxu1 %v14558_v0  ;;  %v7779_v40 = vpop.f32.mrf.mxu0  ;;  %v14565_v0 = vld [vmem:[#allocation3 + $0x230] ss:$200 sps:$4 sm:$0xff]  }
 0x39e   : > { %v7833_v2 = vadd.f32 %v7832_v39, %v7779_v40  ;;  %v7842_v1 = vpop.f32.mrf.mxu1  ;;  %v8913_v39 = vmul.f32 %v15315_v22, %v15315_v22 }
 0x39f   : > { %8388 = vmatpush1.bf16.msra.mxu0 %v14553_v9  ;;  %v15705_v21 = vpop.f32.mrf.mxu0  ;;  %v8938_v9 = vmul.f32 %v15319_v37, %v15319_v37 }
 0x3a0   : > { %8294 = vmatpush2.bf16.msra.mxu1 %v14556_v4  ;;  %8389 = vmatprep.subr.bf16.mxu0 %v14561_v14  ;;  %v9013_v15 = vmul.f32 %v7833_v2, %v7833_v2  ;;  %v14568_v14 = vld [vmem:[#allocation3 + $0x11c8] ss:$200 sps:$4 sm:$0xff]   ;;  %v15713_v40 = vpop.f32.mrf.mxu1  ;;  %v14573_v2 = vld [vmem:[#allocation3 + $0xa4] ss:$200 sps:$4 sm:$0xff]  }
 0x3a1   : > { %8295 = vmatprep.subr.bf16.mxu1 %v14564_v50  ;;  %v7783_v18 = vpop.f32.mrf.mxu0  ;;  %17254 = vst [vmem:[#allocation106_spill] sm:$0xff] %v15713_v40  ;;  %v14582_v40 = vld [vmem:[#allocation3 + $0xeac] ss:$200 sps:$4 sm:$0xff]  }
 0x3a2   : > { %v7837_v58 = vadd.f32 %v7836_v56, %v7783_v18  ;;  %v14576_v56 = vld [vmem:[#allocation3 + $0x103c] ss:$200 sps:$4 sm:$0xff]  }
 0x3a3   : > { %8390 = vmatpush1.bf16.msra.mxu0 %v14559_v35  ;;  %v15707_v23 = vpop.f32.mrf.mxu0  ;;  %v15715_v35 = vadd.f32 %v9013_v15, %v8913_v39 }
 0x3a4   : > { %17253 = vst [vmem:[#allocation105_spill] sm:$0xff] %v15707_v23  ;;  %v9038_v4 = vmul.f32 %v7837_v58, %v7837_v58  ;;  %8296 = vmatpush2.bf16.msra.mxu1 %v14562_v16  ;;  %8391 = vmatprep.subr.bf16.mxu0 %v14567_v52  ;;  %v14574_v58 = vld [vmem:[#allocation3 + $0x1038] ss:$200 sps:$4 sm:$0xff]   ;;  %v14579_v52 = vld [vmem:[#allocation3 + $0x1814] ss:$200 sps:$4 sm:$0xff]   ;;  %v7846_v16 = vpop.f32.mrf.mxu1 }
 0x3a5   : > { %8297 = vmatprep.subr.bf16.mxu1 %v14570_v33  ;;  %v7789_v50 = vpop.f32.mrf.mxu0  ;;  %17255 = vst [vmem:[#allocation107_spill] sm:$0xff] %v15715_v35 }
 0x3a6   : > { %v15717_v18 = vadd.f32 %v9038_v4, %v8938_v9  ;;  %v7843_v23 = vadd.f32 %v7842_v1, %v7789_v50  ;;  %v14577_v9 = vld [vmem:[#allocation3 + $0x1810] ss:$200 sps:$4 sm:$0xff]   ;;  %v8963_v1 = vmul.f32 %v15323_v46, %v15323_v46  ;;  %v14585_v50 = vld [vmem:[#allocation3 + $0x1684] ss:$200 sps:$4 sm:$0xff]  }
 0x3a7   : > { %8392 = vmatpush1.bf16.msra.mxu0 %v14565_v0  ;;  %v15719_v22 = vpop.f32.mrf.mxu0  ;;  %v8988_v0 = vmul.f32 %v15327_v62, %v15327_v62  ;;  %v14586_v46 = vld [vmem:[#allocation3 + $0xd18] ss:$200 sps:$4 sm:$0xff]   ;;  %v14591_v62 = vld [vmem:[#allocation3 + $0x14f4] ss:$200 sps:$4 sm:$0xff]  }
 0x3a8   : > { %17256 = vst [vmem:[#allocation108_spill] sm:$0xff] %v15717_v18  ;;  %17257 = vst [vmem:[#allocation109_spill] sm:$0xff] %v15719_v22  ;;  %8298 = vmatpush2.bf16.msra.mxu1 %v14568_v14  ;;  %8393 = vmatprep.subr.bf16.mxu0 %v14573_v2  ;;  %v9063_v15 = vmul.f32 %v7843_v23, %v7843_v23  ;;  %v14580_v14 = vld [vmem:[#allocation3 + $0xea8] ss:$200 sps:$4 sm:$0xff]   ;;  %v14588_v2 = vld [vmem:[#allocation3 + $0xd1c] ss:$200 sps:$4 sm:$0xff]   ;;  %v8915_v23 = vmul.f32 %v15348_v47, %v15348_v47 }
 0x3a9   : > { %8299 = vmatprep.subr.bf16.mxu1 %v14576_v56  ;;  %v7793_v33 = vpop.f32.mrf.mxu0  ;;  %v8940_v18 = vmul.f32 %v15353_v8, %v15353_v8  ;;  %v14666_v8 = vld [vmem:[#allocation3 + $0x181c] ss:$200 sps:$4 sm:$0xff]  }
 0x3aa   : > { %v7847_v39 = vadd.f32 %v7846_v16, %v7793_v33  ;;  %v15727_v56 = vadd.f32 %v9063_v15, %v8963_v1  ;;  %v14597_v16 = vld [vmem:[#allocation3 + $0x1364] ss:$200 sps:$4 sm:$0xff]   ;;  %v14595_v15 = vld [vmem:[#allocation3 + $0x1360] ss:$200 sps:$4 sm:$0xff]   ;;  %v14606_v1 = vld [vmem:[#allocation3 + $0x1b34] ss:$200 sps:$4 sm:$0xff]  }
 0x3ab   : > { %8394 = vmatpush1.bf16.msra.mxu0 %v14571_v25  ;;  %v14583_v25 = vld [vmem:[#allocation3 + $0x1680] ss:$200 sps:$4 sm:$0xff]   ;;  %v14600_v33 = vld [vmem:[#allocation3 + $0x1cc4] ss:$200 sps:$4 sm:$0xff]  }
 0x3ac   : > { %v9088_v4 = vmul.f32 %v7847_v39, %v7847_v39  ;;  %8300 = vmatpush2.bf16.msra.mxu1 %v14574_v58  ;;  %8395 = vmatprep.subr.bf16.mxu0 %v14579_v52  ;;  %17258 = vst [vmem:[#allocation110_spill] sm:$0xff] %v15727_v56  ;;  %v14594_v58 = vld [vmem:[#allocation3 + $0x1e54] ss:$200 sps:$4 sm:$0xff]   ;;  %v14589_v52 = vld [vmem:[#allocation3 + $0x14f0] ss:$200 sps:$4 sm:$0xff]  }
 0x3ad   : > { %8301 = vmatprep.subr.bf16.mxu1 %v14582_v40  ;;  %v14592_v40 = vld [vmem:[#allocation3 + $0x1e50] ss:$200 sps:$4 sm:$0xff]   ;;  %v14598_v39 = vld [vmem:[#allocation3 + $0x1cc0] ss:$200 sps:$4 sm:$0xff]  }
 0x3ae   : > { %v15729_v37 = vadd.f32 %v9088_v4, %v8988_v0  ;;  %v14601_v0 = vld [vmem:[#allocation3 + $0x11d0] ss:$200 sps:$4 sm:$0xff]  }
 0x3af   : > { %8396 = vmatpush2.bf16.msra.mxu0 %v14577_v9  ;;  %v14603_v9 = vld [vmem:[#allocation3 + $0x11d4] ss:$200 sps:$4 sm:$0xff]   ;;  %v14604_v4 = vld [vmem:[#allocation3 + $0x1b30] ss:$200 sps:$4 sm:$0xff]  }
 0x3b0   : > { %17259 = vst [vmem:[#allocation111_spill] sm:$0xff] %v15729_v37  ;;  %8302 = vmatpush2.bf16.msra.mxu1 %v14580_v14  ;;  %8397 = vmatprep.subr.bf16.mxu0 %v14585_v50  ;;  %v14609_v14 = vld [vmem:[#allocation3 + $0x1044] ss:$200 sps:$4 sm:$0xff]  }
 0x3b1   : > { %8303 = vmatprep.subr.bf16.mxu1 %v14588_v2  ;;  %v14612_v50 = vld [vmem:[#allocation3 + $0x19a4] ss:$200 sps:$4 sm:$0xff]   ;;  %v14607_v2 = vld [vmem:[#allocation3 + $0x1040] ss:$200 sps:$4 sm:$0xff]  }
 0x3b3   : > { %8398 = vmatpush2.bf16.msra.mxu0 %v14583_v25  ;;  %v14610_v25 = vld [vmem:[#allocation3 + $0x19a0] ss:$200 sps:$4 sm:$0xff]  }
 0x3b4   : > { %8304 = vmatpush2.bf16.msra.mxu1 %v14586_v46  ;;  %8399 = vmatprep.subr.bf16.mxu0 %v14591_v62  ;;  %v14615_v46 = vld [vmem:[#allocation3 + $0xeb4] ss:$200 sps:$4 sm:$0xff]  }
 0x3b5   : > { %8440 = vmatprep.subr.bf16.mxu1 %v14594_v58  ;;  %v14618_v62 = vld [vmem:[#allocation3 + $0xb9c] ss:$200 sps:$4 sm:$0xff]   ;;  %v14613_v58 = vld [vmem:[#allocation3 + $0xeb0] ss:$200 sps:$4 sm:$0xff]  }
 0x3b7   : > { %8306 = vmatmul.mubr.bf16.vlgmr.msra.gmra.mxu1 %v15181_v17  ;;  %8400 = vmatpush2.bf16.msra.mxu0 %v14589_v52  ;;  %v14616_v52 = vld [vmem:[#allocation3 + $0xb98] ss:$200 sps:$4 sm:$0xff]  }
 0x3b8   : > { %8315 = vmatprep.mubr.bf16.mxu1 %v15198_v27  ;;  %8441 = vmatpush1.bf16.msra.mxu1 %v14592_v40  ;;  %v14621_v40 = vld [vmem:[#allocation3 + $0xd24] ss:$200 sps:$4 sm:$0xff]  }
 0x3b9   : > { %8401 = vmatprep.subr.bf16.mxu0 %v14597_v16  ;;  %8442 = vmatprep.subr.bf16.mxu1 %v14600_v33  ;;  %v14624_v16 = vld [vmem:[#allocation3 + $0xa0c] ss:$200 sps:$4 sm:$0xff]   ;;  %v15737_v33 = vpop.f32.mrf.mxu0 }
 0x3bb   : > { %8402 = vmatpush2.bf16.msra.mxu0 %v14595_v15  ;;  %v14619_v15 = vld [vmem:[#allocation3 + $0xd20] ss:$200 sps:$4 sm:$0xff]  }
 0x3bc   : > { %8443 = vmatpush1.bf16.msra.mxu1 %v14598_v39  ;;  %8403 = vmatprep.subr.bf16.mxu0 %v14603_v9  ;;  %v14622_v39 = vld [vmem:[#allocation3 + $0xa08] ss:$200 sps:$4 sm:$0xff]   ;;  %v14627_v9 = vld [vmem:[#allocation3 + $0x1e5c] ss:$200 sps:$4 sm:$0xff]  }
 0x3bd   : > { %8444 = vmatprep.subr.bf16.mxu1 %v14606_v1  ;;  %v14630_v1 = vld [vmem:[#allocation3 + $0x87c] ss:$200 sps:$4 sm:$0xff]  }
 0x3bf   : > { %8316 = vmatmul.mubr.bf16.gmra.mxu1 %v15203_v32  ;;  %8404 = vmatpush2.bf16.msra.mxu0 %v14601_v0  ;;  %v7938_v0 = vpop.f32.mrf.mxu0 }
 0x3c0   : > { %8445 = vmatpush1.bf16.msra.mxu1 %v14604_v4  ;;  %8405 = vmatprep.subr.bf16.mxu0 %v14609_v14  ;;  %v14625_v4 = vld [vmem:[#allocation3 + $0x1e58] ss:$200 sps:$4 sm:$0xff]  }
 0x3c1   : > { %8446 = vmatprep.subr.bf16.mxu1 %v14612_v50  ;;  %8464 = vmatprep.mubr.bf16.mxu1 %v17174_v5  ;;  %v14628_v14 = vld [vmem:[#allocation3 + $0x878] ss:$200 sps:$4 sm:$0xff]   ;;  %v14633_v50 = vld [vmem:[#allocation3 + $0x1ccc] ss:$200 sps:$4 sm:$0xff]  }
 0x3c3   : > { %8406 = vmatpush2.bf16.msra.mxu0 %v14607_v2  ;;  %v14636_v2 = vld [vmem:[#allocation3 + $0x6ec] ss:$200 sps:$4 sm:$0xff]  }
 0x3c4   : > { %8447 = vmatpush1.bf16.msra.mxu1 %v14610_v25  ;;  %8407 = vmatprep.subr.bf16.mxu0 %v14615_v46  ;;  %v15743_v25 = vpop.f32.mrf.mxu0  ;;  %v14631_v46 = vld [vmem:[#allocation3 + $0x1cc8] ss:$200 sps:$4 sm:$0xff]  }
 0x3c5   : > { %8485 = vmatprep.subr.bf16.mxu1 %v14618_v62  ;;  %v14634_v62 = vld [vmem:[#allocation3 + $0x6e8] ss:$200 sps:$4 sm:$0xff]  }
 0x3c7   : > { %8408 = vmatpush2.bf16.msra.mxu0 %v14613_v58  ;;  %12751 = vmatmul.mubr.msk.bf16.vlgmr.msra.gmra.mxu1 %vm6254_vm3, %v15174_v10  ;;  %v14639_v58 = vld [vmem:[#allocation3 + $0x1b3c] ss:$200 sps:$4 sm:$0xff]  }
 0x3c8   : > { %8486 = vmatpush1.bf16.msra.mxu1 %v14616_v52  ;;  %8409 = vmatprep.subr.bf16.mxu0 %v14621_v40  ;;  %v14642_v52 = vld [vmem:[#allocation3 + $0x55c] ss:$200 sps:$4 sm:$0xff]   ;;  %v7942_v40 = vpop.f32.mrf.mxu0 }
 0x3c9   : > { %8487 = vmatprep.subr.bf16.mxu1 %v14624_v16  ;;  %8474 = vmatprep.mubr.bf16.mxu1 %v17174_v5  ;;  %v14637_v16 = vld [vmem:[#allocation3 + $0x1b38] ss:$200 sps:$4 sm:$0xff]  }
 0x3cb   : > { %8410 = vmatpush2.bf16.msra.mxu0 %v14619_v15  ;;  %v14640_v15 = vld [vmem:[#allocation3 + $0x558] ss:$200 sps:$4 sm:$0xff]  }
 0x3cc   : > { %8488 = vmatpush1.bf16.msra.mxu1 %v14622_v39  ;;  %8546 = vmatprep.subr.bf16.mxu0 %v14627_v9  ;;  %v14645_v9 = vld [vmem:[#allocation3 + $0x19ac] ss:$200 sps:$4 sm:$0xff]  }
 0x3cd   : > { %8489 = vmatprep.subr.bf16.mxu1 %v14630_v1  ;;  %v14648_v1 = vld [vmem:[#allocation3 + $0x3cc] ss:$200 sps:$4 sm:$0xff]  }
 0x3ce   : > { %8412 = vmatmul.mubr.bf16.vlgmr.msra.gmra.mxu0 %v15181_v17 }
 0x3cf   : > { %8421 = vmatprep.mubr.bf16.mxu0 %v15198_v27  ;;  %12752 = vmatmul.mubr.msk.bf16.gmra.mxu1 %vm6254_vm3, %v15188_v20 }
 0x3d0   : > { %8547 = vmatpush1.bf16.msra.mxu0 %v14625_v4  ;;  %8490 = vmatpush1.bf16.msra.mxu1 %v14628_v14  ;;  %v15752_v4 = vpop.f32.mrf.mxu0 }
 0x3d1   : > { %8517 = vmatprep.mubr.bf16.mxu1 %v15186_v19  ;;  %8548 = vmatprep.subr.bf16.mxu0 %v14633_v50  ;;  %17260 = vst [vmem:[#allocation112_spill] sm:$0xff] %v15752_v4 }
 0x3d2   : > { %8491 = vmatprep.subr.bf16.mxu1 %v14636_v2  ;;  %v14643_v2 = vld [vmem:[#allocation3 + $0x19a8] ss:$200 sps:$4 sm:$0xff]   ;;  %v7948_v56 = vpop.f32.mrf.mxu0 }
 0x3d4   : > { %8549 = vmatpush1.bf16.msra.mxu0 %v14631_v46  ;;  %8492 = vmatpush1.bf16.msra.mxu1 %v14634_v62  ;;  %v14646_v46 = vld [vmem:[#allocation3 + $0x3c8] ss:$200 sps:$4 sm:$0xff]  }
 0x3d5   : > { %8550 = vmatprep.subr.bf16.mxu0 %v14639_v58  ;;  %v15749_v39 = vpop.f32.mrf.mxu1  ;;  %8493 = vmatprep.subr.bf16.mxu1 %v14642_v52  ;;  %v14651_v58 = vld [vmem:[#allocation3 + $0xba4] ss:$200 sps:$4 sm:$0xff]  }
 0x3d6   : > { %8422 = vmatmul.mubr.bf16.gmra.mxu0 %v15203_v32  ;;  %v14654_v52 = vld [vmem:[#allocation3 + $0x23c] ss:$200 sps:$4 sm:$0xff]  }
 0x3d7   : > { %v7885_v14 = vpop.f32.mrf.mxu1  ;;  %8570 = vmatprep.mubr.bf16.mxu0 %v17174_v5 }
 0x3d8   : > { %8551 = vmatpush1.bf16.msra.mxu0 %v14637_v16  ;;  %8494 = vmatpush1.bf16.msra.mxu1 %v14640_v15  ;;  %v7939_v50 = vadd.f32 %v7938_v0, %v7885_v14  ;;  %v14649_v0 = vld [vmem:[#allocation3 + $0xba0] ss:$200 sps:$4 sm:$0xff]   ;;  %v14660_v14 = vld [vmem:[#allocation3 + $0xac] ss:$200 sps:$4 sm:$0xff]  }
 0x3d9   : > { %8552 = vmatprep.subr.bf16.mxu0 %v14645_v9  ;;  %v15755_v62 = vpop.f32.mrf.mxu1  ;;  %8495 = vmatprep.subr.bf16.mxu1 %v14648_v1  ;;  %v14652_v15 = vld [vmem:[#allocation3 + $0x238] ss:$200 sps:$4 sm:$0xff]   ;;  %v14657_v1 = vld [vmem:[#allocation3 + $0xa14] ss:$200 sps:$4 sm:$0xff]  }
 0x3da   : > { %v9015_v22 = vmul.f32 %v7939_v50, %v7939_v50  ;;  %v15765_v50 = vpop.f32.mrf.mxu0 }
 0x3db   : > { %v7889_v37 = vpop.f32.mrf.mxu1 }
 0x3dc   : > { %v15759_v35 = vadd.f32 %v9015_v22, %v8915_v23  ;;  %8553 = vmatpush1.bf16.msra.mxu0 %v14643_v2  ;;  %8496 = vmatpush1.bf16.msra.mxu1 %v14646_v46  ;;  %v7943_v16 = vadd.f32 %v7942_v40, %v7889_v37  ;;  %v14655_v40 = vld [vmem:[#allocation3 + $0xa10] ss:$200 sps:$4 sm:$0xff]  }
 0x3dd   : > { %8591 = vmatprep.subr.bf16.mxu0 %v14651_v58  ;;  %v15761_v9 = vpop.f32.mrf.mxu1  ;;  %8497 = vmatprep.subr.bf16.mxu1 %v14654_v52  ;;  %v14658_v2 = vld [vmem:[#allocation3 + $0xa8] ss:$200 sps:$4 sm:$0xff]   ;;  %v14663_v58 = vld [vmem:[#allocation3 + $0x884] ss:$200 sps:$4 sm:$0xff]   ;;  %v8965_v52 = vmul.f32 %v15357_v24, %v15357_v24  ;;  %v14669_v24 = vld [vmem:[#allocation3 + $0x6f4] ss:$200 sps:$4 sm:$0xff]  }
 0x3de   : > { %17261 = vst [vmem:[#allocation113_spill] sm:$0xff] %v15759_v35  ;;  %v9040_v47 = vmul.f32 %v7943_v16, %v7943_v16  ;;  %v14672_v16 = vld [vmem:[#allocation3 + $0x168c] ss:$200 sps:$4 sm:$0xff]  }
 0x3df   : > { %12753 = vmatmul.mubr.msk.bf16.vlgmr.msra.gmra.mxu0 %vm6254_vm3, %v15174_v10  ;;  %v7895_v22 = vpop.f32.mrf.mxu1  ;;  %v14684_v35 = vld [vmem:[#allocation3 + $0x136c] ss:$200 sps:$4 sm:$0xff]  }
 0x3e0   : > { %v15769_v23 = vadd.f32 %v9040_v47, %v8940_v18  ;;  %8592 = vmatpush1.bf16.msra.mxu0 %v14649_v0  ;;  %8498 = vmatpush1.bf16.msra.mxu1 %v14652_v15  ;;  %v7949_v37 = vadd.f32 %v7948_v56, %v7895_v22  ;;  %v7952_v18 = vpop.f32.mrf.mxu0  ;;  %v14664_v47 = vld [vmem:[#allocation3 + $0x1818] ss:$200 sps:$4 sm:$0xff]   ;;  %v8990_v22 = vmul.f32 %v15363_v53, %v15363_v53  ;;  %v14687_v53 = vld [vmem:[#allocation3 + $0x244] ss:$200 sps:$4 sm:$0xff]  }
 0x3e1   : > { %8593 = vmatprep.subr.bf16.mxu0 %v14657_v1  ;;  %v15771_v46 = vpop.f32.mrf.mxu1  ;;  %8499 = vmatprep.subr.bf16.mxu1 %v14660_v14  ;;  %v14661_v1 = vld [vmem:[#allocation3 + $0x880] ss:$200 sps:$4 sm:$0xff]  }
 0x3e2   : > { %17262 = vst [vmem:[#allocation114_spill] sm:$0xff] %v15769_v23  ;;  %v9065_v4 = vmul.f32 %v7949_v37, %v7949_v37  ;;  %8580 = vmatprep.mubr.bf16.mxu0 %v17174_v5 }
 0x3e3   : > { %v7899_v0 = vpop.f32.mrf.mxu1 }
 0x3e4   : > { %v15778_v56 = vadd.f32 %v9065_v4, %v8965_v52  ;;  %8594 = vmatpush1.bf16.msra.mxu0 %v14655_v40  ;;  %8500 = vmatpush1.bf16.msra.mxu1 %v14658_v2  ;;  %v7953_v15 = vadd.f32 %v7952_v18, %v7899_v0  ;;  %v14667_v40 = vld [vmem:[#allocation3 + $0x6f0] ss:$200 sps:$4 sm:$0xff]   ;;  %v14678_v18 = vld [vmem:[#allocation3 + $0x14fc] ss:$200 sps:$4 sm:$0xff]  }
 0x3e5   : > { %8595 = vmatprep.subr.bf16.mxu0 %v14663_v58  ;;  %v15780_v14 = vpop.f32.mrf.mxu1  ;;  %8501 = vmatprep.subr.bf16.mxu1 %v14666_v8  ;;  %v14670_v58 = vld [vmem:[#allocation3 + $0x1688] ss:$200 sps:$4 sm:$0xff]   ;;  %v14675_v8 = vld [vmem:[#allocation3 + $0x564] ss:$200 sps:$4 sm:$0xff]  }
 0x3e6   : > { %17263 = vst [vmem:[#allocation115_spill] sm:$0xff] %v15778_v56  ;;  %17264 = vst [vmem:[#allocation116_spill] sm:$0xff] %v15780_v14  ;;  %v9090_v37 = vmul.f32 %v7953_v15, %v7953_v15 }
 0x3e7   : > { %12754 = vmatmul.mubr.msk.bf16.gmra.mxu0 %vm6254_vm3, %v15188_v20  ;;  %v8044_v4 = vpop.f32.mrf.mxu1 }
 0x3e8   : > { %v15786_v52 = vadd.f32 %v9090_v37, %v8990_v22  ;;  %8596 = vmatpush1.bf16.msra.mxu0 %v14661_v1  ;;  %8623 = vmatprep.mubr.bf16.mxu0 %v15186_v19  ;;  %v14673_v22 = vld [vmem:[#allocation3 + $0x560] ss:$200 sps:$4 sm:$0xff]   ;;  %v14681_v37 = vld [vmem:[#allocation3 + $0x3d4] ss:$200 sps:$4 sm:$0xff]  }
 0x3e9   : > { %8502 = vmatpush2.bf16.msra.mxu1 %v14664_v47  ;;  %8597 = vmatprep.subr.bf16.mxu0 %v14669_v24  ;;  %v15789_v2 = vpop.f32.mrf.mxu1  ;;  %v14676_v1 = vld [vmem:[#allocation3 + $0x14f8] ss:$200 sps:$4 sm:$0xff]  }
 0x3ea   : > { %17265 = vst [vmem:[#allocation117_spill] sm:$0xff] %v15786_v52  ;;  %17266 = vst [vmem:[#allocation118_spill] sm:$0xff] %v15789_v2  ;;  %8503 = vmatprep.subr.bf16.mxu1 %v14672_v16  ;;  %v14679_v16 = vld [vmem:[#allocation3 + $0x3d0] ss:$200 sps:$4 sm:$0xff]  }
 0x3eb   : > { %v8048_v0 = vpop.f32.mrf.mxu1  ;;  %v14691_v2 = vld [vmem:[#allocation3 + $0xb0] ss:$200 sps:$4 sm:$0xff]  }
 0x3ec   : > { %8598 = vmatpush1.bf16.msra.mxu0 %v14667_v40  ;;  %v15793_v15 = vpop.f32.mrf.mxu0  ;;  %v14682_v40 = vld [vmem:[#allocation3 + $0x1368] ss:$200 sps:$4 sm:$0xff]  }
 0x3ed   : > { %17267 = vst [vmem:[#allocation119_spill] sm:$0xff] %v15793_v15  ;;  %8504 = vmatpush2.bf16.msra.mxu1 %v14670_v58  ;;  %8599 = vmatprep.subr.bf16.mxu0 %v14675_v8  ;;  %v15795_v47 = vpop.f32.mrf.mxu1  ;;  %v14690_v8 = vld [vmem:[#allocation3 + $0x11dc] ss:$200 sps:$4 sm:$0xff]  }
 0x3ee   : > { %17268 = vst [vmem:[#allocation120_spill] sm:$0xff] %v15795_v47  ;;  %8505 = vmatprep.subr.bf16.mxu1 %v14678_v18  ;;  %v7991_v24 = vpop.f32.mrf.mxu0  ;;  %v14685_v18 = vld [vmem:[#allocation3 + $0x240] ss:$200 sps:$4 sm:$0xff]  }
 0x3ef   : > { %v8045_v23 = vadd.f32 %v8044_v4, %v7991_v24  ;;  %v8054_v56 = vpop.f32.mrf.mxu1  ;;  %v8917_v4 = vmul.f32 %v15375_v44, %v15375_v44 }
 0x3f0   : > { %8600 = vmatpush1.bf16.msra.mxu0 %v14673_v22  ;;  %v15797_v14 = vpop.f32.mrf.mxu0  ;;  %v8942_v22 = vmul.f32 %v15379_v59, %v15379_v59 }
 0x3f1   : > { %8506 = vmatpush2.bf16.msra.mxu1 %v14676_v1  ;;  %8601 = vmatprep.subr.bf16.mxu0 %v14681_v37  ;;  %v9017_v52 = vmul.f32 %v8045_v23, %v8045_v23  ;;  %v14688_v37 = vld [vmem:[#allocation3 + $0x11d8] ss:$200 sps:$4 sm:$0xff]   ;;  %v15805_v24 = vpop.f32.mrf.mxu1  ;;  %v14693_v23 = vld [vmem:[#allocation3 + $0xb4] ss:$200 sps:$4 sm:$0xff]  }
 0x3f2   : > { %8507 = vmatprep.subr.bf16.mxu1 %v14684_v35  ;;  %v7995_v58 = vpop.f32.mrf.mxu0  ;;  %17270 = vst [vmem:[#allocation122_spill] sm:$0xff] %v15805_v24  ;;  %v14702_v24 = vld [vmem:[#allocation3 + $0xebc] ss:$200 sps:$4 sm:$0xff]  }
 0x3f3   : > { %v8049_v15 = vadd.f32 %v8048_v0, %v7995_v58  ;;  %v14696_v0 = vld [vmem:[#allocation3 + $0x104c] ss:$200 sps:$4 sm:$0xff]  }
 0x3f4   : > { %8602 = vmatpush1.bf16.msra.mxu0 %v14679_v16  ;;  %v15799_v47 = vpop.f32.mrf.mxu0  ;;  %v15807_v16 = vadd.f32 %v9017_v52, %v8917_v4 }
 0x3f5   : > { %17269 = vst [vmem:[#allocation121_spill] sm:$0xff] %v15799_v47  ;;  %v9042_v1 = vmul.f32 %v8049_v15, %v8049_v15  ;;  %8508 = vmatpush2.bf16.msra.mxu1 %v14682_v40  ;;  %8603 = vmatprep.subr.bf16.mxu0 %v14687_v53  ;;  %v14694_v53 = vld [vmem:[#allocation3 + $0x1048] ss:$200 sps:$4 sm:$0xff]   ;;  %v14699_v15 = vld [vmem:[#allocation3 + $0x1824] ss:$200 sps:$4 sm:$0xff]   ;;  %v8058_v40 = vpop.f32.mrf.mxu1 }
 0x3f6   : > { %8509 = vmatprep.subr.bf16.mxu1 %v14690_v8  ;;  %v8001_v35 = vpop.f32.mrf.mxu0  ;;  %17271 = vst [vmem:[#allocation123_spill] sm:$0xff] %v15807_v16 }
 0x3f7   : > { %v15809_v58 = vadd.f32 %v9042_v1, %v8942_v22  ;;  %v8055_v47 = vadd.f32 %v8054_v56, %v8001_v35  ;;  %v14697_v22 = vld [vmem:[#allocation3 + $0x1820] ss:$200 sps:$4 sm:$0xff]   ;;  %v8967_v56 = vmul.f32 %v15383_v43, %v15383_v43  ;;  %v14705_v35 = vld [vmem:[#allocation3 + $0x1694] ss:$200 sps:$4 sm:$0xff]  }
 0x3f8   : > { %8604 = vmatpush1.bf16.msra.mxu0 %v14685_v18  ;;  %v15811_v44 = vpop.f32.mrf.mxu0  ;;  %v8992_v18 = vmul.f32 %v15387_v45, %v15387_v45  ;;  %v14706_v43 = vld [vmem:[#allocation3 + $0xd28] ss:$200 sps:$4 sm:$0xff]   ;;  %v14711_v45 = vld [vmem:[#allocation3 + $0x1504] ss:$200 sps:$4 sm:$0xff]  }
 0x3f9   : > { %17272 = vst [vmem:[#allocation124_spill] sm:$0xff] %v15809_v58  ;;  %17273 = vst [vmem:[#allocation125_spill] sm:$0xff] %v15811_v44  ;;  %8510 = vmatpush2.bf16.msra.mxu1 %v14688_v37  ;;  %8605 = vmatprep.subr.bf16.mxu0 %v14693_v23  ;;  %v9067_v52 = vmul.f32 %v8055_v47, %v8055_v47  ;;  %v14700_v37 = vld [vmem:[#allocation3 + $0xeb8] ss:$200 sps:$4 sm:$0xff]   ;;  %v14708_v23 = vld [vmem:[#allocation3 + $0xd2c] ss:$200 sps:$4 sm:$0xff]   ;;  %v8919_v47 = vmul.f32 %v15408_v29, %v15408_v29 }
 0x3fa   : > { %8511 = vmatprep.subr.bf16.mxu1 %v14696_v0  ;;  %v8005_v8 = vpop.f32.mrf.mxu0  ;;  %v8944_v58 = vmul.f32 %v15413_v55, %v15413_v55  ;;  %v14786_v55 = vld [vmem:[#allocation3 + $0x182c] ss:$200 sps:$4 sm:$0xff]  }
 0x3fb   : > { %v8059_v4 = vadd.f32 %v8058_v40, %v8005_v8  ;;  %v15819_v0 = vadd.f32 %v9067_v52, %v8967_v56  ;;  %v14717_v40 = vld [vmem:[#allocation3 + $0x1374] ss:$200 sps:$4 sm:$0xff]   ;;  %v14715_v52 = vld [vmem:[#allocation3 + $0x1370] ss:$200 sps:$4 sm:$0xff]   ;;  %v14726_v56 = vld [vmem:[#allocation3 + $0x1b44] ss:$200 sps:$4 sm:$0xff]  }
 0x3fc   : > { %8606 = vmatpush1.bf16.msra.mxu0 %v14691_v2  ;;  %v14703_v2 = vld [vmem:[#allocation3 + $0x1690] ss:$200 sps:$4 sm:$0xff]   ;;  %v14720_v8 = vld [vmem:[#allocation3 + $0x1cd4] ss:$200 sps:$4 sm:$0xff]  }
 0x3fd   : > { %v9092_v1 = vmul.f32 %v8059_v4, %v8059_v4  ;;  %8512 = vmatpush2.bf16.msra.mxu1 %v14694_v53  ;;  %8607 = vmatprep.subr.bf16.mxu0 %v14699_v15  ;;  %17274 = vst [vmem:[#allocation126_spill] sm:$0xff] %v15819_v0  ;;  %v14714_v53 = vld [vmem:[#allocation3 + $0x1e64] ss:$200 sps:$4 sm:$0xff]   ;;  %v14709_v15 = vld [vmem:[#allocation3 + $0x1500] ss:$200 sps:$4 sm:$0xff]  }
 0x3fe   : > { %8513 = vmatprep.subr.bf16.mxu1 %v14702_v24  ;;  %v14712_v24 = vld [vmem:[#allocation3 + $0x1e60] ss:$200 sps:$4 sm:$0xff]   ;;  %v14718_v4 = vld [vmem:[#allocation3 + $0x1cd0] ss:$200 sps:$4 sm:$0xff]  }
 0x3ff   : > { %v15821_v59 = vadd.f32 %v9092_v1, %v8992_v18  ;;  %v14721_v18 = vld [vmem:[#allocation3 + $0x11e0] ss:$200 sps:$4 sm:$0xff]  }
 0x400   : > { %8608 = vmatpush2.bf16.msra.mxu0 %v14697_v22  ;;  %v14723_v22 = vld [vmem:[#allocation3 + $0x11e4] ss:$200 sps:$4 sm:$0xff]   ;;  %v14724_v1 = vld [vmem:[#allocation3 + $0x1b40] ss:$200 sps:$4 sm:$0xff]  }
 0x401   : > { %17275 = vst [vmem:[#allocation127_spill] sm:$0xff] %v15821_v59  ;;  %8514 = vmatpush2.bf16.msra.mxu1 %v14700_v37  ;;  %8609 = vmatprep.subr.bf16.mxu0 %v14705_v35  ;;  %v14729_v37 = vld [vmem:[#allocation3 + $0x1054] ss:$200 sps:$4 sm:$0xff]  }
 0x402   : > { %8515 = vmatprep.subr.bf16.mxu1 %v14708_v23  ;;  %v14732_v35 = vld [vmem:[#allocation3 + $0x19b4] ss:$200 sps:$4 sm:$0xff]   ;;  %v14727_v23 = vld [vmem:[#allocation3 + $0x1050] ss:$200 sps:$4 sm:$0xff]  }
 0x404   : > { %8610 = vmatpush2.bf16.msra.mxu0 %v14703_v2  ;;  %v14730_v2 = vld [vmem:[#allocation3 + $0x19b0] ss:$200 sps:$4 sm:$0xff]  }
 0x405   : > { %8516 = vmatpush2.bf16.msra.mxu1 %v14706_v43  ;;  %8611 = vmatprep.subr.bf16.mxu0 %v14711_v45  ;;  %v14735_v43 = vld [vmem:[#allocation3 + $0xec4] ss:$200 sps:$4 sm:$0xff]  }
 0x406   : > { %8652 = vmatprep.subr.bf16.mxu1 %v14714_v53  ;;  %v14738_v45 = vld [vmem:[#allocation3 + $0xbac] ss:$200 sps:$4 sm:$0xff]   ;;  %v14733_v53 = vld [vmem:[#allocation3 + $0xec0] ss:$200 sps:$4 sm:$0xff]  }
 0x408   : > { %8518 = vmatmul.mubr.bf16.vlgmr.msra.gmra.mxu1 %v15181_v17  ;;  %8612 = vmatpush2.bf16.msra.mxu0 %v14709_v15  ;;  %v14736_v15 = vld [vmem:[#allocation3 + $0xba8] ss:$200 sps:$4 sm:$0xff]  }
 0x409   : > { %8527 = vmatprep.mubr.bf16.mxu1 %v15198_v27  ;;  %8653 = vmatpush1.bf16.msra.mxu1 %v14712_v24  ;;  %v14741_v24 = vld [vmem:[#allocation3 + $0xd34] ss:$200 sps:$4 sm:$0xff]  }
 0x40a   : > { %8613 = vmatprep.subr.bf16.mxu0 %v14717_v40  ;;  %8654 = vmatprep.subr.bf16.mxu1 %v14720_v8  ;;  %v14744_v40 = vld [vmem:[#allocation3 + $0xa1c] ss:$200 sps:$4 sm:$0xff]   ;;  %v15829_v8 = vpop.f32.mrf.mxu0 }
 0x40c   : > { %8614 = vmatpush2.bf16.msra.mxu0 %v14715_v52  ;;  %v14739_v52 = vld [vmem:[#allocation3 + $0xd30] ss:$200 sps:$4 sm:$0xff]  }
 0x40d   : > { %8655 = vmatpush1.bf16.msra.mxu1 %v14718_v4  ;;  %8615 = vmatprep.subr.bf16.mxu0 %v14723_v22  ;;  %v14742_v4 = vld [vmem:[#allocation3 + $0xa18] ss:$200 sps:$4 sm:$0xff]   ;;  %v14747_v22 = vld [vmem:[#allocation3 + $0x1e6c] ss:$200 sps:$4 sm:$0xff]  }
 0x40e   : > { %8656 = vmatprep.subr.bf16.mxu1 %v14726_v56  ;;  %v14750_v56 = vld [vmem:[#allocation3 + $0x88c] ss:$200 sps:$4 sm:$0xff]  }
 0x410   : > { %8528 = vmatmul.mubr.bf16.gmra.mxu1 %v15203_v32  ;;  %8616 = vmatpush2.bf16.msra.mxu0 %v14721_v18  ;;  %v8150_v18 = vpop.f32.mrf.mxu0 }
 0x411   : > { %8657 = vmatpush1.bf16.msra.mxu1 %v14724_v1  ;;  %8617 = vmatprep.subr.bf16.mxu0 %v14729_v37  ;;  %v14745_v1 = vld [vmem:[#allocation3 + $0x1e68] ss:$200 sps:$4 sm:$0xff]  }
 0x412   : > { %8658 = vmatprep.subr.bf16.mxu1 %v14732_v35  ;;  %8676 = vmatprep.mubr.bf16.mxu1 %v17174_v5  ;;  %v14748_v37 = vld [vmem:[#allocation3 + $0x888] ss:$200 sps:$4 sm:$0xff]   ;;  %v14753_v35 = vld [vmem:[#allocation3 + $0x1cdc] ss:$200 sps:$4 sm:$0xff]  }
 0x414   : > { %8618 = vmatpush2.bf16.msra.mxu0 %v14727_v23  ;;  %v14756_v23 = vld [vmem:[#allocation3 + $0x6fc] ss:$200 sps:$4 sm:$0xff]  }
 0x415   : > { %8659 = vmatpush1.bf16.msra.mxu1 %v14730_v2  ;;  %8619 = vmatprep.subr.bf16.mxu0 %v14735_v43  ;;  %v15835_v2 = vpop.f32.mrf.mxu0  ;;  %v14751_v43 = vld [vmem:[#allocation3 + $0x1cd8] ss:$200 sps:$4 sm:$0xff]  }
 0x416   : > { %8697 = vmatprep.subr.bf16.mxu1 %v14738_v45  ;;  %v14754_v45 = vld [vmem:[#allocation3 + $0x6f8] ss:$200 sps:$4 sm:$0xff]  }
 0x418   : > { %8620 = vmatpush2.bf16.msra.mxu0 %v14733_v53  ;;  %12755 = vmatmul.mubr.msk.bf16.vlgmr.msra.gmra.mxu1 %vm6254_vm3, %v15174_v10  ;;  %v14759_v53 = vld [vmem:[#allocation3 + $0x1b4c] ss:$200 sps:$4 sm:$0xff]  }
 0x419   : > { %8698 = vmatpush1.bf16.msra.mxu1 %v14736_v15  ;;  %8621 = vmatprep.subr.bf16.mxu0 %v14741_v24  ;;  %v14762_v15 = vld [vmem:[#allocation3 + $0x56c] ss:$200 sps:$4 sm:$0xff]   ;;  %v8154_v24 = vpop.f32.mrf.mxu0 }
 0x41a   : > { %8699 = vmatprep.subr.bf16.mxu1 %v14744_v40  ;;  %8686 = vmatprep.mubr.bf16.mxu1 %v17174_v5  ;;  %v14757_v40 = vld [vmem:[#allocation3 + $0x1b48] ss:$200 sps:$4 sm:$0xff]  }
 0x41c   : > { %8622 = vmatpush2.bf16.msra.mxu0 %v14739_v52  ;;  %v14760_v52 = vld [vmem:[#allocation3 + $0x568] ss:$200 sps:$4 sm:$0xff]  }
 0x41d   : > { %8700 = vmatpush1.bf16.msra.mxu1 %v14742_v4  ;;  %8758 = vmatprep.subr.bf16.mxu0 %v14747_v22  ;;  %v14765_v22 = vld [vmem:[#allocation3 + $0x19bc] ss:$200 sps:$4 sm:$0xff]  }
 0x41e   : > { %8701 = vmatprep.subr.bf16.mxu1 %v14750_v56  ;;  %v14768_v56 = vld [vmem:[#allocation3 + $0x3dc] ss:$200 sps:$4 sm:$0xff]  }
 0x41f   : > { %8624 = vmatmul.mubr.bf16.vlgmr.msra.gmra.mxu0 %v15181_v17 }
 0x420   : > { %8633 = vmatprep.mubr.bf16.mxu0 %v15198_v27  ;;  %12756 = vmatmul.mubr.msk.bf16.gmra.mxu1 %vm6254_vm3, %v15188_v20 }
 0x421   : > { %8759 = vmatpush1.bf16.msra.mxu0 %v14745_v1  ;;  %8702 = vmatpush1.bf16.msra.mxu1 %v14748_v37  ;;  %v15844_v1 = vpop.f32.mrf.mxu0 }
 0x422   : > { %8729 = vmatprep.mubr.bf16.mxu1 %v15186_v19  ;;  %8760 = vmatprep.subr.bf16.mxu0 %v14753_v35  ;;  %17276 = vst [vmem:[#allocation128_spill] sm:$0xff] %v15844_v1 }
 0x423   : > { %8703 = vmatprep.subr.bf16.mxu1 %v14756_v23  ;;  %v14763_v23 = vld [vmem:[#allocation3 + $0x19b8] ss:$200 sps:$4 sm:$0xff]   ;;  %v8160_v0 = vpop.f32.mrf.mxu0 }
 0x425   : > { %8761 = vmatpush1.bf16.msra.mxu0 %v14751_v43  ;;  %8704 = vmatpush1.bf16.msra.mxu1 %v14754_v45  ;;  %v14766_v43 = vld [vmem:[#allocation3 + $0x3d8] ss:$200 sps:$4 sm:$0xff]  }
 0x426   : > { %8762 = vmatprep.subr.bf16.mxu0 %v14759_v53  ;;  %v15841_v4 = vpop.f32.mrf.mxu1  ;;  %8705 = vmatprep.subr.bf16.mxu1 %v14762_v15  ;;  %v14771_v53 = vld [vmem:[#allocation3 + $0xbb4] ss:$200 sps:$4 sm:$0xff]  }
 0x427   : > { %8634 = vmatmul.mubr.bf16.gmra.mxu0 %v15203_v32  ;;  %v14774_v15 = vld [vmem:[#allocation3 + $0x24c] ss:$200 sps:$4 sm:$0xff]  }
 0x428   : > { %v8097_v37 = vpop.f32.mrf.mxu1  ;;  %8782 = vmatprep.mubr.bf16.mxu0 %v17174_v5 }
 0x429   : > { %8763 = vmatpush1.bf16.msra.mxu0 %v14757_v40  ;;  %8706 = vmatpush1.bf16.msra.mxu1 %v14760_v52  ;;  %v8151_v35 = vadd.f32 %v8150_v18, %v8097_v37  ;;  %v14769_v18 = vld [vmem:[#allocation3 + $0xbb0] ss:$200 sps:$4 sm:$0xff]   ;;  %v14780_v37 = vld [vmem:[#allocation3 + $0xbc] ss:$200 sps:$4 sm:$0xff]  }
 0x42a   : > { %8764 = vmatprep.subr.bf16.mxu0 %v14765_v22  ;;  %v15847_v45 = vpop.f32.mrf.mxu1  ;;  %8707 = vmatprep.subr.bf16.mxu1 %v14768_v56  ;;  %v14772_v52 = vld [vmem:[#allocation3 + $0x248] ss:$200 sps:$4 sm:$0xff]   ;;  %v14777_v56 = vld [vmem:[#allocation3 + $0xa24] ss:$200 sps:$4 sm:$0xff]  }
 0x42b   : > { %v9019_v44 = vmul.f32 %v8151_v35, %v8151_v35  ;;  %v15857_v35 = vpop.f32.mrf.mxu0 }
 0x42c   : > { %v8101_v59 = vpop.f32.mrf.mxu1 }
 0x42d   : > { %v15851_v16 = vadd.f32 %v9019_v44, %v8919_v47  ;;  %8765 = vmatpush1.bf16.msra.mxu0 %v14763_v23  ;;  %8708 = vmatpush1.bf16.msra.mxu1 %v14766_v43  ;;  %v8155_v40 = vadd.f32 %v8154_v24, %v8101_v59  ;;  %v14775_v24 = vld [vmem:[#allocation3 + $0xa20] ss:$200 sps:$4 sm:$0xff]  }
 0x42e   : > { %8803 = vmatprep.subr.bf16.mxu0 %v14771_v53  ;;  %v15853_v22 = vpop.f32.mrf.mxu1  ;;  %8709 = vmatprep.subr.bf16.mxu1 %v14774_v15  ;;  %v14778_v23 = vld [vmem:[#allocation3 + $0xb8] ss:$200 sps:$4 sm:$0xff]   ;;  %v14783_v53 = vld [vmem:[#allocation3 + $0x894] ss:$200 sps:$4 sm:$0xff]   ;;  %v8969_v15 = vmul.f32 %v15417_v41, %v15417_v41  ;;  %v14789_v41 = vld [vmem:[#allocation3 + $0x704] ss:$200 sps:$4 sm:$0xff]  }
 0x42f   : > { %17277 = vst [vmem:[#allocation129_spill] sm:$0xff] %v15851_v16  ;;  %v9044_v29 = vmul.f32 %v8155_v40, %v8155_v40  ;;  %v14792_v40 = vld [vmem:[#allocation3 + $0x169c] ss:$200 sps:$4 sm:$0xff]  }
 0x430   : > { %12757 = vmatmul.mubr.msk.bf16.vlgmr.msra.gmra.mxu0 %vm6254_vm3, %v15174_v10  ;;  %v8107_v44 = vpop.f32.mrf.mxu1 }
 0x431   : > { %v15861_v47 = vadd.f32 %v9044_v29, %v8944_v58  ;;  %8804 = vmatpush1.bf16.msra.mxu0 %v14769_v18  ;;  %8710 = vmatpush1.bf16.msra.mxu1 %v14772_v52  ;;  %v8161_v59 = vadd.f32 %v8160_v0, %v8107_v44  ;;  %v8164_v58 = vpop.f32.mrf.mxu0  ;;  %v14784_v29 = vld [vmem:[#allocation3 + $0x1828] ss:$200 sps:$4 sm:$0xff]   ;;  %v8994_v44 = vmul.f32 %v15423_v54, %v15423_v54  ;;  %v14807_v54 = vld [vmem:[#allocation3 + $0x254] ss:$200 sps:$4 sm:$0xff]  }
 0x432   : > { %8805 = vmatprep.subr.bf16.mxu0 %v14777_v56  ;;  %v15863_v43 = vpop.f32.mrf.mxu1  ;;  %8711 = vmatprep.subr.bf16.mxu1 %v14780_v37  ;;  %v14781_v56 = vld [vmem:[#allocation3 + $0x890] ss:$200 sps:$4 sm:$0xff]  }
 0x433   : > { %17278 = vst [vmem:[#allocation130_spill] sm:$0xff] %v15861_v47  ;;  %v9069_v1 = vmul.f32 %v8161_v59, %v8161_v59  ;;  %8792 = vmatprep.mubr.bf16.mxu0 %v17174_v5 }
 0x434   : > { %v8111_v18 = vpop.f32.mrf.mxu1 }
 0x435   : > { %v15870_v0 = vadd.f32 %v9069_v1, %v8969_v15  ;;  %8806 = vmatpush1.bf16.msra.mxu0 %v14775_v24  ;;  %8712 = vmatpush1.bf16.msra.mxu1 %v14778_v23  ;;  %v8165_v52 = vadd.f32 %v8164_v58, %v8111_v18  ;;  %v14787_v24 = vld [vmem:[#allocation3 + $0x700] ss:$200 sps:$4 sm:$0xff]   ;;  %v14798_v58 = vld [vmem:[#allocation3 + $0x150c] ss:$200 sps:$4 sm:$0xff]  }
 0x436   : > { %8807 = vmatprep.subr.bf16.mxu0 %v14783_v53  ;;  %v15872_v37 = vpop.f32.mrf.mxu1  ;;  %8713 = vmatprep.subr.bf16.mxu1 %v14786_v55  ;;  %v14790_v53 = vld [vmem:[#allocation3 + $0x1698] ss:$200 sps:$4 sm:$0xff]   ;;  %v14795_v55 = vld [vmem:[#allocation3 + $0x574] ss:$200 sps:$4 sm:$0xff]  }
 0x437   : > { %17279 = vst [vmem:[#allocation131_spill] sm:$0xff] %v15870_v0  ;;  %17280 = vst [vmem:[#allocation132_spill] sm:$0xff] %v15872_v37  ;;  %v9094_v59 = vmul.f32 %v8165_v52, %v8165_v52 }
 0x438   : > { %12758 = vmatmul.mubr.msk.bf16.gmra.mxu0 %vm6254_vm3, %v15188_v20  ;;  %v8256_v1 = vpop.f32.mrf.mxu1 }
 0x439   : > { %v15878_v15 = vadd.f32 %v9094_v59, %v8994_v44  ;;  %8808 = vmatpush1.bf16.msra.mxu0 %v14781_v56  ;;  %8835 = vmatprep.mubr.bf16.mxu0 %v15186_v19  ;;  %v14793_v44 = vld [vmem:[#allocation3 + $0x570] ss:$200 sps:$4 sm:$0xff]   ;;  %v14801_v56 = vld [vmem:[#allocation3 + $0x3e4] ss:$200 sps:$4 sm:$0xff]  }
 0x43a   : > { %8714 = vmatpush2.bf16.msra.mxu1 %v14784_v29  ;;  %8809 = vmatprep.subr.bf16.mxu0 %v14789_v41  ;;  %v15881_v23 = vpop.f32.mrf.mxu1  ;;  %v14796_v19 = vld [vmem:[#allocation3 + $0x1508] ss:$200 sps:$4 sm:$0xff]   ;;  %v14804_v59 = vld [vmem:[#allocation3 + $0x137c] ss:$200 sps:$4 sm:$0xff]  }
 0x43b   : > { %17281 = vst [vmem:[#allocation133_spill] sm:$0xff] %v15878_v15  ;;  %8715 = vmatprep.subr.bf16.mxu1 %v14792_v40  ;;  %v14799_v40 = vld [vmem:[#allocation3 + $0x3e0] ss:$200 sps:$4 sm:$0xff]  }
 0x43c   : > { %v8260_v18 = vpop.f32.mrf.mxu1 }
 0x43d   : > { %8810 = vmatpush1.bf16.msra.mxu0 %v14787_v24  ;;  %v15885_v52 = vpop.f32.mrf.mxu0  ;;  %v14802_v24 = vld [vmem:[#allocation3 + $0x1378] ss:$200 sps:$4 sm:$0xff]  }
 0x43e   : > { %17282 = vst [vmem:[#allocation134_spill] sm:$0xff] %v15885_v52  ;;  %8716 = vmatpush2.bf16.msra.mxu1 %v14790_v53  ;;  %8811 = vmatprep.subr.bf16.mxu0 %v14795_v55  ;;  %v15887_v29 = vpop.f32.mrf.mxu1  ;;  %v14810_v55 = vld [vmem:[#allocation3 + $0x11ec] ss:$200 sps:$4 sm:$0xff]   ;;  %v14811_v52 = vld [vmem:[#allocation3 + $0xc0] ss:$200 sps:$4 sm:$0xff]  }
 0x43f   : > { %17283 = vst [vmem:[#allocation135_spill] sm:$0xff] %v15887_v29  ;;  %8717 = vmatprep.subr.bf16.mxu1 %v14798_v58  ;;  %v8203_v41 = vpop.f32.mrf.mxu0  ;;  %v14805_v58 = vld [vmem:[#allocation3 + $0x250] ss:$200 sps:$4 sm:$0xff]  }
 0x440   : > { %v8257_v16 = vadd.f32 %v8256_v1, %v8203_v41  ;;  %v8266_v0 = vpop.f32.mrf.mxu1  ;;  %v8921_v1 = vmul.f32 %v15435_v6, %v15435_v6 }
 0x441   : > { %8812 = vmatpush1.bf16.msra.mxu0 %v14793_v44  ;;  %v15889_v47 = vpop.f32.mrf.mxu0  ;;  %v8946_v44 = vmul.f32 %v15439_v31, %v15439_v31 }
 0x442   : > { %8718 = vmatpush2.bf16.msra.mxu1 %v14796_v19  ;;  %8813 = vmatprep.subr.bf16.mxu0 %v14801_v56  ;;  %v9021_v15 = vmul.f32 %v8257_v16, %v8257_v16  ;;  %v14808_v56 = vld [vmem:[#allocation3 + $0x11e8] ss:$200 sps:$4 sm:$0xff]   ;;  %v15897_v41 = vpop.f32.mrf.mxu1  ;;  %v14813_v16 = vld [vmem:[#allocation3 + $0xc4] ss:$200 sps:$4 sm:$0xff]  }
 0x443   : > { %8719 = vmatprep.subr.bf16.mxu1 %v14804_v59  ;;  %v8207_v53 = vpop.f32.mrf.mxu0  ;;  %17285 = vst [vmem:[#allocation137_spill] sm:$0xff] %v15897_v41  ;;  %v14822_v41 = vld [vmem:[#allocation3 + $0xecc] ss:$200 sps:$4 sm:$0xff]  }
 0x444   : > { %v8261_v37 = vadd.f32 %v8260_v18, %v8207_v53  ;;  %v14816_v18 = vld [vmem:[#allocation3 + $0x105c] ss:$200 sps:$4 sm:$0xff]  }
 0x445   : > { %8814 = vmatpush1.bf16.msra.mxu0 %v14799_v40  ;;  %v15891_v29 = vpop.f32.mrf.mxu0  ;;  %v15899_v40 = vadd.f32 %v9021_v15, %v8921_v1 }
 0x446   : > { %17284 = vst [vmem:[#allocation136_spill] sm:$0xff] %v15891_v29  ;;  %v9046_v19 = vmul.f32 %v8261_v37, %v8261_v37  ;;  %8720 = vmatpush2.bf16.msra.mxu1 %v14802_v24  ;;  %8815 = vmatprep.subr.bf16.mxu0 %v14807_v54  ;;  %v14814_v37 = vld [vmem:[#allocation3 + $0x1058] ss:$200 sps:$4 sm:$0xff]   ;;  %v14819_v54 = vld [vmem:[#allocation3 + $0x1834] ss:$200 sps:$4 sm:$0xff]   ;;  %v8270_v24 = vpop.f32.mrf.mxu1 }
 0x447   : > { %8721 = vmatprep.subr.bf16.mxu1 %v14810_v55  ;;  %v8213_v59 = vpop.f32.mrf.mxu0 }
 0x448   : > { %v15901_v53 = vadd.f32 %v9046_v19, %v8946_v44  ;;  %v8267_v29 = vadd.f32 %v8266_v0, %v8213_v59  ;;  %v14817_v44 = vld [vmem:[#allocation3 + $0x1830] ss:$200 sps:$4 sm:$0xff]   ;;  %v8971_v0 = vmul.f32 %v15443_v28, %v15443_v28  ;;  %v14825_v59 = vld [vmem:[#allocation3 + $0x16a4] ss:$200 sps:$4 sm:$0xff]  }
 0x449   : > { %8816 = vmatpush1.bf16.msra.mxu0 %v14805_v58  ;;  %v15903_v6 = vpop.f32.mrf.mxu0  ;;  %v8996_v58 = vmul.f32 %v15447_v36, %v15447_v36  ;;  %v14826_v28 = vld [vmem:[#allocation3 + $0xd38] ss:$200 sps:$4 sm:$0xff]   ;;  %v14831_v36 = vld [vmem:[#allocation3 + $0x1514] ss:$200 sps:$4 sm:$0xff]  }
 0x44a   : > { %8722 = vmatpush2.bf16.msra.mxu1 %v14808_v56  ;;  %8817 = vmatprep.subr.bf16.mxu0 %v14813_v16  ;;  %v9071_v15 = vmul.f32 %v8267_v29, %v8267_v29  ;;  %v14820_v56 = vld [vmem:[#allocation3 + $0xec8] ss:$200 sps:$4 sm:$0xff]   ;;  %v14828_v16 = vld [vmem:[#allocation3 + $0xd3c] ss:$200 sps:$4 sm:$0xff]  }
 0x44b   : > { %8723 = vmatprep.subr.bf16.mxu1 %v14816_v18  ;;  %v8217_v55 = vpop.f32.mrf.mxu0 }
 0x44c   : > { %v8271_v1 = vadd.f32 %v8270_v24, %v8217_v55  ;;  %v15911_v18 = vadd.f32 %v9071_v15, %v8971_v0  ;;  %v14837_v24 = vld [vmem:[#allocation3 + $0x1384] ss:$200 sps:$4 sm:$0xff]   ;;  %v14835_v15 = vld [vmem:[#allocation3 + $0x1380] ss:$200 sps:$4 sm:$0xff]   ;;  %v14846_v0 = vld [vmem:[#allocation3 + $0x1b54] ss:$200 sps:$4 sm:$0xff]  }
 0x44d   : > { %8818 = vmatpush1.bf16.msra.mxu0 %v14811_v52  ;;  %v14823_v52 = vld [vmem:[#allocation3 + $0x16a0] ss:$200 sps:$4 sm:$0xff]   ;;  %v14840_v55 = vld [vmem:[#allocation3 + $0x1ce4] ss:$200 sps:$4 sm:$0xff]  }
 0x44e   : > { %v9096_v19 = vmul.f32 %v8271_v1, %v8271_v1  ;;  %8724 = vmatpush2.bf16.msra.mxu1 %v14814_v37  ;;  %8819 = vmatprep.subr.bf16.mxu0 %v14819_v54  ;;  %v14834_v37 = vld [vmem:[#allocation3 + $0x1e74] ss:$200 sps:$4 sm:$0xff]   ;;  %v14829_v54 = vld [vmem:[#allocation3 + $0x1510] ss:$200 sps:$4 sm:$0xff]   ;;  %v14838_v1 = vld [vmem:[#allocation3 + $0x1ce0] ss:$200 sps:$4 sm:$0xff]  }
 0x44f   : > { %8725 = vmatprep.subr.bf16.mxu1 %v14822_v41  ;;  %v14832_v41 = vld [vmem:[#allocation3 + $0x1e70] ss:$200 sps:$4 sm:$0xff]  }
 0x450   : > { %v15913_v31 = vadd.f32 %v9096_v19, %v8996_v58  ;;  %v14841_v58 = vld [vmem:[#allocation3 + $0x11f0] ss:$200 sps:$4 sm:$0xff]  }
 0x451   : > { %8820 = vmatpush2.bf16.msra.mxu0 %v14817_v44  ;;  %v14843_v44 = vld [vmem:[#allocation3 + $0x11f4] ss:$200 sps:$4 sm:$0xff]   ;;  %v14844_v19 = vld [vmem:[#allocation3 + $0x1b50] ss:$200 sps:$4 sm:$0xff]  }
 0x452   : > { %v9246_v29 = vpack.c.bf16 %v15913_v31, %v15911_v18  ;;  %8726 = vmatpush2.bf16.msra.mxu1 %v14820_v56  ;;  %8821 = vmatprep.subr.bf16.mxu0 %v14825_v59  ;;  %v14849_v56 = vld [vmem:[#allocation3 + $0x1064] ss:$200 sps:$4 sm:$0xff]   ;;  %v17380_v18 = vld [vmem:[#allocation137_spill] sm:$0xff] }
 0x453   : > { %8727 = vmatprep.subr.bf16.mxu1 %v14828_v16  ;;  %v14852_v59 = vld [vmem:[#allocation3 + $0x19c4] ss:$200 sps:$4 sm:$0xff]   ;;  %v14847_v16 = vld [vmem:[#allocation3 + $0x1060] ss:$200 sps:$4 sm:$0xff]  }
 0x454   : > { %v14975_v31 = vld [vmem:[%s17124_s2 + $0x458] sm:$0xff]  }
 0x455   : > { %8822 = vmatpush2.bf16.msra.mxu0 %v14823_v52  ;;  %v14850_v52 = vld [vmem:[#allocation3 + $0x19c0] ss:$200 sps:$4 sm:$0xff]  }
 0x456   : > { %8728 = vmatpush2.bf16.msra.mxu1 %v14826_v28  ;;  %8823 = vmatprep.subr.bf16.mxu0 %v14831_v36  ;;  %v14855_v28 = vld [vmem:[#allocation3 + $0xed4] ss:$200 sps:$4 sm:$0xff]   ;;  %v14856_v36 = vld [vmem:[%s17124_s2 + $0x78] sm:$0xff]  }
 0x457   : > { %8864 = vmatprep.subr.bf16.mxu1 %v14834_v37  ;;  %v7729_v37 = vadd.f32 %v15651_v3, %v15663_v60  ;;  %v14861_v3 = vld [vmem:[%s17124_s2 + $0x70] sm:$0xff]  }
 0x459   : > { %8730 = vmatmul.mubr.bf16.vlgmr.msra.gmra.mxu1 %v15181_v17  ;;  %8824 = vmatpush2.bf16.msra.mxu0 %v14829_v54  ;;  %v14853_v54 = vld [vmem:[#allocation3 + $0xed0] ss:$200 sps:$4 sm:$0xff]   ;;  %v9035_v60 = vmul.f32 %v7729_v37, %v7729_v37  ;;  %v8914_v37 = vmul.f32 %v15317_v26, %v15317_v26 }
 0x45a   : > { %8739 = vmatprep.mubr.bf16.mxu1 %v15198_v27  ;;  %8865 = vmatpush1.bf16.msra.mxu1 %v14832_v41  ;;  %v14857_v41 = vld [vmem:[%s17124_s2 + $0x38] sm:$0xff]   ;;  %v14873_v26 = vld [vmem:[%s17124_s2 + $0x128] sm:$0xff]  }
 0x45b   : > { %8825 = vmatprep.subr.bf16.mxu0 %v14837_v24  ;;  %8866 = vmatprep.subr.bf16.mxu1 %v14840_v55  ;;  %v14860_v24 = vld [vmem:[#allocation3 + $0xd44] ss:$200 sps:$4 sm:$0xff]   ;;  %v6353_v55 = vadd.f32 %v15253_v48, %v15261_v61  ;;  %v14862_v48 = vld [vmem:[%s17124_s2 + $0x30] sm:$0xff]  }
 0x45c   : > { %v14863_v61 = vld [vmem:[%s17124_s2 + $0x178] sm:$0xff]  }
 0x45d   : > { %8826 = vmatpush2.bf16.msra.mxu0 %v14835_v15  ;;  %v7725_v15 = vadd.f32 %v15645_v63, %v15657_v11  ;;  %v8935_v63 = vmul.f32 %v6353_v55, %v6353_v55  ;;  %v14874_v55 = vld [vmem:[%s17124_s2 + $0x18] sm:$0xff]  }
 0x45e   : > { %8867 = vmatpush1.bf16.msra.mxu1 %v14838_v1  ;;  %8827 = vmatprep.subr.bf16.mxu0 %v14843_v44  ;;  %v15936_v1 = vpop.f32.mrf.mxu0  ;;  %v14858_v44 = vld [vmem:[#allocation3 + $0xd40] ss:$200 sps:$4 sm:$0xff]  }
 0x45f   : > { %8868 = vmatprep.subr.bf16.mxu1 %v14846_v0  ;;  %v9010_v11 = vmul.f32 %v7725_v15, %v7725_v15  ;;  %v7941_v0 = vadd.f32 %v15743_v25, %v15755_v62  ;;  %v14866_v25 = vld [vmem:[%s17124_s2 + $0x28] sm:$0xff]  }
 0x461   : > { %8740 = vmatmul.mubr.bf16.gmra.mxu1 %v15203_v32  ;;  %8828 = vmatpush2.bf16.msra.mxu0 %v14841_v58  ;;  %v8910_v58 = vmul.f32 %v15257_v57, %v15257_v57  ;;  %v9039_v62 = vmul.f32 %v7941_v0, %v7941_v0  ;;  %v14878_v0 = vld [vmem:[%s17124_s2 + $0x10] sm:$0xff]  }
 0x462   : > { %8869 = vmatpush1.bf16.msra.mxu1 %v14844_v19  ;;  %8829 = vmatprep.subr.bf16.mxu0 %v14849_v56  ;;  %v6565_v19 = vadd.f32 %v15313_v13, %v15321_v38  ;;  %v9135_v56 = vadd.f32 %v9035_v60, %v8935_v63  ;;  %v14867_v13 = vld [vmem:[%s17124_s2 + $0x170] sm:$0xff]   ;;  %v14868_v38 = vld [vmem:[%s17124_s2 + $0x60] sm:$0xff]  }
 0x463   : > { %8870 = vmatprep.subr.bf16.mxu1 %v14852_v59  ;;  %8888 = vmatprep.mubr.bf16.mxu1 %v17174_v5  ;;  %v7937_v59 = vadd.f32 %v15737_v33, %v15749_v39  ;;  %v9110_v57 = vadd.f32 %v9010_v11, %v8910_v58  ;;  %v14875_v60 = vld [vmem:[%s17124_s2 + $0x160] sm:$0xff]   ;;  %v14880_v58 = vld [vmem:[%s17124_s2 + $0x48] sm:$0xff]  }
 0x464   : > { %v8939_v33 = vmul.f32 %v6565_v19, %v6565_v19  ;;  %v14877_v11 = vld [vmem:[%s17124_s2 + $0x120] sm:$0xff]   ;;  %v8923_v19 = vmul.f32 %v15468_v42, %v15468_v42  ;;  %v14881_v42 = vld [vmem:[%s17124_s2 + $0x118] sm:$0xff]  }
 0x465   : > { %8830 = vmatpush2.bf16.msra.mxu0 %v14847_v16  ;;  %v8362_v16 = vpop.f32.mrf.mxu0  ;;  %v9014_v39 = vmul.f32 %v7937_v59, %v7937_v59 }
 0x466   : > { %8871 = vmatpush1.bf16.msra.mxu1 %v14850_v52  ;;  %8831 = vmatprep.subr.bf16.mxu0 %v14855_v28  ;;  %v9210_v28 = vpack.c.bf16 %v9135_v56, %v9110_v57  ;;  %v7739_v56 = vadd.f32 %v15673_v30, %v15679_v49  ;;  %v17286_v57 = vld [vmem:[#allocation7_spill] sm:$0xff]  ;;  %v14882_v30 = vld [vmem:[%s17124_s2 + $0x8] sm:$0xff]  }
 0x467   : > { %12964 = vmatprep.subr.bf16.mxu1 %v14856_v36  ;;  %v15971_v52 = vpop.f32.mrf.mxu0  ;;  %v14870_v36 = vld [vmem:[%s17124_s2 + $0x20] sm:$0xff]  }
 0x468   : > { %v17287_v49 = vld [vmem:[#allocation43_spill] sm:$0xff] }
 0x469   : > { %8832 = vmatpush2.bf16.msra.mxu0 %v14853_v54  ;;  %12759 = vmatmul.mubr.msk.bf16.vlgmr.msra.gmra.mxu1 %vm6254_vm3, %v15174_v10  ;;  %v14864_v10 = vld [vmem:[%s17124_s2 + $0x68] sm:$0xff]   ;;  %v9139_v54 = vadd.f32 %v9039_v62, %v8939_v33  ;;  %v6363_v62 = vadd.f32 %v17286_v57, %v15273_v51  ;;  %v14883_v51 = vld [vmem:[%s17124_s2 + $0x150] sm:$0xff]   ;;  %v8948_v33 = vmul.f32 %v17287_v49, %v17287_v49  ;;  %v17295_v49 = vld [vmem:[#allocation103_spill] sm:$0xff] }
 0x46a   : > { %12965 = vmatpush3.bf16.msra.mxu1 %v14857_v41  ;;  %8833 = vmatprep.subr.bf16.mxu0 %v14860_v24  ;;  %v9114_v41 = vadd.f32 %v9014_v39, %v8914_v37  ;;  %v8366_v24 = vpop.f32.mrf.mxu0  ;;  %v9085_v39 = vmul.f32 %v7739_v56, %v7739_v56  ;;  %v17291_v56 = vld [vmem:[#allocation16_spill] sm:$0xff] }
 0x46b   : > { %12966 = vmatprep.subr.bf16.mxu1 %v14861_v3  ;;  %8898 = vmatprep.mubr.bf16.mxu1 %v17174_v5  ;;  %v14865_v5 = vld [vmem:[%s17124_s2 + $0x138] sm:$0xff]  }
 0x46c   : > { %v9214_v3 = vpack.c.bf16 %v9139_v54, %v9114_v41  ;;  %v8985_v54 = vmul.f32 %v6363_v62, %v6363_v62  ;;  %v14885_v41 = vld [vmem:[%s17124_s2 + $0x110] sm:$0xff]   ;;  %v17292_v62 = vld [vmem:[#allocation112_spill] sm:$0xff] }
 0x46d   : > { %8834 = vmatpush2.bf16.msra.mxu0 %v14858_v44  ;;  %v14876_v44 = vld [vmem:[%s17124_s2 + $0x50] sm:$0xff]  }
 0x46e   : > { %12967 = vmatpush3.bf16.msra.mxu1 %v14862_v48  ;;  %13020 = vmatprep.subr.bf16.mxu0 %v14863_v61  ;;  %v16005_v48 = vpop.f32.mrf.mxu0 }
 0x46f   : > { %12968 = vmatprep.subr.bf16.mxu1 %v14864_v10 }
 0x470   : > { %8836 = vmatmul.mubr.bf16.vlgmr.msra.gmra.mxu0 %v15181_v17  ;;  %v14869_v17 = vld [vmem:[%s17124_s2 + $0x130] sm:$0xff]  }
 0x471   : > { %8845 = vmatprep.mubr.bf16.mxu0 %v15198_v27  ;;  %12760 = vmatmul.mubr.msk.bf16.gmra.mxu1 %vm6254_vm3, %v15188_v20  ;;  %v14871_v20 = vld [vmem:[%s17124_s2 + $0x168] sm:$0xff]   ;;  %v14872_v27 = vld [vmem:[%s17124_s2 + $0x58] sm:$0xff]  }
 0x472   : > { %13021 = vmatpush3.bf16.msra.mxu0 %v14865_v5  ;;  %12969 = vmatpush3.bf16.msra.mxu1 %v14866_v25  ;;  %v8372_v5 = vpop.f32.mrf.mxu0 }
 0x473   : > { %10891 = vmatprep.mubr.bf16.mxu1 %v9210_v28  ;;  %13022 = vmatprep.subr.bf16.mxu0 %v14867_v13 }
 0x474   : > { %12970 = vmatprep.subr.bf16.mxu1 %v14868_v38 }
 0x476   : > { %13023 = vmatpush3.bf16.msra.mxu0 %v14869_v17  ;;  %12971 = vmatpush3.bf16.msra.mxu1 %v14870_v36  ;;  %v16047_v36 = vpop.f32.mrf.mxu0 }
 0x477   : > { %13024 = vmatprep.subr.bf16.mxu0 %v14871_v20  ;;  %v15996_v15 = vpop.f32.mrf.mxu1  ;;  %12972 = vmatprep.subr.bf16.mxu1 %v14872_v27 }
 0x478   : > { %8846 = vmatmul.mubr.bf16.gmra.mxu0 %v15203_v32  ;;  %v14879_v32 = vld [vmem:[%s17124_s2 + $0x158] sm:$0xff]  }
 0x479   : > { %10989 = vmatprep.mubr.bf16.mxu0 %v9214_v3  ;;  %v8309_v61 = vpop.f32.mrf.mxu1  ;;  %v17289_v3 = vld [vmem:[#allocation45_spill] sm:$0xff] }
 0x47a   : > { %13025 = vmatpush3.bf16.msra.mxu0 %v14873_v26  ;;  %12973 = vmatpush3.bf16.msra.mxu1 %v14874_v55  ;;  %v8363_v63 = vadd.f32 %v8362_v16, %v8309_v61  ;;  %v7735_v16 = vadd.f32 %v15660_v34, %v15669_v7  ;;  %v14884_v7 = vld [vmem:[%s17124_s2 + $0x40] sm:$0xff]   ;;  %v17288_v26 = vld [vmem:[#allocation6_spill] sm:$0xff]  ;;  %v14887_v61 = vld [vmem:[%s17124_s2 + $0x148] sm:$0xff]  }
 0x47b   : > { %13026 = vmatprep.subr.bf16.mxu0 %v14875_v60  ;;  %v16013_v10 = vpop.f32.mrf.mxu1  ;;  %12974 = vmatprep.subr.bf16.mxu1 %v14876_v44  ;;  %v8960_v55 = vmul.f32 %v17288_v26, %v17288_v26  ;;  %v8973_v60 = vmul.f32 %v17289_v3, %v17289_v3  ;;  %v17298_v26 = vld [vmem:[#allocation94_spill] sm:$0xff] }
 0x47c   : > { %v9023_v59 = vmul.f32 %v8363_v63, %v8363_v63  ;;  %v9060_v17 = vmul.f32 %v7735_v16, %v7735_v16  ;;  %v14888_v63 = vld [vmem:[%s17124_s2 + $0xf8] sm:$0xff]  }
 0x47d   : > { %v8313_v25 = vpop.f32.mrf.mxu1 }
 0x47e   : > { %v16029_v13 = vadd.f32 %v9023_v59, %v8923_v19  ;;  %13027 = vmatpush3.bf16.msra.mxu0 %v14877_v11  ;;  %12975 = vmatpush3.bf16.msra.mxu1 %v14878_v0  ;;  %v8367_v38 = vadd.f32 %v8366_v24, %v8313_v25  ;;  %v14886_v24 = vld [vmem:[%s17124_s2] sm:$0xff]   ;;  %v9185_v11 = vadd.f32 %v9085_v39, %v8985_v54  ;;  %v8376_v25 = vpop.f32.mrf.mxu0 }
 0x47f   : > { %13028 = vmatprep.subr.bf16.mxu0 %v14879_v32  ;;  %v16037_v34 = vpop.f32.mrf.mxu1  ;;  %12976 = vmatprep.subr.bf16.mxu1 %v14880_v58  ;;  %v7951_v0 = vadd.f32 %v15765_v50, %v15771_v46  ;;  %v17290_v19 = vld [vmem:[#allocation15_spill] sm:$0xff]  ;;  %v9160_v16 = vadd.f32 %v9060_v17, %v8960_v55  ;;  %v14889_v46 = vld [vmem:[%s17124_s2 + $0x108] sm:$0xff]  }
 0x480   : > { %v9048_v28 = vmul.f32 %v8367_v38, %v8367_v38  ;;  %v6575_v59 = vadd.f32 %v17291_v56, %v17290_v19  ;;  %v7947_v38 = vadd.f32 %v17292_v62, %v15761_v9  ;;  %v14890_v9 = vld [vmem:[%s17124_s2 + $0xb8] sm:$0xff]   ;;  %v14891_v39 = vld [vmem:[%s17124_s2 + $0x140] sm:$0xff]   ;;  %v17299_v55 = vld [vmem:[#allocation92_spill] sm:$0xff]  ;;  %v8153_v62 = vadd.f32 %v15835_v2, %v15847_v45 }
 0x481   : > { %v8319_v37 = vpop.f32.mrf.mxu1  ;;  %v17300_v3 = vpack.c.bf16 %v17298_v26, %v17299_v55  ;;  %v8149_v2 = vadd.f32 %v15829_v8, %v15841_v4  ;;  %v14899_v4 = vld [vmem:[%s17124_s2 + $0x270] sm:$0xff]   ;;  %v17306_v26 = vld [vmem:[#allocation107_spill] sm:$0xff] }
 0x482   : > { %v16049_v20 = vadd.f32 %v9048_v28, %v8948_v33  ;;  %13029 = vmatpush3.bf16.msra.mxu0 %v14881_v42  ;;  %12977 = vmatpush3.bf16.msra.mxu1 %v14882_v30  ;;  %v8373_v27 = vadd.f32 %v8372_v5, %v8319_v37  ;;  %v7835_v5 = vadd.f32 %v15697_v12, %v15705_v21  ;;  %v17293_v30 = vld [vmem:[#allocation10_spill] sm:$0xff]  ;;  %v17296_v33 = vld [vmem:[#allocation101_spill] sm:$0xff]  ;;  %v17297_v28 = vld [vmem:[#allocation47_spill] sm:$0xff] }
 0x483   : > { %13030 = vmatprep.subr.bf16.mxu0 %v14883_v51  ;;  %v16061_v44 = vpop.f32.mrf.mxu1  ;;  %12978 = vmatprep.subr.bf16.mxu1 %v14884_v7  ;;  %v17294_v51 = vld [vmem:[#allocation8_spill] sm:$0xff]  ;;  %v7831_v21 = vadd.f32 %v17296_v33, %v17295_v49  ;;  %v8998_v17 = vmul.f32 %v17297_v28, %v17297_v28  ;;  %v9089_v37 = vmul.f32 %v7951_v0, %v7951_v0  ;;  %v17303_v49 = vld [vmem:[#allocation25_spill] sm:$0xff]  ;;  %v17304_v33 = vld [vmem:[#allocation23_spill] sm:$0xff] }
 0x484   : > { %v9223_v32 = vpack.c.bf16 %v16049_v20, %v16029_v13  ;;  %v9073_v58 = vmul.f32 %v8373_v27, %v8373_v27  ;;  %v6459_v7 = vadd.f32 %v17294_v51, %v17293_v30  ;;  %v9235_v27 = vpack.c.bf16 %v9185_v11, %v9160_v16  ;;  %v14893_v11 = vld [vmem:[%s17124_s2 + $0x100] sm:$0xff]   ;;  %v14894_v16 = vld [vmem:[%s17124_s2 + $0xb0] sm:$0xff]   ;;  %v17407_v13 = vld [vmem:[#allocation62_spill] sm:$0xff] }
 0x485   : > { %v8323_v57 = vpop.f32.mrf.mxu1  ;;  %v9012_v19 = vmul.f32 %v7831_v21, %v7831_v21  ;;  %v6777_v21 = vadd.f32 %v17304_v33, %v17303_v49  ;;  %v8928_v20 = vmul.f32 %v17407_v13, %v17407_v13 }
 0x486   : > { %v16079_v42 = vadd.f32 %v9073_v58, %v8973_v60  ;;  %13031 = vmatpush3.bf16.msra.mxu0 %v14885_v41  ;;  %12979 = vmatpush3.bf16.msra.mxu1 %v14886_v24  ;;  %v8377_v50 = vadd.f32 %v8376_v25, %v8323_v57  ;;  %v14892_v41 = vld [vmem:[%s17124_s2 + $0xf0] sm:$0xff]   ;;  %v9037_v24 = vmul.f32 %v7835_v5, %v7835_v5  ;;  %v17301_v5 = vld [vmem:[#allocation14_spill] sm:$0xff] }
 0x487   : > { %13032 = vmatprep.subr.bf16.mxu0 %v14887_v61  ;;  %v16088_v12 = vpop.f32.mrf.mxu1  ;;  %12992 = vmatprep.subr.bf16.mxu1 %v14888_v63  ;;  %v8989_v61 = vmul.f32 %v6575_v59, %v6575_v59  ;;  %v9064_v63 = vmul.f32 %v7947_v38, %v7947_v38  ;;  %v8937_v0 = vmul.f32 %v6459_v7, %v6459_v7  ;;  %v14895_v59 = vld [vmem:[%s17124_s2 + $0x278] sm:$0xff]  }
 0x488   : > { %v9098_v54 = vmul.f32 %v8377_v50, %v8377_v50  ;;  %v8964_v25 = vmul.f32 %v17301_v5, %v17301_v5  ;;  %v14896_v50 = vld [vmem:[%s17124_s2 + $0xe8] sm:$0xff]   ;;  %v14901_v5 = vld [vmem:[%s17124_s2 + $0x230] sm:$0xff]  }
 0x489   : > { %10892 = vmatmul.mubr.bf16.vlgmr.msra.gmra.mxu1 %v17300_v3  ;;  %v8468_v60 = vpop.f32.mrf.mxu1  ;;  %v9189_v57 = vadd.f32 %v9089_v37, %v8989_v61  ;;  %v9137_v51 = vadd.f32 %v9037_v24, %v8937_v0  ;;  %v9043_v37 = vmul.f32 %v8153_v62, %v8153_v62  ;;  %v17305_v24 = vld [vmem:[#allocation108_spill] sm:$0xff]  ;;  %v17308_v3 = vld [vmem:[#allocation97_spill] sm:$0xff] }
 0x48a   : > { %v16104_v58 = vadd.f32 %v9098_v54, %v8998_v17  ;;  %13033 = vmatpush3.bf16.msra.mxu0 %v14889_v46  ;;  %10899 = vmatprep.mubr.bf16.mxu1 %v9235_v27  ;;  %v17302_v46 = vld [vmem:[#allocation9_spill] sm:$0xff]  ;;  %v14898_v17 = vld [vmem:[%s17124_s2 + $0xa8] sm:$0xff]   ;;  %v17307_v55 = vpack.c.bf16 %v17305_v24, %v17306_v26  ;;  %v14907_v24 = vld [vmem:[%s17124_s2 + $0x260] sm:$0xff]  }
 0x48b   : > { %12993 = vmatpush3.bf16.msra.mxu1 %v14890_v9  ;;  %13034 = vmatprep.subr.bf16.mxu0 %v14891_v39  ;;  %v16109_v56 = vpop.f32.mrf.mxu1  ;;  %v8912_v30 = vmul.f32 %v17302_v46, %v17302_v46  ;;  %v9164_v9 = vadd.f32 %v9064_v63, %v8964_v25  ;;  %v14897_v39 = vld [vmem:[%s17124_s2 + $0x238] sm:$0xff]   ;;  %v17309_v61 = vld [vmem:[#allocation96_spill] sm:$0xff]  ;;  %v14902_v25 = vld [vmem:[%s17124_s2 + $0xa0] sm:$0xff]  }
 0x48c   : > { %v9248_v38 = vpack.c.bf16 %v16104_v58, %v16079_v42  ;;  %12994 = vmatprep.subr.bf16.mxu1 %v14892_v41  ;;  %v14900_v41 = vld [vmem:[%s17124_s2 + $0xe0] sm:$0xff]   ;;  %v17310_v63 = vpack.c.bf16 %v17308_v3, %v17309_v61  ;;  %v14908_v26 = vld [vmem:[%s17124_s2 + $0xd0] sm:$0xff]  }
 0x48d   : > { %v8472_v7 = vpop.f32.mrf.mxu1  ;;  %v9112_v28 = vadd.f32 %v9012_v19, %v8912_v30  ;;  %v9239_v27 = vpack.c.bf16 %v9189_v57, %v9164_v9  ;;  %v8943_v19 = vmul.f32 %v6777_v21, %v6777_v21  ;;  %v17311_v57 = vld [vmem:[#allocation24_spill] sm:$0xff]  ;;  %v17314_v61 = vld [vmem:[#allocation111_spill] sm:$0xff]  ;;  %v15025_v42 = vld [vmem:[%s17124_s2 + $0x4d0] sm:$0xff]  }
 0x48e   : > { %13035 = vmatpush3.bf16.msra.mxu0 %v14893_v11  ;;  %v16132_v45 = vpop.f32.mrf.mxu0  ;;  %v8918_v62 = vmul.f32 %v17311_v57, %v17311_v57 }
 0x48f   : > { %12995 = vmatpush3.bf16.msra.mxu1 %v14894_v16  ;;  %13076 = vmatprep.subr.bf16.mxu0 %v14895_v59  ;;  %v16140_v54 = vpop.f32.mrf.mxu1  ;;  %v9212_v0 = vpack.c.bf16 %v9137_v51, %v9112_v28  ;;  %v9018_v16 = vmul.f32 %v8149_v2, %v8149_v2  ;;  %v14904_v51 = vld [vmem:[%s17124_s2 + $0xd8] sm:$0xff]   ;;  %v14905_v2 = vld [vmem:[%s17124_s2 + $0x228] sm:$0xff]  }
 0x490   : > { %12996 = vmatprep.subr.bf16.mxu1 %v14896_v50  ;;  %v8415_v8 = vpop.f32.mrf.mxu0  ;;  %v9143_v50 = vadd.f32 %v9043_v37, %v8943_v19 }
 0x491   : > { %10990 = vmatmul.mubr.bf16.vlgmr.msra.gmra.mxu0 %v17307_v55  ;;  %10900 = vmatmul.mubr.bf16.gmra.mxu1 %v17310_v63  ;;  %v8469_v11 = vadd.f32 %v8468_v60, %v8415_v8  ;;  %v14903_v60 = vld [vmem:[%s17124_s2 + $0x268] sm:$0xff]   ;;  %v8478_v46 = vpop.f32.mrf.mxu1  ;;  %v9118_v21 = vadd.f32 %v9018_v16, %v8918_v62  ;;  %v17315_v63 = vld [vmem:[#allocation110_spill] sm:$0xff]  ;;  %v14909_v16 = vld [vmem:[%s17124_s2 + $0x220] sm:$0xff]  }
 0x492   : > { %10997 = vmatprep.mubr.bf16.mxu0 %v9239_v27  ;;  %13077 = vmatpush3.bf16.msra.mxu0 %v14897_v39  ;;  %v16154_v59 = vpop.f32.mrf.mxu0  ;;  %v17312_v39 = vld [vmem:[#allocation51_spill] sm:$0xff] }
 0x493   : > { %12997 = vmatpush3.bf16.msra.mxu1 %v14898_v17  ;;  %10940 = vmatprep.mubr.bf16.mxu1 %v9212_v0  ;;  %v9025_v49 = vmul.f32 %v8469_v11, %v8469_v11  ;;  %v8925_v28 = vmul.f32 %v17312_v39, %v17312_v39  ;;  %v17313_v17 = vld [vmem:[#allocation53_spill] sm:$0xff]  ;;  %v16182_v8 = vpop.f32.mrf.mxu1  ;;  %v17316_v11 = vpack.c.bf16 %v17314_v61, %v17315_v63  ;;  %v14914_v61 = vld [vmem:[%s17124_s2 + $0x88] sm:$0xff]  }
 0x494   : > { %13078 = vmatprep.subr.bf16.mxu0 %v14899_v4  ;;  %12998 = vmatprep.subr.bf16.mxu1 %v14900_v41  ;;  %v8419_v30 = vpop.f32.mrf.mxu0  ;;  %v8950_v37 = vmul.f32 %v17313_v17, %v17313_v17  ;;  %v9218_v4 = vpack.c.bf16 %v9143_v50, %v9118_v21  ;;  %v14912_v50 = vld [vmem:[%s17124_s2 + $0xc8] sm:$0xff]   ;;  %v14915_v63 = vld [vmem:[%s17124_s2 + $0x250] sm:$0xff]  }
 0x495   : > { %v8473_v33 = vadd.f32 %v8472_v7, %v8419_v30  ;;  %v14906_v7 = vld [vmem:[%s17124_s2 + $0x98] sm:$0xff]   ;;  %v16190_v55 = vadd.f32 %v9025_v49, %v8925_v28  ;;  %v8482_v57 = vpop.f32.mrf.mxu1  ;;  %v17319_v21 = vld [vmem:[#allocation12_spill] sm:$0xff]  ;;  %v17321_v28 = vld [vmem:[#allocation55_spill] sm:$0xff] }
 0x496   : > { %13079 = vmatpush3.bf16.msra.mxu0 %v14901_v5  ;;  %v16170_v9 = vpop.f32.mrf.mxu0  ;;  %v17318_v30 = vld [vmem:[#allocation106_spill] sm:$0xff]  ;;  %v8975_v17 = vmul.f32 %v17321_v28, %v17321_v28  ;;  %v17327_v28 = vld [vmem:[#allocation28_spill] sm:$0xff] }
 0x497   : > { %v9050_v27 = vmul.f32 %v8473_v33, %v8473_v33  ;;  %12999 = vmatpush3.bf16.msra.mxu1 %v14902_v25  ;;  %13080 = vmatprep.subr.bf16.mxu0 %v14903_v60  ;;  %v14910_v25 = vld [vmem:[%s17124_s2 + $0x90] sm:$0xff]   ;;  %v14911_v60 = vld [vmem:[%s17124_s2 + $0x258] sm:$0xff]  }
 0x498   : > { %13000 = vmatprep.subr.bf16.mxu1 %v14904_v51  ;;  %v8425_v41 = vpop.f32.mrf.mxu0 }
 0x499   : > { %v16192_v3 = vadd.f32 %v9050_v27, %v8950_v37  ;;  %10998 = vmatmul.mubr.bf16.gmra.mxu0 %v17316_v11  ;;  %v8479_v0 = vadd.f32 %v8478_v46, %v8425_v41  ;;  %v17317_v46 = vld [vmem:[#allocation109_spill] sm:$0xff]  ;;  %v14913_v37 = vld [vmem:[%s17124_s2 + $0x218] sm:$0xff]   ;;  %v17324_v41 = vld [vmem:[#allocation104_spill] sm:$0xff] }
 0x49a   : > { %13081 = vmatpush3.bf16.msra.mxu0 %v14905_v2  ;;  %11087 = vmatprep.mubr.bf16.mxu0 %v9218_v4  ;;  %v16197_v19 = vpop.f32.mrf.mxu0  ;;  %v7845_v51 = vadd.f32 %v17318_v30, %v17317_v46  ;;  %v17320_v2 = vld [vmem:[#allocation13_spill] sm:$0xff]  ;;  %v14916_v11 = vld [vmem:[%s17124_s2 + $0xc0] sm:$0xff]   ;;  %v14919_v30 = vld [vmem:[%s17124_s2 + $0x248] sm:$0xff]  }
 0x49b   : > { %v9225_v5 = vpack.c.bf16 %v16192_v3, %v16190_v55  ;;  %13001 = vmatpush3.bf16.msra.mxu1 %v14906_v7  ;;  %13082 = vmatprep.subr.bf16.mxu0 %v14907_v24  ;;  %v9075_v49 = vmul.f32 %v8479_v0, %v8479_v0  ;;  %v6469_v39 = vadd.f32 %v17320_v2, %v17319_v21  ;;  %v17322_v27 = vld [vmem:[#allocation57_spill] sm:$0xff]  ;;  %v14994_v55 = vld [vmem:[%s17124_s2 + $0x3a0] sm:$0xff]   ;;  %v14995_v3 = vld [vmem:[%s17124_s2 + $0x3d8] sm:$0xff]  }
 0x49c   : > { %13002 = vmatprep.subr.bf16.mxu1 %v14908_v26  ;;  %v8429_v62 = vpop.f32.mrf.mxu0  ;;  %v9000_v7 = vmul.f32 %v17322_v27, %v17322_v27  ;;  %v17323_v4 = vld [vmem:[#allocation105_spill] sm:$0xff]  ;;  %v9087_v0 = vmul.f32 %v7845_v51, %v7845_v51  ;;  %v8163_v51 = vadd.f32 %v15857_v35, %v15863_v43  ;;  %v14921_v35 = vld [vmem:[%s17124_s2 + $0x208] sm:$0xff]   ;;  %v17330_v43 = vld [vmem:[#allocation19_spill] sm:$0xff] }
 0x49d   : > { %v8483_v33 = vadd.f32 %v8482_v57, %v8429_v62  ;;  %v7841_v24 = vadd.f32 %v17324_v41, %v17323_v4  ;;  %v17331_v41 = vld [vmem:[#allocation17_spill] sm:$0xff] }
 0x49e   : > { %13083 = vmatpush3.bf16.msra.mxu0 %v14909_v16  ;;  %v16235_v16 = vadd.f32 %v9075_v49, %v8975_v17  ;;  %v14920_v49 = vld [vmem:[%s17124_s2 + $0x1f8] sm:$0xff]  }
 0x49f   : > { %v9100_v26 = vmul.f32 %v8483_v33, %v8483_v33  ;;  %13003 = vmatpush3.bf16.msra.mxu1 %v14910_v25  ;;  %13084 = vmatprep.subr.bf16.mxu0 %v14911_v60  ;;  %v14917_v25 = vld [vmem:[%s17124_s2 + $0x210] sm:$0xff]   ;;  %v8987_v60 = vmul.f32 %v6469_v39, %v6469_v39  ;;  %v9062_v62 = vmul.f32 %v7841_v24, %v7841_v24  ;;  %v17325_v33 = vld [vmem:[#allocation11_spill] sm:$0xff] }
 0x4a0   : > { %13004 = vmatprep.subr.bf16.mxu1 %v14912_v50  ;;  %v14918_v50 = vld [vmem:[%s17124_s2 + $0x80] sm:$0xff]   ;;  %v8962_v21 = vmul.f32 %v17325_v33, %v17325_v33  ;;  %v6671_v24 = vadd.f32 %v17331_v41, %v17330_v43  ;;  %v17338_v43 = vld [vmem:[#allocation18_spill] sm:$0xff] }
 0x4a1   : > { %v16237_v57 = vadd.f32 %v9100_v26, %v9000_v7  ;;  %v9187_v2 = vadd.f32 %v9087_v0, %v8987_v60  ;;  %v17326_v39 = vld [vmem:[#allocation27_spill] sm:$0xff]  ;;  %v17329_v7 = vld [vmem:[#allocation128_spill] sm:$0xff]  ;;  %v9093_v0 = vmul.f32 %v8163_v51, %v8163_v51  ;;  %v8916_v41 = vmul.f32 %v17338_v43, %v17338_v43 }
 0x4a2   : > { %13085 = vmatpush3.bf16.msra.mxu0 %v14913_v37  ;;  %v6787_v17 = vadd.f32 %v17327_v28, %v17326_v39  ;;  %v17328_v37 = vld [vmem:[#allocation118_spill] sm:$0xff]  ;;  %v8159_v4 = vadd.f32 %v17329_v7, %v15853_v22  ;;  %v9162_v26 = vadd.f32 %v9062_v62, %v8962_v21  ;;  %v14923_v22 = vld [vmem:[%s17124_s2 + $0x240] sm:$0xff]   ;;  %v14937_v43 = vld [vmem:[%s17124_s2 + $0x328] sm:$0xff]  }
 0x4a3   : > { %v9250_v46 = vpack.c.bf16 %v16237_v57, %v16235_v16  ;;  %13005 = vmatpush3.bf16.msra.mxu1 %v14914_v61  ;;  %13086 = vmatprep.subr.bf16.mxu0 %v14915_v63  ;;  %v8047_v27 = vadd.f32 %v17328_v37, %v15797_v14  ;;  %v14922_v61 = vld [vmem:[%s17124_s2 + $0x1b8] sm:$0xff]   ;;  %v17332_v63 = vld [vmem:[#allocation119_spill] sm:$0xff]  ;;  %v17333_v14 = vld [vmem:[#allocation116_spill] sm:$0xff]  ;;  %v8481_v57 = vadd.f32 %v16182_v8, %v16197_v19 }
 0x4a4   : > { %13006 = vmatprep.subr.bf16.mxu1 %v14916_v11  ;;  %v8043_v11 = vadd.f32 %v17333_v14, %v17332_v63  ;;  %v9237_v60 = vpack.c.bf16 %v9187_v2, %v9162_v26  ;;  %v8993_v62 = vmul.f32 %v6787_v17, %v6787_v17  ;;  %v17334_v33 = vld [vmem:[#allocation99_spill] sm:$0xff]  ;;  %v17335_v21 = vld [vmem:[#allocation98_spill] sm:$0xff]  ;;  %v14926_v2 = vld [vmem:[%s17124_s2 + $0x1b0] sm:$0xff]  }
 0x4a5   : > { %v17336_v39 = vpack.c.bf16 %v17334_v33, %v17335_v21  ;;  %v14925_v51 = vld [vmem:[%s17124_s2 + $0x200] sm:$0xff]   ;;  %v17337_v28 = vld [vmem:[#allocation26_spill] sm:$0xff] }
 0x4a6   : > { %13087 = vmatpush3.bf16.msra.mxu0 %v14917_v25  ;;  %v14924_v25 = vld [vmem:[%s17124_s2 + $0x1f0] sm:$0xff]   ;;  %v8968_v37 = vmul.f32 %v17337_v28, %v17337_v28  ;;  %v14927_v17 = vld [vmem:[%s17124_s2 + $0x378] sm:$0xff]   ;;  %v9193_v7 = vadd.f32 %v9093_v0, %v8993_v62  ;;  %v17340_v26 = vld [vmem:[#allocation35_spill] sm:$0xff] }
 0x4a7   : > { %13007 = vmatpush3.bf16.msra.mxu1 %v14918_v50  ;;  %13088 = vmatprep.subr.bf16.mxu0 %v14919_v30  ;;  %v9041_v50 = vmul.f32 %v8047_v27, %v8047_v27  ;;  %v9068_v30 = vmul.f32 %v8159_v4, %v8159_v4  ;;  %v9016_v27 = vmul.f32 %v8043_v11, %v8043_v11  ;;  %v17344_v21 = vld [vmem:[#allocation102_spill] sm:$0xff]  ;;  %v14933_v28 = vld [vmem:[%s17124_s2 + $0x330] sm:$0xff]   ;;  %v15016_v16 = vld [vmem:[%s17124_s2 + $0x520] sm:$0xff]  }
 0x4a8   : > { %13048 = vmatprep.subr.bf16.mxu1 %v14920_v49  ;;  %v8941_v49 = vmul.f32 %v6671_v24, %v6671_v24  ;;  %v8365_v4 = vadd.f32 %v15971_v52, %v16013_v10  ;;  %v17339_v24 = vld [vmem:[#allocation37_spill] sm:$0xff]  ;;  %v8361_v11 = vadd.f32 %v15936_v1, %v15996_v15  ;;  %v14929_v52 = vld [vmem:[%s17124_s2 + $0x338] sm:$0xff]   ;;  %v14930_v10 = vld [vmem:[%s17124_s2 + $0x1a8] sm:$0xff]  }
 0x4a9   : > { %v9168_v14 = vadd.f32 %v9068_v30, %v8968_v37  ;;  %v9116_v0 = vadd.f32 %v9016_v27, %v8916_v41  ;;  %v17341_v1 = vld [vmem:[#allocation124_spill] sm:$0xff]  ;;  %v17342_v15 = vld [vmem:[#allocation123_spill] sm:$0xff]  ;;  %v14938_v41 = vld [vmem:[%s17124_s2 + $0x198] sm:$0xff]  }
 0x4aa   : > { %10941 = vmatmul.mubr.bf16.vlgmr.msra.gmra.mxu1 %v17336_v39  ;;  %13089 = vmatpush3.bf16.msra.mxu0 %v14921_v35  ;;  %v14928_v35 = vld [vmem:[%s17124_s2 + $0x1e8] sm:$0xff]   ;;  %v9141_v63 = vadd.f32 %v9041_v50, %v8941_v49  ;;  %v17343_v62 = vpack.c.bf16 %v17341_v1, %v17342_v15  ;;  %v14932_v50 = vld [vmem:[%s17124_s2 + $0x1e0] sm:$0xff]   ;;  %v9022_v33 = vmul.f32 %v8361_v11, %v8361_v11  ;;  %v17352_v1 = vld [vmem:[#allocation122_spill] sm:$0xff] }
 0x4ab   : > { %10948 = vmatprep.mubr.bf16.mxu1 %v9237_v60  ;;  %13049 = vmatpush3.bf16.msra.mxu1 %v14922_v61  ;;  %v6989_v61 = vadd.f32 %v17340_v26, %v17339_v24  ;;  %v14931_v60 = vld [vmem:[%s17124_s2 + $0x370] sm:$0xff]   ;;  %v17345_v39 = vld [vmem:[#allocation100_spill] sm:$0xff]  ;;  %v14934_v37 = vld [vmem:[%s17124_s2 + $0x1a0] sm:$0xff]  }
 0x4ac   : > { %13090 = vmatprep.subr.bf16.mxu0 %v14923_v22  ;;  %13050 = vmatprep.subr.bf16.mxu1 %v14924_v25  ;;  %v9047_v22 = vmul.f32 %v8365_v4, %v8365_v4  ;;  %v9243_v25 = vpack.c.bf16 %v9193_v7, %v9168_v14  ;;  %v9216_v49 = vpack.c.bf16 %v9141_v63, %v9116_v0  ;;  %v14935_v7 = vld [vmem:[%s17124_s2 + $0x368] sm:$0xff]   ;;  %v14936_v4 = vld [vmem:[%s17124_s2 + $0x1d8] sm:$0xff]   ;;  %v14939_v26 = vld [vmem:[%s17124_s2 + $0x360] sm:$0xff]  }
 0x4ad   : > { %v8947_v30 = vmul.f32 %v6989_v61, %v6989_v61  ;;  %v14940_v61 = vld [vmem:[%s17124_s2 + $0x1d0] sm:$0xff]   ;;  %v17348_v63 = vld [vmem:[#allocation127_spill] sm:$0xff]  ;;  %v17349_v14 = vld [vmem:[#allocation126_spill] sm:$0xff] }
 0x4ae   : > { %13091 = vmatpush3.bf16.msra.mxu0 %v14925_v51  ;;  %v17346_v51 = vpack.c.bf16 %v17344_v21, %v17345_v39  ;;  %v17350_v11 = vpack.c.bf16 %v17348_v63, %v17349_v14  ;;  %v14942_v0 = vld [vmem:[%s17124_s2 + $0x190] sm:$0xff]   ;;  %v17356_v39 = vld [vmem:[#allocation120_spill] sm:$0xff]  ;;  %v8375_v14 = vadd.f32 %v16047_v36, %v16061_v44  ;;  %v17362_v44 = vld [vmem:[#allocation134_spill] sm:$0xff] }
 0x4af   : > { %13051 = vmatpush3.bf16.msra.mxu1 %v14926_v2  ;;  %13132 = vmatprep.subr.bf16.mxu0 %v14927_v17  ;;  %v17347_v2 = vld [vmem:[#allocation36_spill] sm:$0xff]  ;;  %v9147_v27 = vadd.f32 %v9047_v22, %v8947_v30  ;;  %v14943_v22 = vld [vmem:[%s17124_s2 + $0x358] sm:$0xff]   ;;  %v17355_v21 = vld [vmem:[#allocation121_spill] sm:$0xff] }
 0x4b0   : > { %13052 = vmatprep.subr.bf16.mxu1 %v14928_v35  ;;  %v8922_v17 = vmul.f32 %v17347_v2, %v17347_v2  ;;  %v17354_v30 = vld [vmem:[#allocation22_spill] sm:$0xff]  ;;  %v14948_v2 = vld [vmem:[%s17124_s2 + $0x1c0] sm:$0xff]  }
 0x4b1   : > { %11088 = vmatmul.mubr.bf16.vlgmr.msra.gmra.mxu0 %v17343_v62  ;;  %v15001_v8 = vld [vmem:[%s17124_s2 + $0x3c0] sm:$0xff]   ;;  %v15020_v19 = vld [vmem:[%s17124_s2 + $0x518] sm:$0xff]  }
 0x4b2   : > { %10949 = vmatmul.mubr.bf16.gmra.mxu1 %v17346_v51  ;;  %11095 = vmatprep.mubr.bf16.mxu0 %v9243_v25  ;;  %v9122_v35 = vadd.f32 %v9022_v33, %v8922_v17  ;;  %v14944_v25 = vld [vmem:[%s17124_s2 + $0x1c8] sm:$0xff]   ;;  %v8053_v51 = vadd.f32 %v17356_v39, %v17355_v21  ;;  %v14954_v21 = vld [vmem:[%s17124_s2 + $0x2b8] sm:$0xff]  }
 0x4b3   : > { %13133 = vmatpush3.bf16.msra.mxu0 %v14929_v52  ;;  %13053 = vmatpush3.bf16.msra.mxu1 %v14930_v10  ;;  %v16351_v52 = vpop.f32.mrf.mxu0  ;;  %v14941_v10 = vld [vmem:[%s17124_s2 + $0x320] sm:$0xff]  }
 0x4b4   : > { %11038 = vmatprep.mubr.bf16.mxu1 %v9216_v49  ;;  %13134 = vmatprep.subr.bf16.mxu0 %v14931_v60  ;;  %v9222_v24 = vpack.c.bf16 %v9147_v27, %v9122_v35  ;;  %v17351_v60 = vld [vmem:[#allocation125_spill] sm:$0xff]  ;;  %v14945_v49 = vld [vmem:[%s17124_s2 + $0x318] sm:$0xff]  }
 0x4b5   : > { %13054 = vmatprep.subr.bf16.mxu1 %v14932_v50  ;;  %v8057_v15 = vadd.f32 %v17352_v1, %v17351_v60  ;;  %v8574_v62 = vpop.f32.mrf.mxu0  ;;  %v17353_v50 = vld [vmem:[#allocation21_spill] sm:$0xff]  ;;  %v8371_v1 = vadd.f32 %v16005_v48, %v16037_v34  ;;  %v14955_v48 = vld [vmem:[%s17124_s2 + $0x340] sm:$0xff]   ;;  %v9097_v34 = vmul.f32 %v8375_v14, %v8375_v14 }
 0x4b6   : > { %v6681_v33 = vadd.f32 %v17354_v30, %v17353_v50  ;;  %v14949_v35 = vld [vmem:[%s17124_s2 + $0x310] sm:$0xff]   ;;  %v17360_v50 = vld [vmem:[#allocation31_spill] sm:$0xff] }
 0x4b7   : > { %13135 = vmatpush3.bf16.msra.mxu0 %v14933_v28  ;;  %13055 = vmatpush3.bf16.msra.mxu1 %v14934_v37  ;;  %v14946_v28 = vld [vmem:[%s17124_s2 + $0x188] sm:$0xff]   ;;  %v14947_v37 = vld [vmem:[%s17124_s2 + $0x350] sm:$0xff]   ;;  %v9091_v17 = vmul.f32 %v8057_v15, %v8057_v15  ;;  %v8576_v27 = vpop.f32.mrf.mxu0 }
 0x4b8   : > { %13136 = vmatprep.subr.bf16.mxu0 %v14935_v7  ;;  %13056 = vmatprep.subr.bf16.mxu1 %v14936_v4  ;;  %v8991_v7 = vmul.f32 %v6681_v33, %v6681_v33  ;;  %v9066_v4 = vmul.f32 %v8053_v51, %v8053_v51  ;;  %v14953_v15 = vld [vmem:[%s17124_s2 + $0x308] sm:$0xff]   ;;  %v17361_v30 = vld [vmem:[#allocation29_spill] sm:$0xff] }
 0x4b9   : > { %11096 = vmatmul.mubr.bf16.gmra.mxu0 %v17350_v11  ;;  %v8259_v11 = vadd.f32 %v15881_v23, %v15889_v47  ;;  %v6883_v36 = vadd.f32 %v17361_v30, %v17360_v50  ;;  %v17363_v33 = vld [vmem:[#allocation132_spill] sm:$0xff]  ;;  %v14956_v51 = vld [vmem:[%s17124_s2 + $0x2f0] sm:$0xff]   ;;  %v17369_v50 = vld [vmem:[#allocation30_spill] sm:$0xff] }
 0x4ba   : > { %11185 = vmatprep.mubr.bf16.mxu0 %v9222_v24  ;;  %v14952_v24 = vld [vmem:[%s17124_s2 + $0x2f8] sm:$0xff]   ;;  %v9191_v63 = vadd.f32 %v9091_v17, %v8991_v7  ;;  %v8255_v47 = vadd.f32 %v17363_v33, %v17362_v44  ;;  %v8920_v30 = vmul.f32 %v17369_v50, %v17369_v50  ;;  %v14967_v50 = vld [vmem:[%s17124_s2 + $0x468] sm:$0xff]  }
 0x4bb   : > { %13137 = vmatpush3.bf16.msra.mxu0 %v14937_v43  ;;  %13057 = vmatpush3.bf16.msra.mxu1 %v14938_v41  ;;  %v14950_v43 = vld [vmem:[%s17124_s2 + $0x180] sm:$0xff]   ;;  %v14951_v41 = vld [vmem:[%s17124_s2 + $0x348] sm:$0xff]   ;;  %v17371_v44 = vld [vmem:[#allocation50_spill] sm:$0xff] }
 0x4bc   : > { %13138 = vmatprep.subr.bf16.mxu0 %v14939_v26  ;;  %13058 = vmatprep.subr.bf16.mxu1 %v14940_v61  ;;  %v17357_v26 = vld [vmem:[#allocation20_spill] sm:$0xff] }
 0x4bd   : > { %v8966_v61 = vmul.f32 %v17357_v26, %v17357_v26  ;;  %v17367_v26 = vld [vmem:[#allocation38_spill] sm:$0xff] }
 0x4bf   : > { %13139 = vmatpush3.bf16.msra.mxu0 %v14941_v10  ;;  %13059 = vmatpush3.bf16.msra.mxu1 %v14942_v0  ;;  %v8578_v10 = vpop.f32.mrf.mxu0  ;;  %v17358_v0 = vld [vmem:[#allocation39_spill] sm:$0xff]  ;;  %v9166_v60 = vadd.f32 %v9066_v4, %v8966_v61  ;;  %v8972_v61 = vmul.f32 %v17367_v26, %v17367_v26  ;;  %v17374_v26 = vld [vmem:[#allocation117_spill] sm:$0xff] }
 0x4c0   : > { %13140 = vmatprep.subr.bf16.mxu0 %v14943_v22  ;;  %13060 = vmatprep.subr.bf16.mxu1 %v14944_v25  ;;  %v17359_v22 = vld [vmem:[#allocation40_spill] sm:$0xff] }
 0x4c1   : > { %v6999_v25 = vadd.f32 %v17359_v22, %v17358_v0  ;;  %v9241_v39 = vpack.c.bf16 %v9191_v63, %v9166_v60  ;;  %v9020_v63 = vmul.f32 %v8255_v47, %v8255_v47  ;;  %v17368_v0 = vld [vmem:[#allocation61_spill] sm:$0xff] }
 0x4c2   : > { %v8927_v22 = vmul.f32 %v17368_v0, %v17368_v0 }
 0x4c3   : > { %13141 = vmatpush3.bf16.msra.mxu0 %v14945_v49  ;;  %13061 = vmatpush3.bf16.msra.mxu1 %v14946_v28  ;;  %v9045_v49 = vmul.f32 %v8259_v11, %v8259_v11  ;;  %v16421_v28 = vpop.f32.mrf.mxu0  ;;  %v8997_v4 = vmul.f32 %v6999_v25, %v6999_v25  ;;  %v14958_v11 = vld [vmem:[%s17124_s2 + $0x2b0] sm:$0xff]  }
 0x4c4   : > { %13142 = vmatprep.subr.bf16.mxu0 %v14947_v37  ;;  %13062 = vmatprep.subr.bf16.mxu1 %v14948_v2  ;;  %v17364_v37 = vld [vmem:[#allocation114_spill] sm:$0xff]  ;;  %v17365_v2 = vld [vmem:[#allocation113_spill] sm:$0xff] }
 0x4c5   : > { %v17366_v17 = vpack.c.bf16 %v17364_v37, %v17365_v2  ;;  %v9197_v25 = vadd.f32 %v9097_v34, %v8997_v4  ;;  %v9120_v2 = vadd.f32 %v9020_v63, %v8920_v30  ;;  %v17378_v30 = vld [vmem:[#allocation65_spill] sm:$0xff] }
 0x4c7   : > { %13143 = vmatpush3.bf16.msra.mxu0 %v14949_v35  ;;  %13063 = vmatpush3.bf16.msra.mxu1 %v14950_v43  ;;  %v9072_v35 = vmul.f32 %v8371_v1, %v8371_v1 }
 0x4c8   : > { %13144 = vmatprep.subr.bf16.mxu0 %v14951_v41  ;;  %v8519_v23 = vpop.f32.mrf.mxu1  ;;  %13104 = vmatprep.subr.bf16.mxu1 %v14952_v24  ;;  %v14957_v41 = vld [vmem:[%s17124_s2 + $0x300] sm:$0xff]   ;;  %v8945_v24 = vmul.f32 %v6883_v36, %v6883_v36  ;;  %v17370_v36 = vld [vmem:[#allocation54_spill] sm:$0xff] }
 0x4c9   : > { %v7201_v33 = vadd.f32 %v17371_v44, %v17370_v36  ;;  %v8573_v37 = vadd.f32 %v16351_v52, %v8519_v23  ;;  %v8977_v36 = vmul.f32 %v17378_v30, %v17378_v30 }
 0x4ca   : > { %11039 = vmatmul.mubr.bf16.vlgmr.msra.gmra.mxu1 %v17366_v17  ;;  %v8521_v7 = vpop.f32.mrf.mxu1  ;;  %v9145_v47 = vadd.f32 %v9045_v49, %v8945_v24  ;;  %v14962_v49 = vld [vmem:[%s17124_s2 + $0x2a8] sm:$0xff]   ;;  %v17373_v24 = vpack.c.bf16 %v15901_v53, %v15899_v40  ;;  %v14965_v40 = vld [vmem:[%s17124_s2 + $0x430] sm:$0xff]  }
 0x4cb   : > { %13145 = vmatpush3.bf16.msra.mxu0 %v14953_v15  ;;  %11046 = vmatprep.mubr.bf16.mxu1 %v9241_v39  ;;  %v8575_v43 = vadd.f32 %v8574_v62, %v8521_v7  ;;  %v14959_v62 = vld [vmem:[%s17124_s2 + $0x478] sm:$0xff]   ;;  %v14960_v15 = vld [vmem:[%s17124_s2 + $0x2e8] sm:$0xff]   ;;  %v9172_v39 = vadd.f32 %v9072_v35, %v8972_v61  ;;  %v17372_v7 = vld [vmem:[#allocation63_spill] sm:$0xff]  ;;  %v9026_v0 = vmul.f32 %v8573_v37, %v8573_v37 }
 0x4cc   : > { %13105 = vmatpush3.bf16.msra.mxu1 %v14954_v21  ;;  %13146 = vmatprep.subr.bf16.mxu0 %v14955_v48  ;;  %v8523_v14 = vpop.f32.mrf.mxu1  ;;  %v8584_v21 = vpop.f32.mrf.mxu0  ;;  %v8952_v52 = vmul.f32 %v17372_v7, %v17372_v7  ;;  %v14963_v35 = vld [vmem:[%s17124_s2 + $0x470] sm:$0xff]   ;;  %v17375_v61 = vld [vmem:[#allocation115_spill] sm:$0xff]  ;;  %v17377_v53 = vld [vmem:[#allocation52_spill] sm:$0xff] }
 0x4cd   : > { %v9027_v60 = vmul.f32 %v8575_v43, %v8575_v43  ;;  %v8577_v1 = vadd.f32 %v8576_v27, %v8523_v14  ;;  %13106 = vmatprep.subr.bf16.mxu1 %v14956_v51  ;;  %v14961_v51 = vld [vmem:[%s17124_s2 + $0x438] sm:$0xff]   ;;  %v8951_v43 = vmul.f32 %v7201_v33, %v7201_v33  ;;  %v17376_v63 = vpack.c.bf16 %v17374_v26, %v17375_v61  ;;  %v14973_v61 = vld [vmem:[%s17124_s2 + $0x420] sm:$0xff]  }
 0x4ce   : > { %v8525_v48 = vpop.f32.mrf.mxu1  ;;  %v9220_v14 = vpack.c.bf16 %v9145_v47, %v9120_v2  ;;  %v14969_v2 = vld [vmem:[%s17124_s2 + $0x428] sm:$0xff]   ;;  %v14970_v7 = vld [vmem:[%s17124_s2 + $0x298] sm:$0xff]  }
 0x4cf   : > { %v16447_v34 = vadd.f32 %v9027_v60, %v8927_v22  ;;  %13147 = vmatpush3.bf16.msra.mxu0 %v14957_v41  ;;  %v8579_v27 = vadd.f32 %v8578_v10, %v8525_v48  ;;  %v9051_v23 = vmul.f32 %v8577_v1, %v8577_v1  ;;  %v9247_v10 = vpack.c.bf16 %v9197_v25, %v9172_v39  ;;  %v16462_v41 = vpop.f32.mrf.mxu0 }
 0x4d0   : > { %13107 = vmatpush3.bf16.msra.mxu1 %v14958_v11  ;;  %13188 = vmatprep.subr.bf16.mxu0 %v14959_v62  ;;  %v16452_v17 = vpop.f32.mrf.mxu1  ;;  %v14964_v62 = vld [vmem:[%s17124_s2 + $0x2e0] sm:$0xff]   ;;  %v8926_v60 = vmul.f32 %v17377_v53, %v17377_v53 }
 0x4d1   : > { %v9052_v4 = vmul.f32 %v8579_v27, %v8579_v27  ;;  %13108 = vmatprep.subr.bf16.mxu1 %v14960_v15  ;;  %v14966_v15 = vld [vmem:[%s17124_s2 + $0x2a0] sm:$0xff]   ;;  %v9151_v44 = vadd.f32 %v9051_v23, %v8951_v43  ;;  %v8588_v48 = vpop.f32.mrf.mxu0  ;;  %v14972_v43 = vld [vmem:[%s17124_s2 + $0x2d0] sm:$0xff]  }
 0x4d2   : > { %11186 = vmatmul.mubr.bf16.vlgmr.msra.gmra.mxu0 %v17373_v24  ;;  %11047 = vmatmul.mubr.bf16.gmra.mxu1 %v17376_v63  ;;  %v8531_v11 = vpop.f32.mrf.mxu1  ;;  %v9126_v37 = vadd.f32 %v9026_v0, %v8926_v60  ;;  %v17379_v23 = vld [vmem:[#allocation67_spill] sm:$0xff]  ;;  %v17383_v60 = vld [vmem:[#allocation136_spill] sm:$0xff] }
 0x4d3   : > { %v16473_v22 = vadd.f32 %v9052_v4, %v8952_v52  ;;  %11193 = vmatprep.mubr.bf16.mxu0 %v9247_v10  ;;  %13189 = vmatpush3.bf16.msra.mxu0 %v14961_v51  ;;  %v8585_v25 = vadd.f32 %v8584_v21, %v8531_v11  ;;  %v14968_v21 = vld [vmem:[%s17124_s2 + $0x2d8] sm:$0xff]   ;;  %v14971_v52 = vld [vmem:[%s17124_s2 + $0x460] sm:$0xff]   ;;  %v9002_v4 = vmul.f32 %v17379_v23, %v17379_v23 }
 0x4d4   : > { %13109 = vmatpush3.bf16.msra.mxu1 %v14962_v49  ;;  %11136 = vmatprep.mubr.bf16.mxu1 %v9220_v14  ;;  %v16480_v1 = vpop.f32.mrf.mxu1  ;;  %v14974_v14 = vld [vmem:[%s17124_s2 + $0x290] sm:$0xff]   ;;  %v14982_v23 = vld [vmem:[%s17124_s2 + $0x280] sm:$0xff]  }
 0x4d5   : > { %v9227_v33 = vpack.c.bf16 %v16473_v22, %v16447_v34  ;;  %v9077_v47 = vmul.f32 %v8585_v25, %v8585_v25  ;;  %13190 = vmatprep.subr.bf16.mxu0 %v14963_v35  ;;  %13110 = vmatprep.subr.bf16.mxu1 %v14964_v62  ;;  %v9226_v35 = vpack.c.bf16 %v9151_v44, %v9126_v37  ;;  %v14976_v62 = vld [vmem:[%s17124_s2 + $0x2c8] sm:$0xff]   ;;  %v17381_v25 = vld [vmem:[#allocation33_spill] sm:$0xff] }
 0x4d6   : > { %v8535_v39 = vpop.f32.mrf.mxu1  ;;  %v14979_v44 = vld [vmem:[%s17124_s2 + $0x450] sm:$0xff]   ;;  %v15042_v34 = vld [vmem:[%s17124_s2 + $0x5e8] sm:$0xff]  }
 0x4d7   : > { %v16495_v27 = vadd.f32 %v9077_v47, %v8977_v36  ;;  %13191 = vmatpush3.bf16.msra.mxu0 %v14965_v40  ;;  %v8589_v51 = vadd.f32 %v8588_v48, %v8535_v39  ;;  %v17382_v40 = vld [vmem:[#allocation34_spill] sm:$0xff]  ;;  %v14978_v36 = vld [vmem:[%s17124_s2 + $0x288] sm:$0xff]   ;;  %v14980_v39 = vld [vmem:[%s17124_s2 + $0x2c0] sm:$0xff]  }
 0x4d8   : > { %13111 = vmatpush3.bf16.msra.mxu1 %v14966_v15  ;;  %13192 = vmatprep.subr.bf16.mxu0 %v14967_v50  ;;  %v16500_v49 = vpop.f32.mrf.mxu1  ;;  %v6893_v53 = vadd.f32 %v17382_v40, %v17381_v25  ;;  %v17384_v15 = vld [vmem:[#allocation135_spill] sm:$0xff]  ;;  %v8471_v25 = vadd.f32 %v16109_v56, %v16154_v59  ;;  %v17391_v56 = vld [vmem:[#allocation73_spill] sm:$0xff] }
 0x4d9   : > { %v9102_v10 = vmul.f32 %v8589_v51, %v8589_v51  ;;  %13112 = vmatprep.subr.bf16.mxu1 %v14968_v21  ;;  %v8265_v50 = vadd.f32 %v17384_v15, %v17383_v60  ;;  %v17388_v60 = vld [vmem:[#allocation58_spill] sm:$0xff]  ;;  %v17389_v15 = vld [vmem:[#allocation59_spill] sm:$0xff]  ;;  %v8954_v59 = vmul.f32 %v17391_v56, %v17391_v56 }
 0x4da   : > { %11194 = vmatmul.mubr.bf16.gmra.mxu0 %v9246_v29  ;;  %v8680_v24 = vpop.f32.mrf.mxu1  ;;  %v8269_v29 = vadd.f32 %v17380_v18, %v15903_v6  ;;  %v14977_v6 = vld [vmem:[%s17124_s2 + $0x418] sm:$0xff]   ;;  %v8995_v51 = vmul.f32 %v6893_v53, %v6893_v53  ;;  %v17386_v18 = vld [vmem:[#allocation44_spill] sm:$0xff] }
 0x4db   : > { %v16516_v26 = vadd.f32 %v9102_v10, %v9002_v4  ;;  %13193 = vmatpush3.bf16.msra.mxu0 %v14969_v2  ;;  %11283 = vmatprep.mubr.bf16.mxu0 %v9226_v35  ;;  %v9070_v2 = vmul.f32 %v8265_v50, %v8265_v50  ;;  %v14983_v4 = vld [vmem:[%s17124_s2 + $0x448] sm:$0xff]   ;;  %v7211_v50 = vadd.f32 %v17389_v15, %v17388_v60 }
 0x4dc   : > { %13113 = vmatpush3.bf16.msra.mxu1 %v14970_v7  ;;  %13194 = vmatprep.subr.bf16.mxu0 %v14971_v52  ;;  %v16521_v63 = vpop.f32.mrf.mxu1  ;;  %v9095_v47 = vmul.f32 %v8269_v29, %v8269_v29  ;;  %v14981_v52 = vld [vmem:[%s17124_s2 + $0x410] sm:$0xff]   ;;  %v17385_v10 = vld [vmem:[#allocation32_spill] sm:$0xff] }
 0x4dd   : > { %v9252_v11 = vpack.c.bf16 %v16516_v26, %v16495_v27  ;;  %13114 = vmatprep.subr.bf16.mxu1 %v14972_v43  ;;  %v8970_v35 = vmul.f32 %v17385_v10, %v17385_v10  ;;  %v17387_v29 = vld [vmem:[#allocation41_spill] sm:$0xff]  ;;  %v9001_v10 = vmul.f32 %v7211_v50, %v7211_v50  ;;  %v17395_v60 = vld [vmem:[#allocation56_spill] sm:$0xff]  ;;  %v17423_v26 = vld [vmem:[#allocation82_spill] sm:$0xff] }
 0x4de   : > { %v8684_v0 = vpop.f32.mrf.mxu1  ;;  %v9195_v43 = vadd.f32 %v9095_v47, %v8995_v51  ;;  %v14985_v47 = vld [vmem:[%s17124_s2 + $0x408] sm:$0xff]   ;;  %v8976_v15 = vmul.f32 %v17395_v60, %v17395_v60  ;;  %v14996_v60 = vld [vmem:[%s17124_s2 + $0x398] sm:$0xff]   ;;  %v15050_v27 = vld [vmem:[%s17124_s2 + $0x610] sm:$0xff]  }
 0x4df   : > { %13195 = vmatpush3.bf16.msra.mxu0 %v14973_v61  ;;  %v16540_v30 = vpop.f32.mrf.mxu0 }
 0x4e0   : > { %13115 = vmatpush3.bf16.msra.mxu1 %v14974_v14  ;;  %13196 = vmatprep.subr.bf16.mxu0 %v14975_v31  ;;  %v16551_v21 = vpop.f32.mrf.mxu1  ;;  %v14984_v31 = vld [vmem:[%s17124_s2 + $0x3f8] sm:$0xff]  }
 0x4e1   : > { %13116 = vmatprep.subr.bf16.mxu1 %v14976_v62  ;;  %v8627_v48 = vpop.f32.mrf.mxu0  ;;  %v7095_v62 = vadd.f32 %v17387_v29, %v17386_v18  ;;  %v14989_v18 = vld [vmem:[%s17124_s2 + $0x400] sm:$0xff]  }
 0x4e2   : > { %v8681_v37 = vadd.f32 %v8680_v24, %v8627_v48  ;;  %v8587_v24 = vadd.f32 %v16462_v41, %v16480_v1  ;;  %v8690_v61 = vpop.f32.mrf.mxu1  ;;  %v9170_v1 = vadd.f32 %v9070_v2, %v8970_v35  ;;  %v14987_v2 = vld [vmem:[%s17124_s2 + $0x440] sm:$0xff]  }
 0x4e3   : > { %13197 = vmatpush3.bf16.msra.mxu0 %v14977_v6  ;;  %v16556_v7 = vpop.f32.mrf.mxu0  ;;  %v17390_v6 = vld [vmem:[#allocation71_spill] sm:$0xff]  ;;  %v8949_v29 = vmul.f32 %v7095_v62, %v7095_v62 }
 0x4e4   : > { %13117 = vmatpush3.bf16.msra.mxu1 %v14978_v36  ;;  %13198 = vmatprep.subr.bf16.mxu0 %v14979_v44  ;;  %v9029_v40 = vmul.f32 %v8681_v37, %v8681_v37  ;;  %v8929_v41 = vmul.f32 %v17390_v6, %v17390_v6  ;;  %v8583_v36 = vadd.f32 %v16421_v28, %v16452_v17  ;;  %v14986_v28 = vld [vmem:[%s17124_s2 + $0x3b8] sm:$0xff]  }
 0x4e5   : > { %13118 = vmatprep.subr.bf16.mxu1 %v14980_v39  ;;  %v8631_v14 = vpop.f32.mrf.mxu0  ;;  %v9101_v17 = vmul.f32 %v8587_v24, %v8587_v24  ;;  %v16596_v39 = vpop.f32.mrf.mxu1  ;;  %v9245_v51 = vpack.c.bf16 %v9195_v43, %v9170_v1  ;;  %v17392_v24 = vld [vmem:[#allocation130_spill] sm:$0xff] }
 0x4e6   : > { %v8685_v53 = vadd.f32 %v8684_v0, %v8631_v14  ;;  %v8467_v0 = vadd.f32 %v16088_v12, %v16132_v45  ;;  %v14988_v12 = vld [vmem:[%s17124_s2 + $0x3f0] sm:$0xff]   ;;  %v9049_v45 = vmul.f32 %v8471_v25, %v8471_v25  ;;  %v9076_v35 = vmul.f32 %v8583_v36, %v8583_v36  ;;  %v17396_v1 = vld [vmem:[#allocation42_spill] sm:$0xff] }
 0x4e7   : > { %13199 = vmatpush3.bf16.msra.mxu0 %v14981_v52  ;;  %v16584_v44 = vpop.f32.mrf.mxu0  ;;  %v16604_v52 = vadd.f32 %v9029_v40, %v8929_v41  ;;  %v17393_v14 = vld [vmem:[#allocation129_spill] sm:$0xff]  ;;  %v9201_v50 = vadd.f32 %v9101_v17, %v9001_v10  ;;  %v8694_v6 = vpop.f32.mrf.mxu1  ;;  %v14991_v41 = vld [vmem:[%s17124_s2 + $0x3e8] sm:$0xff]   ;;  %v8924_v36 = vmul.f32 %v17396_v1, %v17396_v1  ;;  %v15004_v10 = vld [vmem:[%s17124_s2 + $0x538] sm:$0xff]  }
 0x4e8   : > { %v9054_v48 = vmul.f32 %v8685_v53, %v8685_v53  ;;  %13119 = vmatpush3.bf16.msra.mxu1 %v14982_v23  ;;  %13200 = vmatprep.subr.bf16.mxu0 %v14983_v4  ;;  %v9024_v25 = vmul.f32 %v8467_v0, %v8467_v0  ;;  %v15003_v53 = vld [vmem:[%s17124_s2 + $0x578] sm:$0xff]   ;;  %v17397_v0 = vld [vmem:[#allocation75_spill] sm:$0xff]  ;;  %v17398_v17 = vld [vmem:[#allocation77_spill] sm:$0xff] }
 0x4e9   : > { %13160 = vmatprep.subr.bf16.mxu1 %v14984_v31  ;;  %v8637_v37 = vpop.f32.mrf.mxu0  ;;  %v17394_v31 = vpack.c.bf16 %v17392_v24, %v17393_v14  ;;  %v17402_v1 = vld [vmem:[#allocation48_spill] sm:$0xff] }
 0x4ea   : > { %v16606_v23 = vadd.f32 %v9054_v48, %v8954_v59  ;;  %v8691_v4 = vadd.f32 %v8690_v61, %v8637_v37  ;;  %v14990_v61 = vld [vmem:[%s17124_s2 + $0x3b0] sm:$0xff]   ;;  %v8979_v48 = vmul.f32 %v17397_v0, %v17397_v0  ;;  %v9004_v37 = vmul.f32 %v17398_v17, %v17398_v17  ;;  %v15005_v17 = vld [vmem:[%s17124_s2 + $0x4f8] sm:$0xff]  }
 0x4eb   : > { %11137 = vmatmul.mubr.bf16.vlgmr.msra.gmra.mxu1 %v17394_v31  ;;  %13201 = vmatpush3.bf16.msra.mxu0 %v14985_v47  ;;  %v16611_v43 = vpop.f32.mrf.mxu0  ;;  %v9149_v47 = vadd.f32 %v9049_v45, %v8949_v29  ;;  %v15007_v31 = vld [vmem:[%s17124_s2 + $0x570] sm:$0xff]   ;;  %v17400_v29 = vld [vmem:[#allocation131_spill] sm:$0xff]  ;;  %v9099_v0 = vmul.f32 %v8481_v57, %v8481_v57 }
 0x4ec   : > { %v9229_v40 = vpack.c.bf16 %v16606_v23, %v16604_v52  ;;  %11144 = vmatprep.mubr.bf16.mxu1 %v9245_v51  ;;  %13161 = vmatpush3.bf16.msra.mxu1 %v14986_v28  ;;  %v9079_v56 = vmul.f32 %v8691_v4, %v8691_v4  ;;  %v9176_v28 = vadd.f32 %v9076_v35, %v8976_v15  ;;  %v14993_v4 = vld [vmem:[%s17124_s2 + $0x3e0] sm:$0xff]   ;;  %v14997_v15 = vld [vmem:[%s17124_s2 + $0x3d0] sm:$0xff]  }
 0x4ed   : > { %13202 = vmatprep.subr.bf16.mxu0 %v14987_v2  ;;  %13162 = vmatprep.subr.bf16.mxu1 %v14988_v12  ;;  %v8641_v62 = vpop.f32.mrf.mxu0  ;;  %v9124_v51 = vadd.f32 %v9024_v25, %v8924_v36  ;;  %v14992_v12 = vld [vmem:[%s17124_s2 + $0x3a8] sm:$0xff]   ;;  %v17403_v36 = vld [vmem:[#allocation49_spill] sm:$0xff]  ;;  %v15017_v57 = vld [vmem:[%s17124_s2 + $0x4e0] sm:$0xff]  }
 0x4ee   : > { %v8695_v59 = vadd.f32 %v8694_v6, %v8641_v62  ;;  %v9251_v45 = vpack.c.bf16 %v9201_v50, %v9176_v28  ;;  %v16644_v35 = vadd.f32 %v9079_v56, %v8979_v48  ;;  %v15012_v50 = vld [vmem:[%s17124_s2 + $0x528] sm:$0xff]   ;;  %v15015_v6 = vld [vmem:[%s17124_s2 + $0x560] sm:$0xff]   ;;  %v14998_v62 = vld [vmem:[%s17124_s2 + $0x390] sm:$0xff]   ;;  %v8477_v56 = vadd.f32 %v16140_v54, %v16170_v9 }
 0x4ef   : > { %13203 = vmatpush3.bf16.msra.mxu0 %v14989_v18  ;;  %v9224_v14 = vpack.c.bf16 %v9149_v47, %v9124_v51  ;;  %v17399_v18 = vld [vmem:[#allocation133_spill] sm:$0xff]  ;;  %v7105_v47 = vadd.f32 %v17403_v36, %v17402_v1  ;;  %v15002_v28 = vld [vmem:[%s17124_s2 + $0x380] sm:$0xff]   ;;  %v17404_v51 = vld [vmem:[#allocation46_spill] sm:$0xff] }
 0x4f0   : > { %v9104_v2 = vmul.f32 %v8695_v59, %v8695_v59  ;;  %13163 = vmatpush3.bf16.msra.mxu1 %v14990_v61  ;;  %13244 = vmatprep.subr.bf16.mxu0 %v15003_v53  ;;  %v17401_v25 = vpack.c.bf16 %v17399_v18, %v17400_v29  ;;  %v15011_v53 = vld [vmem:[%s17124_s2 + $0x568] sm:$0xff]   ;;  %v15023_v54 = vld [vmem:[%s17124_s2 + $0x550] sm:$0xff]   ;;  %v9074_v48 = vmul.f32 %v8477_v56, %v8477_v56  ;;  %v15018_v36 = vld [vmem:[%s17124_s2 + $0x4a0] sm:$0xff]  }
 0x4f1   : > { %13164 = vmatprep.subr.bf16.mxu1 %v14991_v41  ;;  %v14999_v41 = vld [vmem:[%s17124_s2 + $0x3c8] sm:$0xff]   ;;  %v8999_v9 = vmul.f32 %v7105_v47, %v7105_v47  ;;  %v8679_v29 = vadd.f32 %v16500_v49, %v16540_v30  ;;  %v15031_v49 = vld [vmem:[%s17124_s2 + $0x540] sm:$0xff]   ;;  %v8784_v30 = vpop.f32.mrf.mxu0  ;;  %v15021_v47 = vld [vmem:[%s17124_s2 + $0x4d8] sm:$0xff]  }
 0x4f2   : > { %v16646_v24 = vadd.f32 %v9104_v2, %v9004_v37  ;;  %11284 = vmatmul.mubr.bf16.vlgmr.msra.gmra.mxu0 %v9225_v5  ;;  %v15008_v5 = vld [vmem:[%s17124_s2 + $0x530] sm:$0xff]   ;;  %v15000_v59 = vld [vmem:[%s17124_s2 + $0x388] sm:$0xff]   ;;  %v8974_v2 = vmul.f32 %v17404_v51, %v17404_v51 }
 0x4f3   : > { %11145 = vmatmul.mubr.bf16.gmra.mxu1 %v17401_v25  ;;  %11291 = vmatprep.mubr.bf16.mxu0 %v9251_v45  ;;  %v15024_v37 = vld [vmem:[%s17124_s2 + $0x510] sm:$0xff]   ;;  %v8683_v45 = vadd.f32 %v16521_v63, %v16556_v7  ;;  %v15006_v25 = vld [vmem:[%s17124_s2 + $0x4b8] sm:$0xff]   ;;  %v15028_v7 = vld [vmem:[%s17124_s2 + $0x508] sm:$0xff]  }
 0x4f4   : > { %v9254_v61 = vpack.c.bf16 %v16646_v24, %v16644_v35  ;;  %13165 = vmatpush3.bf16.msra.mxu1 %v14992_v12  ;;  %11234 = vmatprep.mubr.bf16.mxu1 %v9224_v14  ;;  %v9199_v12 = vadd.f32 %v9099_v0, %v8999_v9  ;;  %v17406_v14 = vld [vmem:[#allocation60_spill] sm:$0xff]  ;;  %v9174_v18 = vadd.f32 %v9074_v48, %v8974_v2  ;;  %v15009_v63 = vld [vmem:[%s17124_s2 + $0x4f0] sm:$0xff]   ;;  %v17408_v0 = vld [vmem:[#allocation74_spill] sm:$0xff] }
 0x4f5   : > { %13166 = vmatprep.subr.bf16.mxu1 %v14993_v4  ;;  %13245 = vmatpush3.bf16.msra.mxu0 %v15004_v10  ;;  %v15027_v4 = vld [vmem:[%s17124_s2 + $0x548] sm:$0xff]   ;;  %v15039_v52 = vld [vmem:[%s17124_s2 + $0x5f0] sm:$0xff]   ;;  %v15047_v35 = vld [vmem:[%s17124_s2 + $0x618] sm:$0xff]  }
 0x4f6   : > { %13246 = vmatprep.subr.bf16.mxu0 %v15007_v31  ;;  %v17405_v10 = vld [vmem:[#allocation64_spill] sm:$0xff] }
 0x4f7   : > { %v7307_v31 = vadd.f32 %v17406_v14, %v17405_v10  ;;  %v15029_v51 = vld [vmem:[%s17124_s2 + $0x4c8] sm:$0xff]  }
 0x4f8   : > { %13167 = vmatpush3.bf16.msra.mxu1 %v14994_v55  ;;  %v9053_v55 = vmul.f32 %v8683_v45, %v8683_v45  ;;  %v17410_v45 = vld [vmem:[#allocation68_spill] sm:$0xff] }
 0x4f9   : > { %13168 = vmatprep.subr.bf16.mxu1 %v14995_v3  ;;  %13247 = vmatpush3.bf16.msra.mxu0 %v15008_v5  ;;  %v9249_v3 = vpack.c.bf16 %v9199_v12, %v9174_v18  ;;  %v8953_v5 = vmul.f32 %v7307_v31, %v7307_v31  ;;  %v17412_v14 = vld [vmem:[#allocation72_spill] sm:$0xff]  ;;  %v8689_v18 = vadd.f32 %v16551_v21, %v16584_v44  ;;  %v15033_v21 = vld [vmem:[%s17124_s2 + $0x4c0] sm:$0xff]  }
 0x4fa   : > { %11292 = vmatmul.mubr.bf16.gmra.mxu0 %v9250_v46  ;;  %13248 = vmatprep.subr.bf16.mxu0 %v15011_v53  ;;  %v15019_v46 = vld [vmem:[%s17124_s2 + $0x558] sm:$0xff]   ;;  %v9028_v53 = vmul.f32 %v8679_v29, %v8679_v29  ;;  %v8930_v31 = vmul.f32 %v17412_v14, %v17412_v14  ;;  %v17421_v24 = vld [vmem:[#allocation84_spill] sm:$0xff] }
 0x4fb   : > { %v15037_v14 = vld [vmem:[%s17124_s2 + $0x5b8] sm:$0xff]  }
 0x4fc   : > { %13169 = vmatpush3.bf16.msra.mxu1 %v14996_v60  ;;  %v15010_v60 = vld [vmem:[%s17124_s2 + $0x4b0] sm:$0xff]  }
 0x4fd   : > { %13170 = vmatprep.subr.bf16.mxu1 %v14997_v15  ;;  %13249 = vmatpush3.bf16.msra.mxu0 %v15012_v50  ;;  %v15013_v15 = vld [vmem:[%s17124_s2 + $0x4e8] sm:$0xff]   ;;  %v15032_v50 = vld [vmem:[%s17124_s2 + $0x500] sm:$0xff]  }
 0x4fe   : > { %13250 = vmatprep.subr.bf16.mxu0 %v15015_v6  ;;  %v16765_v6 = vld [vmem:[%s17124_s2 + $0x638] sm:$0xff]  }
 0x500   : > { %13171 = vmatpush3.bf16.msra.mxu1 %v14998_v62  ;;  %v8786_v62 = vpop.f32.mrf.mxu0 }
 0x501   : > { %13172 = vmatprep.subr.bf16.mxu1 %v14999_v41  ;;  %13251 = vmatpush3.bf16.msra.mxu0 %v15016_v16  ;;  %v9128_v41 = vadd.f32 %v9028_v53, %v8928_v20  ;;  %v15014_v16 = vld [vmem:[%s17124_s2 + $0x4a8] sm:$0xff]  }
 0x502   : > { %13252 = vmatprep.subr.bf16.mxu0 %v15019_v46  ;;  %v8788_v1 = vpop.f32.mrf.mxu0 }
 0x504   : > { %13173 = vmatpush3.bf16.msra.mxu1 %v15000_v59  ;;  %v8790_v56 = vpop.f32.mrf.mxu0  ;;  %v15022_v59 = vld [vmem:[%s17124_s2 + $0x498] sm:$0xff]  }
 0x505   : > { %13174 = vmatprep.subr.bf16.mxu1 %v15001_v8  ;;  %13253 = vmatpush3.bf16.msra.mxu0 %v15020_v19 }
 0x506   : > { %13254 = vmatprep.subr.bf16.mxu0 %v15023_v54  ;;  %v17409_v54 = vld [vmem:[#allocation70_spill] sm:$0xff] }
 0x507   : > { %v7413_v9 = vadd.f32 %v17409_v54, %v17408_v0 }
 0x508   : > { %13175 = vmatpush3.bf16.msra.mxu1 %v15002_v28  ;;  %v15026_v28 = vld [vmem:[%s17124_s2 + $0x490] sm:$0xff]  }
 0x509   : > { %13216 = vmatprep.subr.bf16.mxu1 %v15005_v17  ;;  %13255 = vmatpush3.bf16.msra.mxu0 %v15024_v37  ;;  %v8693_v17 = vadd.f32 %v16596_v39, %v16611_v43  ;;  %v8955_v39 = vmul.f32 %v7413_v9, %v7413_v9 }
 0x50a   : > { %13256 = vmatprep.subr.bf16.mxu0 %v15027_v4  ;;  %v17411_v4 = vld [vmem:[#allocation69_spill] sm:$0xff] }
 0x50b   : > { %11235 = vmatmul.mubr.bf16.vlgmr.msra.gmra.mxu1 %v9223_v32  ;;  %v9153_v32 = vadd.f32 %v9053_v55, %v8953_v5  ;;  %v7317_v10 = vadd.f32 %v17411_v4, %v17410_v45  ;;  %v15030_v55 = vld [vmem:[%s17124_s2 + $0x488] sm:$0xff]   ;;  %v9103_v53 = vmul.f32 %v8693_v17, %v8693_v17 }
 0x50c   : > { %11242 = vmatprep.mubr.bf16.mxu1 %v9249_v3  ;;  %13217 = vmatpush3.bf16.msra.mxu1 %v15006_v25  ;;  %v17413_v3 = vld [vmem:[#allocation81_spill] sm:$0xff] }
 0x50d   : > { %13218 = vmatprep.subr.bf16.mxu1 %v15009_v63  ;;  %13257 = vmatpush3.bf16.msra.mxu0 %v15028_v7  ;;  %v9228_v46 = vpack.c.bf16 %v9153_v32, %v9128_v41  ;;  %v9003_v20 = vmul.f32 %v7317_v10, %v7317_v10  ;;  %v17415_v32 = vld [vmem:[#allocation78_spill] sm:$0xff] }
 0x50e   : > { %13258 = vmatprep.subr.bf16.mxu0 %v15031_v49  ;;  %v8931_v49 = vmul.f32 %v17413_v3, %v17413_v3 }
 0x50f   : > { %v9203_v0 = vadd.f32 %v9103_v53, %v9003_v20 }
 0x510   : > { %13219 = vmatpush3.bf16.msra.mxu1 %v15010_v60 }
 0x511   : > { %13220 = vmatprep.subr.bf16.mxu1 %v15013_v15  ;;  %13259 = vmatpush3.bf16.msra.mxu0 %v15032_v50 }
 0x512   : > { %13310 = vmatprep.subr.bf16.mxu0 %v16765_v6 }
 0x513   : > { %11243 = vmatmul.mubr.bf16.gmra.mxu1 %v9248_v38  ;;  %v8794_v38 = vpop.f32.mrf.mxu0 }
 0x514   : > { %13221 = vmatpush3.bf16.msra.mxu1 %v15014_v16  ;;  %11332 = vmatprep.mubr.bf16.mxu1 %v9228_v46  ;;  %v9078_v16 = vmul.f32 %v8689_v18, %v8689_v18 }
 0x515   : > { %13222 = vmatprep.subr.bf16.mxu1 %v15017_v57  ;;  %v8796_v29 = vpop.f32.mrf.mxu0 }
 0x517   : > { %v8798_v57 = vpop.f32.mrf.mxu0 }
 0x518   : > { %13223 = vmatpush3.bf16.msra.mxu1 %v15018_v36 }
 0x519   : > { %v8731_v8 = vpop.f32.mrf.mxu1  ;;  %13224 = vmatprep.subr.bf16.mxu1 %v15021_v47 }
 0x51a   : > { %v8785_v58 = vadd.f32 %v8784_v30, %v8731_v8  ;;  %v17414_v30 = vld [vmem:[#allocation83_spill] sm:$0xff]  ;;  %v17417_v8 = vld [vmem:[#allocation66_spill] sm:$0xff] }
 0x51b   : > { %v8733_v19 = vpop.f32.mrf.mxu1  ;;  %v8956_v5 = vmul.f32 %v17414_v30, %v17414_v30  ;;  %v15040_v30 = vld [vmem:[%s17124_s2 + $0x5b0] sm:$0xff]  }
 0x51c   : > { %13225 = vmatpush3.bf16.msra.mxu1 %v15022_v59  ;;  %v8787_v48 = vadd.f32 %v8786_v62, %v8733_v19  ;;  %v9030_v2 = vmul.f32 %v8785_v58, %v8785_v58  ;;  %v17416_v62 = vld [vmem:[#allocation79_spill] sm:$0xff]  ;;  %v15038_v19 = vld [vmem:[%s17124_s2 + $0x630] sm:$0xff]  }
 0x51d   : > { %v8735_v37 = vpop.f32.mrf.mxu1  ;;  %13226 = vmatprep.subr.bf16.mxu1 %v15025_v42  ;;  %v7423_v41 = vadd.f32 %v17416_v62, %v17415_v32  ;;  %v8978_v42 = vmul.f32 %v17417_v8, %v17417_v8 }
 0x51e   : > { %v8789_v12 = vadd.f32 %v8788_v1, %v8735_v37  ;;  %v9031_v43 = vmul.f32 %v8787_v48, %v8787_v48  ;;  %v9130_v44 = vadd.f32 %v9030_v2, %v8930_v31  ;;  %v8800_v2 = vpop.f32.mrf.mxu0  ;;  %v17419_v31 = vld [vmem:[#allocation85_spill] sm:$0xff] }
 0x51f   : > { %v8737_v25 = vpop.f32.mrf.mxu1  ;;  %v9005_v37 = vmul.f32 %v7423_v41, %v7423_v41  ;;  %v8981_v18 = vmul.f32 %v17419_v31, %v17419_v31  ;;  %v15046_v41 = vld [vmem:[%s17124_s2 + $0x5a0] sm:$0xff]  }
 0x520   : > { %v9055_v63 = vmul.f32 %v8789_v12, %v8789_v12  ;;  %13227 = vmatpush3.bf16.msra.mxu1 %v15026_v28  ;;  %v8791_v7 = vadd.f32 %v8790_v56, %v8737_v25  ;;  %v16817_v1 = vadd.f32 %v9031_v43, %v8931_v49  ;;  %v15034_v56 = vld [vmem:[%s17124_s2 + $0x480] sm:$0xff]   ;;  %v17418_v28 = vld [vmem:[#allocation76_spill] sm:$0xff] }
 0x521   : > { %v8741_v60 = vpop.f32.mrf.mxu1  ;;  %13228 = vmatprep.subr.bf16.mxu1 %v15029_v51  ;;  %v8980_v17 = vmul.f32 %v17418_v28, %v17418_v28  ;;  %v9178_v51 = vadd.f32 %v9078_v16, %v8978_v42 }
 0x522   : > { %v9155_v15 = vadd.f32 %v9055_v63, %v8955_v39  ;;  %v9056_v50 = vmul.f32 %v8791_v7, %v8791_v7  ;;  %v8795_v13 = vadd.f32 %v8794_v38, %v8741_v60  ;;  %v15036_v38 = vld [vmem:[%s17124_s2 + $0x5f8] sm:$0xff]   ;;  %v15041_v63 = vld [vmem:[%s17124_s2 + $0x628] sm:$0xff]  }
 0x523   : > { %v8743_v46 = vpop.f32.mrf.mxu1  ;;  %v9253_v43 = vpack.c.bf16 %v9203_v0, %v9178_v51  ;;  %v17425_v51 = vld [vmem:[#allocation90_spill] sm:$0xff] }
 0x524   : > { %v16819_v36 = vadd.f32 %v9056_v50, %v8956_v5  ;;  %13229 = vmatpush3.bf16.msra.mxu1 %v15030_v55  ;;  %v8797_v47 = vadd.f32 %v8796_v29, %v8743_v46  ;;  %v9230_v59 = vpack.c.bf16 %v9155_v15, %v9130_v44  ;;  %v9080_v9 = vmul.f32 %v8795_v13, %v8795_v13  ;;  %v17420_v29 = vld [vmem:[#allocation87_spill] sm:$0xff]  ;;  %v15048_v46 = vld [vmem:[%s17124_s2 + $0x5d8] sm:$0xff]  }
 0x525   : > { %v8745_v58 = vpop.f32.mrf.mxu1  ;;  %13230 = vmatprep.subr.bf16.mxu1 %v15033_v21  ;;  %v9006_v25 = vmul.f32 %v17420_v29, %v17420_v29  ;;  %v15043_v21 = vld [vmem:[%s17124_s2 + $0x5a8] sm:$0xff]   ;;  %v15045_v15 = vld [vmem:[%s17124_s2 + $0x5e0] sm:$0xff]  }
 0x526   : > { %v9231_v54 = vpack.c.bf16 %v16819_v36, %v16817_v1  ;;  %v8799_v48 = vadd.f32 %v8798_v57, %v8745_v58  ;;  %11381 = vmatprep.mubr.bf16.mxu0 %v9230_v59  ;;  %v9081_v45 = vmul.f32 %v8797_v47, %v8797_v47  ;;  %v9180_v23 = vadd.f32 %v9080_v9, %v8980_v17  ;;  %v17424_v58 = vld [vmem:[#allocation91_spill] sm:$0xff]  ;;  %v15049_v9 = vld [vmem:[%s17124_s2 + $0x598] sm:$0xff]  }
 0x527   : > { %v8747_v12 = vpop.f32.mrf.mxu1  ;;  %11382 = vmatmul.mubr.bf16.vlgmr.msra.gmra.mxu0 %v9229_v40 }
 0x528   : > { %v9105_v4 = vmul.f32 %v8799_v48, %v8799_v48  ;;  %13231 = vmatpush3.bf16.msra.mxu1 %v15034_v56  ;;  %v8801_v10 = vadd.f32 %v8800_v2, %v8747_v12  ;;  %13311 = vmatpush3.bf16.msra.mxu0 %v16765_v6  ;;  %v16856_v55 = vadd.f32 %v9081_v45, %v8981_v18 }
 0x529   : > { %v8890_v39 = vpop.f32.mrf.mxu1  ;;  %13272 = vmatprep.subr.bf16.mxu1 %v15036_v38  ;;  %13312 = vmatprep.subr.bf16.mxu0 %v15038_v19  ;;  %v8958_v38 = vmul.f32 %v17424_v58, %v17424_v58  ;;  %v8933_v2 = vmul.f32 %v17425_v51, %v17425_v51 }
 0x52a   : > { %v9205_v40 = vadd.f32 %v9105_v4, %v9005_v37  ;;  %v9106_v6 = vmul.f32 %v8801_v10, %v8801_v10  ;;  %v15051_v37 = vld [vmem:[%s17124_s2 + $0x5d0] sm:$0xff]   ;;  %v15053_v4 = vld [vmem:[%s17124_s2 + $0x608] sm:$0xff]  }
 0x52b   : > { %11333 = vmatmul.mubr.bf16.vlgmr.msra.gmra.mxu1 %v9227_v33  ;;  %v8892_v7 = vpop.f32.mrf.mxu1  ;;  %v15044_v33 = vld [vmem:[%s17124_s2 + $0x620] sm:$0xff]  }
 0x52c   : > { %v16858_v3 = vadd.f32 %v9106_v6, %v9006_v25  ;;  %11340 = vmatprep.mubr.bf16.mxu1 %v9253_v43  ;;  %13273 = vmatpush3.bf16.msra.mxu1 %v15037_v14  ;;  %v9255_v49 = vpack.c.bf16 %v9205_v40, %v9180_v23  ;;  %v15052_v25 = vld [vmem:[%s17124_s2 + $0x590] sm:$0xff]   ;;  %v15056_v43 = vld [vmem:[%s17124_s2 + $0x600] sm:$0xff]  }
 0x52d   : > { %13313 = vmatpush3.bf16.msra.mxu0 %v15038_v19  ;;  %v8894_v5 = vpop.f32.mrf.mxu1  ;;  %13274 = vmatprep.subr.bf16.mxu1 %v15039_v52 }
 0x52e   : > { %v9256_v22 = vpack.c.bf16 %v16858_v3, %v16856_v55  ;;  %11389 = vmatprep.mubr.bf16.mxu0 %v9255_v49  ;;  %13314 = vmatprep.subr.bf16.mxu0 %v15041_v63  ;;  %v17426_v49 = vld [vmem:[#allocation88_spill] sm:$0xff] }
 0x52f   : > { %v8896_v53 = vpop.f32.mrf.mxu1  ;;  %11390 = vmatmul.mubr.bf16.gmra.mxu0 %v9254_v61  ;;  %v17422_v61 = vld [vmem:[#allocation80_spill] sm:$0xff] }
 0x530   : > { %13275 = vmatpush3.bf16.msra.mxu1 %v15040_v30  ;;  %v8837_v60 = vpop.f32.mrf.mxu0  ;;  %v7519_v20 = vadd.f32 %v17422_v61, %v17421_v24  ;;  %v17427_v30 = vld [vmem:[#allocation89_spill] sm:$0xff] }
 0x531   : > { %v8891_v44 = vadd.f32 %v8890_v39, %v8837_v60  ;;  %13315 = vmatpush3.bf16.msra.mxu0 %v15041_v63  ;;  %13276 = vmatprep.subr.bf16.mxu1 %v15042_v34  ;;  %v8900_v50 = vpop.f32.mrf.mxu1  ;;  %v15054_v39 = vld [vmem:[%s17124_s2 + $0x5c8] sm:$0xff]  }
 0x532   : > { %v8839_v13 = vpop.f32.mrf.mxu0  ;;  %13316 = vmatprep.subr.bf16.mxu0 %v15044_v33  ;;  %v8957_v59 = vmul.f32 %v7519_v20, %v7519_v20 }
 0x533   : > { %11341 = vmatmul.mubr.bf16.gmra.mxu1 %v9252_v11  ;;  %v8893_v32 = vadd.f32 %v8892_v7, %v8839_v13  ;;  %v9032_v16 = vmul.f32 %v8891_v44, %v8891_v44  ;;  %v8902_v47 = vpop.f32.mrf.mxu1  ;;  %v8932_v11 = vmul.f32 %v17423_v26, %v17423_v26  ;;  %v15057_v13 = vld [vmem:[%s17124_s2 + $0x5c0] sm:$0xff]  }
 0x534   : > { %13277 = vmatpush3.bf16.msra.mxu1 %v15043_v21  ;;  %v8841_v62 = vpop.f32.mrf.mxu0  ;;  %v17429_v21 = vld [vmem:[#allocation95_spill] sm:$0xff] }
 0x535   : > { %v8895_v57 = vadd.f32 %v8894_v5, %v8841_v62  ;;  %13317 = vmatpush3.bf16.msra.mxu0 %v15044_v33  ;;  %13278 = vmatprep.subr.bf16.mxu1 %v15045_v15  ;;  %v9033_v19 = vmul.f32 %v8893_v32, %v8893_v32  ;;  %v9132_v48 = vadd.f32 %v9032_v16, %v8932_v11  ;;  %v8904_v12 = vpop.f32.mrf.mxu1  ;;  %v15055_v33 = vld [vmem:[%s17124_s2 + $0x588] sm:$0xff]   ;;  %v15058_v32 = vld [vmem:[%s17124_s2 + $0x580] sm:$0xff]  }
 0x536   : > { %v8843_v56 = vpop.f32.mrf.mxu0  ;;  %13318 = vmatprep.subr.bf16.mxu0 %v15047_v35  ;;  %v7529_v5 = vadd.f32 %v17427_v30, %v17426_v49  ;;  %v9008_v44 = vmul.f32 %v17429_v21, %v17429_v21 }
 0x537   : > { %v9057_v8 = vmul.f32 %v8895_v57, %v8895_v57  ;;  %v8897_v42 = vadd.f32 %v8896_v53, %v8843_v56  ;;  %v9133_v18 = vadd.f32 %v9033_v19, %v8933_v2  ;;  %v8906_v52 = vpop.f32.mrf.mxu1  ;;  %v17428_v53 = vld [vmem:[#allocation93_spill] sm:$0xff] }
 0x538   : > { %13279 = vmatpush3.bf16.msra.mxu1 %v15046_v41  ;;  %v8847_v0 = vpop.f32.mrf.mxu0  ;;  %v8983_v60 = vmul.f32 %v17428_v53, %v17428_v53  ;;  %v9007_v61 = vmul.f32 %v7529_v5, %v7529_v5  ;;  %v17430_v41 = vld [vmem:[#allocation86_spill] sm:$0xff] }
 0x539   : > { %v9157_v28 = vadd.f32 %v9057_v8, %v8957_v59  ;;  %v9058_v17 = vmul.f32 %v8897_v42, %v8897_v42  ;;  %13319 = vmatpush3.bf16.msra.mxu0 %v15047_v35  ;;  %13280 = vmatprep.subr.bf16.mxu1 %v15048_v46  ;;  %v8901_v34 = vadd.f32 %v8900_v50, %v8847_v0 }
 0x53a   : > { %v8849_v45 = vpop.f32.mrf.mxu0  ;;  %13320 = vmatprep.subr.bf16.mxu0 %v15050_v27  ;;  %v8982_v16 = vmul.f32 %v17430_v41, %v17430_v41 }
 0x53b   : > { %v9158_v10 = vadd.f32 %v9058_v17, %v8958_v38  ;;  %v8903_v14 = vadd.f32 %v8902_v47, %v8849_v45  ;;  %v9232_v31 = vpack.c.bf16 %v9157_v28, %v9132_v48  ;;  %v9082_v20 = vmul.f32 %v8901_v34, %v8901_v34 }
 0x53c   : > { %13281 = vmatpush3.bf16.msra.mxu1 %v15049_v9  ;;  %v8851_v29 = vpop.f32.mrf.mxu0 }
 0x53d   : > { %13321 = vmatpush3.bf16.msra.mxu0 %v15050_v27  ;;  %13282 = vmatprep.subr.bf16.mxu1 %v15051_v37  ;;  %v8905_v23 = vadd.f32 %v8904_v12, %v8851_v29  ;;  %v9233_v6 = vpack.c.bf16 %v9158_v10, %v9133_v18  ;;  %v9083_v63 = vmul.f32 %v8903_v14, %v8903_v14 }
 0x53e   : > { %11430 = vmatprep.mubr.bf16.mxu1 %v9232_v31  ;;  %v8853_v40 = vpop.f32.mrf.mxu0  ;;  %13322 = vmatprep.subr.bf16.mxu0 %v15053_v4  ;;  %v9182_v46 = vadd.f32 %v9082_v20, %v8982_v16 }
 0x53f   : > { %v8907_v7 = vadd.f32 %v8906_v52, %v8853_v40  ;;  %13326 = vmatprep.mubr.bf16.mxu0 %v9233_v6  ;;  %v9107_v50 = vmul.f32 %v8905_v23, %v8905_v23  ;;  %v9183_v35 = vadd.f32 %v9083_v63, %v8983_v60 }
 0x540   : > { %13283 = vmatpush3.bf16.msra.mxu1 %v15052_v25 }
 0x541   : > { %v9108_v15 = vmul.f32 %v8907_v7, %v8907_v7  ;;  %13323 = vmatpush3.bf16.msra.mxu0 %v15053_v4  ;;  %13284 = vmatprep.subr.bf16.mxu1 %v15054_v39  ;;  %v9207_v57 = vadd.f32 %v9107_v50, %v9007_v61 }
 0x542   : > { %13324 = vmatprep.subr.bf16.mxu0 %v15056_v43 }
 0x543   : > { %v9208_v24 = vadd.f32 %v9108_v15, %v9008_v44  ;;  %v9257_v56 = vpack.c.bf16 %v9207_v57, %v9182_v46 }
 0x544   : > { %13285 = vmatpush3.bf16.msra.mxu1 %v15055_v33 }
 0x545   : > { %v9258_v62 = vpack.c.bf16 %v9208_v24, %v9183_v35  ;;  %13325 = vmatpush3.bf16.msra.mxu0 %v15056_v43  ;;  %13286 = vmatprep.subr.bf16.mxu1 %v15057_v13 }
 0x548   : > { %13287 = vmatpush3.bf16.msra.mxu1 %v15058_v32  ;;  %13327 = vmatmul.mubr.bf16.vlgmr.msra.gmra.mxu0 %v9258_v62 }
 0x549   : > { %v12980_v47 = vpop.f32.mrf.mxu1 }
 0x54b   : > { %11431 = vmatmul.mubr.bf16.vlgmr.msra.gmra.mxu1 %v9231_v54  ;;  %v12981_v27 = vpop.f32.mrf.mxu1 }
 0x54c   : > { %11438 = vmatprep.mubr.bf16.mxu1 %v9257_v56  ;;  %v12982_v26 = vadd.f32 %v12981_v27, %v12980_v47 }
 0x54d   : > { %v12983_v11 = vpop.f32.mrf.mxu1 }
 0x54f   : > { %v12984_v59 = vpop.f32.mrf.mxu1 }
 0x550   : > { %v16941_v8 = vadd.f32 %v12984_v59, %v12983_v11 }
 0x551   : > { %v12986_v42 = vpop.f32.mrf.mxu1  ;;  %v13036_v1 = vpop.f32.mrf.mxu0 }
 0x553   : > { %11439 = vmatmul.mubr.bf16.gmra.mxu1 %v9256_v22  ;;  %v12987_v58 = vpop.f32.mrf.mxu1  ;;  %v13037_v54 = vpop.f32.mrf.mxu0 }
 0x554   : > { %v16946_v38 = vadd.f32 %v12987_v58, %v12986_v42  ;;  %v13038_v17 = vadd.f32 %v13037_v54, %v13036_v1 }
 0x555   : > { %v12989_v19 = vpop.f32.mrf.mxu1  ;;  %v16952_v2 = vpop.f32.mrf.mxu0 }
 0x557   : > { %v12990_v0 = vpop.f32.mrf.mxu1  ;;  %v16956_v3 = vpop.f32.mrf.mxu0 }
 0x558   : > { %v16948_v9 = vadd.f32 %v12990_v0, %v12989_v19 }
 0x559   : > { %v16958_v12 = vpop.f32.mrf.mxu0 }
 0x55b   : > { %v16962_v4 = vpop.f32.mrf.mxu0 }
 0x55d   : > { %v16964_v14 = vpop.f32.mrf.mxu0 }
 0x55f   : > { %v16968_v18 = vpop.f32.mrf.mxu0 }
 0x56a   : > { %v13008_v36 = vpop.f32.mrf.mxu1 }
 0x56c   : > { %v13009_v48 = vpop.f32.mrf.mxu1 }
 0x56d   : > { %v13010_v28 = vadd.f32 %v13009_v48, %v13008_v36 }
 0x56e   : > { %v16954_v55 = vpop.f32.mrf.mxu1 }
 0x56f   : > { %v10943_v37 = vadd.f32 %v13010_v28, %v12982_v26 }
 0x570   : > { %v13012_v22 = vpop.f32.mrf.mxu1 }
 0x571   : > { %v16950_v51 = vadd.f32 %v13038_v17, %v10943_v37  ;;  %v16970_v29 = vpop.f32.mrf.mxu0 }
 0x572   : > { %v16960_v45 = vpop.f32.mrf.mxu1 }
 0x573   : > { %v13093_v52 = vpop.f32.mrf.mxu0 }
 0x574   : > { %v13015_v10 = vpop.f32.mrf.mxu1 }
 0x575   : > { %v16972_v40 = vpop.f32.mrf.mxu0 }
 0x576   : > { %v16966_v31 = vpop.f32.mrf.mxu1 }
 0x577   : > { %v16974_v43 = vpop.f32.mrf.mxu0 }
 0x578   : > { %v13018_v25 = vpop.f32.mrf.mxu1 }
 0x579   : > { %v16976_v7 = vpop.f32.mrf.mxu0 }
 0x57b   : > { %v16978_v30 = vpop.f32.mrf.mxu0 }
 0x57d   : > { %v16980_v34 = vpop.f32.mrf.mxu0 }
 0x57f   : > { %v16984_v53 = vpop.f32.mrf.mxu0 }
 0x58a   : > { %v13064_v39 = vpop.f32.mrf.mxu1 }
 0x58c   : > { %v13065_v23 = vpop.f32.mrf.mxu1 }
 0x58e   : > { %v13067_v6 = vpop.f32.mrf.mxu1 }
 0x590   : > { %v13068_v63 = vpop.f32.mrf.mxu1 }
 0x592   : > { %v13070_v49 = vpop.f32.mrf.mxu1  ;;  %v16986_v60 = vpop.f32.mrf.mxu0 }
 0x594   : > { %v13071_v5 = vpop.f32.mrf.mxu1  ;;  %v16990_v15 = vpop.f32.mrf.mxu0 }
 0x596   : > { %v16982_v33 = vpop.f32.mrf.mxu1  ;;  %v16992_v50 = vpop.f32.mrf.mxu0 }
 0x598   : > { %v16988_v21 = vpop.f32.mrf.mxu1  ;;  %v16994_v24 = vpop.f32.mrf.mxu0 }
 0x59a   : > { %v16996_v20 = vpop.f32.mrf.mxu0 }
 0x59b   : > { %17431 = vst [vmem:[#allocation7_spill] sm:$0xff] %v16996_v20 }
 0x59c   : > { %v17000_v62 = vpop.f32.mrf.mxu0 }
 0x59d   : > { %17432 = vst [vmem:[#allocation43_spill] sm:$0xff] %v17000_v62 }
 0x59e   : > { %v17004_v16 = vpop.f32.mrf.mxu0 }
 0x59f   : > { %17433 = vst [vmem:[#allocation6_spill] sm:$0xff] %v17004_v16 }
 0x5a0   : > { %v17008_v46 = vpop.f32.mrf.mxu0 }
 0x5a1   : > { %17434 = vst [vmem:[#allocation45_spill] sm:$0xff] %v17008_v46 }
 0x5ab   : > { %v13120_v44 = vpop.f32.mrf.mxu1 }
 0x5ad   : > { %v13121_v13 = vpop.f32.mrf.mxu1 }
 0x5af   : > { %v13123_v35 = vpop.f32.mrf.mxu1 }
 0x5b1   : > { %v13124_v61 = vpop.f32.mrf.mxu1 }
 0x5b2   : > { %v17010_v47 = vpop.f32.mrf.mxu0 }
 0x5b3   : > { %v16998_v32 = vpop.f32.mrf.mxu1 }
 0x5b4   : > { %v17014_v26 = vpop.f32.mrf.mxu0 }
 0x5b5   : > { %v17002_v41 = vpop.f32.mrf.mxu1 }
 0x5b6   : > { %v17016_v59 = vpop.f32.mrf.mxu0 }
 0x5b7   : > { %v17006_v57 = vpop.f32.mrf.mxu1  ;;  %17435 = vst [vmem:[#allocation15_spill] sm:$0xff] %v17016_v59  ;;  %v13013_v59 = vadd.f32 %v13012_v22, %v16954_v55  ;;  %v13094_v55 = vadd.f32 %v13093_v52, %v16970_v29  ;;  %v13125_v52 = vadd.f32 %v13124_v61, %v13123_v35  ;;  %v13103_v61 = vadd.f32 %v16984_v53, %v16980_v34 }
 0x5b8   : > { %v17018_v58 = vpop.f32.mrf.mxu0 }
 0x5b9   : > { %v17012_v56 = vpop.f32.mrf.mxu1  ;;  %17436 = vst [vmem:[#allocation16_spill] sm:$0xff] %v17018_v58 }
 0x5ba   : > { %v17020_v0 = vpop.f32.mrf.mxu0 }
 0x5bb   : > { %17437 = vst [vmem:[#allocation112_spill] sm:$0xff] %v17020_v0 }
 0x5bc   : > { %v17024_v36 = vpop.f32.mrf.mxu0 }
 0x5bd   : > { %17439 = vst [vmem:[#allocation8_spill] sm:$0xff] %v17024_v36  ;;  %v13066_v36 = vadd.f32 %v13065_v23, %v13064_v39  ;;  %v13122_v23 = vadd.f32 %v13121_v13, %v13120_v44 }
 0x5be   : > { %v17028_v48 = vpop.f32.mrf.mxu0 }
 0x5bf   : > { %17441 = vst [vmem:[#allocation101_spill] sm:$0xff] %v17028_v48  ;;  %v10946_v48 = vadd.f32 %v13013_v59, %v16941_v8  ;;  %v13072_v59 = vadd.f32 %v13071_v5, %v13070_v49 }
 0x5c0   : > { %v17032_v17 = vpop.f32.mrf.mxu0 }
 0x5c1   : > { %17443 = vst [vmem:[#allocation94_spill] sm:$0xff] %v17032_v17  ;;  %v13041_v17 = vadd.f32 %v16956_v3, %v16952_v2 }
 0x5c3   : > { %v10995_v39 = vadd.f32 %v13041_v17, %v10946_v48 }
 0x5cb   : > { %v13176_v27 = vpop.f32.mrf.mxu1 }
 0x5cd   : > { %v13177_v11 = vpop.f32.mrf.mxu1 }
 0x5ce   : > { %v13178_v49 = vadd.f32 %v13177_v11, %v13176_v27 }
 0x5cf   : > { %v13179_v42 = vpop.f32.mrf.mxu1 }
 0x5d1   : > { %v13180_v19 = vpop.f32.mrf.mxu1 }
 0x5d3   : > { %v17022_v1 = vpop.f32.mrf.mxu1 }
 0x5d4   : > { %17438 = vst [vmem:[#allocation10_spill] sm:$0xff] %v17022_v1 }
 0x5d5   : > { %v17026_v54 = vpop.f32.mrf.mxu1 }
 0x5d6   : > { %17440 = vst [vmem:[#allocation103_spill] sm:$0xff] %v17026_v54 }
 0x5d7   : > { %v17030_v28 = vpop.f32.mrf.mxu1 }
 0x5d8   : > { %17442 = vst [vmem:[#allocation47_spill] sm:$0xff] %v17030_v28  ;;  %v13016_v28 = vadd.f32 %v13015_v10, %v16960_v45  ;;  %v13044_v45 = vadd.f32 %v16962_v4, %v16958_v12  ;;  %v13150_v12 = vadd.f32 %v16990_v15, %v16986_v60  ;;  %v13181_v15 = vadd.f32 %v13180_v19, %v13179_v42 }
 0x5d9   : > { %v17034_v37 = vpop.f32.mrf.mxu1 }
 0x5da   : > { %17444 = vst [vmem:[#allocation92_spill] sm:$0xff] %v17034_v37  ;;  %v13069_v37 = vadd.f32 %v13068_v63, %v13067_v6  ;;  %v10951_v22 = vadd.f32 %v13016_v28, %v16946_v38  ;;  %v13047_v38 = vadd.f32 %v16968_v18, %v16964_v14  ;;  %v13075_v6 = vadd.f32 %v16988_v21, %v16982_v33 }
 0x5db   : > { %v13128_v14 = vadd.f32 %v17002_v41, %v16998_v32  ;;  %v13153_v21 = vadd.f32 %v16994_v24, %v16992_v50  ;;  %v17448_v50 = vld [vmem:[#allocation43_spill] sm:$0xff]  ;;  %v17449_v42 = vld [vmem:[#allocation10_spill] sm:$0xff] }
 0x5dc   : > { %v11044_v10 = vadd.f32 %v13069_v37, %v10995_v39  ;;  %v17452_v37 = vld [vmem:[#allocation16_spill] sm:$0xff] }
 0x5dd   : > { %v17450_v19 = vld [vmem:[#allocation103_spill] sm:$0xff] }
 0x5de   : > { %v13184_v28 = vadd.f32 %v17450_v19, %v17449_v42 }
 0x5e7   : > { %v17036_v46 = vpop.f32.mrf.mxu0 }
 0x5e8   : > { %17445 = vst [vmem:[#allocation14_spill] sm:$0xff] %v17036_v46  ;;  %v11041_v46 = vadd.f32 %v13066_v36, %v16950_v51  ;;  %v17447_v36 = vld [vmem:[#allocation7_spill] sm:$0xff] }
 0x5e9   : > { %v17038_v58 = vpop.f32.mrf.mxu0  ;;  %v13156_v24 = vadd.f32 %v17448_v50, %v17447_v36 }
 0x5ea   : > { %17446 = vst [vmem:[#allocation9_spill] sm:$0xff] %v17038_v58  ;;  %v13019_v58 = vadd.f32 %v13018_v25, %v16966_v31  ;;  %v11090_v2 = vadd.f32 %v13094_v55, %v11041_v46  ;;  %v13097_v31 = vadd.f32 %v16974_v43, %v16972_v40  ;;  %v11000_v25 = vadd.f32 %v13044_v45, %v10951_v22  ;;  %v17456_v45 = vld [vmem:[#allocation92_spill] sm:$0xff] }
 0x5eb   : > { %v13232_v16 = vpop.f32.mrf.mxu1  ;;  %v17041_v1 = vpop.f32.mrf.mxu0  ;;  %v13100_v40 = vadd.f32 %v16978_v30, %v16976_v7  ;;  %v13131_v46 = vadd.f32 %v17012_v56, %v17006_v57  ;;  %v13206_v30 = vadd.f32 %v17014_v26, %v17010_v47  ;;  %v17451_v56 = vld [vmem:[#allocation15_spill] sm:$0xff] }
 0x5ec   : > { %v10954_v51 = vadd.f32 %v13019_v58, %v16948_v9  ;;  %v11139_v29 = vadd.f32 %v13122_v23, %v11090_v2  ;;  %v11049_v4 = vadd.f32 %v13072_v59, %v11000_v25  ;;  %v11093_v9 = vadd.f32 %v13097_v31, %v11044_v10  ;;  %v17455_v23 = vld [vmem:[#allocation47_spill] sm:$0xff] }
 0x5ed   : > { %v13233_v0 = vpop.f32.mrf.mxu1  ;;  %v17045_v62 = vpop.f32.mrf.mxu0  ;;  %v13209_v55 = vadd.f32 %v17452_v37, %v17451_v56  ;;  %v13187_v10 = vadd.f32 %v17456_v45, %v17455_v23 }
 0x5ee   : > { %v11003_v5 = vadd.f32 %v13047_v38, %v10954_v51  ;;  %v11142_v43 = vadd.f32 %v13125_v52, %v11093_v9  ;;  %v11188_v18 = vadd.f32 %v13150_v12, %v11139_v29  ;;  %v11098_v35 = vadd.f32 %v13100_v40, %v11049_v4  ;;  %v17459_v52 = vld [vmem:[#allocation112_spill] sm:$0xff] }
 0x5ef   : > { %v13235_v54 = vpop.f32.mrf.mxu1  ;;  %v17053_v8 = vpop.f32.mrf.mxu0  ;;  %v13234_v27 = vadd.f32 %v13233_v0, %v13232_v16  ;;  %v17453_v16 = vld [vmem:[#allocation6_spill] sm:$0xff]  ;;  %v17454_v0 = vld [vmem:[#allocation45_spill] sm:$0xff]  ;;  %v17460_v38 = vld [vmem:[#allocation8_spill] sm:$0xff] }
 0x5f0   : > { %v11052_v13 = vadd.f32 %v13075_v6, %v11003_v5  ;;  %v11237_v60 = vadd.f32 %v13178_v49, %v11188_v18  ;;  %v11147_v32 = vadd.f32 %v13128_v14, %v11098_v35  ;;  %v11191_v41 = vadd.f32 %v13153_v21, %v11142_v43  ;;  %v17457_v51 = vld [vmem:[#allocation14_spill] sm:$0xff]  ;;  %v17461_v21 = vld [vmem:[#allocation101_spill] sm:$0xff] }
 0x5f1   : > { %v13236_v20 = vpop.f32.mrf.mxu1  ;;  %v17064_v63 = vpop.f32.mrf.mxu0  ;;  %v13159_v39 = vadd.f32 %v17454_v0, %v17453_v16  ;;  %v17458_v31 = vld [vmem:[#allocation9_spill] sm:$0xff]  ;;  %v13212_v6 = vadd.f32 %v17460_v38, %v17459_v52  ;;  %v13265_v14 = vadd.f32 %v17045_v62, %v17041_v1  ;;  %v17462_v35 = vld [vmem:[#allocation94_spill] sm:$0xff] }
 0x5f2   : > { %v11101_v11 = vadd.f32 %v13103_v61, %v11052_v13  ;;  %v11240_v48 = vadd.f32 %v13181_v15, %v11191_v41  ;;  %v11286_v34 = vadd.f32 %v13206_v30, %v11237_v60  ;;  %v11196_v47 = vadd.f32 %v13156_v24, %v11147_v32 }
 0x5f3   : > { %v13238_v3 = vpop.f32.mrf.mxu1  ;;  %v13269_v33 = vpop.f32.mrf.mxu0  ;;  %v13237_v22 = vadd.f32 %v13236_v20, %v13235_v54  ;;  %v13262_v25 = vadd.f32 %v17458_v31, %v17457_v51  ;;  %v13215_v60 = vadd.f32 %v17462_v35, %v17461_v21 }
 0x5f4   : > { %v11150_v53 = vadd.f32 %v13131_v46, %v11101_v11  ;;  %v11335_v26 = vadd.f32 %v13234_v27, %v11286_v34  ;;  %v11245_v2 = vadd.f32 %v13184_v28, %v11196_v47  ;;  %v11289_v29 = vadd.f32 %v13209_v55, %v11240_v48 }
 0x5f5   : > { %v13239_v44 = vpop.f32.mrf.mxu1  ;;  %v13270_v58 = vpop.f32.mrf.mxu0  ;;  %v13268_v11 = vadd.f32 %v17064_v63, %v17053_v8 }
 0x5f6   : > { %v11199_v12 = vadd.f32 %v13159_v39, %v11150_v53  ;;  %v11338_v49 = vadd.f32 %v13237_v22, %v11289_v29  ;;  %v13240_v20 = vadd.f32 %v13239_v44, %v13238_v3  ;;  %v11384_v54 = vadd.f32 %v13262_v25, %v11335_v26 }
 0x5f7   : > { %v13241_v7 = vpop.f32.mrf.mxu1  ;;  %v11294_v18 = vadd.f32 %v13212_v6, %v11245_v2  ;;  %v13271_v19 = vadd.f32 %v13270_v58, %v13269_v33 }
 0x5f8   : > { %v11248_v40 = vadd.f32 %v13187_v10, %v11199_v12  ;;  %v11387_v32 = vadd.f32 %v13265_v14, %v11338_v49 }
 0x5f9   : > { %v13242_v17 = vpop.f32.mrf.mxu1  ;;  %v11343_v30 = vadd.f32 %v13240_v20, %v11294_v18 }
 0x5fa   : > { %v13243_v15 = vadd.f32 %v13242_v17, %v13241_v7  ;;  %v11297_v27 = vadd.f32 %v13215_v60, %v11248_v40 }
 0x5fb   : > { %v11392_v48 = vadd.f32 %v13268_v11, %v11343_v30 }
 0x5fc   : > { %v11346_v50 = vadd.f32 %v13243_v15, %v11297_v27 }
 0x5fe   : > { %v11395_v37 = vadd.f32 %v13271_v19, %v11346_v50 }
 0x608   : > { %v13328_v57 = vpop.f32.mrf.mxu0 }
 0x60a   : > { %v11481_v4 = vpop.f32.mrf.mxu0 }
 0x60b   : > { %v13288_v59 = vpop.f32.mrf.mxu1 }
 0x60c   : > { %v13329_v61 = vpop.f32.mrf.mxu0 }
 0x60d   : > { %v13289_v9 = vpop.f32.mrf.mxu1 }
 0x60e   : > { %v13290_v5 = vadd.f32 %v13289_v9, %v13288_v59  ;;  %v11484_v62 = vpop.f32.mrf.mxu0 }
 0x60f   : > { %v13291_v43 = vpop.f32.mrf.mxu1 }
 0x610   : > { %v11433_v13 = vadd.f32 %v13290_v5, %v11384_v54 }
 0x611   : > { %v13292_v46 = vpop.f32.mrf.mxu1 }
 0x612   : > { %v13293_v41 = vadd.f32 %v13292_v46, %v13291_v43  ;;  %v11482_v3 = vadd.f32 %v11481_v4, %v11433_v13 }
 0x613   : > { %v13294_v44 = vpop.f32.mrf.mxu1 }
 0x614   : > { %v11436_v36 = vadd.f32 %v13293_v41, %v11387_v32  ;;  %v11521_v28 = vrot.slane %v11482_v3, 2  ;;  %v11501_v17 = vrot.slane %v11482_v3, 1 }
 0x615   : > { %v13295_v1 = vpop.f32.mrf.mxu1 }
 0x616   : > { %v11485_v24 = vadd.f32 %v11484_v62, %v11436_v36  ;;  %v13296_v42 = vadd.f32 %v13295_v1, %v13294_v44 }
 0x617   : > { %v13297_v7 = vpop.f32.mrf.mxu1 }
 0x618   : > { %v11441_v34 = vadd.f32 %v13296_v42, %v11392_v48  ;;  %v11522_v53 = vrot.slane %v11485_v24, 2  ;;  %v11502_v56 = vrot.slane %v11485_v24, 1 }
 0x619   : > { %v13298_v55 = vpop.f32.mrf.mxu1 }
 0x61a   : > { %v11490_v47 = vadd.f32 %v13328_v57, %v11441_v34  ;;  %v13299_v26 = vadd.f32 %v13298_v55, %v13297_v7  ;;  %v11523_v8 = vsel %vm11520_vm7, %v11521_v28, %v11522_v53  ;;  %v11503_v63 = vsel %vm215_vm0, %v11501_v17, %v11502_v56 }
 0x61b   : > { %11528 = vrot.lane.b32.xlu1 %v11523_v8, %s15112_s29  ;;  %11508 = vrot.lane.b32.xlu0 %v11503_v63, %s15113_s30 }
 0x61c   : > { %v11444_v33 = vadd.f32 %v13299_v26, %v11395_v37  ;;  %v11504_v58 = vrot.slane %v11490_v47, 1  ;;  %v11524_v39 = vrot.slane %v11490_v47, 2 }
 0x61e   : > { %v11493_v22 = vadd.f32 %v13329_v61, %v11444_v33  ;;  %v11505_v16 = vsel %vm215_vm0, %v11502_v56, %v11504_v58  ;;  %v11525_v10 = vsel %vm11520_vm7, %v11522_v53, %v11524_v39 }
 0x61f   : > { %11510 = vrot.lane.b32.xlu1 %v11505_v16, %s15113_s30 }
 0x620   : > { %v11506_v0 = vrot.slane %v11493_v22, 1  ;;  %v11526_v23 = vrot.slane %v11493_v22, 2 }
 0x622   : > { %v11507_v57 = vsel %vm215_vm0, %v11504_v58, %v11506_v0  ;;  %v11527_v45 = vsel %vm11520_vm7, %v11524_v39, %v11526_v23 }
 0x623   : > { %11512 = vrot.lane.b32.xlu0 %v11507_v57, %s15113_s30  ;;  %11532 = vrot.lane.b32.xlu1 %v11527_v45, %s15112_s29 }
 0x627   : > { %11530 = vrot.lane.b32.xlu0 %v11525_v10, %s15112_s29 }
 0x68d   : > { %v11529_v59 = vpop.permute.xlu1 %11528  ;;  %v11509_v2 = vpop.permute.xlu0 %11508 }
 0x68e   : > { %v11517_v51 = vadd.f32 %v11509_v2, %v11482_v3 }
 0x690   : > { %v11537_v31 = vadd.f32 %v11529_v59, %v11517_v51 }
 0x691   : > { %v11511_v25 = vpop.permute.xlu1 %11510 }
 0x692   : > { %v11540_v29 = vand.u32 2147483647, %v11537_v31  ;;  %v11518_v4 = vadd.f32 %v11511_v25, %v11485_v24 }
 0x694   : > { %v11543_v52 = vadd.f32 1.0, %v11540_v29 }
 0x695   : > { %v11513_v38 = vpop.permute.xlu0 %11512  ;;  %v11533_v12 = vpop.permute.xlu1 %11532 }
 0x696   : > { %15059 = vlog2.f32 %v11543_v52  ;;  %v11519_v6 = vadd.f32 %v11513_v38, %v11490_v47 }
 0x698   : > { %v11539_v9 = vadd.f32 %v11533_v12, %v11519_v6 }
 0x699   : > { %v11531_v49 = vpop.permute.xlu0 %11530 }
 0x69a   : > { %v11542_v20 = vand.u32 2147483647, %v11539_v9  ;;  %v11538_v54 = vadd.f32 %v11531_v49, %v11518_v4 }
 0x69c   : > { %v11545_v5 = vadd.f32 1.0, %v11542_v20  ;;  %v11541_v40 = vand.u32 2147483647, %v11538_v54 }
 0x69e   : > { %15061 = vlog2.f32 %v11545_v5  ;;  %v11544_v43 = vadd.f32 1.0, %v11541_v40 }
 0x6a0   : > { %15063 = vlog2.f32 %v11544_v43 }
 0x6a3   : > { %v15060_v14 = vpop.eup %15059 }
 0x6a4   : > { %v11547_v18 = vmul.f32 0.6931472, %v15060_v14 }
 0x6a6   : > { %11553 = vst.msk [vmem:[#allocation2] sm:$0xff] %vm11552_vm8, %v11547_v18 }
 0x6ab   : > { %v15062_v13 = vpop.eup %15061 }
 0x6ac   : > { %v11551_v21 = vmul.f32 0.6931472, %v15062_v13 }
 0x6ad   : > { %v15064_v35 = vpop.eup %15063  ;;  %v11556_v15 = vld [vmem:[#allocation2] sm:$0xff] }
 0x6ae   : > { %11555 = vst.msk [vmem:[#allocation2 + $0x10] sm:$0xff] %vm11552_vm8, %v11551_v21  ;;  %v11549_v60 = vmul.f32 0.6931472, %v15064_v35  ;;  %v11559_v30 = vsel %vm11552_vm8, %v11556_v15, 0.0 }
 0x6b0   : > { %11554 = vst.msk [vmem:[#allocation2 + $0x8] sm:$0xff] %vm11552_vm8, %v11549_v60 }
 0x6b5   : > { %v11558_v46 = vld [vmem:[#allocation2 + $0x10] sm:$0x7f] }
 0x6b6   : > { %v11563_v27 = vsel %vm11562_vm9, %v11558_v46, 0.0 }
 0x6b7   : > { %v11557_v61 = vld [vmem:[#allocation2 + $0x8] sm:$0xff] }
 0x6b8   : > { %v11560_v32 = vsel %vm11552_vm8, %v11557_v61, 0.0 }
 0x6b9   : > { %v11561_v41 = vadd.f32 %v11560_v32, %v11559_v30 }
 0x6bb   : > { %v11564_v3 = vadd.f32 %v11563_v27, %v11561_v41 }
 0x6bd   : > { %v11565_v44 = vrot.slane %v11564_v3, 4 }
 0x6bf   : > { %v11566_v11 = vadd.f32 %v11565_v44, %v11564_v3 }
 0x6c1   : > { %v11567_v36 = vrot.slane %v11566_v11, 2 }
 0x6c3   : > { %v11568_v50 = vadd.f32 %v11567_v36, %v11566_v11 }
 0x6c5   : > { %v11569_v62 = vrot.slane %v11568_v50, 1 }
 0x6c7   : > { %v11570_v1 = vadd.f32 %v11569_v62, %v11568_v50 }
 0x6c9   : > { %v11572_v24 = vmul.f32 0.04347826, %v11570_v1 }
 0x6cb   : > { %v11573_v48 = vsub.f32 %v11556_v15, %v11572_v24  ;;  %v11574_v42 = vsub.f32 %v11557_v61, %v11572_v24  ;;  %v11575_v19 = vsub.f32 %v11558_v46, %v11572_v24 }
 0x6cd   : > { %v11576_v7 = vmul.f32 %v11573_v48, %v11573_v48  ;;  %v11577_v28 = vmul.f32 %v11574_v42, %v11574_v42  ;;  %v11578_v34 = vmul.f32 %v11575_v19, %v11575_v19 }
 0x6cf   : > { %v11579_v53 = vsel %vm11552_vm8, %v11576_v7, 0.0  ;;  %v11580_v17 = vsel %vm11552_vm8, %v11577_v28, 0.0  ;;  %v11582_v37 = vsel %vm11562_vm9, %v11578_v34, 0.0 }
 0x6d0   : > { %v11581_v56 = vadd.f32 %v11580_v17, %v11579_v53 }
 0x6d2   : > { %v11583_v55 = vadd.f32 %v11582_v37, %v11581_v56 }
 0x6d4   : > { %v11584_v47 = vrot.slane %v11583_v55, 4 }
 0x6d6   : > { %v11585_v26 = vadd.f32 %v11584_v47, %v11583_v55 }
 0x6d8   : > { %v11586_v8 = vrot.slane %v11585_v26, 2 }
 0x6da   : > { %v11587_v63 = vadd.f32 %v11586_v8, %v11585_v26 }
 0x6dc   : > { %v11588_v33 = vrot.slane %v11587_v63, 1 }
 0x6de   : > { %v11589_v58 = vadd.f32 %v11588_v33, %v11587_v63 }
 0x6e0   : > { %v11590_v22 = vmul.f32 0.04347826, %v11589_v58 }
 0x6e2   : > { %v11591_v16 = vadd.f32 1e-05, %v11590_v22 }
 0x6e4   : > { %15065 = vrsqrt.f32 %v11591_v16 }
 0x6f1   : > { %v15066_v0 = vpop.eup %15065 }
 0x6f2   : > { %v11593_v39 = vmul.f32 %v15066_v0, %v11573_v48  ;;  %v11594_v23 = vmul.f32 %v15066_v0, %v11574_v42  ;;  %v11595_v57 = vmul.f32 %v15066_v0, %v11575_v19 }
 0x6f4   : > { %11596 = vxpose.xlu0.b32.start [1/3] (short) (narrow) %v11593_v39, 40 }
 0x6f8   : > { %11597 = vxpose.xlu0.b32.cont [2/3] (short) (narrow) %v11594_v23, 40 }
 0x6fc   : > { %11598 = vxpose.xlu0.b32.end [3/3] (short) (narrow) %v11595_v57, 40 }
 0x770   : > { %v11612_v45 = vpop.trf.xlu0 }
 0x771   : > { %11629 = vst.msk [vmem:[%s185_s7] sm:$0xff] %vm11628_vm10, %v11612_v45 }
 0x774   : > { %v11613_v10 = vpop.trf.xlu0 }
 0x775   : > { %11630 = vst.msk [vmem:[%s185_s7 + $0x8] sm:$0xff] %vm11628_vm10, %v11613_v10 }
 0x778   : > { %v11614_v59 = vpop.trf.xlu0 }
 0x779   : > { %11631 = vst.msk [vmem:[%s185_s7 + $0x10] sm:$0xff] %vm11628_vm10, %v11614_v59 }
 0x77c   : > { %v11615_v2 = vpop.trf.xlu0 }
 0x77d   : > { %11632 = vst.msk [vmem:[%s185_s7 + $0x18] sm:$0xff] %vm11628_vm10, %v11615_v2 }
 0x780   : > { %v11616_v51 = vpop.trf.xlu0 }
 0x781   : > { %11633 = vst.msk [vmem:[%s185_s7 + $0x20] sm:$0xff] %vm11628_vm10, %v11616_v51 }
 0x782 PF: > { %s14_s12 = sadd.s32 1, %s15103_s12  }
 0x783   : > { %p11_p1 = scmp.ge.s32.totalorder %s14_s12, 4  }
 0x785   :  { %13 = sbr.rel (!%p11_p1) target bundleno = 1 (0x1), region = 67 }
 0x78a   :  { %11655 = vsyncpa [#allocation4], 1 }
 0x78b   :  { %11657 = vsyncpa [#allocation4 + $0x1], 1 }

</bundles_post_ra>
